<compile_context>
chip_gen: v7x
topology: tpu7x:2x2x1
jax: 0.10.0
libtpu: 0.0.40
codegen_flags: <defaults>
</compile_context>

<pallas_src>
import functools

import numpy as np
import jax
import jax.numpy as jnp
from jax import lax
from jax.experimental import pallas as pl
from jax.experimental.pallas import tpu as pltpu

LN_EPS = 1e-5


# --------------------------------------------------------------------------- #
# Kernel
# --------------------------------------------------------------------------- #
def _tabmixer_kernel(T, use_bf16, approx_gelu,
                     x_ref,
                     g1_ref, be1_ref, g2_ref, be2_ref,
                     w1a_ref, b1a_ref, w1b_ref, b1b_ref,
                     w2a_ref, b2a_ref, w2b_ref, b2b_ref,
                     o_ref):
    M, F = x_ref.shape                     # static block shape, M = block_b * T
    TB = M // T                            # batch elements folded into this block
    mm_dtype = jnp.bfloat16 if use_bf16 else jnp.float32
    inv_f = jnp.float32(1.0 / F)

    x = x_ref[...].astype(jnp.float32)     # residual / working copy, [M, F]

    def layer_norm(v, g, b):
        # Two-pass (mean, then centred variance): matches the PyTorch formulation
        # and avoids the E[x^2]-E[x]^2 cancellation.  rsqrt goes to the EUP.
        mu = jnp.sum(v, axis=-1, keepdims=True) * inv_f
        c = v - mu
        var = jnp.sum(c * c, axis=-1, keepdims=True) * inv_f
        return c * lax.rsqrt(var + jnp.float32(LN_EPS)) * g + b

    # ---- LayerNorm1 over features ------------------------------------------
    y = layer_norm(x, g1_ref[...], be1_ref[...])                        # [M, F]

    # ---- mlp2: feature mixing, batch+token folded into the M rows ----------
    h2 = jnp.dot(y.astype(mm_dtype), w2a_ref[...].astype(mm_dtype),
                 preferred_element_type=jnp.float32) + b2a_ref[...]
    h2 = jnp.maximum(h2, 0.0)                                           # [M, dff]
    x2 = jnp.dot(h2.astype(mm_dtype), w2b_ref[...].astype(mm_dtype),
                 preferred_element_type=jnp.float32) + b2b_ref[...]     # [M, F]

    # ---- mlp1: token mixing, ONE stacked matmul pair ------------------------
    # Lay the per-batch [T, F] tiles side by side along lanes -> [T, TB*F].
    # (Tile-aligned slices + a lane concat; with T=8, F=128 this is a vreg
    #  relabel.)  Weights stay in PyTorch [out, in] layout, so the mixing is
    #  two plain left-multiplies with no activation transpose.
    ys = jnp.concatenate([y[bb * T:(bb + 1) * T, :] for bb in range(TB)], axis=1)
    h1 = jnp.dot(w1a_ref[...].astype(mm_dtype), ys.astype(mm_dtype),
                 preferred_element_type=jnp.float32) + b1a_ref[...]     # [dff, TB*F]
    h1 = jnp.maximum(h1, 0.0)
    ot = jnp.dot(w1b_ref[...].astype(mm_dtype), h1.astype(mm_dtype),
                 preferred_element_type=jnp.float32) + b1b_ref[...]     # [T, TB*F]
    # Un-stack back to [M, F] (sublane concat of tile-aligned lane slices).
    yt = jnp.concatenate([ot[:, bb * F:(bb + 1) * F] for bb in range(TB)], axis=0)

    if approx_gelu:                         # tanh GELU (EUP) -- optional, v5e win
        gelu = jax.nn.gelu(yt, approximate=True)
    else:                                   # exact erf GELU == PyTorch default
        gelu = 0.5 * yt * (1.0 + lax.erf(yt * jnp.float32(0.7071067811865476)))

    # ---- combine, LayerNorm2, SiLU, residual --------------------------------
    out = x2 * gelu
    out = layer_norm(out, g2_ref[...], be2_ref[...])
    out = out * jax.nn.sigmoid(out) + x
    o_ref[...] = out.astype(o_ref.dtype)


# --------------------------------------------------------------------------- #
# Hardware introspection (best-effort; never hides kernel errors)
# --------------------------------------------------------------------------- #
def _device_kind():
    try:
        return jax.devices()[0].device_kind.lower()
    except Exception:
        return ""


def _num_tensorcores():
    """TensorCores one 'parallel' grid axis is sharded across on this device."""
    kind = _device_kind()
    # megacore v4 / v5p and v7x expose 2 TensorCores per device
    if ("v4" in kind) or ("v5p" in kind) or ("7" in kind):
        return 2
    return 1


def _vmem_capacity_bytes():
    try:
        info = pltpu.get_tpu_info()
        for attr in ("vmem_capacity_bytes", "vmem_bytes", "vmem_size_bytes"):
            v = getattr(info, attr, None)
            if v:
                return int(v)
    except Exception:
        pass
    return (64 << 20) if "7" in _device_kind() else (128 << 20)


def _pick_block_b(B, T, num_cores, max_rows=256):
    """Largest batch block with block_b*T <= max_rows (MXU/sublane fill without
    blowing vreg pressure), subject to (8,128) tiling legality; on multi-core
    chips prefer a grid count that is a multiple of the core count."""
    legal = [d for d in range(1, B + 1)
             if B % d == 0 and ((d * T) % 8 == 0 or d == B)]
    fitting = [d for d in legal if d * T <= max_rows] or [min(legal)]
    if num_cores > 1:
        balanced = [d for d in fitting if (B // d) % num_cores == 0]
        if balanced:
            return max(balanced)
    return max(fitting)


# --------------------------------------------------------------------------- #
# Wrapper
# --------------------------------------------------------------------------- #
def tabmixer(x, params, block_b=None, use_bf16_matmul=False, approx_gelu=False):
    """x: [B, T, F] float32.  params: dict from init_params()."""
    B, T, F = x.shape
    dff = params["w2a"].shape[1]
    num_cores = _num_tensorcores()
    if block_b is None:
        block_b = _pick_block_b(B, T, num_cores)
    assert B % block_b == 0, "block_b must divide the batch size"
    grid_b = B // block_b
    M = block_b * T
    assert (M % 8 == 0) or grid_b == 1, "row block must be sublane (8) aligned"

    weight_args = (params["g1"], params["be1"], params["g2"], params["be2"],
                   params["w1a"], params["b1a"], params["w1b"], params["b1b"],
                   params["w2a"], params["b2a"], params["w2b"], params["b2b"])

    # Activations as a contiguous lane-dense 2-D slab: [B*T, F], block (M, F).
    x2d = x.reshape(B * T, F)
    x_spec = pl.BlockSpec((M, F), lambda b: (b, 0))
    o_spec = pl.BlockSpec((M, F), lambda b: (b, 0))
    # Weights / LN params: full-array blocks with constant index maps (DMA'd once).
    in_specs = [x_spec] + [pl.BlockSpec(w.shape, lambda b: (0, 0))
                           for w in weight_args]

    # VMEM budget from the real footprint, capped per TPU generation
    # (~96 MiB of the 128 MiB chips, ~48 MiB on v7x's 64 MiB).
    itemsize = x.dtype.itemsize
    act_bytes = M * F * itemsize
    w_bytes = sum(int(np.prod(w.shape)) * w.dtype.itemsize for w in weight_args)
    interm_bytes = 4 * (6 * M * F + dff * block_b * F + 2 * T * block_b * F + M * dff)
    footprint = 4 * act_bytes + 2 * w_bytes + interm_bytes
    vmem_cap = int(0.75 * _vmem_capacity_bytes())
    vmem_limit = int(min(vmem_cap, max(footprint + (16 << 20), 32 << 20)))

    kernel = functools.partial(_tabmixer_kernel, T, use_bf16_matmul, approx_gelu)

    out2d = pl.pallas_call(
        kernel,
        out_shape=jax.ShapeDtypeStruct((B * T, F), x.dtype),
        grid_spec=pltpu.PrefetchScalarGridSpec(
            num_scalar_prefetch=0,
            grid=(grid_b,),
            in_specs=in_specs,
            out_specs=o_spec),
        compiler_params=pltpu.CompilerParams(
            dimension_semantics=("parallel",),
            vmem_limit_bytes=vmem_limit),
    )(x2d, *weight_args)
    return out2d.reshape(B, T, F)


# --------------------------------------------------------------------------- #
# Parameters & pure-JAX reference
# --------------------------------------------------------------------------- #
def init_params(key, dim_tokens, dim_features, dim_feedforward):
    T, F, dff = dim_tokens, dim_features, dim_feedforward
    ks = jax.random.split(key, 8)
    s = 0.05
    return {
        # LayerNorm params (torch default init: gamma=1, beta=0)
        "g1": jnp.ones((1, F), jnp.float32),
        "be1": jnp.zeros((1, F), jnp.float32),
        "g2": jnp.ones((1, F), jnp.float32),
        "be2": jnp.zeros((1, F), jnp.float32),
        # mlp1 Linear(T->dff): PyTorch [out, in] layout, bias as column
        "w1a": s * jax.random.normal(ks[0], (dff, T), jnp.float32),
        "b1a": s * jax.random.normal(ks[1], (dff, 1), jnp.float32),
        # mlp1 Linear(dff->T): PyTorch [out, in] layout, bias as column
        "w1b": s * jax.random.normal(ks[2], (T, dff), jnp.float32),
        "b1b": s * jax.random.normal(ks[3], (T, 1), jnp.float32),
        # mlp2 Linear(F->dff), Linear(dff->F): stored transposed for y @ W
        "w2a": s * jax.random.normal(ks[4], (F, dff), jnp.float32),
        "b2a": s * jax.random.normal(ks[5], (1, dff), jnp.float32),
        "w2b": s * jax.random.normal(ks[6], (dff, F), jnp.float32),
        "b2b": s * jax.random.normal(ks[7], (1, F), jnp.float32),
    }


def tabmixer_ref(x, p):
    """Pure-JAX reference mirroring the PyTorch forward."""
    def ln(v, g, b):
        mu = jnp.mean(v, axis=-1, keepdims=True)
        var = jnp.mean((v - mu) ** 2, axis=-1, keepdims=True)
        return (v - mu) / jnp.sqrt(var + LN_EPS) * g + b

    x_res = x
    y = ln(x, p["g1"], p["be1"])
    yt = jnp.swapaxes(y, -1, -2)                                   # [..., F, T]
    yt = jnp.maximum(yt @ p["w1a"].T + p["b1a"].reshape(1, -1), 0.0)
    yt = yt @ p["w1b"].T + p["b1b"].reshape(1, -1)
    yt = jnp.swapaxes(yt, -1, -2)                                  # [..., T, F]
    yt = 0.5 * yt * (1.0 + lax.erf(yt / jnp.sqrt(2.0)))
    x2 = jnp.maximum(y @ p["w2a"] + p["b2a"], 0.0) @ p["w2b"] + p["b2b"]
    xo = x2 * yt
    xo = ln(xo, p["g2"], p["be2"])
    xo = xo * jax.nn.sigmoid(xo)
    return xo + x_res


if __name__ == "__main__":
    # batch=16, dim_tokens=8, dim_features=128 (lane-dense), dim_feedforward=256
    # -> single-core chips: one (128, 128) block; 2-core chips: grid of 2 x (64, 128)
    B, T, F, DFF = 16, 8, 128, 256
    key = jax.random.PRNGKey(0)
    kx, kp = jax.random.split(key)
    x = jax.random.normal(kx, (B, T, F), jnp.float32)
    params = init_params(kp, T, F, DFF)

    # f32 path: exact PyTorch parity
    out = jax.block_until_ready(tabmixer(x, params))
    ref = tabmixer_ref(x, params)
    np.testing.assert_allclose(np.asarray(out), np.asarray(ref),
                               rtol=1e-4, atol=1e-5)

    # optional bf16-MXU path (native on v5e/v6e/v7x): loose sanity check only,
    # since it intentionally relaxes exact f32 parity.
    out_bf16 = jax.block_until_ready(tabmixer(x, params, use_bf16_matmul=True))
    max_err = float(jnp.max(jnp.abs(out_bf16 - ref)))
    assert max_err < 0.5, f"bf16 matmul path drifted too far: {max_err}"

    print("KERNEL_OK")
</pallas_src>

<mosaic_0001>
module attributes {stable_mosaic.version = 11 : i64} {
  func.func @_tabmixer_kernel(%arg0: i32, %arg1: memref<128x128xf32, #tpu.memory_space<vmem>>, %arg2: memref<1x128xf32, #tpu.memory_space<vmem>>, %arg3: memref<1x128xf32, #tpu.memory_space<vmem>>, %arg4: memref<1x128xf32, #tpu.memory_space<vmem>>, %arg5: memref<1x128xf32, #tpu.memory_space<vmem>>, %arg6: memref<256x8xf32, #tpu.memory_space<vmem>>, %arg7: memref<256x1xf32, #tpu.memory_space<vmem>>, %arg8: memref<8x256xf32, #tpu.memory_space<vmem>>, %arg9: memref<8x1xf32, #tpu.memory_space<vmem>>, %arg10: memref<128x256xf32, #tpu.memory_space<vmem>>, %arg11: memref<1x256xf32, #tpu.memory_space<vmem>>, %arg12: memref<256x128xf32, #tpu.memory_space<vmem>>, %arg13: memref<1x128xf32, #tpu.memory_space<vmem>>, %arg14: memref<128x128xf32, #tpu.memory_space<vmem>>) attributes {dimension_semantics = [#tpu.dimension_semantics<parallel>], iteration_bounds = array<i64: 1>, scalar_prefetch = 0 : i64, scratch_operands = 0 : i64, tpu.core_type = #tpu.core_type<tc>, window_params = [{transform_indices = @transform_0, window_bounds = array<i64: 128, 128>}, {pipeline_mode = #tpu.pipeline_mode<synchronous>, transform_indices = @transform_1, window_bounds = array<i64: 1, 128>}, {pipeline_mode = #tpu.pipeline_mode<synchronous>, transform_indices = @transform_2, window_bounds = array<i64: 1, 128>}, {pipeline_mode = #tpu.pipeline_mode<synchronous>, transform_indices = @transform_3, window_bounds = array<i64: 1, 128>}, {pipeline_mode = #tpu.pipeline_mode<synchronous>, transform_indices = @transform_4, window_bounds = array<i64: 1, 128>}, {pipeline_mode = #tpu.pipeline_mode<synchronous>, transform_indices = @transform_5, window_bounds = array<i64: 256, 8>}, {pipeline_mode = #tpu.pipeline_mode<synchronous>, transform_indices = @transform_6, window_bounds = array<i64: 256, 1>}, {pipeline_mode = #tpu.pipeline_mode<synchronous>, transform_indices = @transform_7, window_bounds = array<i64: 8, 256>}, {pipeline_mode = #tpu.pipeline_mode<synchronous>, transform_indices = @transform_8, window_bounds = array<i64: 8, 1>}, {pipeline_mode = #tpu.pipeline_mode<synchronous>, transform_indices = @transform_9, window_bounds = array<i64: 128, 256>}, {pipeline_mode = #tpu.pipeline_mode<synchronous>, transform_indices = @transform_10, window_bounds = array<i64: 1, 256>}, {pipeline_mode = #tpu.pipeline_mode<synchronous>, transform_indices = @transform_11, window_bounds = array<i64: 256, 128>}, {pipeline_mode = #tpu.pipeline_mode<synchronous>, transform_indices = @transform_12, window_bounds = array<i64: 1, 128>}, {transform_indices = @transform_13, window_bounds = array<i64: 128, 128>}]} {
    %c0 = arith.constant 0 : index
    %c0_0 = arith.constant 0 : index
    %0 = vector.load %arg1[%c0, %c0_0] : memref<128x128xf32, #tpu.memory_space<vmem>>, vector<128x128xf32>
    %c0_1 = arith.constant 0 : index
    %c0_2 = arith.constant 0 : index
    %1 = vector.load %arg2[%c0_1, %c0_2] : memref<1x128xf32, #tpu.memory_space<vmem>>, vector<1x128xf32>
    %c0_3 = arith.constant 0 : index
    %c0_4 = arith.constant 0 : index
    %2 = vector.load %arg3[%c0_3, %c0_4] : memref<1x128xf32, #tpu.memory_space<vmem>>, vector<1x128xf32>
    %cst = arith.constant dense<0.000000e+00> : vector<128xf32>
    %3 = vector.multi_reduction <add>, %0, %cst [1] : vector<128x128xf32> to vector<128xf32>
    %4 = vector.shape_cast %3 : vector<128xf32> to vector<128x1xf32>
    %cst_5 = arith.constant 7.812500e-03 : f32
    %5 = vector.broadcast %cst_5 : f32 to vector<128x1xf32>
    %6 = arith.mulf %4, %5 : vector<128x1xf32>
    %7 = vector.broadcast %6 : vector<128x1xf32> to vector<128x128xf32>
    %8 = arith.subf %0, %7 : vector<128x128xf32>
    %9 = arith.mulf %8, %8 : vector<128x128xf32>
    %cst_6 = arith.constant dense<0.000000e+00> : vector<128xf32>
    %10 = vector.multi_reduction <add>, %9, %cst_6 [1] : vector<128x128xf32> to vector<128xf32>
    %11 = vector.shape_cast %10 : vector<128xf32> to vector<128x1xf32>
    %cst_7 = arith.constant 7.812500e-03 : f32
    %12 = vector.broadcast %cst_7 : f32 to vector<128x1xf32>
    %13 = arith.mulf %11, %12 : vector<128x1xf32>
    %cst_8 = arith.constant 9.99999974E-6 : f32
    %14 = vector.broadcast %cst_8 : f32 to vector<128x1xf32>
    %15 = arith.addf %13, %14 : vector<128x1xf32>
    %16 = math.rsqrt %15 : vector<128x1xf32>
    %17 = vector.broadcast %16 : vector<128x1xf32> to vector<128x128xf32>
    %18 = arith.mulf %8, %17 : vector<128x128xf32>
    %19 = vector.broadcast %1 : vector<1x128xf32> to vector<128x128xf32>
    %20 = arith.mulf %18, %19 : vector<128x128xf32>
    %21 = vector.broadcast %2 : vector<1x128xf32> to vector<128x128xf32>
    %22 = arith.addf %20, %21 : vector<128x128xf32>
    %c0_9 = arith.constant 0 : index
    %c0_10 = arith.constant 0 : index
    %23 = vector.load %arg10[%c0_9, %c0_10] : memref<128x256xf32, #tpu.memory_space<vmem>>, vector<128x256xf32>
    %cst_11 = arith.constant dense<0.000000e+00> : vector<128x256xf32>
    %24 = tpu.matmul %22, %23, %cst_11 {dimension_numbers = #tpu.dot_dimension_numbers<[1], [0], [0], [1], [0, 0, 1, 1], [], []>} : vector<128x128xf32>, vector<128x256xf32>, vector<128x256xf32> -> vector<128x256xf32>
    %c0_12 = arith.constant 0 : index
    %c0_13 = arith.constant 0 : index
    %25 = vector.load %arg11[%c0_12, %c0_13] : memref<1x256xf32, #tpu.memory_space<vmem>>, vector<1x256xf32>
    %26 = vector.broadcast %25 : vector<1x256xf32> to vector<128x256xf32>
    %27 = arith.addf %24, %26 : vector<128x256xf32>
    %cst_14 = arith.constant 0.000000e+00 : f32
    %28 = vector.broadcast %cst_14 : f32 to vector<128x256xf32>
    %29 = arith.maximumf %27, %28 : vector<128x256xf32>
    %c0_15 = arith.constant 0 : index
    %c0_16 = arith.constant 0 : index
    %30 = vector.load %arg12[%c0_15, %c0_16] : memref<256x128xf32, #tpu.memory_space<vmem>>, vector<256x128xf32>
    %cst_17 = arith.constant dense<0.000000e+00> : vector<128x128xf32>
    %31 = tpu.matmul %29, %30, %cst_17 {dimension_numbers = #tpu.dot_dimension_numbers<[1], [0], [0], [1], [0, 0, 1, 1], [], []>} : vector<128x256xf32>, vector<256x128xf32>, vector<128x128xf32> -> vector<128x128xf32>
    %c0_18 = arith.constant 0 : index
    %c0_19 = arith.constant 0 : index
    %32 = vector.load %arg13[%c0_18, %c0_19] : memref<1x128xf32, #tpu.memory_space<vmem>>, vector<1x128xf32>
    %33 = vector.broadcast %32 : vector<1x128xf32> to vector<128x128xf32>
    %34 = arith.addf %31, %33 : vector<128x128xf32>
    %35 = vector.extract_strided_slice %22 {offsets = [0, 0], sizes = [8, 128], strides = [1, 1]} : vector<128x128xf32> to vector<8x128xf32>
    %36 = vector.extract_strided_slice %22 {offsets = [8, 0], sizes = [8, 128], strides = [1, 1]} : vector<128x128xf32> to vector<8x128xf32>
    %37 = vector.extract_strided_slice %22 {offsets = [16, 0], sizes = [8, 128], strides = [1, 1]} : vector<128x128xf32> to vector<8x128xf32>
    %38 = vector.extract_strided_slice %22 {offsets = [24, 0], sizes = [8, 128], strides = [1, 1]} : vector<128x128xf32> to vector<8x128xf32>
    %39 = vector.extract_strided_slice %22 {offsets = [32, 0], sizes = [8, 128], strides = [1, 1]} : vector<128x128xf32> to vector<8x128xf32>
    %40 = vector.extract_strided_slice %22 {offsets = [40, 0], sizes = [8, 128], strides = [1, 1]} : vector<128x128xf32> to vector<8x128xf32>
    %41 = vector.extract_strided_slice %22 {offsets = [48, 0], sizes = [8, 128], strides = [1, 1]} : vector<128x128xf32> to vector<8x128xf32>
    %42 = vector.extract_strided_slice %22 {offsets = [56, 0], sizes = [8, 128], strides = [1, 1]} : vector<128x128xf32> to vector<8x128xf32>
    %43 = vector.extract_strided_slice %22 {offsets = [64, 0], sizes = [8, 128], strides = [1, 1]} : vector<128x128xf32> to vector<8x128xf32>
    %44 = vector.extract_strided_slice %22 {offsets = [72, 0], sizes = [8, 128], strides = [1, 1]} : vector<128x128xf32> to vector<8x128xf32>
    %45 = vector.extract_strided_slice %22 {offsets = [80, 0], sizes = [8, 128], strides = [1, 1]} : vector<128x128xf32> to vector<8x128xf32>
    %46 = vector.extract_strided_slice %22 {offsets = [88, 0], sizes = [8, 128], strides = [1, 1]} : vector<128x128xf32> to vector<8x128xf32>
    %47 = vector.extract_strided_slice %22 {offsets = [96, 0], sizes = [8, 128], strides = [1, 1]} : vector<128x128xf32> to vector<8x128xf32>
    %48 = vector.extract_strided_slice %22 {offsets = [104, 0], sizes = [8, 128], strides = [1, 1]} : vector<128x128xf32> to vector<8x128xf32>
    %49 = vector.extract_strided_slice %22 {offsets = [112, 0], sizes = [8, 128], strides = [1, 1]} : vector<128x128xf32> to vector<8x128xf32>
    %50 = vector.extract_strided_slice %22 {offsets = [120, 0], sizes = [8, 128], strides = [1, 1]} : vector<128x128xf32> to vector<8x128xf32>
    %51 = tpu.concatenate %35, %36, %37, %38, %39, %40, %41, %42, %43, %44, %45, %46, %47, %48, %49, %50 in 1 : vector<8x128xf32>, vector<8x128xf32>, vector<8x128xf32>, vector<8x128xf32>, vector<8x128xf32>, vector<8x128xf32>, vector<8x128xf32>, vector<8x128xf32>, vector<8x128xf32>, vector<8x128xf32>, vector<8x128xf32>, vector<8x128xf32>, vector<8x128xf32>, vector<8x128xf32>, vector<8x128xf32>, vector<8x128xf32> -> vector<8x2048xf32>
    %c0_20 = arith.constant 0 : index
    %c0_21 = arith.constant 0 : index
    %52 = vector.load %arg6[%c0_20, %c0_21] : memref<256x8xf32, #tpu.memory_space<vmem>>, vector<256x8xf32>
    %cst_22 = arith.constant dense<0.000000e+00> : vector<256x2048xf32>
    %53 = tpu.matmul %52, %51, %cst_22 {dimension_numbers = #tpu.dot_dimension_numbers<[1], [0], [0], [1], [0, 0, 1, 1], [], []>} : vector<256x8xf32>, vector<8x2048xf32>, vector<256x2048xf32> -> vector<256x2048xf32>
    %c0_23 = arith.constant 0 : index
    %c0_24 = arith.constant 0 : index
    %54 = vector.load %arg7[%c0_23, %c0_24] : memref<256x1xf32, #tpu.memory_space<vmem>>, vector<256x1xf32>
    %55 = vector.broadcast %54 : vector<256x1xf32> to vector<256x2048xf32>
    %56 = arith.addf %53, %55 : vector<256x2048xf32>
    %cst_25 = arith.constant 0.000000e+00 : f32
    %57 = vector.broadcast %cst_25 : f32 to vector<256x2048xf32>
    %58 = arith.maximumf %56, %57 : vector<256x2048xf32>
    %c0_26 = arith.constant 0 : index
    %c0_27 = arith.constant 0 : index
    %59 = vector.load %arg8[%c0_26, %c0_27] : memref<8x256xf32, #tpu.memory_space<vmem>>, vector<8x256xf32>
    %cst_28 = arith.constant dense<0.000000e+00> : vector<8x2048xf32>
    %60 = tpu.matmul %59, %58, %cst_28 {dimension_numbers = #tpu.dot_dimension_numbers<[1], [0], [0], [1], [0, 0, 1, 1], [], []>} : vector<8x256xf32>, vector<256x2048xf32>, vector<8x2048xf32> -> vector<8x2048xf32>
    %c0_29 = arith.constant 0 : index
    %c0_30 = arith.constant 0 : index
    %61 = vector.load %arg9[%c0_29, %c0_30] : memref<8x1xf32, #tpu.memory_space<vmem>>, vector<8x1xf32>
    %62 = vector.broadcast %61 : vector<8x1xf32> to vector<8x2048xf32>
    %63 = arith.addf %60, %62 : vector<8x2048xf32>
    %64 = vector.extract_strided_slice %63 {offsets = [0, 0], sizes = [8, 128], strides = [1, 1]} : vector<8x2048xf32> to vector<8x128xf32>
    %65 = vector.extract_strided_slice %63 {offsets = [0, 128], sizes = [8, 128], strides = [1, 1]} : vector<8x2048xf32> to vector<8x128xf32>
    %66 = vector.extract_strided_slice %63 {offsets = [0, 256], sizes = [8, 128], strides = [1, 1]} : vector<8x2048xf32> to vector<8x128xf32>
    %67 = vector.extract_strided_slice %63 {offsets = [0, 384], sizes = [8, 128], strides = [1, 1]} : vector<8x2048xf32> to vector<8x128xf32>
    %68 = vector.extract_strided_slice %63 {offsets = [0, 512], sizes = [8, 128], strides = [1, 1]} : vector<8x2048xf32> to vector<8x128xf32>
    %69 = vector.extract_strided_slice %63 {offsets = [0, 640], sizes = [8, 128], strides = [1, 1]} : vector<8x2048xf32> to vector<8x128xf32>
    %70 = vector.extract_strided_slice %63 {offsets = [0, 768], sizes = [8, 128], strides = [1, 1]} : vector<8x2048xf32> to vector<8x128xf32>
    %71 = vector.extract_strided_slice %63 {offsets = [0, 896], sizes = [8, 128], strides = [1, 1]} : vector<8x2048xf32> to vector<8x128xf32>
    %72 = vector.extract_strided_slice %63 {offsets = [0, 1024], sizes = [8, 128], strides = [1, 1]} : vector<8x2048xf32> to vector<8x128xf32>
    %73 = vector.extract_strided_slice %63 {offsets = [0, 1152], sizes = [8, 128], strides = [1, 1]} : vector<8x2048xf32> to vector<8x128xf32>
    %74 = vector.extract_strided_slice %63 {offsets = [0, 1280], sizes = [8, 128], strides = [1, 1]} : vector<8x2048xf32> to vector<8x128xf32>
    %75 = vector.extract_strided_slice %63 {offsets = [0, 1408], sizes = [8, 128], strides = [1, 1]} : vector<8x2048xf32> to vector<8x128xf32>
    %76 = vector.extract_strided_slice %63 {offsets = [0, 1536], sizes = [8, 128], strides = [1, 1]} : vector<8x2048xf32> to vector<8x128xf32>
    %77 = vector.extract_strided_slice %63 {offsets = [0, 1664], sizes = [8, 128], strides = [1, 1]} : vector<8x2048xf32> to vector<8x128xf32>
    %78 = vector.extract_strided_slice %63 {offsets = [0, 1792], sizes = [8, 128], strides = [1, 1]} : vector<8x2048xf32> to vector<8x128xf32>
    %79 = vector.extract_strided_slice %63 {offsets = [0, 1920], sizes = [8, 128], strides = [1, 1]} : vector<8x2048xf32> to vector<8x128xf32>
    %80 = tpu.concatenate %64, %65, %66, %67, %68, %69, %70, %71, %72, %73, %74, %75, %76, %77, %78, %79 in 0 : vector<8x128xf32>, vector<8x128xf32>, vector<8x128xf32>, vector<8x128xf32>, vector<8x128xf32>, vector<8x128xf32>, vector<8x128xf32>, vector<8x128xf32>, vector<8x128xf32>, vector<8x128xf32>, vector<8x128xf32>, vector<8x128xf32>, vector<8x128xf32>, vector<8x128xf32>, vector<8x128xf32>, vector<8x128xf32> -> vector<128x128xf32>
    %cst_31 = arith.constant 5.000000e-01 : f32
    %81 = vector.broadcast %cst_31 : f32 to vector<128x128xf32>
    %82 = arith.mulf %81, %80 : vector<128x128xf32>
    %cst_32 = arith.constant 0.707106769 : f32
    %83 = vector.broadcast %cst_32 : f32 to vector<128x128xf32>
    %84 = arith.mulf %80, %83 : vector<128x128xf32>
    %85 = math.erf %84 : vector<128x128xf32>
    %cst_33 = arith.constant 1.000000e+00 : f32
    %86 = vector.broadcast %cst_33 : f32 to vector<128x128xf32>
    %87 = arith.addf %86, %85 : vector<128x128xf32>
    %88 = arith.mulf %82, %87 : vector<128x128xf32>
    %89 = arith.mulf %34, %88 : vector<128x128xf32>
    %c0_34 = arith.constant 0 : index
    %c0_35 = arith.constant 0 : index
    %90 = vector.load %arg4[%c0_34, %c0_35] : memref<1x128xf32, #tpu.memory_space<vmem>>, vector<1x128xf32>
    %c0_36 = arith.constant 0 : index
    %c0_37 = arith.constant 0 : index
    %91 = vector.load %arg5[%c0_36, %c0_37] : memref<1x128xf32, #tpu.memory_space<vmem>>, vector<1x128xf32>
    %cst_38 = arith.constant dense<0.000000e+00> : vector<128xf32>
    %92 = vector.multi_reduction <add>, %89, %cst_38 [1] : vector<128x128xf32> to vector<128xf32>
    %93 = vector.shape_cast %92 : vector<128xf32> to vector<128x1xf32>
    %cst_39 = arith.constant 7.812500e-03 : f32
    %94 = vector.broadcast %cst_39 : f32 to vector<128x1xf32>
    %95 = arith.mulf %93, %94 : vector<128x1xf32>
    %96 = vector.broadcast %95 : vector<128x1xf32> to vector<128x128xf32>
    %97 = arith.subf %89, %96 : vector<128x128xf32>
    %98 = arith.mulf %97, %97 : vector<128x128xf32>
    %cst_40 = arith.constant dense<0.000000e+00> : vector<128xf32>
    %99 = vector.multi_reduction <add>, %98, %cst_40 [1] : vector<128x128xf32> to vector<128xf32>
    %100 = vector.shape_cast %99 : vector<128xf32> to vector<128x1xf32>
    %cst_41 = arith.constant 7.812500e-03 : f32
    %101 = vector.broadcast %cst_41 : f32 to vector<128x1xf32>
    %102 = arith.mulf %100, %101 : vector<128x1xf32>
    %cst_42 = arith.constant 9.99999974E-6 : f32
    %103 = vector.broadcast %cst_42 : f32 to vector<128x1xf32>
    %104 = arith.addf %102, %103 : vector<128x1xf32>
    %105 = math.rsqrt %104 : vector<128x1xf32>
    %106 = vector.broadcast %105 : vector<128x1xf32> to vector<128x128xf32>
    %107 = arith.mulf %97, %106 : vector<128x128xf32>
    %108 = vector.broadcast %90 : vector<1x128xf32> to vector<128x128xf32>
    %109 = arith.mulf %107, %108 : vector<128x128xf32>
    %110 = vector.broadcast %91 : vector<1x128xf32> to vector<128x128xf32>
    %111 = arith.addf %109, %110 : vector<128x128xf32>
    %112 = arith.negf %111 : vector<128x128xf32>
    %113 = math.exp %112 : vector<128x128xf32>
    %cst_43 = arith.constant 1.000000e+00 : f32
    %114 = vector.broadcast %cst_43 : f32 to vector<128x128xf32>
    %115 = arith.addf %114, %113 : vector<128x128xf32>
    %116 = arith.divf %114, %115 : vector<128x128xf32>
    %117 = arith.mulf %111, %116 : vector<128x128xf32>
    %118 = arith.addf %117, %0 : vector<128x128xf32>
    %c0_44 = arith.constant 0 : index
    %c0_45 = arith.constant 0 : index
    %119 = vector.load %arg14[%c0_44, %c0_45] : memref<128x128xf32, #tpu.memory_space<vmem>>, vector<128x128xf32>
    tpu.vector_store %arg14[%c0_44, %c0_45], %118 {strides = array<i32>} : memref<128x128xf32, #tpu.memory_space<vmem>>, vector<128x128xf32>,
    return
  }
  func.func @transform_0(%arg0: i32) -> (i32, i32) {
    %c0_i32 = arith.constant 0 : i32
    %c0_i32_0 = arith.constant 0 : i32
    return %arg0, %c0_i32 : i32, i32
  }
  func.func @transform_1(%arg0: i32) -> (i32, i32) {
    %c0_i32 = arith.constant 0 : i32
    %c0_i32_0 = arith.constant 0 : i32
    %c0_i32_1 = arith.constant 0 : i32
    return %c0_i32, %c0_i32_0 : i32, i32
  }
  func.func @transform_2(%arg0: i32) -> (i32, i32) {
    %c0_i32 = arith.constant 0 : i32
    %c0_i32_0 = arith.constant 0 : i32
    %c0_i32_1 = arith.constant 0 : i32
    return %c0_i32, %c0_i32_0 : i32, i32
  }
  func.func @transform_3(%arg0: i32) -> (i32, i32) {
    %c0_i32 = arith.constant 0 : i32
    %c0_i32_0 = arith.constant 0 : i32
    %c0_i32_1 = arith.constant 0 : i32
    return %c0_i32, %c0_i32_0 : i32, i32
  }
  func.func @transform_4(%arg0: i32) -> (i32, i32) {
    %c0_i32 = arith.constant 0 : i32
    %c0_i32_0 = arith.constant 0 : i32
    %c0_i32_1 = arith.constant 0 : i32
    return %c0_i32, %c0_i32_0 : i32, i32
  }
  func.func @transform_5(%arg0: i32) -> (i32, i32) {
    %c0_i32 = arith.constant 0 : i32
    %c0_i32_0 = arith.constant 0 : i32
    %c0_i32_1 = arith.constant 0 : i32
    return %c0_i32, %c0_i32_0 : i32, i32
  }
  func.func @transform_6(%arg0: i32) -> (i32, i32) {
    %c0_i32 = arith.constant 0 : i32
    %c0_i32_0 = arith.constant 0 : i32
    %c0_i32_1 = arith.constant 0 : i32
    return %c0_i32, %c0_i32_0 : i32, i32
  }
  func.func @transform_7(%arg0: i32) -> (i32, i32) {
    %c0_i32 = arith.constant 0 : i32
    %c0_i32_0 = arith.constant 0 : i32
    %c0_i32_1 = arith.constant 0 : i32
    return %c0_i32, %c0_i32_0 : i32, i32
  }
  func.func @transform_8(%arg0: i32) -> (i32, i32) {
    %c0_i32 = arith.constant 0 : i32
    %c0_i32_0 = arith.constant 0 : i32
    %c0_i32_1 = arith.constant 0 : i32
    return %c0_i32, %c0_i32_0 : i32, i32
  }
  func.func @transform_9(%arg0: i32) -> (i32, i32) {
    %c0_i32 = arith.constant 0 : i32
    %c0_i32_0 = arith.constant 0 : i32
    %c0_i32_1 = arith.constant 0 : i32
    return %c0_i32, %c0_i32_0 : i32, i32
  }
  func.func @transform_10(%arg0: i32) -> (i32, i32) {
    %c0_i32 = arith.constant 0 : i32
    %c0_i32_0 = arith.constant 0 : i32
    %c0_i32_1 = arith.constant 0 : i32
    return %c0_i32, %c0_i32_0 : i32, i32
  }
  func.func @transform_11(%arg0: i32) -> (i32, i32) {
    %c0_i32 = arith.constant 0 : i32
    %c0_i32_0 = arith.constant 0 : i32
    %c0_i32_1 = arith.constant 0 : i32
    return %c0_i32, %c0_i32_0 : i32, i32
  }
  func.func @transform_12(%arg0: i32) -> (i32, i32) {
    %c0_i32 = arith.constant 0 : i32
    %c0_i32_0 = arith.constant 0 : i32
    %c0_i32_1 = arith.constant 0 : i32
    return %c0_i32, %c0_i32_0 : i32, i32
  }
  func.func @transform_13(%arg0: i32) -> (i32, i32) {
    %c0_i32 = arith.constant 0 : i32
    %c0_i32_0 = arith.constant 0 : i32
    return %arg0, %c0_i32 : i32, i32
  }
}

</mosaic_0001>

<bundles_post_ra>
// kernel: tpu_custom_call.1
= control target key start
LH: loop header
LB: loop body
LE: loop exit
PB: predicated region body
PF: predicated region fallthrough
CT: control target
= control target key end

     0   :  { %18 = vsyncpa [#allocation3], 0  ;;  %s9595_s0 = inlined_call_operand.hbm [shape: f32[128,128], index: 0, kind: input, shape index: {}]   ;;  %s9596_s1 = inlined_call_operand.vmem [shape: f32[1,128], index: 1, kind: input, shape index: {}]   ;;  %s9597_s2 = inlined_call_operand.vmem [shape: f32[1,128], index: 2, kind: input, shape index: {}]   ;;  %s9598_s3 = inlined_call_operand.vmem [shape: f32[1,128], index: 3, kind: input, shape index: {}]   ;;  %s9599_s4 = inlined_call_operand.vmem [shape: f32[1,128], index: 4, kind: input, shape index: {}]   ;;  %s9600_s5 = inlined_call_operand.vmem [shape: f32[256,8], index: 5, kind: input, shape index: {}]   ;;  %s9601_s6 = inlined_call_operand.vmem [shape: f32[256,1], index: 6, kind: input, shape index: {}]   ;;  %s9602_s7 = inlined_call_operand.vmem [shape: f32[8,256], index: 7, kind: input, shape index: {}]   ;;  %s9603_s8 = inlined_call_operand.vmem [shape: f32[8,1], index: 8, kind: input, shape index: {}]   ;;  %s9604_s9 = inlined_call_operand.vmem [shape: f32[128,256], index: 9, kind: input, shape index: {}]   ;;  %s9605_s10 = inlined_call_operand.vmem [shape: f32[1,256], index: 10, kind: input, shape index: {}]   ;;  %s9606_s11 = inlined_call_operand.vmem [shape: f32[256,128], index: 11, kind: input, shape index: {}]   ;;  %s9607_s12 = inlined_call_operand.vmem [shape: f32[1,128], index: 12, kind: input, shape index: {}]   ;;  %s9608_s13 = inlined_call_operand.hbm [shape: f32[128,128], index: 13, kind: output, shape index: {}]  }
   0x1   :  { %19 = vsyncpa [#allocation4], 0  ;;  %s5931_s25 = smov [#allocation2]   ;;  %s5883_s29 = scalar_lea.hbm %s9595_s0, 2048 }
   0x2   :  { %s25_s26 = sshll.u32 %s5931_s25, 4  ;;  %p5884_p0 = scmp.ne.s32.totalorder %s9595_s0, %s5883_s29  ;;  %s26_s26 = int_to_ptr.vmem [resolvable:$true] %s25_s26 }
   0x3   :  { %p5887_p1 = scmp.lt.u32.totalorder %s5883_s29, %s9595_s0 }
   0x5   :  { %p5889_p2 = pnand %p5887_p1, %p5884_p0 }
   0x7   :  { %5892 = shalt.err (!%p5889_p2)
}
   0x8   :  { %s5893_s17 = scalar_lea.vmem %s26_s26, 2048  ;;  %p5898_p4 = scmp.lt.s32.totalorder %s26_s26, %s26_s26 }
   0x9   :  { %p5894_p3 = scmp.ne.s32.totalorder %s26_s26, %s5893_s17  ;;  %p5899_p5 = scmp.lt.s32.totalorder %s5893_s17, %s5893_s17 }
   0xb   :  { %p5900_p6 = por %p5899_p5, %p5898_p4 }
   0xd   :  { %p5901_p7 = pnand %p5900_p6, %p5894_p3 }
   0xf   :  { %5904 = shalt.err (!%p5901_p7)
}
  0x10   :  { %s5932_s18 = smov 128   ;;  %s5933_s19 = smov 8  }
  0x11   :  { %31 = dma.hbm_to_vmem [thread:$0]  %s9595_s0, 2048, %s26_s26, [#allocation3], %s5932_s18, %s5932_s18, %s5933_s19  }
  0x12   :  { %5927 = dma.done.wait [#allocation3], 2048  }
  0x13   :  { %5928 = vsyncadd [#allocation3], 4294965248  ;;  %v6022_v0 = vld [vmem:[#allocation2] sm:$0xff]  ;;  %v6024_v1 = vld [vmem:[#allocation2 + $0x10] sm:$0xff]  ;;  %vm942_vm0 = vcmask 64512  }
  0x14   :  { %77 = vadd.xlane.f32.xlu0 %v6022_v0  ;;  %81 = vadd.xlane.f32.xlu1 %v6024_v1  ;;  %v6028_v2 = vld [vmem:[#allocation2 + $0x8] sm:$0xff]  ;;  %v6030_v3 = vld [vmem:[#allocation2 + $0x18] sm:$0xff]  ;;  %v6034_v4 = vld [vmem:[#allocation2 + $0x20] sm:$0xff] }
  0x15   :  { %v6036_v5 = vld [vmem:[#allocation2 + $0x28] sm:$0xff]  ;;  %v6040_v6 = vld [vmem:[#allocation2 + $0x30] sm:$0xff]  ;;  %v6042_v7 = vld [vmem:[#allocation2 + $0x38] sm:$0xff] }
  0x16   :  { %v6046_v8 = vld [vmem:[#allocation2 + $0x40] sm:$0xff]  ;;  %v6048_v9 = vld [vmem:[#allocation2 + $0x48] sm:$0xff]  ;;  %v6052_v10 = vld [vmem:[#allocation2 + $0x50] sm:$0xff] }
  0x17   :  { %v6054_v11 = vld [vmem:[#allocation2 + $0x58] sm:$0xff]  ;;  %v6058_v12 = vld [vmem:[#allocation2 + $0x60] sm:$0xff]  ;;  %v6060_v13 = vld [vmem:[#allocation2 + $0x68] sm:$0xff] }
  0x18   :  { %79 = vadd.xlane.f32.xlu0 %v6028_v2  ;;  %83 = vadd.xlane.f32.xlu1 %v6030_v3  ;;  %v6064_v14 = vld [vmem:[#allocation2 + $0x70] sm:$0xff]  ;;  %v6066_v15 = vld [vmem:[#allocation2 + $0x78] sm:$0xff]  ;;  %v298_v16 = vld [vmem:[%s9604_s9 + $0x8] sm:$0xff] }
  0x19   :  { %v300_v17 = vld [vmem:[%s9604_s9 + $0x18] sm:$0xff]  ;;  %v297_v18 = vld [vmem:[%s9604_s9] sm:$0xff]  ;;  %v299_v20 = vld [vmem:[%s9604_s9 + $0x10] sm:$0xff] }
  0x1a   :  { %v5019_v19 = vpack.c.bf16 %v300_v17, %v298_v16  ;;  %v302_v21 = vld [vmem:[%s9604_s9 + $0x28] sm:$0xff]  ;;  %v304_v22 = vld [vmem:[%s9604_s9 + $0x38] sm:$0xff]  ;;  %v5021_v23 = vpack.c.bf16 %v299_v20, %v297_v18  ;;  %v301_v25 = vld [vmem:[%s9604_s9 + $0x20] sm:$0xff] }
  0x1b   :  { %v5023_v24 = vpack.c.bf16 %v304_v22, %v302_v21  ;;  %v303_v26 = vld [vmem:[%s9604_s9 + $0x30] sm:$0xff]  ;;  %v306_v27 = vld [vmem:[%s9604_s9 + $0x48] sm:$0xff]  ;;  %v308_v28 = vld [vmem:[%s9604_s9 + $0x58] sm:$0xff] }
  0x1c   :  { %85 = vadd.xlane.f32.xlu0 %v6034_v4  ;;  %87 = vadd.xlane.f32.xlu1 %v6036_v5  ;;  %v5025_v29 = vpack.c.bf16 %v303_v26, %v301_v25  ;;  %v550_v30 = vld [vmem:[%s9606_s11 + $0x80] sm:$0xff]  ;;  %v551_v31 = vld [vmem:[%s9606_s11 + $0x88] sm:$0xff]  ;;  %v5027_v32 = vpack.c.bf16 %v308_v28, %v306_v27  ;;  %v307_v34 = vld [vmem:[%s9604_s9 + $0x50] sm:$0xff] }
  0x1d   :  { %5020 = vmatprep.subr.bf16.mxu0 %v5019_v19  ;;  %v305_v33 = vld [vmem:[%s9604_s9 + $0x40] sm:$0xff]  ;;  %v5051_v35 = vpack.c.bf16 %v551_v31, %v550_v30  ;;  %v310_v22 = vld [vmem:[%s9604_s9 + $0x68] sm:$0xff]  ;;  %v552_v30 = vld [vmem:[%s9606_s11 + $0x90] sm:$0xff] }
  0x1e   :  { %5022 = vmatpush1.bf16.msra.mxu0 %v5021_v23  ;;  %v5029_v36 = vpack.c.bf16 %v307_v34, %v305_v33  ;;  %v312_v23 = vld [vmem:[%s9604_s9 + $0x78] sm:$0xff] }
  0x1f   :  { %5024 = vmatprep.subr.bf16.mxu0 %v5023_v24  ;;  %5052 = vmatprep.subr.bf16.mxu1 %v5051_v35  ;;  %v5031_v26 = vpack.c.bf16 %v312_v23, %v310_v22  ;;  %v553_v31 = vld [vmem:[%s9606_s11 + $0x98] sm:$0xff]  ;;  %v556_v22 = vld [vmem:[%s9606_s11 + $0xb0] sm:$0xff] }
  0x20   :  { %89 = vadd.xlane.f32.xlu0 %v6040_v6  ;;  %91 = vadd.xlane.f32.xlu1 %v6042_v7  ;;  %v5055_v33 = vpack.c.bf16 %v553_v31, %v552_v30  ;;  %v557_v23 = vld [vmem:[%s9606_s11 + $0xb8] sm:$0xff]  ;;  %v321_v30 = vld [vmem:[%s9604_s9 + $0xc0] sm:$0xff]  ;;  %v323_v31 = vld [vmem:[%s9604_s9 + $0xd0] sm:$0xff] }
  0x22   :  { %5026 = vmatpush1.bf16.msra.mxu0 %v5025_v29 }
  0x23   :  { %5028 = vmatprep.subr.bf16.mxu0 %v5027_v32 }
  0x24   :  { %93 = vadd.xlane.f32.xlu0 %v6046_v8  ;;  %95 = vadd.xlane.f32.xlu1 %v6048_v9 }
  0x26   :  { %5030 = vmatpush1.bf16.msra.mxu0 %v5029_v36 }
  0x27   :  { %5032 = vmatprep.subr.bf16.mxu0 %v5031_v26  ;;  %v5063_v26 = vpack.c.bf16 %v557_v23, %v556_v22 }
  0x28   :  { %97 = vadd.xlane.f32.xlu0 %v6052_v10  ;;  %99 = vadd.xlane.f32.xlu1 %v6054_v11 }
  0x2c   :  { %101 = vadd.xlane.f32.xlu0 %v6058_v12  ;;  %103 = vadd.xlane.f32.xlu1 %v6060_v13 }
  0x30   :  { %105 = vadd.xlane.f32.xlu0 %v6064_v14  ;;  %107 = vadd.xlane.f32.xlu1 %v6066_v15 }
  0xa1   :  { %v78_v37 = vpop.xlane.xlu0 %77  ;;  %v82_v38 = vpop.xlane.xlu1 %81 }
  0xa2   :  { %v109_v39 = vmul.f32 0.0078125, %v78_v37  ;;  %v111_v40 = vmul.f32 0.0078125, %v82_v38  ;;  %v536_v37 = vld [vmem:[%s9606_s11 + $0x10] sm:$0xff]  ;;  %v537_v38 = vld [vmem:[%s9606_s11 + $0x18] sm:$0xff] }
  0xa4   :  { %v6113_v41 = vsub.f32 %v6022_v0, %v109_v39  ;;  %v6116_v42 = vsub.f32 %v6024_v1, %v111_v40 }
  0xa5   :  { %v80_v43 = vpop.xlane.xlu0 %79  ;;  %v84_v44 = vpop.xlane.xlu1 %83 }
  0xa6   :  { %v110_v45 = vmul.f32 0.0078125, %v80_v43  ;;  %v141_v46 = vmul.f32 %v6113_v41, %v6113_v41  ;;  %v112_v47 = vmul.f32 0.0078125, %v84_v44  ;;  %v143_v49 = vmul.f32 %v6116_v42, %v6116_v42  ;;  %v316_v43 = vld [vmem:[%s9604_s9 + $0x98] sm:$0xff] }
  0xa8   :  { %v6121_v48 = vsub.f32 %v6028_v2, %v110_v45  ;;  %157 = vadd.xlane.f32.xlu0 %v141_v46  ;;  %v6126_v50 = vsub.f32 %v6030_v3, %v112_v47  ;;  %v313_v47 = vld [vmem:[%s9604_s9 + $0x80] sm:$0xff] }
  0xa9   :  { %v86_v51 = vpop.xlane.xlu0 %85  ;;  %v88_v52 = vpop.xlane.xlu1 %87 }
  0xaa   :  { %v113_v53 = vmul.f32 0.0078125, %v86_v51  ;;  %v142_v54 = vmul.f32 %v6121_v48, %v6121_v48  ;;  %v114_v55 = vmul.f32 0.0078125, %v88_v52  ;;  %v144_v58 = vmul.f32 %v6126_v50, %v6126_v50 }
  0xac   :  { %v6131_v56 = vsub.f32 %v6034_v4, %v113_v53  ;;  %161 = vadd.xlane.f32.xlu0 %v143_v49  ;;  %159 = vadd.xlane.f32.xlu1 %v142_v54  ;;  %v6134_v57 = vsub.f32 %v6036_v5, %v114_v55  ;;  %v315_v49 = vld [vmem:[%s9604_s9 + $0x90] sm:$0xff]  ;;  %v554_v54 = vld [vmem:[%s9606_s11 + $0xa0] sm:$0xff]  ;;  %v555_v55 = vld [vmem:[%s9606_s11 + $0xa8] sm:$0xff] }
  0xad   :  { %v90_v59 = vpop.xlane.xlu0 %89  ;;  %v92_v60 = vpop.xlane.xlu1 %91  ;;  %v5037_v53 = vpack.c.bf16 %v315_v49, %v313_v47  ;;  %v560_v49 = vld [vmem:[%s9606_s11 + $0xd0] sm:$0xff] }
  0xae   :  { %v115_v61 = vmul.f32 0.0078125, %v90_v59  ;;  %v145_v62 = vmul.f32 %v6131_v56, %v6131_v56  ;;  %v116_v63 = vmul.f32 0.0078125, %v92_v60  ;;  %v146_v2 = vmul.f32 %v6134_v57, %v6134_v57 }
  0xaf   :  { %v5059_v60 = vpack.c.bf16 %v555_v55, %v554_v54  ;;  %v545_v54 = vld [vmem:[%s9606_s11 + $0x58] sm:$0xff] }
  0xb0   :  { %v6141_v0 = vsub.f32 %v6040_v6, %v115_v61  ;;  %163 = vadd.xlane.f32.xlu1 %v144_v58  ;;  %165 = vadd.xlane.f32.xlu0 %v145_v62  ;;  %v6144_v1 = vsub.f32 %v6042_v7, %v116_v63  ;;  %v534_v6 = vld [vmem:[%s9606_s11] sm:$0xff]  ;;  %v535_v7 = vld [vmem:[%s9606_s11 + $0x8] sm:$0xff] }
  0xb1   :  { %v94_v3 = vpop.xlane.xlu0 %93  ;;  %v96_v4 = vpop.xlane.xlu1 %95  ;;  %v5053_v21 = vpack.c.bf16 %v535_v7, %v534_v6  ;;  %v538_v61 = vld [vmem:[%s9606_s11 + $0x20] sm:$0xff]  ;;  %v539_v62 = vld [vmem:[%s9606_s11 + $0x28] sm:$0xff] }
  0xb2   :  { %v117_v5 = vmul.f32 0.0078125, %v94_v3  ;;  %v147_v16 = vmul.f32 %v6141_v0, %v6141_v0  ;;  %v118_v17 = vmul.f32 0.0078125, %v96_v4  ;;  %v148_v18 = vmul.f32 %v6144_v1, %v6144_v1 }
  0xb3   :  { %5054 = vmatpush3.bf16.msra.mxu1 %v5053_v21  ;;  %v5061_v3 = vpack.c.bf16 %v539_v62, %v538_v61  ;;  %v562_v61 = vld [vmem:[%s9606_s11 + $0xe0] sm:$0xff]  ;;  %v563_v62 = vld [vmem:[%s9606_s11 + $0xe8] sm:$0xff] }
  0xb4   :  { %v6159_v19 = vsub.f32 %v6046_v8, %v117_v5  ;;  %167 = vadd.xlane.f32.xlu1 %v146_v2  ;;  %169 = vadd.xlane.f32.xlu0 %v147_v16  ;;  %v6162_v20 = vsub.f32 %v6048_v9, %v118_v17  ;;  %v309_v8 = vld [vmem:[%s9604_s9 + $0x60] sm:$0xff]  ;;  %v311_v9 = vld [vmem:[%s9604_s9 + $0x70] sm:$0xff] }
  0xb5   :  { %v98_v24 = vpop.xlane.xlu0 %97  ;;  %v100_v25 = vpop.xlane.xlu1 %99  ;;  %v5033_v32 = vpack.c.bf16 %v311_v9, %v309_v8  ;;  %5056 = vmatprep.subr.bf16.mxu1 %v5055_v33  ;;  %v317_v17 = vld [vmem:[%s9604_s9 + $0xa0] sm:$0xff]  ;;  %v540_v8 = vld [vmem:[%s9606_s11 + $0x30] sm:$0xff]  ;;  %v541_v9 = vld [vmem:[%s9606_s11 + $0x38] sm:$0xff] }
  0xb6   :  { %v119_v27 = vmul.f32 0.0078125, %v98_v24  ;;  %v149_v28 = vmul.f32 %v6159_v19, %v6159_v19  ;;  %v120_v29 = vmul.f32 0.0078125, %v100_v25  ;;  %v150_v36 = vmul.f32 %v6162_v20, %v6162_v20  ;;  %v558_v33 = vld [vmem:[%s9606_s11 + $0xc0] sm:$0xff] }
  0xb7   :  { %5034 = vmatpush1.bf16.msra.mxu0 %v5033_v32  ;;  %v5045_v32 = vpack.c.bf16 %v323_v31, %v321_v30 }
  0xb8   :  { %v6185_v34 = vsub.f32 %v6052_v10, %v119_v27  ;;  %171 = vadd.xlane.f32.xlu1 %v148_v18  ;;  %173 = vadd.xlane.f32.xlu0 %v149_v28  ;;  %v6188_v35 = vsub.f32 %v6054_v11, %v120_v29  ;;  %v5057_v10 = vpack.c.bf16 %v537_v38, %v536_v37  ;;  %v314_v11 = vld [vmem:[%s9604_s9 + $0x88] sm:$0xff]  ;;  %v319_v18 = vld [vmem:[%s9604_s9 + $0xb0] sm:$0xff] }
  0xb9   :  { %v102_v39 = vpop.xlane.xlu0 %101  ;;  %v104_v40 = vpop.xlane.xlu1 %103  ;;  %v5035_v52 = vpack.c.bf16 %v316_v43, %v314_v11  ;;  %v5041_v21 = vpack.c.bf16 %v319_v18, %v317_v17  ;;  %v5065_v27 = vpack.c.bf16 %v541_v9, %v540_v8  ;;  %v326_v11 = vld [vmem:[%s9604_s9 + $0xe8] sm:$0xff]  ;;  %v328_v43 = vld [vmem:[%s9604_s9 + $0xf8] sm:$0xff] }
  0xba   :  { %v121_v44 = vmul.f32 0.0078125, %v102_v39  ;;  %v151_v45 = vmul.f32 %v6185_v34, %v6185_v34  ;;  %v122_v46 = vmul.f32 0.0078125, %v104_v40  ;;  %v152_v51 = vmul.f32 %v6188_v35, %v6188_v35  ;;  %5058 = vmatpush3.bf16.msra.mxu1 %v5057_v10  ;;  %v542_v39 = vld [vmem:[%s9606_s11 + $0x40] sm:$0xff]  ;;  %v543_v40 = vld [vmem:[%s9606_s11 + $0x48] sm:$0xff]  ;;  %v549_v17 = vld [vmem:[%s9606_s11 + $0x78] sm:$0xff] }
  0xbb   :  { %5036 = vmatprep.subr.bf16.mxu0 %v5035_v52  ;;  %5060 = vmatprep.subr.bf16.mxu1 %v5059_v60  ;;  %v5069_v10 = vpack.c.bf16 %v543_v40, %v542_v39  ;;  %v9614_v60 = vmov 0.0   ;;  %v6346_v40 = vld [vmem:[%s9596_s1] ss:$0 sm:$0xff] }
  0xbc   :  { %v6221_v58 = vsub.f32 %v6058_v12, %v121_v44  ;;  %175 = vadd.xlane.f32.xlu1 %v150_v36  ;;  %177 = vadd.xlane.f32.xlu0 %v151_v45  ;;  %v6224_v59 = vsub.f32 %v6060_v13, %v122_v46  ;;  %v318_v12 = vld [vmem:[%s9604_s9 + $0xa8] sm:$0xff]  ;;  %v320_v13 = vld [vmem:[%s9604_s9 + $0xb8] sm:$0xff]  ;;  %v5047_v44 = vpack.c.bf16 %v328_v43, %v326_v11  ;;  %v325_v45 = vld [vmem:[%s9604_s9 + $0xe0] sm:$0xff] }
  0xbd   :  { %v106_v63 = vpop.xlane.xlu0 %105  ;;  %v108_v2 = vpop.xlane.xlu1 %107  ;;  %5038 = vmatpush1.bf16.msra.mxu0 %v5037_v53  ;;  %v5039_v7 = vpack.c.bf16 %v320_v13, %v318_v12  ;;  %v559_v36 = vld [vmem:[%s9606_s11 + $0xc8] sm:$0xff]  ;;  %v327_v46 = vld [vmem:[%s9604_s9 + $0xf0] sm:$0xff]  ;;  %405 = vmatprep.mubr.f32.mxu0 %v9614_v60  ;;  %v6352_v43 = vld [vmem:[%s9597_s2] ss:$0 sm:$0xff] }
  0xbe   :  { %v123_v4 = vmul.f32 0.0078125, %v106_v63  ;;  %v153_v5 = vmul.f32 %v6221_v58, %v6221_v58  ;;  %v124_v16 = vmul.f32 0.0078125, %v108_v2  ;;  %v154_v6 = vmul.f32 %v6224_v59, %v6224_v59  ;;  %5062 = vmatpush3.bf16.msra.mxu1 %v5061_v3  ;;  %v544_v53 = vld [vmem:[%s9606_s11 + $0x50] sm:$0xff]  ;;  %v546_v2 = vld [vmem:[%s9606_s11 + $0x60] sm:$0xff]  ;;  %v547_v3 = vld [vmem:[%s9606_s11 + $0x68] sm:$0xff] }
  0xbf   :  { %5040 = vmatprep.subr.bf16.mxu0 %v5039_v7  ;;  %5064 = vmatprep.subr.bf16.mxu1 %v5063_v26  ;;  %v5067_v38 = vpack.c.bf16 %v559_v36, %v558_v33  ;;  %v5049_v47 = vpack.c.bf16 %v327_v46, %v325_v45  ;;  %v5073_v55 = vpack.c.bf16 %v545_v54, %v544_v53  ;;  %v564_v13 = vld [vmem:[%s9606_s11 + $0xf0] sm:$0xff] }
  0xc0   :  { %v6255_v24 = vsub.f32 %v6064_v14, %v123_v4  ;;  %179 = vadd.xlane.f32.xlu1 %v152_v51  ;;  %181 = vadd.xlane.f32.xlu0 %v153_v5  ;;  %v6258_v25 = vsub.f32 %v6066_v15, %v124_v16  ;;  %v322_v14 = vld [vmem:[%s9604_s9 + $0xc8] sm:$0xff]  ;;  %v324_v15 = vld [vmem:[%s9604_s9 + $0xd8] sm:$0xff]  ;;  %v5075_v63 = vpack.c.bf16 %v563_v62, %v562_v61  ;;  %v548_v16 = vld [vmem:[%s9606_s11 + $0x70] sm:$0xff] }
  0xc1   :  { %5042 = vmatpush1.bf16.msra.mxu0 %v5041_v21  ;;  %v5043_v29 = vpack.c.bf16 %v324_v15, %v322_v14  ;;  %v561_v51 = vld [vmem:[%s9606_s11 + $0xd8] sm:$0xff]  ;;  %v5077_v12 = vpack.c.bf16 %v547_v3, %v546_v2  ;;  %v5081_v18 = vpack.c.bf16 %v549_v17, %v548_v16 }
  0xc2   :  { %v155_v28 = vmul.f32 %v6255_v24, %v6255_v24  ;;  %5066 = vmatpush3.bf16.msra.mxu1 %v5065_v27  ;;  %v156_v37 = vmul.f32 %v6258_v25, %v6258_v25  ;;  %v5071_v52 = vpack.c.bf16 %v561_v51, %v560_v49  ;;  %v565_v4 = vld [vmem:[%s9606_s11 + $0xf8] sm:$0xff] }
  0xc3   :  { %5044 = vmatprep.subr.bf16.mxu0 %v5043_v29  ;;  %5068 = vmatprep.subr.bf16.mxu1 %v5067_v38  ;;  %v5079_v5 = vpack.c.bf16 %v565_v4, %v564_v13 }
  0xc4   :  { %183 = vadd.xlane.f32.xlu1 %v154_v6  ;;  %185 = vadd.xlane.f32.xlu0 %v155_v28 }
  0xc5   :  { %5046 = vmatpush1.bf16.msra.mxu0 %v5045_v32 }
  0xc6   :  { %5070 = vmatpush3.bf16.msra.mxu1 %v5069_v10  ;;  %5048 = vmatprep.subr.bf16.mxu0 %v5047_v44 }
  0xc7   :  { %5072 = vmatprep.subr.bf16.mxu1 %v5071_v52 }
  0xc8   :  { %187 = vadd.xlane.f32.xlu1 %v156_v37 }
  0xc9   :  { %5050 = vmatpush1.bf16.msra.mxu0 %v5049_v47 }
  0xca   :  { %5074 = vmatpush3.bf16.msra.mxu1 %v5073_v55 }
  0xcb   :  { %5076 = vmatprep.subr.bf16.mxu1 %v5075_v63 }
  0xce   :  { %5078 = vmatpush3.bf16.msra.mxu1 %v5077_v12 }
  0xcf   :  { %5080 = vmatprep.subr.bf16.mxu1 %v5079_v5 }
  0xd2   :  { %5082 = vmatpush3.bf16.msra.mxu1 %v5081_v18 }
 0x135   :  { %v158_v6 = vpop.xlane.xlu0 %157 }
 0x136   :  { %v189_v7 = vmul.f32 0.0078125, %v158_v6 }
 0x138   :  { %v205_v21 = vadd.f32 1e-05, %v189_v7 }
 0x139   :  { %v160_v22 = vpop.xlane.xlu1 %159  ;;  %v162_v23 = vpop.xlane.xlu0 %161 }
 0x13a   :  { %5603 = vrsqrt.f32 %v205_v21  ;;  %v190_v26 = vmul.f32 0.0078125, %v160_v22  ;;  %v191_v8 = vmul.f32 0.0078125, %v162_v23 }
 0x13c   :  { %v206_v9 = vadd.f32 1e-05, %v190_v26  ;;  %v207_v27 = vadd.f32 1e-05, %v191_v8 }
 0x13d   :  { %v164_v14 = vpop.xlane.xlu1 %163  ;;  %v166_v15 = vpop.xlane.xlu0 %165 }
 0x13e   :  { %5605 = vrsqrt.f32 %v206_v9  ;;  %v192_v28 = vmul.f32 0.0078125, %v164_v14  ;;  %v193_v29 = vmul.f32 0.0078125, %v166_v15 }
 0x13f   :  { %5607 = vrsqrt.f32 %v207_v27 }
 0x140   :  { %v208_v30 = vadd.f32 1e-05, %v192_v28  ;;  %v209_v31 = vadd.f32 1e-05, %v193_v29 }
 0x141   :  { %v168_v32 = vpop.xlane.xlu1 %167  ;;  %v170_v33 = vpop.xlane.xlu0 %169 }
 0x142   :  { %5609 = vrsqrt.f32 %v208_v30  ;;  %v194_v36 = vmul.f32 0.0078125, %v168_v32  ;;  %v195_v39 = vmul.f32 0.0078125, %v170_v33 }
 0x143   :  { %5611 = vrsqrt.f32 %v209_v31 }
 0x144   :  { %v5604_v37 = vpop.eup %5603  ;;  %v210_v38 = vadd.f32 1e-05, %v194_v36  ;;  %v211_v46 = vadd.f32 1e-05, %v195_v39 }
 0x145   :  { %v172_v10 = vpop.xlane.xlu1 %171  ;;  %v237_v11 = vmul.f32 %v5604_v37, %v6113_v41  ;;  %v174_v51 = vpop.xlane.xlu0 %173 }
 0x146   :  { %5613 = vrsqrt.f32 %v210_v38  ;;  %v196_v47 = vmul.f32 0.0078125, %v172_v10  ;;  %v197_v62 = vmul.f32 0.0078125, %v174_v51 }
 0x147   :  { %v259_v44 = vmul.f32 %v6346_v40, %v237_v11  ;;  %5615 = vrsqrt.f32 %v211_v46 }
 0x148   :  { %v5606_v45 = vpop.eup %5605  ;;  %v212_v61 = vadd.f32 1e-05, %v196_v47  ;;  %v213_v4 = vadd.f32 1e-05, %v197_v62 }
 0x149   :  { %v5608_v49 = vpop.eup %5607  ;;  %v281_v52 = vadd.f32 %v6352_v43, %v259_v44  ;;  %v238_v53 = vmul.f32 %v5606_v45, %v6121_v48  ;;  %v176_v63 = vpop.xlane.xlu1 %175 }
 0x14a   :  { %v239_v54 = vmul.f32 %v5608_v49, %v6116_v42  ;;  %5617 = vrsqrt.f32 %v212_v61  ;;  %v198_v5 = vmul.f32 0.0078125, %v176_v63  ;;  %v178_v16 = vpop.xlane.xlu0 %177 }
 0x14b   :  { %406 = vmatmul.mubr.f32.vlgmr.msra.gmra.mrb[0].mxu0 %v281_v52  ;;  %v260_v41 = vmul.f32 %v6346_v40, %v238_v53  ;;  %5619 = vrsqrt.f32 %v213_v4  ;;  %v199_v22 = vmul.f32 0.0078125, %v178_v16 }
 0x14c   :  { %v5610_v55 = vpop.eup %5609  ;;  %411 = vmatprep.mubr.f32.mxu0 %v9614_v60  ;;  %v261_v3 = vmul.f32 %v6346_v40, %v239_v54  ;;  %v214_v21 = vadd.f32 1e-05, %v198_v5 }
 0x14d   :  { %v282_v2 = vadd.f32 %v6352_v43, %v260_v41  ;;  %v240_v12 = vmul.f32 %v5610_v55, %v6126_v50  ;;  %v5612_v13 = vpop.eup %5611  ;;  %v180_v23 = vpop.xlane.xlu1 %179 }
 0x14e   :  { %v6366_v17 = vadd.f32 %v6352_v43, %v261_v3  ;;  %v241_v6 = vmul.f32 %v5612_v13, %v6131_v56  ;;  %5621 = vrsqrt.f32 %v214_v21  ;;  %v215_v56 = vadd.f32 1e-05, %v199_v22  ;;  %v182_v27 = vpop.xlane.xlu0 %181 }
 0x14f   :  { %412 = vmatmul.mubr.f32.gmra.mrb[2].mxu0 %v282_v2  ;;  %1039 = vmatprep.subr.mxu0 %v282_v2  ;;  %v262_v42 = vmul.f32 %v6346_v40, %v240_v12  ;;  %v201_v30 = vmul.f32 0.0078125, %v182_v27  ;;  %v6526_v27 = vld [vmem:[%s9600_s5 + $0x48] sm:$0xff] }
 0x150   :  { %v5614_v48 = vpop.eup %5613  ;;  %1040 = vmatpush1.msra.mxu0 %v281_v52  ;;  %417 = vmatprep.mubr.f32.mxu0 %v9614_v60  ;;  %v263_v8 = vmul.f32 %v6346_v40, %v241_v6  ;;  %5623 = vrsqrt.f32 %v215_v56  ;;  %v6510_v56 = vld [vmem:[%s9600_s5 + $0x38] sm:$0xff] }
 0x151   :  { %v284_v18 = vadd.f32 %v6352_v43, %v262_v42  ;;  %v242_v50 = vmul.f32 %v5614_v48, %v6134_v57  ;;  %v5616_v9 = vpop.eup %5615  ;;  %v200_v57 = vmul.f32 0.0078125, %v180_v23  ;;  %v184_v31 = vpop.xlane.xlu1 %183  ;;  %v217_v37 = vadd.f32 1e-05, %v201_v30  ;;  %v6478_v23 = vld [vmem:[%s9600_s5 + $0x18] sm:$0xff]  ;;  %v6566_v30 = vld [vmem:[%s9600_s5 + $0x70] sm:$0xff] }
 0x152   :  { %v6378_v14 = vadd.f32 %v6352_v43, %v263_v8  ;;  %v243_v15 = vmul.f32 %v5616_v9, %v6141_v0  ;;  %v202_v38 = vmul.f32 0.0078125, %v184_v31  ;;  %v186_v0 = vpop.xlane.xlu0 %185  ;;  %v6494_v8 = vld [vmem:[%s9600_s5 + $0x28] sm:$0xff]  ;;  %v6502_v9 = vld [vmem:[%s9600_s5 + $0x30] sm:$0xff]  ;;  %v6574_v31 = vld [vmem:[%s9600_s5 + $0x78] sm:$0xff] }
 0x153   :  { %418 = vmatmul.mubr.f32.gmra.mrb[4].mxu0 %v6366_v17  ;;  %1296 = vmatprep.subr.mxu1 %v284_v18  ;;  %v264_v7 = vmul.f32 %v6346_v40, %v242_v50  ;;  %v216_v29 = vadd.f32 1e-05, %v200_v57  ;;  %v203_v45 = vmul.f32 0.0078125, %v186_v0  ;;  %v6518_v57 = vld [vmem:[%s9600_s5 + $0x40] sm:$0xff]  ;;  %v6622_v0 = vld [vmem:[%s9600_s5 + $0xa8] sm:$0xff] }
 0x154   :  { %423 = vmatprep.mubr.f32.mxu0 %v9614_v60  ;;  %v5618_v28 = vpop.eup %5617  ;;  %v265_v32 = vmul.f32 %v6346_v40, %v243_v15  ;;  %v6542_v15 = vld [vmem:[%s9600_s5 + $0x58] sm:$0xff] }
 0x155   :  { %v286_v26 = vadd.f32 %v6352_v43, %v264_v7  ;;  %v244_v33 = vmul.f32 %v5618_v28, %v6144_v1  ;;  %v5620_v36 = vpop.eup %5619  ;;  %5625 = vrsqrt.f32 %v216_v29  ;;  %v218_v1 = vadd.f32 1e-05, %v202_v38  ;;  %v188_v46 = vpop.xlane.xlu1 %187  ;;  %v6550_v28 = vld [vmem:[%s9600_s5 + $0x60] sm:$0xff]  ;;  %v6558_v29 = vld [vmem:[%s9600_s5 + $0x68] sm:$0xff] }
 0x156   :  { %v6387_v39 = vadd.f32 %v6352_v43, %v265_v32  ;;  %v245_v11 = vmul.f32 %v5620_v36, %v6159_v19  ;;  %5627 = vrsqrt.f32 %v217_v37  ;;  %v219_v19 = vadd.f32 1e-05, %v203_v45  ;;  %v6582_v32 = vld [vmem:[%s9600_s5 + $0x80] sm:$0xff]  ;;  %v6598_v36 = vld [vmem:[%s9600_s5 + $0x90] sm:$0xff]  ;;  %v6606_v37 = vld [vmem:[%s9600_s5 + $0x98] sm:$0xff] }
 0x157   :  { %424 = vmatmul.mubr.f32.gmra.mrb[6].mxu0 %v284_v18  ;;  %1553 = vmatprep.subr.mxu0 %v286_v26  ;;  %v266_v10 = vmul.f32 %v6346_v40, %v244_v33  ;;  %5629 = vrsqrt.f32 %v218_v1  ;;  %v204_v53 = vmul.f32 0.0078125, %v188_v46  ;;  %v6590_v33 = vld [vmem:[%s9600_s5 + $0x88] sm:$0xff]  ;;  %v6614_v38 = vld [vmem:[%s9600_s5 + $0xa0] sm:$0xff]  ;;  %v6662_v45 = vld [vmem:[%s9600_s5 + $0xd0] sm:$0xff] }
 0x158   :  { %429 = vmatprep.mubr.f32.mxu0 %v9614_v60  ;;  %v5622_v44 = vpop.eup %5621  ;;  %v267_v49 = vmul.f32 %v6346_v40, %v245_v11  ;;  %5631 = vrsqrt.f32 %v219_v19  ;;  %v6638_v11 = vld [vmem:[%s9600_s5 + $0xb8] sm:$0xff]  ;;  %v6654_v1 = vld [vmem:[%s9600_s5 + $0xc8] sm:$0xff] }
 0x159   :  { %v6394_v47 = vadd.f32 %v6352_v43, %v266_v10  ;;  %v246_v51 = vmul.f32 %v5622_v44, %v6162_v20  ;;  %v220_v20 = vadd.f32 1e-05, %v204_v53  ;;  %v6630_v10 = vld [vmem:[%s9600_s5 + $0xb0] sm:$0xff]  ;;  %v6646_v44 = vld [vmem:[%s9600_s5 + $0xc0] sm:$0xff]  ;;  %v6670_v46 = vld [vmem:[%s9600_s5 + $0xd8] sm:$0xff]  ;;  %v331_v53 = vlaneseq }
 0x15a   :  { %v5624_v52 = vpop.eup %5623  ;;  %v6401_v54 = vadd.f32 %v6352_v43, %v267_v49  ;;  %v6678_v49 = vld [vmem:[%s9600_s5 + $0xe0] sm:$0xff]  ;;  %v6702_v19 = vld [vmem:[%s9600_s5 + $0xf8] sm:$0xff] }
 0x15b   :  { %430 = vmatmul.mubr.f32.gmra.mrb[8].mxu0 %v6378_v14  ;;  %v268_v41 = vmul.f32 %v6346_v40, %v246_v51  ;;  %v247_v55 = vmul.f32 %v5624_v52, %v6185_v34  ;;  %5633 = vrsqrt.f32 %v220_v20  ;;  %v6686_v51 = vld [vmem:[%s9600_s5 + $0xe8] sm:$0xff]  ;;  %v6694_v52 = vld [vmem:[%s9600_s5 + $0xf0] sm:$0xff] }
 0x15c   :  { %435 = vmatprep.mubr.f32.mxu0 %v9614_v60 }
 0x15d   :  { %v290_v62 = vadd.f32 %v6352_v43, %v268_v41  ;;  %v269_v63 = vmul.f32 %v6346_v40, %v247_v55  ;;  %v332_v41 = vshrl.u32 %v331_v53, 7  ;;  %v329_v55 = vld [vmem:[%s9605_s10] sm:$0x3] }
 0x15f   :  { %436 = vmatmul.mubr.f32.gmra.mrb[10].mxu0 %v286_v26  ;;  %v5626_v61 = vpop.eup %5625  ;;  %v6412_v34 = vadd.f32 %v6352_v43, %v269_v63  ;;  %v6486_v26 = vld [vmem:[%s9600_s5 + $0x20] sm:$0xff] }
 0x160   :  { %441 = vmatprep.mubr.f32.mxu0 %v9614_v60  ;;  %v248_v2 = vmul.f32 %v5626_v61, %v6188_v35  ;;  %v5628_v3 = vpop.eup %5627  ;;  %v337_v61 = vsub.s32 1, %v332_v41 }
 0x161   :  { %v249_v13 = vmul.f32 %v5628_v3, %v6221_v58  ;;  %v5630_v42 = vpop.eup %5629 }
 0x162   :  { %v270_v12 = vmul.f32 %v6346_v40, %v248_v2  ;;  %v250_v4 = vmul.f32 %v5630_v42, %v6224_v59  ;;  %v5632_v5 = vpop.eup %5631 }
 0x163   :  { %442 = vmatmul.mubr.f32.gmra.mrb[12].mxu0 %v6387_v39  ;;  %v271_v35 = vmul.f32 %v6346_v40, %v249_v13  ;;  %v251_v18 = vmul.f32 %v5632_v5, %v6255_v24 }
 0x164   :  { %447 = vmatprep.mubr.f32.mxu0 %v9614_v60  ;;  %v6419_v48 = vadd.f32 %v6352_v43, %v270_v12  ;;  %v272_v58 = vmul.f32 %v6346_v40, %v250_v4 }
 0x165   :  { %v6426_v16 = vadd.f32 %v6352_v43, %v271_v35  ;;  %v5634_v50 = vpop.eup %5633  ;;  %v273_v59 = vmul.f32 %v6346_v40, %v251_v18  ;;  %v5935_v35 = vmov 0   ;;  %v751_v18 = vld [vmem:[%s9601_s6 + $0x8] sm:$0xff] }
 0x166   :  { %v6433_v6 = vadd.f32 %v6352_v43, %v272_v58  ;;  %v252_v7 = vmul.f32 %v5634_v50, %v6258_v25  ;;  %v6453_v25 = vld [vmem:[%s9600_s5] sm:$0xff]  ;;  %5602 = vset.pattern.permute.xlu1 %v5935_v35  ;;  %5601 = vset.pattern.permute.xlu0 %v5935_v35 }
 0x167   :  { %448 = vmatmul.mubr.f32.gmra.mrb[14].mxu0 %v6394_v47  ;;  %v6440_v21 = vadd.f32 %v6352_v43, %v273_v59  ;;  %v750_v50 = vld [vmem:[%s9601_s6] sm:$0xff]  ;;  %789 = vperm.xlu1 %5602, %v751_v18  }
 0x168   :  { %453 = vmatprep.mubr.f32.mxu0 %v9614_v60  ;;  %v274_v24 = vmul.f32 %v6346_v40, %v252_v7  ;;  %v6462_v40 = vld [vmem:[%s9600_s5 + $0x8] sm:$0xff]  ;;  %784 = vperm.xlu0 %5601, %v750_v50  }
 0x169   :  { %9708 = vst [vmem:[#allocation8_spill] sm:$0xff] %v6440_v21 }
 0x16a   :  { %v6446_v22 = vadd.f32 %v6352_v43, %v274_v24  ;;  %v6470_v43 = vld [vmem:[%s9600_s5 + $0x10] sm:$0xff] }
 0x16b   :  { %454 = vmatmul.mubr.f32.gmra.mrb[16].mxu0 %v6401_v54 }
 0x16c   :  { %459 = vmatprep.mubr.f32.mxu0 %v9614_v60 }
 0x16f   :  { %460 = vmatmul.mubr.f32.gmra.mrb[18].mxu0 %v290_v62 }
 0x170   :  { %465 = vmatprep.mubr.f32.mxu0 %v9614_v60 }
 0x173   :  { %466 = vmatmul.mubr.f32.gmra.mrb[20].mxu0 %v6412_v34 }
 0x174   :  { %471 = vmatprep.mubr.f32.mxu0 %v9614_v60 }
 0x177   :  { %472 = vmatmul.mubr.f32.gmra.mrb[22].mxu0 %v6419_v48 }
 0x178   :  { %477 = vmatprep.mubr.f32.mxu0 %v9614_v60 }
 0x17b   :  { %478 = vmatmul.mubr.f32.gmra.mrb[24].mxu0 %v6426_v16 }
 0x17c   :  { %483 = vmatprep.mubr.f32.mxu0 %v9614_v60 }
 0x17f   :  { %484 = vmatmul.mubr.f32.gmra.mrb[26].mxu0 %v6433_v6 }
 0x180   :  { %489 = vmatprep.mubr.f32.mxu0 %v9614_v60 }
 0x183   :  { %490 = vmatmul.mubr.f32.gmra.mrb[28].mxu0 %v6440_v21 }
 0x184   :  { %495 = vmatprep.mubr.f32.mxu0 %v9614_v60 }
 0x187   :  { %496 = vmatmul.mubr.f32.gmra.mrb[30].mxu0 %v6446_v22 }
 0x188   :  { %1103 = vmatprep.mubr.f32.mxu0 %v9614_v60 }
 0x18b   :  { %4665 = vmatmul.mubr.msk.f32.vlgmr.msra.gmra.mrb[32].mxu0 %vm942_vm0, %v6453_v25 }
 0x18c   :  { %1554 = vmatpush1.msra.mxu0 %v6378_v14  ;;  %1109 = vmatprep.mubr.f32.mxu0 %v9614_v60  ;;  %v6534_v14 = vld [vmem:[%s9600_s5 + $0x50] sm:$0xff] }
 0x18d   :  { %2067 = vmatprep.subr.mxu0 %v290_v62  ;;  %v6729_v62 = vrot.slane %v329_v55, %v337_v61 }
 0x18f   :  { %4666 = vmatmul.mubr.msk.f32.gmra.mrb[34].mxu0 %vm942_vm0, %v6462_v40 }
 0x190   :  { %1115 = vmatprep.mubr.f32.mxu0 %v9614_v60 }
 0x193   :  { %4667 = vmatmul.mubr.msk.f32.gmra.mrb[36].mxu0 %vm942_vm0, %v6470_v43 }
 0x194   :  { %1121 = vmatprep.mubr.f32.mxu0 %v9614_v60 }
 0x197   :  { %4668 = vmatmul.mubr.msk.f32.gmra.mrb[38].mxu0 %vm942_vm0, %v6478_v23 }
 0x198   :  { %1127 = vmatprep.mubr.f32.mxu0 %v9614_v60 }
 0x19b   :  { %4669 = vmatmul.mubr.msk.f32.gmra.mrb[40].mxu0 %vm942_vm0, %v6486_v26 }
 0x19c   :  { %1133 = vmatprep.mubr.f32.mxu0 %v9614_v60 }
 0x19f   :  { %4670 = vmatmul.mubr.msk.f32.gmra.mrb[42].mxu0 %vm942_vm0, %v6494_v8 }
 0x1a0   :  { %1139 = vmatprep.mubr.f32.mxu0 %v9614_v60 }
 0x1a3   :  { %4671 = vmatmul.mubr.msk.f32.gmra.mrb[44].mxu0 %vm942_vm0, %v6502_v9 }
 0x1a4   :  { %1145 = vmatprep.mubr.f32.mxu0 %v9614_v60 }
 0x1a7   :  { %4672 = vmatmul.mubr.msk.f32.gmra.mrb[46].mxu0 %vm942_vm0, %v6510_v56 }
 0x1a8   :  { %1151 = vmatprep.mubr.f32.mxu0 %v9614_v60 }
 0x1ab   :  { %4673 = vmatmul.mubr.msk.f32.gmra.mrb[48].mxu0 %vm942_vm0, %v6518_v57 }
 0x1ac   :  { %1157 = vmatprep.mubr.f32.mxu0 %v9614_v60 }
 0x1af   :  { %4674 = vmatmul.mubr.msk.f32.gmra.mrb[50].mxu0 %vm942_vm0, %v6526_v27 }
 0x1b0   :  { %1163 = vmatprep.mubr.f32.mxu0 %v9614_v60 }
 0x1b3   :  { %4675 = vmatmul.mubr.msk.f32.gmra.mrb[52].mxu0 %vm942_vm0, %v6534_v14 }
 0x1b4   :  { %1169 = vmatprep.mubr.f32.mxu0 %v9614_v60 }
 0x1b7   :  { %4676 = vmatmul.mubr.msk.f32.gmra.mrb[54].mxu0 %vm942_vm0, %v6542_v15 }
 0x1b8   :  { %1175 = vmatprep.mubr.f32.mxu0 %v9614_v60 }
 0x1bb   :  { %4677 = vmatmul.mubr.msk.f32.gmra.mrb[56].mxu0 %vm942_vm0, %v6550_v28 }
 0x1bc   :  { %1181 = vmatprep.mubr.f32.mxu0 %v9614_v60 }
 0x1bf   :  { %4678 = vmatmul.mubr.msk.f32.gmra.mrb[58].mxu0 %vm942_vm0, %v6558_v29 }
 0x1c0   :  { %1187 = vmatprep.mubr.f32.mxu0 %v9614_v60 }
 0x1c3   :  { %4679 = vmatmul.mubr.msk.f32.gmra.mrb[60].mxu0 %vm942_vm0, %v6566_v30 }
 0x1c4   :  { %1193 = vmatprep.mubr.f32.mxu0 %v9614_v60 }
 0x1c7   :  { %4680 = vmatmul.mubr.msk.f32.gmra.mrb[62].mxu0 %vm942_vm0, %v6574_v31 }
 0x1c8   :  { %1199 = vmatprep.mubr.f32.mxu0 %v9614_v60 }
 0x1cb   :  { %4681 = vmatmul.mubr.msk.f32.gmra.mrb[64].mxu0 %vm942_vm0, %v6582_v32 }
 0x1cc   :  { %1205 = vmatprep.mubr.f32.mxu0 %v9614_v60 }
 0x1cf   :  { %4682 = vmatmul.mubr.msk.f32.gmra.mrb[66].mxu0 %vm942_vm0, %v6590_v33 }
 0x1d0   :  { %1211 = vmatprep.mubr.f32.mxu0 %v9614_v60 }
 0x1d3   :  { %4683 = vmatmul.mubr.msk.f32.gmra.mrb[68].mxu0 %vm942_vm0, %v6598_v36 }
 0x1d4   :  { %1217 = vmatprep.mubr.f32.mxu0 %v9614_v60 }
 0x1d7   :  { %4684 = vmatmul.mubr.msk.f32.gmra.mrb[70].mxu0 %vm942_vm0, %v6606_v37 }
 0x1d8   :  { %1223 = vmatprep.mubr.f32.mxu0 %v9614_v60 }
 0x1db   :  { %4685 = vmatmul.mubr.msk.f32.gmra.mrb[72].mxu0 %vm942_vm0, %v6614_v38 }
 0x1dc   :  { %1229 = vmatprep.mubr.f32.mxu0 %v9614_v60 }
 0x1df   :  { %4686 = vmatmul.mubr.msk.f32.gmra.mrb[74].mxu0 %vm942_vm0, %v6622_v0 }
 0x1e0   :  { %1235 = vmatprep.mubr.f32.mxu0 %v9614_v60 }
 0x1e3   :  { %4687 = vmatmul.mubr.msk.f32.gmra.mrb[76].mxu0 %vm942_vm0, %v6630_v10 }
 0x1e4   :  { %1241 = vmatprep.mubr.f32.mxu0 %v9614_v60 }
 0x1e7   :  { %4688 = vmatmul.mubr.msk.f32.gmra.mrb[78].mxu0 %vm942_vm0, %v6638_v11 }
 0x1e8   :  { %1247 = vmatprep.mubr.f32.mxu0 %v9614_v60 }
 0x1eb   :  { %4689 = vmatmul.mubr.msk.f32.gmra.mrb[80].mxu0 %vm942_vm0, %v6646_v44 }
 0x1ec   :  { %1253 = vmatprep.mubr.f32.mxu0 %v9614_v60 }
 0x1ef   :  { %4690 = vmatmul.mubr.msk.f32.gmra.mrb[82].mxu0 %vm942_vm0, %v6654_v1 }
 0x1f0   :  { %1259 = vmatprep.mubr.f32.mxu0 %v9614_v60 }
 0x1f3   :  { %4691 = vmatmul.mubr.msk.f32.gmra.mrb[84].mxu0 %vm942_vm0, %v6662_v45 }
 0x1f4   :  { %1265 = vmatprep.mubr.f32.mxu0 %v9614_v60 }
 0x1f7   :  { %4692 = vmatmul.mubr.msk.f32.gmra.mrb[86].mxu0 %vm942_vm0, %v6670_v46 }
 0x1f8   :  { %1271 = vmatprep.mubr.f32.mxu0 %v9614_v60 }
 0x1fb   :  { %4693 = vmatmul.mubr.msk.f32.gmra.mrb[88].mxu0 %vm942_vm0, %v6678_v49 }
 0x1fc   :  { %1277 = vmatprep.mubr.f32.mxu0 %v9614_v60 }
 0x1ff   :  { %4694 = vmatmul.mubr.msk.f32.gmra.mrb[90].mxu0 %vm942_vm0, %v6686_v51 }
 0x200   :  { %1283 = vmatprep.mubr.f32.mxu0 %v9614_v60 }
 0x203   :  { %4695 = vmatmul.mubr.msk.f32.gmra.mrb[92].mxu0 %vm942_vm0, %v6694_v52 }
 0x204   :  { %1289 = vmatprep.mubr.f32.mxu0 %v9614_v60 }
 0x207   :  { %4696 = vmatmul.mubr.msk.f32.gmra.mrb[94].mxu0 %vm942_vm0, %v6702_v19 }
 0x208   :  { %1617 = vmatprep.mubr.f32.mxu0 %v9614_v60 }
 0x20b   :  { %4729 = vmatmul.mubr.msk.f32.vlgmr.msra.gmra.mrb[96].mxu0 %vm942_vm0, %v6453_v25 }
 0x20c   :  { %2068 = vmatpush1.msra.mxu0 %v6401_v54  ;;  %1623 = vmatprep.mubr.f32.mxu0 %v9614_v60  ;;  %v333_v54 = vsub.s32 0, %v332_v41 }
 0x20d   :  { %2581 = vmatprep.subr.mxu0 %v6433_v6 }
 0x20e   :  { %v6726_v20 = vrot.slane %v329_v55, %v333_v54  ;;  %v752_v54 = vld [vmem:[%s9601_s6 + $0x10] sm:$0xff] }
 0x20f   :  { %4730 = vmatmul.mubr.msk.f32.gmra.mrb[98].mxu0 %vm942_vm0, %v6462_v40  ;;  %794 = vperm.xlu1 %5602, %v752_v54  }
 0x210   :  { %1629 = vmatprep.mubr.f32.mxu0 %v9614_v60 }
 0x213   :  { %4731 = vmatmul.mubr.msk.f32.gmra.mrb[100].mxu0 %vm942_vm0, %v6470_v43 }
 0x214   :  { %1635 = vmatprep.mubr.f32.mxu0 %v9614_v60 }
 0x217   :  { %4732 = vmatmul.mubr.msk.f32.gmra.mrb[102].mxu0 %vm942_vm0, %v6478_v23 }
 0x218   :  { %1641 = vmatprep.mubr.f32.mxu0 %v9614_v60 }
 0x21b   :  { %4733 = vmatmul.mubr.msk.f32.gmra.mrb[104].mxu0 %vm942_vm0, %v6486_v26 }
 0x21c   :  { %1647 = vmatprep.mubr.f32.mxu0 %v9614_v60 }
 0x21e   :  { %v407_v63 = vpop.f32.mrb[0].mxu0 }
 0x21f   :  { %v408_v2 = vadd.f32 %v407_v63, %v6726_v20  ;;  %v409_v3 = vpop.f32.mrb[1].mxu0  ;;  %4734 = vmatmul.mubr.msk.f32.gmra.mrb[106].mxu0 %vm942_vm0, %v6494_v8 }
 0x220   :  { %1653 = vmatprep.mubr.f32.mxu0 %v9614_v60  ;;  %v410_v12 = vadd.f32 %v409_v3, %v6729_v62  ;;  %v753_v3 = vld [vmem:[%s9601_s6 + $0x18] sm:$0xff] }
 0x221   :  { %v502_v58 = vmax.f32 %v408_v2, 0.0  ;;  %799 = vperm.xlu1 %5602, %v753_v3  }
 0x222   :  { %v413_v13 = vpop.f32.mrb[2].mxu0  ;;  %v503_v42 = vmax.f32 %v410_v12, 0.0 }
 0x223   :  { %v414_v4 = vadd.f32 %v413_v13, %v6726_v20  ;;  %v415_v5 = vpop.f32.mrb[3].mxu0  ;;  %4735 = vmatmul.mubr.msk.f32.gmra.mrb[108].mxu0 %vm942_vm0, %v6502_v9 }
 0x224   :  { %v416_v6 = vadd.f32 %v415_v5, %v6729_v62  ;;  %637 = vmatprep.mubr.f32.mxu1 %v503_v42  ;;  %1659 = vmatprep.mubr.f32.mxu0 %v9614_v60 }
 0x225   :  { %638 = vmatmul.mubr.f32.vlgmr.msra.gmra.mrb[0].mxu1 %v502_v58  ;;  %v504_v41 = vmax.f32 %v414_v4, 0.0  ;;  %v754_v58 = vld [vmem:[%s9601_s6 + $0x20] sm:$0xff] }
 0x226   :  { %1297 = vmatpush1.msra.mxu1 %v6366_v17  ;;  %v419_v59 = vpop.f32.mrb[4].mxu0  ;;  %v505_v7 = vmax.f32 %v416_v6, 0.0  ;;  %804 = vperm.xlu1 %5602, %v754_v58  }
 0x227   :  { %v420_v24 = vadd.f32 %v419_v59, %v6726_v20  ;;  %1810 = vmatprep.subr.mxu1 %v6394_v47  ;;  %v421_v53 = vpop.f32.mrb[5].mxu0  ;;  %4736 = vmatmul.mubr.msk.f32.gmra.mrb[110].mxu0 %vm942_vm0, %v6510_v56 }
 0x228   :  { %v422_v55 = vadd.f32 %v421_v53, %v6729_v62  ;;  %642 = vmatprep.mubr.f32.mxu1 %v505_v7  ;;  %1665 = vmatprep.mubr.f32.mxu0 %v9614_v60  ;;  %v755_v53 = vld [vmem:[%s9601_s6 + $0x28] sm:$0xff] }
 0x229   :  { %643 = vmatmul.mubr.f32.gmra.mrb[2].mxu1 %v504_v41  ;;  %v506_v2 = vmax.f32 %v420_v24, 0.0 }
 0x22a   :  { %v425_v17 = vpop.f32.mrb[6].mxu0  ;;  %v507_v61 = vmax.f32 %v422_v55, 0.0  ;;  %809 = vperm.xlu1 %5602, %v755_v53  }
 0x22b   :  { %v426_v47 = vadd.f32 %v425_v17, %v6726_v20  ;;  %v427_v63 = vpop.f32.mrb[7].mxu0  ;;  %4737 = vmatmul.mubr.msk.f32.gmra.mrb[112].mxu0 %vm942_vm0, %v6518_v57 }
 0x22c   :  { %v428_v12 = vadd.f32 %v427_v63, %v6729_v62  ;;  %647 = vmatprep.mubr.f32.mxu1 %v507_v61  ;;  %1671 = vmatprep.mubr.f32.mxu0 %v9614_v60  ;;  %v756_v63 = vld [vmem:[%s9601_s6 + $0x30] sm:$0xff] }
 0x22d   :  { %648 = vmatmul.mubr.f32.gmra.mrb[4].mxu1 %v506_v2  ;;  %v508_v5 = vmax.f32 %v426_v47, 0.0 }
 0x22e   :  { %v431_v13 = vpop.f32.mrb[8].mxu0  ;;  %v509_v42 = vmax.f32 %v428_v12, 0.0  ;;  %814 = vperm.xlu1 %5602, %v756_v63  }
 0x22f   :  { %v432_v35 = vadd.f32 %v431_v13, %v6726_v20  ;;  %v433_v4 = vpop.f32.mrb[9].mxu0  ;;  %4738 = vmatmul.mubr.msk.f32.gmra.mrb[114].mxu0 %vm942_vm0, %v6526_v27 }
 0x230   :  { %v434_v18 = vadd.f32 %v433_v4, %v6729_v62  ;;  %652 = vmatprep.mubr.f32.mxu1 %v509_v42  ;;  %1677 = vmatprep.mubr.f32.mxu0 %v9614_v60  ;;  %v757_v4 = vld [vmem:[%s9601_s6 + $0x38] sm:$0xff] }
 0x231   :  { %653 = vmatmul.mubr.f32.gmra.mrb[6].mxu1 %v508_v5  ;;  %v510_v24 = vmax.f32 %v432_v35, 0.0 }
 0x232   :  { %v437_v50 = vpop.f32.mrb[10].mxu0  ;;  %v511_v6 = vmax.f32 %v434_v18, 0.0  ;;  %819 = vperm.xlu1 %5602, %v757_v4  }
 0x233   :  { %v438_v59 = vadd.f32 %v437_v50, %v6726_v20  ;;  %v439_v7 = vpop.f32.mrb[11].mxu0  ;;  %4739 = vmatmul.mubr.msk.f32.gmra.mrb[116].mxu0 %vm942_vm0, %v6534_v14 }
 0x234   :  { %v440_v41 = vadd.f32 %v439_v7, %v6729_v62  ;;  %657 = vmatprep.mubr.f32.mxu1 %v511_v6  ;;  %1683 = vmatprep.mubr.f32.mxu0 %v9614_v60 }
 0x235   :  { %658 = vmatmul.mubr.f32.gmra.mrb[8].mxu1 %v510_v24  ;;  %v512_v47 = vmax.f32 %v438_v59, 0.0 }
 0x236   :  { %v443_v54 = vpop.f32.mrb[12].mxu0  ;;  %v513_v55 = vmax.f32 %v440_v41, 0.0 }
 0x237   :  { %v444_v17 = vadd.f32 %v443_v54, %v6726_v20  ;;  %v445_v61 = vpop.f32.mrb[13].mxu0  ;;  %4740 = vmatmul.mubr.msk.f32.gmra.mrb[118].mxu0 %vm942_vm0, %v6542_v15 }
 0x238   :  { %v446_v2 = vadd.f32 %v445_v61, %v6729_v62  ;;  %662 = vmatprep.mubr.f32.mxu1 %v513_v55  ;;  %1689 = vmatprep.mubr.f32.mxu0 %v9614_v60  ;;  %v759_v61 = vld [vmem:[%s9601_s6 + $0x48] sm:$0xff] }
 0x239   :  { %663 = vmatmul.mubr.f32.gmra.mrb[10].mxu1 %v512_v47  ;;  %v514_v35 = vmax.f32 %v444_v17, 0.0  ;;  %v758_v17 = vld [vmem:[%s9601_s6 + $0x40] sm:$0xff]  ;;  %829 = vperm.xlu0 %5601, %v759_v61  }
 0x23a   :  { %v449_v3 = vpop.f32.mrb[14].mxu0  ;;  %v515_v12 = vmax.f32 %v446_v2, 0.0  ;;  %824 = vperm.xlu1 %5602, %v758_v17  }
 0x23b   :  { %v450_v13 = vadd.f32 %v449_v3, %v6726_v20  ;;  %v451_v42 = vpop.f32.mrb[15].mxu0  ;;  %4741 = vmatmul.mubr.msk.f32.gmra.mrb[120].mxu0 %vm942_vm0, %v6550_v28 }
 0x23c   :  { %v452_v5 = vadd.f32 %v451_v42, %v6729_v62  ;;  %667 = vmatprep.mubr.f32.mxu1 %v515_v12  ;;  %1695 = vmatprep.mubr.f32.mxu0 %v9614_v60 }
 0x23d   :  { %668 = vmatmul.mubr.f32.gmra.mrb[12].mxu1 %v514_v35  ;;  %v516_v59 = vmax.f32 %v450_v13, 0.0 }
 0x23e   :  { %v455_v58 = vpop.f32.mrb[16].mxu0  ;;  %v517_v18 = vmax.f32 %v452_v5, 0.0 }
 0x23f   :  { %v456_v50 = vadd.f32 %v455_v58, %v6726_v20  ;;  %v457_v6 = vpop.f32.mrb[17].mxu0  ;;  %4742 = vmatmul.mubr.msk.f32.gmra.mrb[122].mxu0 %vm942_vm0, %v6558_v29 }
 0x240   :  { %v458_v7 = vadd.f32 %v457_v6, %v6729_v62  ;;  %672 = vmatprep.mubr.f32.mxu1 %v517_v18  ;;  %1701 = vmatprep.mubr.f32.mxu0 %v9614_v60  ;;  %v761_v6 = vld [vmem:[%s9601_s6 + $0x58] sm:$0xff] }
 0x241   :  { %673 = vmatmul.mubr.f32.gmra.mrb[14].mxu1 %v516_v59  ;;  %v518_v55 = vmax.f32 %v456_v50, 0.0  ;;  %v760_v50 = vld [vmem:[%s9601_s6 + $0x50] sm:$0xff]  ;;  %839 = vperm.xlu0 %5601, %v761_v6  }
 0x242   :  { %v461_v24 = vpop.f32.mrb[18].mxu0  ;;  %v519_v53 = vmax.f32 %v458_v7, 0.0  ;;  %834 = vperm.xlu1 %5602, %v760_v50  }
 0x243   :  { %v462_v41 = vadd.f32 %v461_v24, %v6726_v20  ;;  %v463_v54 = vpop.f32.mrb[19].mxu0  ;;  %4743 = vmatmul.mubr.msk.f32.gmra.mrb[124].mxu0 %vm942_vm0, %v6566_v30 }
 0x244   :  { %v464_v47 = vadd.f32 %v463_v54, %v6729_v62  ;;  %677 = vmatprep.mubr.f32.mxu1 %v519_v53  ;;  %1707 = vmatprep.mubr.f32.mxu0 %v9614_v60 }
 0x245   :  { %678 = vmatmul.mubr.f32.gmra.mrb[16].mxu1 %v518_v55  ;;  %v520_v13 = vmax.f32 %v462_v41, 0.0 }
 0x246   :  { %v467_v63 = vpop.f32.mrb[20].mxu0  ;;  %v521_v2 = vmax.f32 %v464_v47, 0.0 }
 0x247   :  { %v468_v3 = vadd.f32 %v467_v63, %v6726_v20  ;;  %v469_v12 = vpop.f32.mrb[21].mxu0  ;;  %4744 = vmatmul.mubr.msk.f32.gmra.mrb[126].mxu0 %vm942_vm0, %v6574_v31 }
 0x248   :  { %v470_v42 = vadd.f32 %v469_v12, %v6729_v62  ;;  %682 = vmatprep.mubr.f32.mxu1 %v521_v2  ;;  %1713 = vmatprep.mubr.f32.mxu0 %v9614_v60  ;;  %v763_v12 = vld [vmem:[%s9601_s6 + $0x68] sm:$0xff] }
 0x249   :  { %683 = vmatmul.mubr.f32.gmra.mrb[18].mxu1 %v520_v13  ;;  %v522_v18 = vmax.f32 %v468_v3, 0.0  ;;  %v762_v3 = vld [vmem:[%s9601_s6 + $0x60] sm:$0xff]  ;;  %849 = vperm.xlu0 %5601, %v763_v12   ;;  %v775_v12 = vld [vmem:[%s9601_s6 + $0xc8] sm:$0xff] }
 0x24a   :  { %v473_v35 = vpop.f32.mrb[22].mxu0  ;;  %v523_v4 = vmax.f32 %v470_v42, 0.0  ;;  %844 = vperm.xlu1 %5602, %v762_v3   ;;  %v774_v3 = vld [vmem:[%s9601_s6 + $0xc0] sm:$0xff] }
 0x24b   :  { %v474_v5 = vadd.f32 %v473_v35, %v6726_v20  ;;  %v475_v58 = vpop.f32.mrb[23].mxu0  ;;  %4745 = vmatmul.mubr.msk.f32.gmra.mrb[128].mxu0 %vm942_vm0, %v6582_v32 }
 0x24c   :  { %v476_v59 = vadd.f32 %v475_v58, %v6729_v62  ;;  %687 = vmatprep.mubr.f32.mxu1 %v523_v4  ;;  %1719 = vmatprep.mubr.f32.mxu0 %v9614_v60 }
 0x24d   :  { %688 = vmatmul.mubr.f32.gmra.mrb[20].mxu1 %v522_v18  ;;  %v524_v54 = vmax.f32 %v474_v5, 0.0 }
 0x24e   :  { %v479_v7 = vpop.f32.mrb[24].mxu0  ;;  %v525_v24 = vmax.f32 %v476_v59, 0.0 }
 0x24f   :  { %v480_v53 = vadd.f32 %v479_v7, %v6726_v20  ;;  %v481_v41 = vpop.f32.mrb[25].mxu0  ;;  %4746 = vmatmul.mubr.msk.f32.gmra.mrb[130].mxu0 %vm942_vm0, %v6590_v33 }
 0x250   :  { %v482_v55 = vadd.f32 %v481_v41, %v6729_v62  ;;  %692 = vmatprep.mubr.f32.mxu1 %v525_v24  ;;  %1725 = vmatprep.mubr.f32.mxu0 %v9614_v60  ;;  %v765_v41 = vld [vmem:[%s9601_s6 + $0x78] sm:$0xff] }
 0x251   :  { %693 = vmatmul.mubr.f32.gmra.mrb[22].mxu1 %v524_v54  ;;  %v526_v2 = vmax.f32 %v480_v53, 0.0  ;;  %v764_v53 = vld [vmem:[%s9601_s6 + $0x70] sm:$0xff]  ;;  %859 = vperm.xlu0 %5601, %v765_v41  }
 0x252   :  { %v485_v17 = vpop.f32.mrb[26].mxu0  ;;  %v527_v61 = vmax.f32 %v482_v55, 0.0  ;;  %854 = vperm.xlu1 %5602, %v764_v53  }
 0x253   :  { %v486_v47 = vadd.f32 %v485_v17, %v6726_v20  ;;  %v487_v63 = vpop.f32.mrb[27].mxu0  ;;  %4747 = vmatmul.mubr.msk.f32.gmra.mrb[132].mxu0 %vm942_vm0, %v6598_v36  ;;  %v767_v17 = vld [vmem:[%s9601_s6 + $0x88] sm:$0xff] }
 0x254   :  { %v488_v13 = vadd.f32 %v487_v63, %v6729_v62  ;;  %697 = vmatprep.mubr.f32.mxu1 %v527_v61  ;;  %1731 = vmatprep.mubr.f32.mxu0 %v9614_v60  ;;  %v768_v61 = vld [vmem:[%s9601_s6 + $0x90] sm:$0xff] }
 0x255   :  { %698 = vmatmul.mubr.f32.gmra.mrb[24].mxu1 %v526_v2  ;;  %v528_v58 = vmax.f32 %v486_v47, 0.0  ;;  %869 = vperm.xlu0 %5601, %v767_v17   ;;  %v769_v47 = vld [vmem:[%s9601_s6 + $0x98] sm:$0xff]  ;;  %v772_v63 = vld [vmem:[%s9601_s6 + $0xb0] sm:$0xff] }
 0x256   :  { %v491_v42 = vpop.f32.mrb[28].mxu0  ;;  %v529_v35 = vmax.f32 %v488_v13, 0.0  ;;  %v773_v2 = vld [vmem:[%s9601_s6 + $0xb8] sm:$0xff]  ;;  %v776_v13 = vld [vmem:[%s9601_s6 + $0xd0] sm:$0xff] }
 0x257   :  { %v492_v4 = vadd.f32 %v491_v42, %v6726_v20  ;;  %v493_v5 = vpop.f32.mrb[29].mxu0  ;;  %4748 = vmatmul.mubr.msk.f32.gmra.mrb[134].mxu0 %vm942_vm0, %v6606_v37  ;;  %v777_v42 = vld [vmem:[%s9601_s6 + $0xd8] sm:$0xff] }
 0x258   :  { %v494_v18 = vadd.f32 %v493_v5, %v6729_v62  ;;  %702 = vmatprep.mubr.f32.mxu1 %v529_v35  ;;  %1737 = vmatprep.mubr.f32.mxu0 %v9614_v60  ;;  %v778_v35 = vld [vmem:[%s9601_s6 + $0xe0] sm:$0xff]  ;;  %v780_v5 = vld [vmem:[%s9601_s6 + $0xf0] sm:$0xff] }
 0x259   :  { %703 = vmatmul.mubr.f32.gmra.mrb[26].mxu1 %v528_v58  ;;  %v530_v24 = vmax.f32 %v492_v4, 0.0  ;;  %879 = vperm.xlu0 %5601, %v769_v47   ;;  %v779_v4 = vld [vmem:[%s9601_s6 + $0xe8] sm:$0xff]  ;;  %v781_v58 = vld [vmem:[%s9601_s6 + $0xf8] sm:$0xff] }
 0x25a   :  { %v497_v50 = vpop.f32.mrb[30].mxu0  ;;  %v531_v6 = vmax.f32 %v494_v18, 0.0 }
 0x25b   :  { %v498_v59 = vadd.f32 %v497_v50, %v6726_v20  ;;  %v499_v7 = vpop.f32.mrb[31].mxu0  ;;  %4749 = vmatmul.mubr.msk.f32.gmra.mrb[136].mxu0 %vm942_vm0, %v6614_v38 }
 0x25c   :  { %v500_v54 = vadd.f32 %v499_v7, %v6729_v62  ;;  %707 = vmatprep.mubr.f32.mxu1 %v531_v6  ;;  %1743 = vmatprep.mubr.f32.mxu0 %v9614_v60  ;;  %v766_v62 = vld [vmem:[%s9601_s6 + $0x80] sm:$0xff] }
 0x25d   :  { %708 = vmatmul.mubr.f32.gmra.mrb[28].mxu1 %v530_v24  ;;  %v532_v55 = vmax.f32 %v498_v59, 0.0  ;;  %864 = vperm.xlu1 %5602, %v766_v62  }
 0x25e   :  { %v533_v20 = vmax.f32 %v500_v54, 0.0 }
 0x25f   :  { %4750 = vmatmul.mubr.msk.f32.gmra.mrb[138].mxu0 %vm942_vm0, %v6622_v0 }
 0x260   :  { %712 = vmatprep.mubr.f32.mxu1 %v533_v20  ;;  %1749 = vmatprep.mubr.f32.mxu0 %v9614_v60 }
 0x261   :  { %713 = vmatmul.mubr.f32.gmra.mrb[30].mxu1 %v532_v55  ;;  %874 = vperm.xlu1 %5602, %v768_v61  }
 0x262   :  { %1360 = vmatprep.mubr.f32.mxu1 %v9614_v60 }
 0x263   :  { %4751 = vmatmul.mubr.msk.f32.gmra.mrb[140].mxu0 %vm942_vm0, %v6630_v10 }
 0x264   :  { %1755 = vmatprep.mubr.f32.mxu0 %v9614_v60 }
 0x265   :  { %4697 = vmatmul.mubr.msk.f32.vlgmr.msra.gmra.mrb[32].mxu1 %vm942_vm0, %v6453_v25 }
 0x266   :  { %1811 = vmatpush1.msra.mxu1 %v6387_v39  ;;  %1366 = vmatprep.mubr.f32.mxu1 %v9614_v60  ;;  %v770_v39 = vld [vmem:[%s9601_s6 + $0xa0] sm:$0xff] }
 0x267   :  { %2324 = vmatprep.subr.mxu1 %v6419_v48  ;;  %4752 = vmatmul.mubr.msk.f32.gmra.mrb[142].mxu0 %vm942_vm0, %v6638_v11  ;;  %v771_v48 = vld [vmem:[%s9601_s6 + $0xa8] sm:$0xff] }
 0x268   :  { %1761 = vmatprep.mubr.f32.mxu0 %v9614_v60  ;;  %884 = vperm.xlu1 %5602, %v770_v39  }
 0x269   :  { %4698 = vmatmul.mubr.msk.f32.gmra.mrb[34].mxu1 %vm942_vm0, %v6462_v40  ;;  %889 = vperm.xlu0 %5601, %v771_v48  }
 0x26a   :  { %1372 = vmatprep.mubr.f32.mxu1 %v9614_v60 }
 0x26b   :  { %4753 = vmatmul.mubr.msk.f32.gmra.mrb[144].mxu0 %vm942_vm0, %v6646_v44 }
 0x26c   :  { %1767 = vmatprep.mubr.f32.mxu0 %v9614_v60  ;;  %894 = vperm.xlu1 %5602, %v772_v63  }
 0x26d   :  { %4699 = vmatmul.mubr.msk.f32.gmra.mrb[36].mxu1 %vm942_vm0, %v6470_v43  ;;  %899 = vperm.xlu0 %5601, %v773_v2  }
 0x26e   :  { %1378 = vmatprep.mubr.f32.mxu1 %v9614_v60 }
 0x26f   :  { %4754 = vmatmul.mubr.msk.f32.gmra.mrb[146].mxu0 %vm942_vm0, %v6654_v1 }
 0x270   :  { %1773 = vmatprep.mubr.f32.mxu0 %v9614_v60  ;;  %904 = vperm.xlu1 %5602, %v774_v3  }
 0x271   :  { %4700 = vmatmul.mubr.msk.f32.gmra.mrb[38].mxu1 %vm942_vm0, %v6478_v23  ;;  %909 = vperm.xlu0 %5601, %v775_v12  }
 0x272   :  { %1384 = vmatprep.mubr.f32.mxu1 %v9614_v60 }
 0x273   :  { %4755 = vmatmul.mubr.msk.f32.gmra.mrb[148].mxu0 %vm942_vm0, %v6662_v45 }
 0x274   :  { %1779 = vmatprep.mubr.f32.mxu0 %v9614_v60  ;;  %914 = vperm.xlu1 %5602, %v776_v13  }
 0x275   :  { %4701 = vmatmul.mubr.msk.f32.gmra.mrb[40].mxu1 %vm942_vm0, %v6486_v26  ;;  %919 = vperm.xlu0 %5601, %v777_v42  }
 0x276   :  { %1390 = vmatprep.mubr.f32.mxu1 %v9614_v60 }
 0x277   :  { %4756 = vmatmul.mubr.msk.f32.gmra.mrb[150].mxu0 %vm942_vm0, %v6670_v46 }
 0x278   :  { %1785 = vmatprep.mubr.f32.mxu0 %v9614_v60  ;;  %924 = vperm.xlu1 %5602, %v778_v35  }
 0x279   :  { %4702 = vmatmul.mubr.msk.f32.gmra.mrb[42].mxu1 %vm942_vm0, %v6494_v8  ;;  %929 = vperm.xlu0 %5601, %v779_v4  }
 0x27a   :  { %1396 = vmatprep.mubr.f32.mxu1 %v9614_v60 }
 0x27b   :  { %4757 = vmatmul.mubr.msk.f32.gmra.mrb[152].mxu0 %vm942_vm0, %v6678_v49 }
 0x27c   :  { %1791 = vmatprep.mubr.f32.mxu0 %v9614_v60  ;;  %934 = vperm.xlu1 %5602, %v780_v5  }
 0x27d   :  { %4703 = vmatmul.mubr.msk.f32.gmra.mrb[44].mxu1 %vm942_vm0, %v6502_v9  ;;  %939 = vperm.xlu0 %5601, %v781_v58  }
 0x27e   :  { %1402 = vmatprep.mubr.f32.mxu1 %v9614_v60 }
 0x27f   :  { %4758 = vmatmul.mubr.msk.f32.gmra.mrb[154].mxu0 %vm942_vm0, %v6686_v51 }
 0x280   :  { %1797 = vmatprep.mubr.f32.mxu0 %v9614_v60 }
 0x281   :  { %4704 = vmatmul.mubr.msk.f32.gmra.mrb[46].mxu1 %vm942_vm0, %v6510_v56 }
 0x282   :  { %1408 = vmatprep.mubr.f32.mxu1 %v9614_v60 }
 0x283   :  { %4759 = vmatmul.mubr.msk.f32.gmra.mrb[156].mxu0 %vm942_vm0, %v6694_v52 }
 0x284   :  { %1803 = vmatprep.mubr.f32.mxu0 %v9614_v60 }
 0x285   :  { %4705 = vmatmul.mubr.msk.f32.gmra.mrb[48].mxu1 %vm942_vm0, %v6518_v57 }
 0x286   :  { %1414 = vmatprep.mubr.f32.mxu1 %v9614_v60 }
 0x287   :  { %4760 = vmatmul.mubr.msk.f32.gmra.mrb[158].mxu0 %vm942_vm0, %v6702_v19 }
 0x288   :  { %2131 = vmatprep.mubr.f32.mxu0 %v9614_v60 }
 0x289   :  { %4706 = vmatmul.mubr.msk.f32.gmra.mrb[50].mxu1 %vm942_vm0, %v6526_v27 }
 0x28a   :  { %1420 = vmatprep.mubr.f32.mxu1 %v9614_v60 }
 0x28b   :  { %4793 = vmatmul.mubr.msk.f32.vlgmr.msra.gmra.mrb[160].mxu0 %vm942_vm0, %v6453_v25 }
 0x28c   :  { %2582 = vmatpush1.msra.mxu0 %v6426_v16  ;;  %2137 = vmatprep.mubr.f32.mxu0 %v9614_v60  ;;  %v1105_v16 = vpop.f32.mrb[32].mxu0 }
 0x28d   :  { %4707 = vmatmul.mubr.msk.f32.gmra.mrb[52].mxu1 %vm942_vm0, %v6534_v14  ;;  %v1107_v25 = vpop.f32.mrb[33].mxu0 }
 0x28e   :  { %1426 = vmatprep.mubr.f32.mxu1 %v9614_v60 }
 0x28f   :  { %4794 = vmatmul.mubr.msk.f32.gmra.mrb[162].mxu0 %vm942_vm0, %v6462_v40  ;;  %v1111_v40 = vpop.f32.mrb[34].mxu0 }
 0x290   :  { %2143 = vmatprep.mubr.f32.mxu0 %v9614_v60 }
 0x291   :  { %4708 = vmatmul.mubr.msk.f32.gmra.mrb[54].mxu1 %vm942_vm0, %v6542_v15 }
 0x292   :  { %1432 = vmatprep.mubr.f32.mxu1 %v9614_v60 }
 0x293   :  { %4795 = vmatmul.mubr.msk.f32.gmra.mrb[164].mxu0 %vm942_vm0, %v6470_v43  ;;  %v7015_v43 = vpop.permute.xlu1 %789 }
 0x294   :  { %2149 = vmatprep.mubr.f32.mxu0 %v9614_v60  ;;  %9709 = vst [vmem:[#allocation9_spill] sm:$0xff] %v7015_v43  ;;  %v1112_v50 = vadd.f32 %v1111_v40, %v7015_v43 }
 0x295   :  { %4709 = vmatmul.mubr.msk.f32.gmra.mrb[56].mxu1 %vm942_vm0, %v6550_v28 }
 0x296   :  { %1438 = vmatprep.mubr.f32.mxu1 %v9614_v60  ;;  %v3111_v53 = vmax.f32 %v1112_v50, 0.0 }
 0x297   :  { %4796 = vmatmul.mubr.msk.f32.gmra.mrb[166].mxu0 %vm942_vm0, %v6478_v23  ;;  %v1113_v23 = vpop.f32.mrb[35].mxu0  ;;  %v7029_v6 = vpop.permute.xlu1 %794 }
 0x298   :  { %2155 = vmatprep.mubr.f32.mxu0 %v9614_v60  ;;  %v1117_v51 = vpop.f32.mrb[36].mxu0  ;;  %9711 = vst [vmem:[#allocation11_spill] sm:$0xff] %v7029_v6 }
 0x299   :  { %4710 = vmatmul.mubr.msk.f32.gmra.mrb[58].mxu1 %vm942_vm0, %v6558_v29  ;;  %v1119_v19 = vpop.f32.mrb[37].mxu0  ;;  %v1118_v48 = vadd.f32 %v1117_v51, %v7029_v6 }
 0x29a   :  { %1444 = vmatprep.mubr.f32.mxu1 %v9614_v60  ;;  %v1123_v59 = vpop.f32.mrb[38].mxu0 }
 0x29b   :  { %4797 = vmatmul.mubr.msk.f32.gmra.mrb[168].mxu0 %vm942_vm0, %v6486_v26  ;;  %v1114_v26 = vadd.f32 %v1113_v23, %v7015_v43  ;;  %v1125_v41 = vpop.f32.mrb[39].mxu0  ;;  %v3127_v13 = vmax.f32 %v1118_v48, 0.0 }
 0x29c   :  { %2161 = vmatprep.mubr.f32.mxu0 %v9614_v60  ;;  %v1129_v20 = vpop.f32.mrb[40].mxu0 }
 0x29d   :  { %4711 = vmatmul.mubr.msk.f32.gmra.mrb[60].mxu1 %vm942_vm0, %v6566_v30 }
 0x29e   :  { %1450 = vmatprep.mubr.f32.mxu1 %v9614_v60 }
 0x29f   :  { %4798 = vmatmul.mubr.msk.f32.gmra.mrb[170].mxu0 %vm942_vm0, %v6494_v8  ;;  %v7020_v8 = vpop.permute.xlu0 %784 }
 0x2a0   :  { %2167 = vmatprep.mubr.f32.mxu0 %v9614_v60  ;;  %9710 = vst [vmem:[#allocation10_spill] sm:$0xff] %v7020_v8  ;;  %v1108_v52 = vadd.f32 %v1107_v25, %v7020_v8  ;;  %v1106_v18 = vadd.f32 %v1105_v16, %v7020_v8  ;;  %v7040_v62 = vpop.permute.xlu1 %799 }
 0x2a1   :  { %4712 = vmatmul.mubr.msk.f32.gmra.mrb[62].mxu1 %vm942_vm0, %v6574_v31  ;;  %9712 = vst [vmem:[#allocation12_spill] sm:$0xff] %v7040_v62  ;;  %v1126_v39 = vadd.f32 %v1125_v41, %v7040_v62  ;;  %v1124_v63 = vadd.f32 %v1123_v59, %v7040_v62 }
 0x2a2   :  { %1456 = vmatprep.mubr.f32.mxu1 %v9614_v60  ;;  %v3096_v7 = vmax.f32 %v1108_v52, 0.0  ;;  %v3095_v24 = vmax.f32 %v1106_v18, 0.0 }
 0x2a3   :  { %4799 = vmatmul.mubr.msk.f32.gmra.mrb[172].mxu0 %vm942_vm0, %v6502_v9  ;;  %v3112_v9 = vmax.f32 %v1114_v26, 0.0  ;;  %v3144_v3 = vmax.f32 %v1126_v39, 0.0  ;;  %v3143_v42 = vmax.f32 %v1124_v63, 0.0 }
 0x2a4   :  { %2173 = vmatprep.mubr.f32.mxu0 %v9614_v60  ;;  %v7037_v55 = vpack.c.bf16 %v3111_v53, %v3095_v24 }
 0x2a5   :  { %4713 = vmatmul.mubr.msk.f32.gmra.mrb[64].mxu1 %vm942_vm0, %v6582_v32  ;;  %v5083_v54 = vpack.c.bf16 %v3112_v9, %v3096_v7  ;;  %v7051_v2 = vpop.permute.xlu1 %804  ;;  %v7062_v5 = vpack.c.bf16 %v3143_v42, %v3127_v13 }
 0x2a6   :  { %1462 = vmatprep.mubr.f32.mxu1 %v9614_v60  ;;  %9713 = vst [vmem:[#allocation13_spill] sm:$0xff] %v7051_v2  ;;  %v1130_v26 = vadd.f32 %v1129_v20, %v7051_v2 }
 0x2a7   :  { %4800 = vmatmul.mubr.msk.f32.gmra.mrb[174].mxu0 %vm942_vm0, %v6510_v56  ;;  %v1120_v56 = vadd.f32 %v1119_v19, %v7029_v6  ;;  %5084 = vmatprep.subr.bf16.mxu0 %v5083_v54  ;;  %9715 = vst [vmem:[#allocation15_spill] sm:$0xff] %v7062_v5  ;;  %v7388_v5 = vld [vmem:[%s9600_s5 + $0x8] sm:$0xff] }
 0x2a8   :  { %2179 = vmatprep.mubr.f32.mxu0 %v9614_v60  ;;  %9749 = vst [vmem:[#allocation48_spill] sm:$0xff] %v7388_v5 }
 0x2a9   :  { %4714 = vmatmul.mubr.msk.f32.gmra.mrb[66].mxu1 %vm942_vm0, %v6590_v33  ;;  %v1131_v33 = vpop.f32.mrb[41].mxu0  ;;  %v3128_v61 = vmax.f32 %v1120_v56, 0.0  ;;  %v7065_v58 = vpop.permute.xlu1 %809 }
 0x2aa   :  { %1468 = vmatprep.mubr.f32.mxu1 %v9614_v60  ;;  %v1135_v17 = vpop.f32.mrb[42].mxu0  ;;  %9716 = vst [vmem:[#allocation16_spill] sm:$0xff] %v7065_v58  ;;  %v1132_v40 = vadd.f32 %v1131_v33, %v7051_v2 }
 0x2ab   :  { %4801 = vmatmul.mubr.msk.f32.gmra.mrb[176].mxu0 %vm942_vm0, %v6518_v57  ;;  %v1137_v47 = vpop.f32.mrb[43].mxu0  ;;  %v7056_v35 = vpack.c.bf16 %v3144_v3, %v3128_v61  ;;  %v1136_v51 = vadd.f32 %v1135_v17, %v7065_v58 }
 0x2ac   :  { %2185 = vmatprep.mubr.f32.mxu0 %v9614_v60  ;;  %v1141_v57 = vpop.f32.mrb[44].mxu0  ;;  %v3160_v9 = vmax.f32 %v1132_v40, 0.0 }
 0x2ad   :  { %4715 = vmatmul.mubr.msk.f32.gmra.mrb[68].mxu1 %vm942_vm0, %v6598_v36  ;;  %v1143_v36 = vpop.f32.mrb[45].mxu0  ;;  %9714 = vst [vmem:[#allocation14_spill] sm:$0xff] %v7056_v35  ;;  %v3175_v50 = vmax.f32 %v1136_v51, 0.0 }
 0x2ae   :  { %1474 = vmatprep.mubr.f32.mxu1 %v9614_v60  ;;  %v1147_v12 = vpop.f32.mrb[46].mxu0 }
 0x2af   :  { %4802 = vmatmul.mubr.msk.f32.gmra.mrb[178].mxu0 %vm942_vm0, %v6526_v27  ;;  %v1149_v27 = vpop.f32.mrb[47].mxu0 }
 0x2b0   :  { %2191 = vmatprep.mubr.f32.mxu0 %v9614_v60  ;;  %v7060_v4 = vpop.f32.mrb[48].mxu0 }
 0x2b1   :  { %4716 = vmatmul.mubr.msk.f32.gmra.mrb[70].mxu1 %vm942_vm0, %v6606_v37  ;;  %v1155_v37 = vpop.f32.mrb[49].mxu0 }
 0x2b2   :  { %1480 = vmatprep.mubr.f32.mxu1 %v9614_v60  ;;  %v1159_v16 = vpop.f32.mrb[50].mxu0 }
 0x2b3   :  { %4803 = vmatmul.mubr.msk.f32.gmra.mrb[180].mxu0 %vm942_vm0, %v6534_v14  ;;  %v1161_v25 = vpop.f32.mrb[51].mxu0  ;;  %v1138_v14 = vadd.f32 %v1137_v47, %v7065_v58 }
 0x2b4   :  { %2197 = vmatprep.mubr.f32.mxu0 %v9614_v60  ;;  %v7074_v23 = vpop.f32.mrb[52].mxu0 }
 0x2b5   :  { %4717 = vmatmul.mubr.msk.f32.gmra.mrb[72].mxu1 %vm942_vm0, %v6614_v38  ;;  %v7079_v38 = vpop.permute.xlu1 %814  ;;  %v7081_v52 = vpop.f32.mrb[53].mxu0  ;;  %v3176_v19 = vmax.f32 %v1138_v14, 0.0 }
 0x2b6   :  { %1486 = vmatprep.mubr.f32.mxu1 %v9614_v60  ;;  %9717 = vst [vmem:[#allocation17_spill] sm:$0xff] %v7079_v38  ;;  %v7085_v18 = vpop.f32.mrb[54].mxu0  ;;  %v1142_v20 = vadd.f32 %v1141_v57, %v7079_v38 }
 0x2b7   :  { %4804 = vmatmul.mubr.msk.f32.gmra.mrb[182].mxu0 %vm942_vm0, %v6542_v15  ;;  %v3159_v15 = vmax.f32 %v1130_v26, 0.0  ;;  %v7088_v59 = vpack.c.bf16 %v3176_v19, %v3160_v9  ;;  %v7092_v7 = vpop.f32.mrb[55].mxu0 }
 0x2b8   :  { %2203 = vmatprep.mubr.f32.mxu0 %v9614_v60  ;;  %v7097_v53 = vpop.f32.mrb[56].mxu0  ;;  %v3191_v47 = vmax.f32 %v1142_v20, 0.0 }
 0x2b9   :  { %4718 = vmatmul.mubr.msk.f32.gmra.mrb[74].mxu1 %vm942_vm0, %v6622_v0  ;;  %9718 = vst [vmem:[#allocation18_spill] sm:$0xff] %v7088_v59  ;;  %v7094_v24 = vpack.c.bf16 %v3175_v50, %v3159_v15  ;;  %v7099_v0 = vpop.permute.xlu1 %819  ;;  %v7103_v56 = vpop.f32.mrb[57].mxu0 }
 0x2ba   :  { %1492 = vmatprep.mubr.f32.mxu1 %v9614_v60  ;;  %9720 = vst [vmem:[#allocation20_spill] sm:$0xff] %v7099_v0  ;;  %v7106_v41 = vpop.f32.mrb[58].mxu0  ;;  %v1150_v54 = vadd.f32 %v1149_v27, %v7099_v0  ;;  %v1148_v33 = vadd.f32 %v1147_v12, %v7099_v0  ;;  %v7139_v12 = vpop.permute.xlu0 %829 }
 0x2bb   :  { %4805 = vmatmul.mubr.msk.f32.gmra.mrb[184].mxu0 %vm942_vm0, %v6550_v28  ;;  %9719 = vst [vmem:[#allocation19_spill] sm:$0xff] %v7094_v24  ;;  %v1144_v28 = vadd.f32 %v1143_v36, %v7079_v38  ;;  %v7117_v61 = vpop.f32.mrb[59].mxu0  ;;  %9724 = vst [vmem:[#allocation24_spill] sm:$0xff] %v7139_v12  ;;  %v1162_v42 = vadd.f32 %v1161_v25, %v7139_v12  ;;  %v1160_v40 = vadd.f32 %v1159_v16, %v7139_v12 }
 0x2bc   :  { %2209 = vmatprep.mubr.f32.mxu0 %v9614_v60  ;;  %v3208_v17 = vmax.f32 %v1150_v54, 0.0  ;;  %v3207_v39 = vmax.f32 %v1148_v33, 0.0  ;;  %v7120_v48 = vpop.f32.mrb[60].mxu0  ;;  %v7192_v33 = vld [vmem:[%s9600_s5 + $0x88] sm:$0xff] }
 0x2bd   :  { %4719 = vmatmul.mubr.msk.f32.gmra.mrb[76].mxu1 %vm942_vm0, %v6630_v10  ;;  %v3192_v10 = vmax.f32 %v1144_v28, 0.0  ;;  %v7126_v57 = vpop.f32.mrb[61].mxu0  ;;  %v7133_v36 = vpop.permute.xlu1 %824  ;;  %v3240_v51 = vmax.f32 %v1162_v42, 0.0  ;;  %9729 = vst [vmem:[#allocation29_spill] sm:$0xff] %v7192_v33 }
 0x2be   :  { %1498 = vmatprep.mubr.f32.mxu1 %v9614_v60  ;;  %v7128_v63 = vpack.c.bf16 %v3207_v39, %v3191_v47  ;;  %9723 = vst [vmem:[#allocation23_spill] sm:$0xff] %v7133_v36  ;;  %v1156_v13 = vadd.f32 %v1155_v37, %v7133_v36 }
 0x2bf   :  { %4806 = vmatmul.mubr.msk.f32.gmra.mrb[186].mxu0 %vm942_vm0, %v6558_v29  ;;  %v7122_v29 = vpack.c.bf16 %v3208_v17, %v3192_v10 }
 0x2c0   :  { %2215 = vmatprep.mubr.f32.mxu0 %v9614_v60  ;;  %9722 = vst [vmem:[#allocation22_spill] sm:$0xff] %v7128_v63  ;;  %v3224_v26 = vmax.f32 %v1156_v13, 0.0  ;;  %v7180_v28 = vpop.permute.xlu0 %839  ;;  %v7326_v63 = vld [vmem:[%s9600_s5 + $0xf8] sm:$0xff] }
 0x2c1   :  { %4720 = vmatmul.mubr.msk.f32.gmra.mrb[78].mxu1 %vm942_vm0, %v6638_v11  ;;  %9721 = vst [vmem:[#allocation21_spill] sm:$0xff] %v7122_v29  ;;  %v7131_v11 = vpop.f32.mrb[62].mxu0  ;;  %v7174_v15 = vpop.permute.xlu1 %834  ;;  %9728 = vst [vmem:[#allocation28_spill] sm:$0xff] %v7180_v28  ;;  %v1174_v20 = vadd.f32 %v7092_v7, %v7180_v28  ;;  %v1172_v17 = vadd.f32 %v7085_v18, %v7180_v28  ;;  %v7217_v18 = vld [vmem:[%s9600_s5 + $0x90] sm:$0xff] }
 0x2c2   :  { %1504 = vmatprep.mubr.f32.mxu1 %v9614_v60  ;;  %v7137_v3 = vpop.f32.mrb[63].mxu0  ;;  %9727 = vst [vmem:[#allocation27_spill] sm:$0xff] %v7174_v15  ;;  %v1168_v54 = vadd.f32 %v7081_v52, %v7174_v15  ;;  %v1166_v10 = vadd.f32 %v7074_v23, %v7174_v15  ;;  %9731 = vst [vmem:[#allocation31_spill] sm:$0xff] %v7217_v18 }
 0x2c3   :  { %4807 = vmatmul.mubr.msk.f32.gmra.mrb[188].mxu0 %vm942_vm0, %v6566_v30  ;;  %v7142_v30 = vpop.f32.mrb[64].mxu0  ;;  %v3272_v47 = vmax.f32 %v1174_v20, 0.0  ;;  %v3271_v42 = vmax.f32 %v1172_v17, 0.0  ;;  %v7246_v17 = vld [vmem:[%s9600_s5 + $0x98] sm:$0xff] }
 0x2c4   :  { %2221 = vmatprep.mubr.f32.mxu0 %v9614_v60  ;;  %v7148_v27 = vpop.f32.mrb[65].mxu0  ;;  %v3256_v7 = vmax.f32 %v1168_v54, 0.0  ;;  %v3255_v13 = vmax.f32 %v1166_v10, 0.0  ;;  %9735 = vst [vmem:[#allocation35_spill] sm:$0xff] %v7246_v17 }
 0x2c5   :  { %4721 = vmatmul.mubr.msk.f32.gmra.mrb[80].mxu1 %vm942_vm0, %v6646_v44  ;;  %v1154_v44 = vadd.f32 %v7060_v4, %v7133_v36  ;;  %v7154_v14 = vpop.f32.mrb[66].mxu0  ;;  %v7163_v4 = vpack.c.bf16 %v3240_v51, %v3224_v26 }
 0x2c6   :  { %1510 = vmatprep.mubr.f32.mxu1 %v9614_v60  ;;  %v7158_v37 = vpop.f32.mrb[67].mxu0  ;;  %v7212_v23 = vpack.c.bf16 %v3272_v47, %v3256_v7 }
 0x2c7   :  { %4808 = vmatmul.mubr.msk.f32.gmra.mrb[190].mxu0 %vm942_vm0, %v6574_v31  ;;  %v3223_v25 = vmax.f32 %v1154_v44, 0.0  ;;  %v3239_v31 = vmax.f32 %v1160_v40, 0.0  ;;  %v7161_v9 = vpop.f32.mrb[68].mxu0  ;;  %9725 = vst [vmem:[#allocation25_spill] sm:$0xff] %v7163_v4 }
 0x2c8   :  { %2227 = vmatprep.mubr.f32.mxu0 %v9614_v60  ;;  %v7167_v16 = vpop.f32.mrb[69].mxu0  ;;  %9730 = vst [vmem:[#allocation30_spill] sm:$0xff] %v7212_v23 }
 0x2c9   :  { %4722 = vmatmul.mubr.msk.f32.gmra.mrb[82].mxu1 %vm942_vm0, %v6654_v1  ;;  %v7169_v19 = vpack.c.bf16 %v3239_v31, %v3223_v25  ;;  %v7172_v1 = vpop.f32.mrb[70].mxu0  ;;  %v7228_v51 = vpop.permute.xlu1 %844 }
 0x2ca   :  { %1516 = vmatprep.mubr.f32.mxu1 %v9614_v60  ;;  %v7178_v50 = vpop.f32.mrb[71].mxu0  ;;  %9733 = vst [vmem:[#allocation33_spill] sm:$0xff] %v7228_v51  ;;  %v7234_v31 = vpop.permute.xlu0 %849  ;;  %v1180_v20 = vadd.f32 %v7103_v56, %v7228_v51  ;;  %v1178_v7 = vadd.f32 %v7097_v53, %v7228_v51 }
 0x2cb   :  { %4809 = vmatmul.mubr.msk.f32.gmra.mrb[192].mxu0 %vm942_vm0, %v6582_v32  ;;  %9726 = vst [vmem:[#allocation26_spill] sm:$0xff] %v7169_v19  ;;  %v7183_v32 = vpop.f32.mrb[72].mxu0  ;;  %9734 = vst [vmem:[#allocation34_spill] sm:$0xff] %v7234_v31  ;;  %v1186_v10 = vadd.f32 %v7117_v61, %v7234_v31  ;;  %v1184_v47 = vadd.f32 %v7106_v41, %v7234_v31 }
 0x2cc   :  { %2233 = vmatprep.mubr.f32.mxu0 %v9614_v60  ;;  %v3288_v61 = vmax.f32 %v1180_v20, 0.0  ;;  %v3287_v53 = vmax.f32 %v1178_v7, 0.0  ;;  %v7276_v20 = vld [vmem:[%s9600_s5 + $0xa0] sm:$0xff] }
 0x2cd   :  { %4723 = vmatmul.mubr.msk.f32.gmra.mrb[84].mxu1 %vm942_vm0, %v6662_v45  ;;  %v7196_v45 = vpop.f32.mrb[73].mxu0  ;;  %9737 = vst [vmem:[#allocation37_spill] sm:$0xff] %v7276_v20 }
 0x2ce   :  { %1522 = vmatprep.mubr.f32.mxu1 %v9614_v60  ;;  %v7203_v52 = vpop.f32.mrb[74].mxu0 }
 0x2cf   :  { %4810 = vmatmul.mubr.msk.f32.gmra.mrb[194].mxu0 %vm942_vm0, %v7192_v33  ;;  %v7207_v39 = vpop.f32.mrb[75].mxu0 }
 0x2d0   :  { %2239 = vmatprep.mubr.f32.mxu0 %v9614_v60  ;;  %v7210_v44 = vpop.f32.mrb[76].mxu0 }
 0x2d1   :  { %4724 = vmatmul.mubr.msk.f32.gmra.mrb[86].mxu1 %vm942_vm0, %v6670_v46  ;;  %v7221_v40 = vpop.f32.mrb[77].mxu0  ;;  %v7223_v46 = vpack.c.bf16 %v3271_v42, %v3255_v13  ;;  %v3304_v13 = vmax.f32 %v1186_v10, 0.0  ;;  %v7262_v42 = vld [vmem:[%s9600_s5 + $0xe8] sm:$0xff] }
 0x2d2   :  { %1528 = vmatprep.mubr.f32.mxu1 %v9614_v60  ;;  %v7226_v26 = vpop.f32.mrb[78].mxu0 }
 0x2d3   :  { %4811 = vmatmul.mubr.msk.f32.gmra.mrb[196].mxu0 %vm942_vm0, %v7217_v18  ;;  %9732 = vst [vmem:[#allocation32_spill] sm:$0xff] %v7223_v46  ;;  %v7232_v25 = vpop.f32.mrb[79].mxu0  ;;  %v7271_v18 = vpack.c.bf16 %v3304_v13, %v3288_v61  ;;  %v7292_v61 = vld [vmem:[%s9600_s5 + $0xf0] sm:$0xff] }
 0x2d4   :  { %2245 = vmatprep.mubr.f32.mxu0 %v9614_v60  ;;  %v7237_v54 = vpop.f32.mrb[80].mxu0 }
 0x2d5   :  { %4725 = vmatmul.mubr.msk.f32.gmra.mrb[88].mxu1 %vm942_vm0, %v6678_v49  ;;  %v7250_v49 = vpop.f32.mrb[81].mxu0  ;;  %9736 = vst [vmem:[#allocation36_spill] sm:$0xff] %v7271_v18  ;;  %v7310_v18 = vld [vmem:[%s9600_s5 + $0xa8] sm:$0xff] }
 0x2d6   :  { %1534 = vmatprep.mubr.f32.mxu1 %v9614_v60  ;;  %v7257_v56 = vpop.f32.mrb[82].mxu0  ;;  %9741 = vst [vmem:[#allocation41_spill] sm:$0xff] %v7310_v18 }
 0x2d7   :  { %4812 = vmatmul.mubr.msk.f32.gmra.mrb[198].mxu0 %vm942_vm0, %v7246_v17  ;;  %v7266_v21 = vpop.f32.mrb[83].mxu0  ;;  %v3303_v17 = vmax.f32 %v1184_v47, 0.0  ;;  %v7287_v47 = vpop.permute.xlu1 %854 }
 0x2d8   :  { %2251 = vmatprep.mubr.f32.mxu0 %v9614_v60  ;;  %v7269_v41 = vpop.f32.mrb[84].mxu0  ;;  %9739 = vst [vmem:[#allocation39_spill] sm:$0xff] %v7287_v47 }
 0x2d9   :  { %4726 = vmatmul.mubr.msk.f32.gmra.mrb[90].mxu1 %vm942_vm0, %v7262_v42  ;;  %v7280_v10 = vpop.f32.mrb[85].mxu0  ;;  %v7282_v33 = vpack.c.bf16 %v3303_v17, %v3287_v53  ;;  %v1192_v53 = vadd.f32 %v7126_v57, %v7287_v47  ;;  %v9742_v57 = vmov 0.0  }
 0x2da   :  { %1540 = vmatprep.mubr.f32.mxu1 %v9614_v60  ;;  %v7285_v7 = vpop.f32.mrb[86].mxu0 }
 0x2db   :  { %4813 = vmatmul.mubr.msk.f32.gmra.mrb[200].mxu0 %vm942_vm0, %v7276_v20  ;;  %9738 = vst [vmem:[#allocation38_spill] sm:$0xff] %v7282_v33  ;;  %v7296_v13 = vpop.f32.mrb[87].mxu0  ;;  %v7298_v20 = vpop.permute.xlu0 %859 }
 0x2dc   :  { %2257 = vmatprep.mubr.f32.mxu0 %v9614_v60  ;;  %9740 = vst [vmem:[#allocation40_spill] sm:$0xff] %v7298_v20  ;;  %v7301_v17 = vpop.f32.mrb[88].mxu0  ;;  %v1198_v33 = vadd.f32 %v7137_v3, %v7298_v20  ;;  %v1196_v23 = vadd.f32 %v7131_v11, %v7298_v20  ;;  %v3320_v3 = vmax.f32 %v1192_v53, 0.0 }
 0x2dd   :  { %4727 = vmatmul.mubr.msk.f32.gmra.mrb[92].mxu1 %vm942_vm0, %v7292_v61  ;;  %v7314_v46 = vpop.f32.mrb[89].mxu0 }
 0x2de   :  { %1546 = vmatprep.mubr.f32.mxu1 %v9614_v60  ;;  %v1190_v60 = vadd.f32 %v7120_v48, %v7287_v47  ;;  %v7321_v19 = vpop.f32.mrb[90].mxu0  ;;  %v3336_v4 = vmax.f32 %v1198_v33, 0.0  ;;  %v3335_v47 = vmax.f32 %v1196_v23, 0.0  ;;  %v7340_v33 = vld [vmem:[%s9600_s5 + $0xb0] sm:$0xff]  ;;  %v7351_v23 = vpop.permute.xlu1 %864 }
 0x2df   :  { %4814 = vmatmul.mubr.msk.f32.gmra.mrb[202].mxu0 %vm942_vm0, %v7310_v18  ;;  %v7330_v18 = vpop.f32.mrb[91].mxu0  ;;  %9744 = vst [vmem:[#allocation43_spill] sm:$0xff] %v7340_v33  ;;  %9746 = vst [vmem:[#allocation45_spill] sm:$0xff] %v7351_v23  ;;  %v1202_v31 = vadd.f32 %v7142_v30, %v7351_v23 }
 0x2e0   :  { %2263 = vmatprep.mubr.f32.mxu0 %v9742_v57  ;;  %v3319_v48 = vmax.f32 %v1190_v60, 0.0  ;;  %v7333_v11 = vpop.f32.mrb[92].mxu0  ;;  %v7335_v20 = vpack.c.bf16 %v3336_v4, %v3320_v3  ;;  %v7356_v4 = vld [vmem:[%s9600_s5] sm:$0xff] }
 0x2e1   :  { %4728 = vmatmul.mubr.msk.f32.gmra.mrb[94].mxu1 %vm942_vm0, %v7326_v63  ;;  %v7344_v53 = vpop.f32.mrb[93].mxu0  ;;  %v3351_v30 = vmax.f32 %v1202_v31, 0.0  ;;  %v7408_v31 = vld [vmem:[%s9600_s5 + $0xc0] sm:$0xff] }
 0x2e2   :  { %1874 = vmatprep.mubr.f32.mxu1 %v9742_v57  ;;  %9743 = vst [vmem:[#allocation42_spill] sm:$0xff] %v7335_v20  ;;  %v7346_v29 = vpack.c.bf16 %v3335_v47, %v3319_v48  ;;  %v7349_v60 = vpop.f32.mrb[94].mxu0  ;;  %v1204_v48 = vadd.f32 %v7148_v27, %v7351_v23  ;;  %v7374_v20 = vld [vmem:[%s9600_s5 + $0xb8] sm:$0xff]  ;;  %9752 = vst [vmem:[#allocation51_spill] sm:$0xff] %v7408_v31 }
 0x2e3   :  { %4815 = vmatmul.mubr.msk.f32.gmra.mrb[204].mxu0 %vm942_vm0, %v7340_v33  ;;  %v7360_v3 = vpop.f32.mrb[95].mxu0  ;;  %v7362_v33 = vpop.permute.xlu0 %869  ;;  %9748 = vst [vmem:[#allocation47_spill] sm:$0xff] %v7374_v20 }
 0x2e4   :  { %9745 = vst [vmem:[#allocation44_spill] sm:$0xff] %v7346_v29  ;;  %2269 = vmatprep.mubr.f32.mxu0 %v9742_v57  ;;  %9747 = vst [vmem:[#allocation46_spill] sm:$0xff] %v7362_v33  ;;  %v1619_v47 = vpop.f32.mrb[96].mxu0  ;;  %v1210_v29 = vadd.f32 %v7158_v37, %v7362_v33  ;;  %v1208_v27 = vadd.f32 %v7154_v14, %v7362_v33  ;;  %v3352_v37 = vmax.f32 %v1204_v48, 0.0 }
 0x2e5   :  { %4761 = vmatmul.mubr.msk.f32.vlgmr.msra.gmra.mrb[96].mxu1 %vm942_vm0, %v7356_v4  ;;  %v1621_v24 = vpop.f32.mrb[97].mxu0 }
 0x2e6   :  { %2325 = vmatpush1.msra.mxu1 %v6412_v34  ;;  %1880 = vmatprep.mubr.f32.mxu1 %v9742_v57  ;;  %v1620_v34 = vadd.f32 %v1619_v47, %v7020_v8  ;;  %v3368_v59 = vmax.f32 %v1210_v29, 0.0  ;;  %v1625_v47 = vpop.f32.mrb[98].mxu0  ;;  %v3367_v23 = vmax.f32 %v1208_v27, 0.0  ;;  %v3609_v29 = vld [vmem:[%s9603_s8] sm:$0xff] }
 0x2e7   :  { %2838 = vmatprep.subr.mxu1 %v6446_v22  ;;  %4816 = vmatmul.mubr.msk.f32.gmra.mrb[206].mxu0 %vm942_vm0, %v7374_v20  ;;  %v1622_v22 = vadd.f32 %v1621_v24, %v7020_v8  ;;  %v7392_v20 = vpop.permute.xlu1 %874  ;;  %v1626_v24 = vadd.f32 %v1625_v47, %v7015_v43  ;;  %v1627_v48 = vpop.f32.mrb[99].mxu0 }
 0x2e8   :  { %2275 = vmatprep.mubr.f32.mxu0 %v9742_v57  ;;  %v3099_v14 = vmax.f32 %v1620_v34, 0.0  ;;  %v7399_v8 = vpop.permute.xlu0 %879  ;;  %v7401_v33 = vpack.c.bf16 %v3368_v59, %v3352_v37  ;;  %v1216_v51 = vadd.f32 %v7167_v16, %v7392_v20  ;;  %v1628_v27 = vadd.f32 %v1627_v48, %v7015_v43  ;;  %3612 = vperm.xlu1 %5602, %v3609_v29   ;;  %v1631_v47 = vpop.f32.mrb[100].mxu0 }
 0x2e9   :  { %4762 = vmatmul.mubr.msk.f32.gmra.mrb[98].mxu1 %vm942_vm0, %v7388_v5  ;;  %9750 = vst [vmem:[#allocation49_spill] sm:$0xff] %v7399_v8  ;;  %v3100_v34 = vmax.f32 %v1622_v22, 0.0  ;;  %v7413_v5 = vpack.c.bf16 %v3367_v23, %v3351_v30  ;;  %v1222_v59 = vadd.f32 %v7178_v50, %v7399_v8  ;;  %v3115_v16 = vmax.f32 %v1626_v24, 0.0  ;;  %v7424_v22 = vld [vmem:[%s9600_s5 + $0x10] sm:$0xff] }
 0x2ea   :  { %1886 = vmatprep.mubr.f32.mxu1 %v9742_v57  ;;  %9751 = vst [vmem:[#allocation50_spill] sm:$0xff] %v7401_v33  ;;  %v1632_v37 = vadd.f32 %v1631_v47, %v7029_v6  ;;  %v1633_v33 = vpop.f32.mrb[101].mxu0  ;;  %v3384_v35 = vmax.f32 %v1216_v51, 0.0  ;;  %v3116_v23 = vmax.f32 %v1628_v27, 0.0  ;;  %v1220_v51 = vadd.f32 %v7172_v1, %v7399_v8 }
 0x2eb   :  { %4817 = vmatmul.mubr.msk.f32.gmra.mrb[208].mxu0 %vm942_vm0, %v7408_v31  ;;  %9753 = vst [vmem:[#allocation52_spill] sm:$0xff] %v7413_v5  ;;  %v1214_v31 = vadd.f32 %v7161_v9, %v7392_v20  ;;  %v1634_v50 = vadd.f32 %v1633_v33, %v7029_v6  ;;  %v1637_v30 = vpop.f32.mrb[102].mxu0  ;;  %v7429_v24 = vpop.permute.xlu1 %884  ;;  %v3400_v48 = vmax.f32 %v1222_v59, 0.0  ;;  %v7434_v9 = vpack.c.bf16 %v3115_v16, %v3099_v14  ;;  %v7442_v33 = vld [vmem:[%s9600_s5 + $0xc8] sm:$0xff] }
 0x2ec   :  { %2281 = vmatprep.mubr.f32.mxu0 %v9742_v57  ;;  %v3131_v29 = vmax.f32 %v1632_v37, 0.0  ;;  %v1638_v47 = vadd.f32 %v1637_v30, %v7040_v62  ;;  %v1639_v43 = vpop.f32.mrb[103].mxu0  ;;  %v7437_v5 = vpop.permute.xlu0 %889  ;;  %9755 = vst [vmem:[#allocation54_spill] sm:$0xff] %v7442_v33  ;;  %v7446_v1 = vpack.c.bf16 %v3116_v23, %v3100_v34  ;;  %v3399_v6 = vmax.f32 %v1220_v51, 0.0  ;;  %v7458_v34 = vld [vmem:[%s9600_s5 + $0x18] sm:$0xff] }
 0x2ed   :  { %4763 = vmatmul.mubr.msk.f32.gmra.mrb[100].mxu1 %vm942_vm0, %v7424_v22  ;;  %9754 = vst [vmem:[#allocation53_spill] sm:$0xff] %v7434_v9  ;;  %v3383_v27 = vmax.f32 %v1214_v31, 0.0  ;;  %v3132_v59 = vmax.f32 %v1634_v50, 0.0  ;;  %v1640_v14 = vadd.f32 %v1639_v43, %v7040_v62  ;;  %v7449_v37 = vpack.c.bf16 %v3400_v48, %v3384_v35 }
 0x2ee   :  { %1892 = vmatprep.mubr.f32.mxu1 %v9742_v57  ;;  %9756 = vst [vmem:[#allocation55_spill] sm:$0xff] %v7446_v1  ;;  %v1643_v16 = vpop.f32.mrb[104].mxu0  ;;  %v3147_v30 = vmax.f32 %v1638_v47, 0.0  ;;  %v1228_v8 = vadd.f32 %v7196_v45, %v7429_v24  ;;  %v1234_v50 = vadd.f32 %v7207_v39, %v7437_v5  ;;  %v1226_v48 = vadd.f32 %v7183_v32, %v7429_v24 }
 0x2ef   :  { %4818 = vmatmul.mubr.msk.f32.gmra.mrb[210].mxu0 %vm942_vm0, %v7442_v33  ;;  %v1644_v31 = vadd.f32 %v1643_v16, %v7051_v2  ;;  %v1645_v9 = vpop.f32.mrb[105].mxu0  ;;  %v3148_v43 = vmax.f32 %v1640_v14, 0.0  ;;  %v7463_v23 = vpop.permute.xlu1 %894  ;;  %v7472_v16 = vpack.c.bf16 %v3399_v6, %v3383_v27 }
 0x2f0   :  { %2287 = vmatprep.mubr.f32.mxu0 %v9742_v57  ;;  %v1646_v35 = vadd.f32 %v1645_v9, %v7051_v2  ;;  %v7470_v45 = vpack.c.bf16 %v3147_v30, %v3131_v29  ;;  %v7474_v1 = vpop.permute.xlu0 %899  ;;  %v3416_v14 = vmax.f32 %v1228_v8, 0.0  ;;  %v7479_v9 = vld [vmem:[%s9600_s5 + $0xd0] sm:$0xff]  ;;  %v1232_v8 = vadd.f32 %v7203_v52, %v7437_v5 }
 0x2f1   :  { %4764 = vmatmul.mubr.msk.f32.gmra.mrb[102].mxu1 %vm942_vm0, %v7458_v34  ;;  %v3163_v51 = vmax.f32 %v1644_v31, 0.0  ;;  %9758 = vst [vmem:[#allocation57_spill] sm:$0xff] %v7479_v9  ;;  %v7483_v32 = vpack.c.bf16 %v3148_v43, %v3132_v59  ;;  %v3432_v31 = vmax.f32 %v1234_v50, 0.0  ;;  %v3415_v27 = vmax.f32 %v1226_v48, 0.0  ;;  %v7495_v59 = vld [vmem:[%s9600_s5 + $0x20] sm:$0xff] }
 0x2f2   :  { %1898 = vmatprep.mubr.f32.mxu1 %v9742_v57  ;;  %9757 = vst [vmem:[#allocation56_spill] sm:$0xff] %v7470_v45  ;;  %v1649_v47 = vpop.f32.mrb[106].mxu0  ;;  %v3164_v39 = vmax.f32 %v1646_v35, 0.0  ;;  %v1240_v45 = vadd.f32 %v7221_v40, %v7463_v23  ;;  %v1246_v52 = vadd.f32 %v7232_v25, %v7474_v1  ;;  %v1238_v48 = vadd.f32 %v7210_v44, %v7463_v23 }
 0x2f3   :  { %4819 = vmatmul.mubr.msk.f32.gmra.mrb[212].mxu0 %vm942_vm0, %v7479_v9  ;;  %9759 = vst [vmem:[#allocation58_spill] sm:$0xff] %v7483_v32  ;;  %v1650_v29 = vadd.f32 %v1649_v47, %v7065_v58  ;;  %v1651_v30 = vpop.f32.mrb[107].mxu0  ;;  %v7499_v35 = vpack.c.bf16 %v3432_v31, %v3416_v14  ;;  %v7501_v50 = vpop.permute.xlu1 %904  ;;  %v1244_v14 = vadd.f32 %v7226_v26, %v7474_v1 }
 0x2f4   :  { %2293 = vmatprep.mubr.f32.mxu0 %v9742_v57  ;;  %v1652_v6 = vadd.f32 %v1651_v30, %v7065_v58  ;;  %v3431_v30 = vmax.f32 %v1232_v8, 0.0  ;;  %v7508_v32 = vpop.permute.xlu0 %909  ;;  %v3448_v9 = vmax.f32 %v1240_v45, 0.0  ;;  %v3447_v8 = vmax.f32 %v1238_v48, 0.0 }
 0x2f5   :  { %4765 = vmatmul.mubr.msk.f32.gmra.mrb[104].mxu1 %vm942_vm0, %v7495_v59  ;;  %v3179_v43 = vmax.f32 %v1650_v29, 0.0  ;;  %9760 = vst [vmem:[#allocation59_spill] sm:$0xff] %v7508_v32  ;;  %v7515_v29 = vld [vmem:[%s9600_s5 + $0xd8] sm:$0xff]  ;;  %v3463_v33 = vmax.f32 %v1244_v14, 0.0 }
 0x2f6   :  { %1904 = vmatprep.mubr.f32.mxu1 %v9742_v57  ;;  %v3180_v40 = vmax.f32 %v1652_v6, 0.0  ;;  %v1655_v47 = vpop.f32.mrb[108].mxu0  ;;  %v3464_v6 = vmax.f32 %v1246_v52, 0.0  ;;  %v7526_v2 = vpack.c.bf16 %v3431_v30, %v3415_v27  ;;  %v1258_v27 = vadd.f32 %v7266_v21, %v7508_v32 }
 0x2f7   :  { %4820 = vmatmul.mubr.msk.f32.gmra.mrb[214].mxu0 %vm942_vm0, %v7515_v29  ;;  %v7519_v44 = vpack.c.bf16 %v3179_v43, %v3163_v51  ;;  %v1656_v25 = vadd.f32 %v1655_v47, %v7079_v38  ;;  %v1657_v31 = vpop.f32.mrb[109].mxu0  ;;  %v7531_v51 = vld [vmem:[%s9600_s5 + $0x28] sm:$0xff]  ;;  %v7537_v48 = vpop.permute.xlu1 %914  ;;  %v7546_v14 = vpack.c.bf16 %v3463_v33, %v3447_v8  ;;  %v1256_v33 = vadd.f32 %v7257_v56, %v7508_v32 }
 0x2f8   :  { %v4971_v58 = vpop.f32.mrb[0].mxu1  ;;  %2299 = vmatprep.mubr.f32.mxu0 %v9742_v57  ;;  %v7523_v45 = vpack.c.bf16 %v3180_v40, %v3164_v39  ;;  %v1658_v26 = vadd.f32 %v1657_v31, %v7079_v38  ;;  %v7535_v52 = vpack.c.bf16 %v3464_v6, %v3448_v9  ;;  %9763 = vst [vmem:[#allocation62_spill] sm:$0xff] %v7537_v48  ;;  %v7548_v31 = vpop.permute.xlu0 %919 }
 0x2f9   :  { %9761 = vst [vmem:[#allocation60_spill] sm:$0xff] %v7519_v44  ;;  %v4972_v62 = vpop.f32.mrb[1].mxu1  ;;  %4766 = vmatmul.mubr.msk.f32.gmra.mrb[106].mxu1 %vm942_vm0, %v7531_v51  ;;  %v3195_v43 = vmax.f32 %v1656_v25, 0.0  ;;  %v1252_v39 = vadd.f32 %v7250_v49, %v7501_v50  ;;  %9765 = vst [vmem:[#allocation64_spill] sm:$0xff] %v7548_v31  ;;  %v1250_v9 = vadd.f32 %v7237_v54, %v7501_v50  ;;  %v7555_v49 = vld [vmem:[%s9600_s5 + $0xe0] sm:$0xff]  ;;  %v3496_v25 = vmax.f32 %v1258_v27, 0.0 }
 0x2fa   :  { %9762 = vst [vmem:[#allocation61_spill] sm:$0xff] %v7523_v45  ;;  %v7543_v40 = vadd.f32 %v4972_v62, %v4971_v58  ;;  %1910 = vmatprep.mubr.f32.mxu1 %v9742_v57  ;;  %v3196_v47 = vmax.f32 %v1658_v26, 0.0  ;;  %v1661_v30 = vpop.f32.mrb[110].mxu0  ;;  %9766 = vst [vmem:[#allocation65_spill] sm:$0xff] %v7555_v49  ;;  %v1264_v26 = vadd.f32 %v7280_v10, %v7537_v48 }
 0x2fb   :  { %4821 = vmatmul.mubr.msk.f32.gmra.mrb[216].mxu0 %vm942_vm0, %v7555_v49  ;;  %v1662_v21 = vadd.f32 %v1661_v30, %v7099_v0  ;;  %v1663_v62 = vpop.f32.mrb[111].mxu0  ;;  %v3480_v58 = vmax.f32 %v1252_v39, 0.0  ;;  %v3479_v8 = vmax.f32 %v1250_v9, 0.0  ;;  %v7571_v39 = vld [vmem:[%s9600_s5 + $0x30] sm:$0xff]  ;;  %v7577_v30 = vpop.permute.xlu1 %924  ;;  %v3495_v9 = vmax.f32 %v1256_v33, 0.0 }
 0x2fc   :  { %9764 = vst [vmem:[#allocation63_spill] sm:$0xff] %v7543_v40  ;;  %v4974_v6 = vpop.f32.mrb[2].mxu1  ;;  %2305 = vmatprep.mubr.f32.mxu0 %v9742_v57  ;;  %v1664_v54 = vadd.f32 %v1663_v62, %v7099_v0  ;;  %v1270_v40 = vadd.f32 %v7296_v13, %v7548_v31  ;;  %9767 = vst [vmem:[#allocation66_spill] sm:$0xff] %v7577_v30  ;;  %v1262_v10 = vadd.f32 %v7269_v41, %v7537_v48  ;;  %v7584_v49 = vpop.permute.xlu0 %929 }
 0x2fd   :  { %v4975_v44 = vpop.f32.mrb[3].mxu1  ;;  %4767 = vmatmul.mubr.msk.f32.gmra.mrb[108].mxu1 %vm942_vm0, %v7571_v39  ;;  %v3211_v56 = vmax.f32 %v1662_v21, 0.0  ;;  %v7575_v27 = vpack.c.bf16 %v3496_v25, %v3480_v58  ;;  %9769 = vst [vmem:[#allocation68_spill] sm:$0xff] %v7584_v49  ;;  %v3512_v0 = vmax.f32 %v1264_v26, 0.0  ;;  %v7591_v33 = vpack.c.bf16 %v3495_v9, %v3479_v8 }
 0x2fe   :  { %v7581_v62 = vadd.f32 %v4975_v44, %v4974_v6  ;;  %1916 = vmatprep.mubr.f32.mxu1 %v9742_v57  ;;  %v3212_v13 = vmax.f32 %v1664_v54, 0.0  ;;  %v1667_v45 = vpop.f32.mrb[112].mxu0  ;;  %v3528_v38 = vmax.f32 %v1270_v40, 0.0  ;;  %v1268_v41 = vadd.f32 %v7285_v7, %v7548_v31 }
 0x2ff   :  { %4822 = vmatmul.mubr.msk.f32.gmra.mrb[218].mxu0 %vm942_vm0, %v7262_v42  ;;  %v7588_v21 = vpack.c.bf16 %v3211_v56, %v3195_v43  ;;  %v1668_v58 = vadd.f32 %v1667_v45, %v7133_v36  ;;  %v1669_v25 = vpop.f32.mrb[113].mxu0  ;;  %v3511_v42 = vmax.f32 %v1262_v10, 0.0  ;;  %v7604_v45 = vld [vmem:[%s9600_s5 + $0x38] sm:$0xff]  ;;  %v7608_v8 = vpop.permute.xlu1 %934 }
 0x300   :  { %9768 = vst [vmem:[#allocation67_spill] sm:$0xff] %v7581_v62  ;;  %v4977_v44 = vpop.f32.mrb[4].mxu1  ;;  %2311 = vmatprep.mubr.f32.mxu0 %v9742_v57  ;;  %v7596_v6 = vpack.c.bf16 %v3212_v13, %v3196_v47  ;;  %v1670_v40 = vadd.f32 %v1669_v25, %v7133_v36  ;;  %v7599_v54 = vpack.c.bf16 %v3528_v38, %v3512_v0  ;;  %v3527_v26 = vmax.f32 %v1268_v41, 0.0  ;;  %v7615_v10 = vpop.permute.xlu0 %939 }
 0x301   :  { %9770 = vst [vmem:[#allocation69_spill] sm:$0xff] %v7588_v21  ;;  %v4978_v43 = vpop.f32.mrb[5].mxu1  ;;  %4768 = vmatmul.mubr.msk.f32.gmra.mrb[110].mxu1 %vm942_vm0, %v7604_v45  ;;  %v3227_v7 = vmax.f32 %v1668_v58, 0.0  ;;  %v1276_v47 = vadd.f32 %v7314_v46, %v7577_v30  ;;  %v1282_v38 = vadd.f32 %v7330_v18, %v7584_v49  ;;  %9772 = vst [vmem:[#allocation71_spill] sm:$0xff] %v7615_v10 }
 0x302   :  { %9771 = vst [vmem:[#allocation70_spill] sm:$0xff] %v7596_v6  ;;  %v4979_v0 = vadd.f32 %v4978_v43, %v4977_v44  ;;  %1922 = vmatprep.mubr.f32.mxu1 %v9742_v57  ;;  %v3228_v56 = vmax.f32 %v1670_v40, 0.0  ;;  %v1673_v9 = vpop.f32.mrb[114].mxu0  ;;  %v1274_v13 = vadd.f32 %v7301_v17, %v7577_v30  ;;  %v1280_v58 = vadd.f32 %v7321_v19, %v7584_v49 }
 0x303   :  { %4823 = vmatmul.mubr.msk.f32.gmra.mrb[220].mxu0 %vm942_vm0, %v7292_v61  ;;  %v1674_v46 = vadd.f32 %v1673_v9, %v7139_v12  ;;  %v1675_v25 = vpop.f32.mrb[115].mxu0  ;;  %v7624_v18 = vpack.c.bf16 %v3527_v26, %v3511_v42  ;;  %v3544_v41 = vmax.f32 %v1276_v47, 0.0  ;;  %v3560_v44 = vmax.f32 %v1282_v38, 0.0  ;;  %v7633_v61 = vld [vmem:[%s9600_s5 + $0x40] sm:$0xff] }
 0x304   :  { %v4980_v40 = vpop.f32.mrb[6].mxu1  ;;  %2317 = vmatprep.mubr.f32.mxu0 %v9742_v57  ;;  %v1676_v43 = vadd.f32 %v1675_v25, %v7139_v12  ;;  %v3543_v62 = vmax.f32 %v1274_v13, 0.0  ;;  %v3559_v17 = vmax.f32 %v1280_v58, 0.0  ;;  %v1288_v19 = vadd.f32 %v7344_v53, %v7608_v8 }
 0x305   :  { %v4981_v21 = vpop.f32.mrb[7].mxu1  ;;  %4769 = vmatmul.mubr.msk.f32.gmra.mrb[112].mxu1 %vm942_vm0, %v7633_v61  ;;  %v3243_v42 = vmax.f32 %v1674_v46, 0.0  ;;  %v7637_v26 = vpack.c.bf16 %v3560_v44, %v3544_v41  ;;  %v1294_v47 = vadd.f32 %v7360_v3, %v7615_v10  ;;  %v1286_v38 = vadd.f32 %v7333_v11, %v7608_v8 }
 0x306   :  { %v4982_v9 = vadd.f32 %v4981_v21, %v4980_v40  ;;  %1928 = vmatprep.mubr.f32.mxu1 %v9742_v57  ;;  %v3244_v53 = vmax.f32 %v1676_v43, 0.0  ;;  %v1679_v13 = vpop.f32.mrb[116].mxu0  ;;  %v7644_v58 = vpack.c.bf16 %v3559_v17, %v3543_v62  ;;  %v3576_v25 = vmax.f32 %v1288_v19, 0.0 }
 0x307   :  { %4824 = vmatmul.mubr.msk.f32.gmra.mrb[222].mxu0 %vm942_vm0, %v7326_v63  ;;  %v7648_v46 = vpack.c.bf16 %v3243_v42, %v3227_v7  ;;  %v1680_v41 = vadd.f32 %v1679_v13, %v7174_v15  ;;  %v1681_v44 = vpop.f32.mrb[117].mxu0  ;;  %v3592_v3 = vmax.f32 %v1294_v47, 0.0  ;;  %v1292_v11 = vadd.f32 %v7349_v60, %v7615_v10  ;;  %v7660_v63 = vld [vmem:[%s9600_s5 + $0x48] sm:$0xff] }
 0x308   :  { %v4983_v21 = vpop.f32.mrb[8].mxu1  ;;  %2645 = vmatprep.mubr.f32.mxu0 %v9742_v57  ;;  %v7654_v40 = vpack.c.bf16 %v3244_v53, %v3228_v56  ;;  %v1682_v62 = vadd.f32 %v1681_v44, %v7174_v15  ;;  %v3575_v43 = vmax.f32 %v1286_v38, 0.0  ;;  %v7669_v56 = vld [vmem:[%s9607_s12] ss:$0 sm:$0xff] }
 0x309   :  { %9773 = vst [vmem:[#allocation72_spill] sm:$0xff] %v7648_v46  ;;  %v4984_v17 = vpop.f32.mrb[9].mxu1  ;;  %4770 = vmatmul.mubr.msk.f32.gmra.mrb[114].mxu1 %vm942_vm0, %v7660_v63  ;;  %v7664_v7 = vpack.c.bf16 %v3592_v3, %v3576_v25  ;;  %v3591_v60 = vmax.f32 %v1292_v11, 0.0  ;;  %v7673_v47 = vadd.f32 %v4979_v0, %v7669_v56  ;;  %v7676_v38 = vadd.f32 %v4982_v9, %v7669_v56 }
 0x30a   :  { %9774 = vst [vmem:[#allocation73_spill] sm:$0xff] %v7654_v40  ;;  %v4985_v19 = vadd.f32 %v4984_v17, %v4983_v21  ;;  %1934 = vmatprep.mubr.f32.mxu1 %v9742_v57  ;;  %v1685_v42 = vpop.f32.mrb[118].mxu0  ;;  %v3259_v53 = vmax.f32 %v1680_v41, 0.0  ;;  %v3260_v11 = vmax.f32 %v1682_v62, 0.0  ;;  %v9778_v41 = vld [vmem:[#allocation14_spill] sm:$0xff] }
 0x30b   :  { %9775 = vst [vmem:[#allocation74_spill] sm:$0xff] %v7673_v47  ;;  %9776 = vst [vmem:[#allocation75_spill] sm:$0xff] %v7676_v38  ;;  %4857 = vmatmul.mubr.msk.f32.vlgmr.msra.gmra.mrb[224].mxu0 %vm942_vm0, %v7356_v4  ;;  %v1686_v13 = vadd.f32 %v1685_v42, %v7180_v28  ;;  %v1687_v25 = vpop.f32.mrb[119].mxu0  ;;  %v7681_v44 = vpack.c.bf16 %v3591_v60, %v3575_v43  ;;  %v7692_v4 = vld [vmem:[%s9600_s5 + $0x50] sm:$0xff]  ;;  %v9779_v60 = vld [vmem:[#allocation48_spill] sm:$0xff] }
 0x30c   :  { %v4986_v3 = vpop.f32.mrb[10].mxu1  ;;  %2651 = vmatprep.mubr.f32.mxu0 %v9742_v57  ;;  %5086 = vmatpush1.bf16.msra.mxu0 %v7037_v55  ;;  %v1688_v0 = vadd.f32 %v1687_v25, %v7180_v28  ;;  %v7687_v9 = vadd.f32 %v4985_v19, %v7669_v56  ;;  %v9781_v42 = vld [vmem:[#allocation33_spill] sm:$0xff]  ;;  %v9792_v40 = vld [vmem:[#allocation22_spill] sm:$0xff] }
 0x30d   :  { %v4987_v21 = vpop.f32.mrb[11].mxu1  ;;  %4771 = vmatmul.mubr.msk.f32.gmra.mrb[116].mxu1 %vm942_vm0, %v7692_v4  ;;  %5088 = vmatprep.subr.bf16.mxu0 %v9778_v41  ;;  %v3275_v43 = vmax.f32 %v1686_v13, 0.0 }
 0x30e   :  { %9777 = vst [vmem:[#allocation76_spill] sm:$0xff] %v7687_v9  ;;  %v4988_v17 = vadd.f32 %v4987_v21, %v4986_v3  ;;  %1940 = vmatprep.mubr.f32.mxu1 %v9742_v57  ;;  %v3276_v55 = vmax.f32 %v1688_v0, 0.0  ;;  %v1691_v62 = vpop.f32.mrb[120].mxu0  ;;  %v9782_v9 = vld [vmem:[#allocation15_spill] sm:$0xff]  ;;  %v9785_v21 = vld [vmem:[#allocation18_spill] sm:$0xff] }
 0x30f   :  { %4858 = vmatmul.mubr.msk.f32.gmra.mrb[226].mxu0 %vm942_vm0, %v9779_v60  ;;  %v7700_v19 = vpack.c.bf16 %v3275_v43, %v3259_v53  ;;  %v1692_v25 = vadd.f32 %v1691_v62, %v9781_v42  ;;  %v1693_v38 = vpop.f32.mrb[121].mxu0  ;;  %v7714_v53 = vld [vmem:[%s9600_s5 + $0x58] sm:$0xff] }
 0x310   :  { %v4989_v47 = vpop.f32.mrb[12].mxu1  ;;  %2657 = vmatprep.mubr.f32.mxu0 %v9742_v57  ;;  %5090 = vmatpush1.bf16.msra.mxu0 %v9782_v9  ;;  %v7705_v41 = vpack.c.bf16 %v3276_v55, %v3260_v11  ;;  %v1694_v13 = vadd.f32 %v1693_v38, %v9781_v42  ;;  %v7709_v3 = vadd.f32 %v4988_v17, %v7669_v56  ;;  %v9786_v9 = vld [vmem:[#allocation34_spill] sm:$0xff]  ;;  %v9787_v60 = vld [vmem:[#allocation19_spill] sm:$0xff] }
 0x311   :  { %9780 = vst [vmem:[#allocation14_spill] sm:$0xff] %v7700_v19  ;;  %v4990_v0 = vpop.f32.mrb[13].mxu1  ;;  %4772 = vmatmul.mubr.msk.f32.gmra.mrb[118].mxu1 %vm942_vm0, %v7714_v53  ;;  %5092 = vmatprep.subr.bf16.mxu0 %v9785_v21  ;;  %v3291_v38 = vmax.f32 %v1692_v25, 0.0  ;;  %v9789_v25 = vld [vmem:[#allocation21_spill] sm:$0xff] }
 0x312   :  { %9783 = vst [vmem:[#allocation48_spill] sm:$0xff] %v7705_v41  ;;  %9784 = vst [vmem:[#allocation15_spill] sm:$0xff] %v7709_v3  ;;  %v4991_v43 = vadd.f32 %v4990_v0, %v4989_v47  ;;  %1946 = vmatprep.mubr.f32.mxu1 %v9742_v57  ;;  %v1697_v11 = vpop.f32.mrb[122].mxu0  ;;  %v3292_v3 = vmax.f32 %v1694_v13, 0.0 }
 0x313   :  { %4859 = vmatmul.mubr.msk.f32.gmra.mrb[228].mxu0 %vm942_vm0, %v7424_v22  ;;  %v1698_v17 = vadd.f32 %v1697_v11, %v9786_v9  ;;  %v1699_v55 = vpop.f32.mrb[123].mxu0  ;;  %v7732_v22 = vld [vmem:[%s9600_s5 + $0x60] sm:$0xff] }
 0x314   :  { %v4992_v62 = vpop.f32.mrb[14].mxu1  ;;  %2663 = vmatprep.mubr.f32.mxu0 %v9742_v57  ;;  %5094 = vmatpush1.bf16.msra.mxu0 %v9787_v60  ;;  %v1700_v19 = vadd.f32 %v1699_v55, %v9786_v9  ;;  %v7727_v47 = vadd.f32 %v4991_v43, %v7669_v56  ;;  %v9791_v60 = vld [vmem:[#allocation39_spill] sm:$0xff] }
 0x315   :  { %v4993_v0 = vpop.f32.mrb[15].mxu1  ;;  %4773 = vmatmul.mubr.msk.f32.gmra.mrb[120].mxu1 %vm942_vm0, %v7732_v22  ;;  %5096 = vmatprep.subr.bf16.mxu0 %v9789_v25  ;;  %v3307_v21 = vmax.f32 %v1698_v17, 0.0 }
 0x316   :  { %9788 = vst [vmem:[#allocation18_spill] sm:$0xff] %v7727_v47  ;;  %v4994_v11 = vadd.f32 %v4993_v0, %v4992_v62  ;;  %1952 = vmatprep.mubr.f32.mxu1 %v9742_v57  ;;  %v3308_v13 = vmax.f32 %v1700_v19, 0.0  ;;  %v1703_v55 = vpop.f32.mrb[124].mxu0 }
 0x317   :  { %4860 = vmatmul.mubr.msk.f32.gmra.mrb[230].mxu0 %vm942_vm0, %v7458_v34  ;;  %v7740_v43 = vpack.c.bf16 %v3307_v21, %v3291_v38  ;;  %v1704_v47 = vadd.f32 %v1703_v55, %v9791_v60  ;;  %v1705_v41 = vpop.f32.mrb[125].mxu0  ;;  %v7754_v34 = vld [vmem:[%s9600_s5 + $0x68] sm:$0xff]  ;;  %v9797_v55 = vld [vmem:[#allocation26_spill] sm:$0xff] }
 0x318   :  { %v4995_v46 = vpop.f32.mrb[16].mxu1  ;;  %2669 = vmatprep.mubr.f32.mxu0 %v9742_v57  ;;  %5098 = vmatpush1.bf16.msra.mxu0 %v9792_v40  ;;  %v7745_v25 = vpack.c.bf16 %v3308_v13, %v3292_v3  ;;  %v1706_v17 = vadd.f32 %v1705_v41, %v9791_v60  ;;  %v7749_v19 = vadd.f32 %v4994_v11, %v7669_v56  ;;  %v9795_v38 = vld [vmem:[#allocation25_spill] sm:$0xff]  ;;  %v9796_v3 = vld [vmem:[#allocation40_spill] sm:$0xff] }
 0x319   :  { %9790 = vst [vmem:[#allocation19_spill] sm:$0xff] %v7740_v43  ;;  %v4996_v62 = vpop.f32.mrb[17].mxu1  ;;  %4774 = vmatmul.mubr.msk.f32.gmra.mrb[122].mxu1 %vm942_vm0, %v7754_v34  ;;  %5100 = vmatprep.subr.bf16.mxu0 %v9795_v38  ;;  %v3323_v41 = vmax.f32 %v1704_v47, 0.0  ;;  %v9799_v47 = vld [vmem:[#allocation30_spill] sm:$0xff] }
 0x31a   :  { %9793 = vst [vmem:[#allocation21_spill] sm:$0xff] %v7745_v25  ;;  %9794 = vst [vmem:[#allocation22_spill] sm:$0xff] %v7749_v19  ;;  %v4997_v0 = vadd.f32 %v4996_v62, %v4995_v46  ;;  %1958 = vmatprep.mubr.f32.mxu1 %v9742_v57  ;;  %v1709_v40 = vpop.f32.mrb[126].mxu0  ;;  %v3324_v19 = vmax.f32 %v1706_v17, 0.0 }
 0x31b   :  { %4861 = vmatmul.mubr.msk.f32.gmra.mrb[232].mxu0 %vm942_vm0, %v7495_v59  ;;  %v1710_v21 = vadd.f32 %v1709_v40, %v9796_v3  ;;  %v1711_v11 = vpop.f32.mrb[127].mxu0  ;;  %v7772_v59 = vld [vmem:[%s9600_s5 + $0x70] sm:$0xff] }
 0x31c   :  { %v4998_v13 = vpop.f32.mrb[18].mxu1  ;;  %2675 = vmatprep.mubr.f32.mxu0 %v9742_v57  ;;  %5102 = vmatpush1.bf16.msra.mxu0 %v9797_v55  ;;  %v1712_v43 = vadd.f32 %v1711_v11, %v9796_v3  ;;  %v7767_v46 = vadd.f32 %v4997_v0, %v7669_v56  ;;  %v9801_v55 = vld [vmem:[#allocation45_spill] sm:$0xff]  ;;  %v9802_v3 = vld [vmem:[#allocation32_spill] sm:$0xff] }
 0x31d   :  { %v4999_v62 = vpop.f32.mrb[19].mxu1  ;;  %4775 = vmatmul.mubr.msk.f32.gmra.mrb[124].mxu1 %vm942_vm0, %v7772_v59  ;;  %5104 = vmatprep.subr.bf16.mxu0 %v9799_v47  ;;  %v3339_v38 = vmax.f32 %v1710_v21, 0.0 }
 0x31e   :  { %9798 = vst [vmem:[#allocation25_spill] sm:$0xff] %v7767_v46  ;;  %v5000_v40 = vadd.f32 %v4999_v62, %v4998_v13  ;;  %1964 = vmatprep.mubr.f32.mxu1 %v9742_v57  ;;  %v3340_v17 = vmax.f32 %v1712_v43, 0.0  ;;  %v1715_v11 = vpop.f32.mrb[128].mxu0 }
 0x31f   :  { %4862 = vmatmul.mubr.msk.f32.gmra.mrb[234].mxu0 %vm942_vm0, %v7531_v51  ;;  %v7780_v0 = vpack.c.bf16 %v3339_v38, %v3323_v41  ;;  %v1716_v46 = vadd.f32 %v1715_v11, %v9801_v55  ;;  %v1717_v25 = vpop.f32.mrb[129].mxu0  ;;  %v7794_v51 = vld [vmem:[%s9600_s5 + $0x78] sm:$0xff]  ;;  %v9805_v41 = vld [vmem:[#allocation36_spill] sm:$0xff]  ;;  %v9807_v11 = vld [vmem:[#allocation38_spill] sm:$0xff] }
 0x320   :  { %v5001_v6 = vpop.f32.mrb[20].mxu1  ;;  %2681 = vmatprep.mubr.f32.mxu0 %v9742_v57  ;;  %5106 = vmatpush1.bf16.msra.mxu0 %v9802_v3  ;;  %v7785_v47 = vpack.c.bf16 %v3340_v17, %v3324_v19  ;;  %v1718_v21 = vadd.f32 %v1717_v25, %v9801_v55  ;;  %v7789_v43 = vadd.f32 %v5000_v40, %v7669_v56  ;;  %v9806_v3 = vld [vmem:[#allocation46_spill] sm:$0xff] }
 0x321   :  { %9800 = vst [vmem:[#allocation26_spill] sm:$0xff] %v7780_v0  ;;  %v5002_v13 = vpop.f32.mrb[21].mxu1  ;;  %4776 = vmatmul.mubr.msk.f32.gmra.mrb[126].mxu1 %vm942_vm0, %v7794_v51  ;;  %5108 = vmatprep.subr.bf16.mxu0 %v9805_v41  ;;  %v3355_v25 = vmax.f32 %v1716_v46, 0.0  ;;  %v9809_v46 = vld [vmem:[#allocation42_spill] sm:$0xff] }
 0x322   :  { %9803 = vst [vmem:[#allocation30_spill] sm:$0xff] %v7785_v47  ;;  %9804 = vst [vmem:[#allocation32_spill] sm:$0xff] %v7789_v43  ;;  %v5003_v62 = vadd.f32 %v5002_v13, %v5001_v6  ;;  %1970 = vmatprep.mubr.f32.mxu1 %v9742_v57  ;;  %v1721_v19 = vpop.f32.mrb[130].mxu0  ;;  %v3356_v43 = vmax.f32 %v1718_v21, 0.0 }
 0x323   :  { %4863 = vmatmul.mubr.msk.f32.gmra.mrb[236].mxu0 %vm942_vm0, %v7571_v39  ;;  %v1722_v38 = vadd.f32 %v1721_v19, %v9806_v3  ;;  %v1723_v40 = vpop.f32.mrb[131].mxu0  ;;  %v7812_v39 = vld [vmem:[%s9600_s5 + $0x80] sm:$0xff] }
 0x324   :  { %v5004_v17 = vpop.f32.mrb[22].mxu1  ;;  %2687 = vmatprep.mubr.f32.mxu0 %v9742_v57  ;;  %5110 = vmatpush1.bf16.msra.mxu0 %v9807_v11  ;;  %v1724_v0 = vadd.f32 %v1723_v40, %v9806_v3  ;;  %v7807_v6 = vadd.f32 %v5003_v62, %v7669_v56  ;;  %v9811_v3 = vld [vmem:[#allocation44_spill] sm:$0xff] }
 0x325   :  { %v5005_v13 = vpop.f32.mrb[23].mxu1  ;;  %4777 = vmatmul.mubr.msk.f32.gmra.mrb[128].mxu1 %vm942_vm0, %v7812_v39  ;;  %5112 = vmatprep.subr.bf16.mxu0 %v9809_v46  ;;  %v3371_v41 = vmax.f32 %v1722_v38, 0.0 }
 0x326   :  { %9808 = vst [vmem:[#allocation36_spill] sm:$0xff] %v7807_v6  ;;  %v5006_v19 = vadd.f32 %v5005_v13, %v5004_v17  ;;  %1976 = vmatprep.mubr.f32.mxu1 %v9742_v57  ;;  %v3372_v21 = vmax.f32 %v1724_v0, 0.0  ;;  %v1727_v40 = vpop.f32.mrb[132].mxu0  ;;  %v9813_v13 = vld [vmem:[#allocation29_spill] sm:$0xff] }
 0x327   :  { %4864 = vmatmul.mubr.msk.f32.gmra.mrb[238].mxu0 %vm942_vm0, %v7604_v45  ;;  %v7820_v62 = vpack.c.bf16 %v3371_v41, %v3355_v25  ;;  %v1728_v11 = vadd.f32 %v1727_v40, %v7392_v20  ;;  %v1729_v6 = vpop.f32.mrb[133].mxu0  ;;  %v9814_v45 = vld [vmem:[#allocation50_spill] sm:$0xff] }
 0x328   :  { %v5007_v47 = vpop.f32.mrb[24].mxu1  ;;  %2693 = vmatprep.mubr.f32.mxu0 %v9742_v57  ;;  %5114 = vmatpush1.bf16.msra.mxu0 %v9811_v3  ;;  %v7825_v46 = vpack.c.bf16 %v3372_v21, %v3356_v43  ;;  %v1730_v38 = vadd.f32 %v1729_v6, %v7392_v20  ;;  %v7829_v0 = vadd.f32 %v5006_v19, %v7669_v56  ;;  %v9815_v3 = vld [vmem:[#allocation49_spill] sm:$0xff]  ;;  %v9816_v19 = vld [vmem:[#allocation52_spill] sm:$0xff] }
 0x329   :  { %9810 = vst [vmem:[#allocation38_spill] sm:$0xff] %v7820_v62  ;;  %v5008_v17 = vpop.f32.mrb[25].mxu1  ;;  %4778 = vmatmul.mubr.msk.f32.gmra.mrb[130].mxu1 %vm942_vm0, %v9813_v13  ;;  %5116 = vmatprep.subr.bf16.mxu0 %v9814_v45  ;;  %v3387_v43 = vmax.f32 %v1728_v11, 0.0  ;;  %v9818_v45 = vld [vmem:[#allocation31_spill] sm:$0xff] }
 0x32a   :  { %9812 = vst [vmem:[#allocation42_spill] sm:$0xff] %v7829_v0  ;;  %v5009_v25 = vadd.f32 %v5008_v17, %v5007_v47  ;;  %1982 = vmatprep.mubr.f32.mxu1 %v9742_v57  ;;  %v1733_v41 = vpop.f32.mrb[134].mxu0  ;;  %v3388_v0 = vmax.f32 %v1730_v38, 0.0 }
 0x32b   :  { %4865 = vmatmul.mubr.msk.f32.gmra.mrb[240].mxu0 %vm942_vm0, %v7633_v61  ;;  %v1734_v21 = vadd.f32 %v1733_v41, %v9815_v3  ;;  %v1735_v6 = vpop.f32.mrb[135].mxu0 }
 0x32c   :  { %v5010_v40 = vpop.f32.mrb[26].mxu1  ;;  %2699 = vmatprep.mubr.f32.mxu0 %v9742_v57  ;;  %5118 = vmatpush1.bf16.msra.mxu0 %v9816_v19  ;;  %v1736_v13 = vadd.f32 %v1735_v6, %v9815_v3  ;;  %v7842_v47 = vadd.f32 %v5009_v25, %v7669_v56 }
 0x32d   :  { %v5011_v17 = vpop.f32.mrb[27].mxu1  ;;  %4779 = vmatmul.mubr.msk.f32.gmra.mrb[132].mxu1 %vm942_vm0, %v9818_v45  ;;  %5120 = vmatprep.subr.bf16.mxu0 %v7449_v37  ;;  %v3403_v61 = vmax.f32 %v1734_v21, 0.0 }
 0x32e   :  { %9817 = vst [vmem:[#allocation44_spill] sm:$0xff] %v7842_v47  ;;  %v5012_v11 = vadd.f32 %v5011_v17, %v5010_v40  ;;  %1988 = vmatprep.mubr.f32.mxu1 %v9742_v57  ;;  %v3404_v41 = vmax.f32 %v1736_v13, 0.0  ;;  %v1739_v62 = vpop.f32.mrb[136].mxu0  ;;  %v9820_v17 = vld [vmem:[#allocation35_spill] sm:$0xff] }
 0x32f   :  { %4866 = vmatmul.mubr.msk.f32.gmra.mrb[242].mxu0 %vm942_vm0, %v7660_v63  ;;  %v7850_v38 = vpack.c.bf16 %v3403_v61, %v3387_v43  ;;  %v1740_v25 = vadd.f32 %v1739_v62, %v7429_v24  ;;  %v1741_v6 = vpop.f32.mrb[137].mxu0 }
 0x330   :  { %v5013_v19 = vpop.f32.mrb[28].mxu1  ;;  %2705 = vmatprep.mubr.f32.mxu0 %v9742_v57  ;;  %5122 = vmatpush1.bf16.msra.mxu0 %v7472_v16  ;;  %v7855_v37 = vpack.c.bf16 %v3404_v41, %v3388_v0  ;;  %v1742_v21 = vadd.f32 %v1741_v6, %v7429_v24  ;;  %v7859_v40 = vadd.f32 %v5012_v11, %v7669_v56  ;;  %v9822_v6 = vld [vmem:[#allocation37_spill] sm:$0xff] }
 0x331   :  { %v5014_v13 = vpop.f32.mrb[29].mxu1  ;;  %4780 = vmatmul.mubr.msk.f32.gmra.mrb[134].mxu1 %vm942_vm0, %v9820_v17  ;;  %5124 = vmatprep.subr.bf16.mxu0 %v7499_v35  ;;  %v3419_v16 = vmax.f32 %v1740_v25, 0.0 }
 0x332   :  { %9819 = vst [vmem:[#allocation29_spill] sm:$0xff] %v7859_v40  ;;  %v5015_v63 = vadd.f32 %v5014_v13, %v5013_v19  ;;  %1994 = vmatprep.mubr.f32.mxu1 %v9742_v57  ;;  %v1745_v62 = vpop.f32.mrb[138].mxu0  ;;  %v3420_v61 = vmax.f32 %v1742_v21, 0.0 }
 0x333   :  { %4867 = vmatmul.mubr.msk.f32.gmra.mrb[244].mxu0 %vm942_vm0, %v7692_v4  ;;  %v1746_v0 = vadd.f32 %v1745_v62, %v7437_v5  ;;  %v1747_v43 = vpop.f32.mrb[139].mxu0 }
 0x334   :  { %v5016_v45 = vpop.f32.mrb[30].mxu1  ;;  %2711 = vmatprep.mubr.f32.mxu0 %v9742_v57  ;;  %5126 = vmatpush1.bf16.msra.mxu0 %v7526_v2  ;;  %v1748_v11 = vadd.f32 %v1747_v43, %v7437_v5  ;;  %v7872_v35 = vadd.f32 %v5015_v63, %v7669_v56 }
 0x335   :  { %v5017_v41 = vpop.f32.mrb[31].mxu1  ;;  %4781 = vmatmul.mubr.msk.f32.gmra.mrb[136].mxu1 %vm942_vm0, %v9822_v6  ;;  %5128 = vmatprep.subr.bf16.mxu0 %v7535_v52  ;;  %v3435_v4 = vmax.f32 %v1746_v0, 0.0 }
 0x336   :  { %9821 = vst [vmem:[#allocation50_spill] sm:$0xff] %v7872_v35  ;;  %v5018_v25 = vadd.f32 %v5017_v41, %v5016_v45  ;;  %2000 = vmatprep.mubr.f32.mxu1 %v9742_v57  ;;  %v3436_v19 = vmax.f32 %v1748_v11, 0.0  ;;  %v1751_v13 = vpop.f32.mrb[140].mxu0  ;;  %v9824_v45 = vld [vmem:[#allocation41_spill] sm:$0xff] }
 0x337   :  { %4868 = vmatmul.mubr.msk.f32.gmra.mrb[246].mxu0 %vm942_vm0, %v7714_v53  ;;  %v7880_v2 = vpack.c.bf16 %v3435_v4, %v3419_v16  ;;  %v1752_v21 = vadd.f32 %v1751_v13, %v7463_v23  ;;  %v1753_v17 = vpop.f32.mrb[141].mxu0  ;;  %v9825_v16 = vld [vmem:[#allocation10_spill] sm:$0xff] }
 0x338   :  { %v1362_v63 = vpop.f32.mrb[32].mxu1  ;;  %2717 = vmatprep.mubr.f32.mxu0 %v9742_v57  ;;  %5130 = vmatpush1.bf16.msra.mxu0 %v7546_v14  ;;  %v7885_v52 = vpack.c.bf16 %v3436_v19, %v3420_v61  ;;  %v1754_v62 = vadd.f32 %v1753_v17, %v7463_v23  ;;  %v7889_v0 = vadd.f32 %v5018_v25, %v7669_v56  ;;  %v9826_v25 = vld [vmem:[#allocation9_spill] sm:$0xff]  ;;  %v9827_v17 = vld [vmem:[#allocation43_spill] sm:$0xff] }
 0x339   :  { %v1364_v43 = vpop.f32.mrb[33].mxu1  ;;  %4782 = vmatmul.mubr.msk.f32.gmra.mrb[138].mxu1 %vm942_vm0, %v9824_v45  ;;  %5132 = vmatprep.subr.bf16.mxu0 %v7575_v27  ;;  %v1363_v11 = vadd.f32 %v1362_v63, %v9825_v16  ;;  %v3451_v14 = vmax.f32 %v1752_v21, 0.0 }
 0x33a   :  { %9823 = vst [vmem:[#allocation49_spill] sm:$0xff] %v7889_v0  ;;  %2006 = vmatprep.mubr.f32.mxu1 %v9742_v57  ;;  %v1757_v53 = vpop.f32.mrb[142].mxu0  ;;  %v1365_v56 = vadd.f32 %v1364_v43, %v9825_v16  ;;  %v3452_v27 = vmax.f32 %v1754_v62, 0.0 }
 0x33b   :  { %4869 = vmatmul.mubr.msk.f32.gmra.mrb[248].mxu0 %vm942_vm0, %v7732_v22  ;;  %v1758_v61 = vadd.f32 %v1757_v53, %v7474_v1  ;;  %v1759_v41 = vpop.f32.mrb[143].mxu0  ;;  %v3097_v45 = vmax.f32 %v1363_v11, 0.0 }
 0x33c   :  { %v1368_v6 = vpop.f32.mrb[34].mxu1  ;;  %2723 = vmatprep.mubr.f32.mxu0 %v9742_v57  ;;  %5134 = vmatpush1.bf16.msra.mxu0 %v7591_v33  ;;  %v1760_v4 = vadd.f32 %v1759_v41, %v7474_v1 }
 0x33d   :  { %v1369_v19 = vadd.f32 %v1368_v6, %v9826_v25  ;;  %v1370_v13 = vpop.f32.mrb[35].mxu1  ;;  %4783 = vmatmul.mubr.msk.f32.gmra.mrb[140].mxu1 %vm942_vm0, %v9827_v17  ;;  %5136 = vmatprep.subr.bf16.mxu0 %v7599_v54  ;;  %v3467_v22 = vmax.f32 %v1758_v61, 0.0  ;;  %v3098_v6 = vmax.f32 %v1365_v56, 0.0 }
 0x33e   :  { %v1371_v21 = vadd.f32 %v1370_v13, %v9826_v25  ;;  %2012 = vmatprep.mubr.f32.mxu1 %v9742_v57  ;;  %v3468_v63 = vmax.f32 %v1760_v4, 0.0  ;;  %v1763_v43 = vpop.f32.mrb[144].mxu0  ;;  %v9831_v13 = vld [vmem:[#allocation11_spill] sm:$0xff] }
 0x33f   :  { %v3113_v33 = vmax.f32 %v1369_v19, 0.0  ;;  %4870 = vmatmul.mubr.msk.f32.gmra.mrb[250].mxu0 %vm942_vm0, %v7754_v34  ;;  %v7911_v62 = vpack.c.bf16 %v3467_v22, %v3451_v14  ;;  %v1764_v53 = vadd.f32 %v1763_v43, %v7501_v50  ;;  %v1765_v41 = vpop.f32.mrb[145].mxu0  ;;  %v9830_v34 = vld [vmem:[#allocation47_spill] sm:$0xff] }
 0x340   :  { %v3114_v17 = vmax.f32 %v1371_v21, 0.0  ;;  %v1374_v54 = vpop.f32.mrb[36].mxu1  ;;  %2729 = vmatprep.mubr.f32.mxu0 %v9742_v57  ;;  %5138 = vmatpush1.bf16.msra.mxu0 %v7624_v18  ;;  %v7916_v61 = vpack.c.bf16 %v3468_v63, %v3452_v27  ;;  %v1766_v11 = vadd.f32 %v1765_v41, %v7501_v50 }
 0x341   :  { %9828 = vst [vmem:[#allocation52_spill] sm:$0xff] %v7911_v62  ;;  %v7919_v4 = vpack.c.bf16 %v3113_v33, %v3097_v45  ;;  %v1376_v19 = vpop.f32.mrb[37].mxu1  ;;  %4784 = vmatmul.mubr.msk.f32.gmra.mrb[142].mxu1 %vm942_vm0, %v9830_v34  ;;  %5140 = vmatprep.subr.bf16.mxu0 %v7637_v26  ;;  %v1375_v22 = vadd.f32 %v1374_v54, %v9831_v13  ;;  %v3483_v18 = vmax.f32 %v1764_v53, 0.0  ;;  %v9832_v33 = vld [vmem:[#allocation12_spill] sm:$0xff] }
 0x342   :  { %2018 = vmatprep.mubr.f32.mxu1 %v9742_v57  ;;  %v7925_v14 = vpack.c.bf16 %v3114_v17, %v3098_v6  ;;  %v1769_v56 = vpop.f32.mrb[146].mxu0  ;;  %v1377_v63 = vadd.f32 %v1376_v19, %v9831_v13  ;;  %v3484_v26 = vmax.f32 %v1766_v11, 0.0  ;;  %v9833_v17 = vld [vmem:[#allocation51_spill] sm:$0xff] }
 0x343   :  { %9829 = vst [vmem:[#allocation31_spill] sm:$0xff] %v7919_v4  ;;  %4871 = vmatmul.mubr.msk.f32.gmra.mrb[252].mxu0 %vm942_vm0, %v7772_v59  ;;  %v1770_v27 = vadd.f32 %v1769_v56, %v7508_v32  ;;  %v1771_v21 = vpop.f32.mrb[147].mxu0  ;;  %v3129_v34 = vmax.f32 %v1375_v22, 0.0 }
 0x344   :  { %v1380_v43 = vpop.f32.mrb[38].mxu1  ;;  %2735 = vmatprep.mubr.f32.mxu0 %v9742_v57  ;;  %5142 = vmatpush1.bf16.msra.mxu0 %v7644_v58  ;;  %v1772_v45 = vadd.f32 %v1771_v21, %v7508_v32 }
 0x345   :  { %v1381_v41 = vadd.f32 %v1380_v43, %v9832_v33  ;;  %v1382_v6 = vpop.f32.mrb[39].mxu1  ;;  %4785 = vmatmul.mubr.msk.f32.gmra.mrb[144].mxu1 %vm942_vm0, %v9833_v17  ;;  %5144 = vmatprep.subr.bf16.mxu0 %v7664_v7  ;;  %v3499_v59 = vmax.f32 %v1770_v27, 0.0  ;;  %v3130_v43 = vmax.f32 %v1377_v63, 0.0 }
 0x346   :  { %v1383_v53 = vadd.f32 %v1382_v6, %v9832_v33  ;;  %2024 = vmatprep.mubr.f32.mxu1 %v9742_v57  ;;  %v3500_v54 = vmax.f32 %v1772_v45, 0.0  ;;  %v1775_v19 = vpop.f32.mrb[148].mxu0 }
 0x347   :  { %v3145_v58 = vmax.f32 %v1381_v41, 0.0  ;;  %4872 = vmatmul.mubr.msk.f32.gmra.mrb[254].mxu0 %vm942_vm0, %v7794_v51  ;;  %v7943_v11 = vpack.c.bf16 %v3499_v59, %v3483_v18  ;;  %v1776_v56 = vadd.f32 %v1775_v19, %v7537_v48  ;;  %v1777_v21 = vpop.f32.mrb[149].mxu0  ;;  %v9837_v51 = vld [vmem:[#allocation54_spill] sm:$0xff]  ;;  %v9838_v18 = vld [vmem:[#allocation55_spill] sm:$0xff]  ;;  %v9840_v59 = vld [vmem:[#allocation13_spill] sm:$0xff] }
 0x348   :  { %v3146_v17 = vmax.f32 %v1383_v53, 0.0  ;;  %v1386_v7 = vpop.f32.mrb[40].mxu1  ;;  %2741 = vmatprep.mubr.f32.mxu0 %v9742_v57  ;;  %5146 = vmatpush1.bf16.msra.mxu0 %v7681_v44  ;;  %v7948_v27 = vpack.c.bf16 %v3500_v54, %v3484_v26  ;;  %v1778_v22 = vadd.f32 %v1777_v21, %v7537_v48 }
 0x349   :  { %9834 = vst [vmem:[#allocation35_spill] sm:$0xff] %v7943_v11  ;;  %v7951_v45 = vpack.c.bf16 %v3145_v58, %v3129_v34  ;;  %v1388_v41 = vpop.f32.mrb[41].mxu1  ;;  %4786 = vmatmul.mubr.msk.f32.gmra.mrb[146].mxu1 %vm942_vm0, %v9837_v51  ;;  %5212 = vmatprep.subr.bf16.mxu0 %v9838_v18  ;;  %v1387_v53 = vadd.f32 %v1386_v7, %v9840_v59  ;;  %v3515_v44 = vmax.f32 %v1776_v56, 0.0  ;;  %v9841_v51 = vld [vmem:[#allocation16_spill] sm:$0xff]  ;;  %v9842_v18 = vld [vmem:[#allocation57_spill] sm:$0xff] }
 0x34a   :  { %9835 = vst [vmem:[#allocation37_spill] sm:$0xff] %v7948_v27  ;;  %2030 = vmatprep.mubr.f32.mxu1 %v9742_v57  ;;  %v1781_v63 = vpop.f32.mrb[150].mxu0  ;;  %v7957_v6 = vpack.c.bf16 %v3146_v17, %v3130_v43  ;;  %v1389_v19 = vadd.f32 %v1388_v41, %v9840_v59  ;;  %v3516_v58 = vmax.f32 %v1778_v22, 0.0  ;;  %v7974_v22 = vld [vmem:[%s9600_s5 + $0x88] sm:$0xff] }
 0x34b   :  { %9836 = vst [vmem:[#allocation41_spill] sm:$0xff] %v7951_v45  ;;  %4873 = vmatmul.mubr.msk.f32.gmra.mrb[0].mxu0 %vm942_vm0, %v7812_v39  ;;  %v1782_v26 = vadd.f32 %v1781_v63, %v7548_v31  ;;  %v1783_v54 = vpop.f32.mrb[151].mxu0  ;;  %v3161_v41 = vmax.f32 %v1387_v53, 0.0 }
 0x34c   :  { %9839 = vst [vmem:[#allocation43_spill] sm:$0xff] %v7957_v6  ;;  %v1392_v34 = vpop.f32.mrb[42].mxu1  ;;  %2747 = vmatprep.mubr.f32.mxu0 %v9742_v57  ;;  %v1784_v21 = vadd.f32 %v1783_v54, %v7548_v31 }
 0x34d   :  { %v1393_v43 = vadd.f32 %v1392_v34, %v9841_v51  ;;  %v1394_v17 = vpop.f32.mrb[43].mxu1  ;;  %4787 = vmatmul.mubr.msk.f32.gmra.mrb[148].mxu1 %vm942_vm0, %v9842_v18  ;;  %v3531_v7 = vmax.f32 %v1782_v26, 0.0 }
 0x34e   :  { %v1395_v39 = vadd.f32 %v1394_v17, %v9841_v51  ;;  %2036 = vmatprep.mubr.f32.mxu1 %v9742_v57  ;;  %v3532_v56 = vmax.f32 %v1784_v21, 0.0  ;;  %v1787_v63 = vpop.f32.mrb[152].mxu0  ;;  %v3162_v17 = vmax.f32 %v1389_v19, 0.0  ;;  %v9847_v19 = vld [vmem:[#allocation17_spill] sm:$0xff] }
 0x34f   :  { %v3177_v0 = vmax.f32 %v1393_v43, 0.0  ;;  %4874 = vmatmul.mubr.msk.f32.gmra.mrb[2].mxu0 %vm942_vm0, %v7974_v22  ;;  %v7978_v54 = vpack.c.bf16 %v3531_v7, %v3515_v44  ;;  %v1788_v26 = vadd.f32 %v1787_v63, %v7577_v30  ;;  %v1789_v34 = vpop.f32.mrb[153].mxu0 }
 0x350   :  { %v3178_v18 = vmax.f32 %v1395_v39, 0.0  ;;  %v1398_v35 = vpop.f32.mrb[44].mxu1  ;;  %2753 = vmatprep.mubr.f32.mxu0 %v9742_v57  ;;  %v7982_v53 = vpack.c.bf16 %v3532_v56, %v3516_v58  ;;  %v1790_v21 = vadd.f32 %v1789_v34, %v7577_v30  ;;  %v7996_v58 = vld [vmem:[%s9600_s5 + $0x90] sm:$0xff] }
 0x351   :  { %9843 = vst [vmem:[#allocation47_spill] sm:$0xff] %v7978_v54  ;;  %v7985_v43 = vpack.c.bf16 %v3177_v0, %v3161_v41  ;;  %v1400_v40 = vpop.f32.mrb[45].mxu1  ;;  %4788 = vmatmul.mubr.msk.f32.gmra.mrb[150].mxu1 %vm942_vm0, %v7515_v29  ;;  %v1399_v39 = vadd.f32 %v1398_v35, %v9847_v19  ;;  %v3547_v0 = vmax.f32 %v1788_v26, 0.0 }
 0x352   :  { %9844 = vst [vmem:[#allocation51_spill] sm:$0xff] %v7982_v53  ;;  %v7989_v44 = vpack.c.bf16 %v3178_v18, %v3162_v17  ;;  %2042 = vmatprep.mubr.f32.mxu1 %v9742_v57  ;;  %v1793_v7 = vpop.f32.mrb[154].mxu0  ;;  %v1401_v29 = vadd.f32 %v1400_v40, %v9847_v19  ;;  %v3548_v34 = vmax.f32 %v1790_v21, 0.0  ;;  %v9848_v17 = vld [vmem:[#allocation20_spill] sm:$0xff]  ;;  %v8012_v21 = vld [vmem:[%s9600_s5 + $0x98] sm:$0xff] }
 0x353   :  { %9845 = vst [vmem:[#allocation54_spill] sm:$0xff] %v7985_v43  ;;  %4875 = vmatmul.mubr.msk.f32.gmra.mrb[4].mxu0 %vm942_vm0, %v7996_v58  ;;  %v1794_v56 = vadd.f32 %v1793_v7, %v7584_v49  ;;  %v1795_v63 = vpop.f32.mrb[155].mxu0  ;;  %v9849_v43 = vld [vmem:[#allocation65_spill] sm:$0xff]  ;;  %v3193_v40 = vmax.f32 %v1399_v39, 0.0 }
 0x354   :  { %9846 = vst [vmem:[#allocation55_spill] sm:$0xff] %v7989_v44  ;;  %v1404_v41 = vpop.f32.mrb[46].mxu1  ;;  %2759 = vmatprep.mubr.f32.mxu0 %v9742_v57  ;;  %v1796_v35 = vadd.f32 %v1795_v63, %v7584_v49 }
 0x355   :  { %v1405_v18 = vadd.f32 %v1404_v41, %v9848_v17  ;;  %v1406_v47 = vpop.f32.mrb[47].mxu1  ;;  %4789 = vmatmul.mubr.msk.f32.gmra.mrb[152].mxu1 %vm942_vm0, %v9849_v43  ;;  %v3563_v44 = vmax.f32 %v1794_v56, 0.0 }
 0x356   :  { %v1407_v26 = vadd.f32 %v1406_v47, %v9848_v17  ;;  %2048 = vmatprep.mubr.f32.mxu1 %v9742_v57  ;;  %v3564_v7 = vmax.f32 %v1796_v35, 0.0  ;;  %v1799_v45 = vpop.f32.mrb[156].mxu0  ;;  %v3194_v47 = vmax.f32 %v1401_v29, 0.0 }
 0x357   :  { %v3209_v6 = vmax.f32 %v1405_v18, 0.0  ;;  %4876 = vmatmul.mubr.msk.f32.gmra.mrb[6].mxu0 %vm942_vm0, %v8012_v21  ;;  %v8016_v63 = vpack.c.bf16 %v3563_v44, %v3547_v0  ;;  %v1800_v43 = vadd.f32 %v1799_v45, %v7608_v8  ;;  %v1801_v56 = vpop.f32.mrb[157].mxu0  ;;  %v8028_v44 = vld [vmem:[%s9600_s5 + $0xe8] sm:$0xff] }
 0x358   :  { %v3210_v41 = vmax.f32 %v1407_v26, 0.0  ;;  %v1410_v4 = vpop.f32.mrb[48].mxu1  ;;  %2765 = vmatprep.mubr.f32.mxu0 %v9742_v57  ;;  %v8020_v39 = vpack.c.bf16 %v3564_v7, %v3548_v34  ;;  %v1802_v35 = vadd.f32 %v1801_v56, %v7608_v8 }
 0x359   :  { %9850 = vst [vmem:[#allocation57_spill] sm:$0xff] %v8016_v63  ;;  %v8023_v18 = vpack.c.bf16 %v3209_v6, %v3193_v40  ;;  %v1412_v54 = vpop.f32.mrb[49].mxu1  ;;  %4790 = vmatmul.mubr.msk.f32.gmra.mrb[154].mxu1 %vm942_vm0, %v8028_v44  ;;  %v1411_v29 = vadd.f32 %v1410_v4, %v7133_v36  ;;  %v8039_v6 = vld [vmem:[%s9600_s5 + $0xa0] sm:$0xff]  ;;  %v3579_v34 = vmax.f32 %v1800_v43, 0.0 }
 0x35a   :  { %9851 = vst [vmem:[#allocation65_spill] sm:$0xff] %v8020_v39  ;;  %v8032_v45 = vpack.c.bf16 %v3210_v41, %v3194_v47  ;;  %2054 = vmatprep.mubr.f32.mxu1 %v9742_v57  ;;  %v1805_v0 = vpop.f32.mrb[158].mxu0  ;;  %v1413_v40 = vadd.f32 %v1412_v54, %v7133_v36  ;;  %v3580_v47 = vmax.f32 %v1802_v35, 0.0 }
 0x35b   :  { %9852 = vst [vmem:[#allocation77_spill] sm:$0xff] %v8023_v18  ;;  %4877 = vmatmul.mubr.msk.f32.gmra.mrb[8].mxu0 %vm942_vm0, %v8039_v6  ;;  %v1806_v26 = vadd.f32 %v1805_v0, %v7615_v10  ;;  %v1807_v7 = vpop.f32.mrb[159].mxu0  ;;  %v3225_v63 = vmax.f32 %v1411_v29, 0.0 }
 0x35c   :  { %9853 = vst [vmem:[#allocation78_spill] sm:$0xff] %v8032_v45  ;;  %v1416_v56 = vpop.f32.mrb[50].mxu1  ;;  %2771 = vmatprep.mubr.f32.mxu0 %v9742_v57  ;;  %v1808_v4 = vadd.f32 %v1807_v7, %v7615_v10  ;;  %v8051_v45 = vld [vmem:[%s9600_s5 + $0xf0] sm:$0xff] }
 0x35d   :  { %v1417_v41 = vadd.f32 %v1416_v56, %v7139_v12  ;;  %v1418_v18 = vpop.f32.mrb[51].mxu1  ;;  %4791 = vmatmul.mubr.msk.f32.gmra.mrb[156].mxu1 %vm942_vm0, %v8051_v45  ;;  %v3595_v43 = vmax.f32 %v1806_v26, 0.0  ;;  %v8060_v56 = vld [vmem:[%s9600_s5 + $0xa8] sm:$0xff] }
 0x35e   :  { %v1419_v54 = vadd.f32 %v1418_v18, %v7139_v12  ;;  %2060 = vmatprep.mubr.f32.mxu1 %v9742_v57  ;;  %v3596_v0 = vmax.f32 %v1808_v4, 0.0  ;;  %v2133_v35 = vpop.f32.mrb[160].mxu0  ;;  %v3226_v18 = vmax.f32 %v1413_v40, 0.0 }
 0x35f   :  { %v3241_v7 = vmax.f32 %v1417_v41, 0.0  ;;  %4878 = vmatmul.mubr.msk.f32.gmra.mrb[10].mxu0 %vm942_vm0, %v8060_v56  ;;  %v8064_v39 = vpack.c.bf16 %v3595_v43, %v3579_v34  ;;  %v2134_v26 = vadd.f32 %v2133_v35, %v9825_v16  ;;  %v2135_v53 = vpop.f32.mrb[161].mxu0  ;;  %v8076_v34 = vld [vmem:[%s9600_s5 + $0xf8] sm:$0xff] }
 0x360   :  { %v3242_v11 = vmax.f32 %v1419_v54, 0.0  ;;  %v1422_v27 = vpop.f32.mrb[52].mxu1  ;;  %2777 = vmatprep.mubr.f32.mxu0 %v9742_v57  ;;  %v8068_v29 = vpack.c.bf16 %v3596_v0, %v3580_v47  ;;  %v2136_v4 = vadd.f32 %v2135_v53, %v9825_v16  ;;  %v8087_v53 = vld [vmem:[%s9600_s5 + $0xb0] sm:$0xff] }
 0x361   :  { %9854 = vst [vmem:[#allocation79_spill] sm:$0xff] %v8064_v39  ;;  %v8071_v41 = vpack.c.bf16 %v3241_v7, %v3225_v63  ;;  %v1424_v62 = vpop.f32.mrb[53].mxu1  ;;  %4792 = vmatmul.mubr.msk.f32.gmra.mrb[158].mxu1 %vm942_vm0, %v8076_v34  ;;  %v1423_v47 = vadd.f32 %v1422_v27, %v7174_v15  ;;  %9858 = vst [vmem:[#allocation83_spill] sm:$0xff] %v8087_v53  ;;  %v3103_v63 = vmax.f32 %v2134_v26, 0.0  ;;  %v9859_v39 = vld [vmem:[#allocation8_spill] sm:$0xff] }
 0x362   :  { %9855 = vst [vmem:[#allocation80_spill] sm:$0xff] %v8068_v29  ;;  %v8080_v40 = vpack.c.bf16 %v3242_v11, %v3226_v18  ;;  %2388 = vmatprep.mubr.f32.mxu1 %v9742_v57  ;;  %v2139_v43 = vpop.f32.mrb[162].mxu0  ;;  %v1425_v11 = vadd.f32 %v1424_v62, %v7174_v15  ;;  %v3104_v7 = vmax.f32 %v2136_v4, 0.0 }
 0x363   :  { %9856 = vst [vmem:[#allocation81_spill] sm:$0xff] %v8071_v41  ;;  %4879 = vmatmul.mubr.msk.f32.gmra.mrb[12].mxu0 %vm942_vm0, %v8087_v53  ;;  %v2140_v54 = vadd.f32 %v2139_v43, %v9826_v25  ;;  %v2141_v0 = vpop.f32.mrb[163].mxu0  ;;  %v3257_v29 = vmax.f32 %v1423_v47, 0.0 }
 0x364   :  { %9857 = vst [vmem:[#allocation82_spill] sm:$0xff] %v8080_v40  ;;  %v1428_v35 = vpop.f32.mrb[54].mxu1  ;;  %2783 = vmatprep.mubr.f32.mxu0 %v9742_v57  ;;  %v2142_v27 = vadd.f32 %v2141_v0, %v9826_v25  ;;  %v5804_v40 = vld [vmem:[%s9600_s5] sm:$0xff] }
 0x365   :  { %v1429_v18 = vadd.f32 %v1428_v35, %v7180_v28  ;;  %v1430_v41 = vpop.f32.mrb[55].mxu1  ;;  %4825 = vmatmul.mubr.msk.f32.vlgmr.msra.gmra.mrb[160].mxu1 %vm942_vm0, %v5804_v40  ;;  %v3119_v26 = vmax.f32 %v2140_v54, 0.0  ;;  %v8107_v35 = vld [vmem:[%s9600_s5 + $0xb8] sm:$0xff]  ;;  %v3258_v54 = vmax.f32 %v1425_v11, 0.0 }
 0x366   :  { %v1431_v43 = vadd.f32 %v1430_v41, %v7180_v28  ;;  %2839 = vmatpush1.msra.mxu1 %v9859_v39  ;;  %2394 = vmatprep.mubr.f32.mxu1 %v9742_v57  ;;  %v3120_v62 = vmax.f32 %v2142_v27, 0.0  ;;  %v2145_v4 = vpop.f32.mrb[164].mxu0 }
 0x367   :  { %v3273_v0 = vmax.f32 %v1429_v18, 0.0  ;;  %5148 = vmatprep.subr.bf16.mxu1 %v7925_v14  ;;  %4880 = vmatmul.mubr.msk.f32.gmra.mrb[14].mxu0 %vm942_vm0, %v8107_v35  ;;  %v8111_v40 = vpack.c.bf16 %v3119_v26, %v3103_v63  ;;  %v2146_v39 = vadd.f32 %v2145_v4, %v9831_v13  ;;  %v2147_v41 = vpop.f32.mrb[165].mxu0  ;;  %v5806_v63 = vld [vmem:[%s9600_s5 + $0x8] sm:$0xff] }
 0x368   :  { %v3274_v27 = vmax.f32 %v1431_v43, 0.0  ;;  %v1434_v53 = vpop.f32.mrb[56].mxu1  ;;  %2789 = vmatprep.mubr.f32.mxu0 %v9742_v57  ;;  %v8115_v47 = vpack.c.bf16 %v3120_v62, %v3104_v7  ;;  %v2148_v14 = vadd.f32 %v2147_v41, %v9831_v13  ;;  %v8131_v7 = vld [vmem:[%s9600_s5 + $0xc0] sm:$0xff] }
 0x369   :  { %9860 = vst [vmem:[#allocation8_spill] sm:$0xff] %v8111_v40  ;;  %v8118_v18 = vpack.c.bf16 %v3273_v0, %v3257_v29  ;;  %v1436_v25 = vpop.f32.mrb[57].mxu1  ;;  %4826 = vmatmul.mubr.msk.f32.gmra.mrb[162].mxu1 %vm942_vm0, %v5806_v63  ;;  %v1435_v43 = vadd.f32 %v1434_v53, %v9781_v42  ;;  %9864 = vst [vmem:[#allocation87_spill] sm:$0xff] %v8131_v7  ;;  %v3135_v29 = vmax.f32 %v2146_v39, 0.0 }
 0x36a   :  { %9861 = vst [vmem:[#allocation84_spill] sm:$0xff] %v8115_v47  ;;  %v8124_v26 = vpack.c.bf16 %v3274_v27, %v3258_v54  ;;  %2400 = vmatprep.mubr.f32.mxu1 %v9742_v57  ;;  %v2151_v11 = vpop.f32.mrb[166].mxu0  ;;  %v1437_v0 = vadd.f32 %v1436_v25, %v9781_v42  ;;  %v3136_v54 = vmax.f32 %v2148_v14, 0.0 }
 0x36b   :  { %9862 = vst [vmem:[#allocation85_spill] sm:$0xff] %v8118_v18  ;;  %4881 = vmatmul.mubr.msk.f32.gmra.mrb[16].mxu0 %vm942_vm0, %v8131_v7  ;;  %v2152_v62 = vadd.f32 %v2151_v11, %v9832_v33  ;;  %v2153_v4 = vpop.f32.mrb[167].mxu0  ;;  %v5808_v18 = vld [vmem:[%s9600_s5 + $0x10] sm:$0xff]  ;;  %v3289_v40 = vmax.f32 %v1435_v43, 0.0 }
 0x36c   :  { %9863 = vst [vmem:[#allocation86_spill] sm:$0xff] %v8124_v26  ;;  %v1440_v41 = vpop.f32.mrb[58].mxu1  ;;  %2795 = vmatprep.mubr.f32.mxu0 %v9742_v57  ;;  %v2154_v53 = vadd.f32 %v2153_v4, %v9832_v33  ;;  %v8149_v4 = vld [vmem:[%s9600_s5 + $0xc8] sm:$0xff] }
 0x36d   :  { %v1441_v27 = vadd.f32 %v1440_v41, %v9786_v9  ;;  %v1442_v63 = vpop.f32.mrb[59].mxu1  ;;  %4827 = vmatmul.mubr.msk.f32.gmra.mrb[164].mxu1 %vm942_vm0, %v5808_v18  ;;  %v3151_v39 = vmax.f32 %v2152_v62, 0.0 }
 0x36e   :  { %v1443_v11 = vadd.f32 %v1442_v63, %v9786_v9  ;;  %2406 = vmatprep.mubr.f32.mxu1 %v9742_v57  ;;  %v3152_v25 = vmax.f32 %v2154_v53, 0.0  ;;  %v2157_v26 = vpop.f32.mrb[168].mxu0  ;;  %v3290_v63 = vmax.f32 %v1437_v0, 0.0 }
 0x36f   :  { %v3305_v14 = vmax.f32 %v1441_v27, 0.0  ;;  %4882 = vmatmul.mubr.msk.f32.gmra.mrb[18].mxu0 %vm942_vm0, %v8149_v4  ;;  %v8153_v41 = vpack.c.bf16 %v3151_v39, %v3135_v29  ;;  %v2158_v18 = vadd.f32 %v2157_v26, %v9840_v59  ;;  %v2159_v62 = vpop.f32.mrb[169].mxu0  ;;  %v5810_v29 = vld [vmem:[%s9600_s5 + $0x18] sm:$0xff] }
 0x370   :  { %v3306_v47 = vmax.f32 %v1443_v11, 0.0  ;;  %v1446_v7 = vpop.f32.mrb[60].mxu1  ;;  %2801 = vmatprep.mubr.f32.mxu0 %v9742_v57  ;;  %v8157_v43 = vpack.c.bf16 %v3152_v25, %v3136_v54  ;;  %v2160_v53 = vadd.f32 %v2159_v62, %v9840_v59  ;;  %v8173_v54 = vld [vmem:[%s9600_s5 + $0xd0] sm:$0xff] }
 0x371   :  { %9865 = vst [vmem:[#allocation88_spill] sm:$0xff] %v8153_v41  ;;  %v8160_v27 = vpack.c.bf16 %v3305_v14, %v3289_v40  ;;  %v1448_v33 = vpop.f32.mrb[61].mxu1  ;;  %4828 = vmatmul.mubr.msk.f32.gmra.mrb[166].mxu1 %vm942_vm0, %v5810_v29  ;;  %v1447_v39 = vadd.f32 %v1446_v7, %v9791_v60  ;;  %9869 = vst [vmem:[#allocation92_spill] sm:$0xff] %v8173_v54  ;;  %v3167_v40 = vmax.f32 %v2158_v18, 0.0 }
 0x372   :  { %9866 = vst [vmem:[#allocation89_spill] sm:$0xff] %v8157_v43  ;;  %v8166_v26 = vpack.c.bf16 %v3306_v47, %v3290_v63  ;;  %2412 = vmatprep.mubr.f32.mxu1 %v9742_v57  ;;  %v2163_v0 = vpop.f32.mrb[170].mxu0  ;;  %v1449_v47 = vadd.f32 %v1448_v33, %v9791_v60  ;;  %v3168_v62 = vmax.f32 %v2160_v53, 0.0  ;;  %v9870_v63 = vld [vmem:[#allocation40_spill] sm:$0xff] }
 0x373   :  { %9867 = vst [vmem:[#allocation90_spill] sm:$0xff] %v8160_v27  ;;  %4883 = vmatmul.mubr.msk.f32.gmra.mrb[20].mxu0 %vm942_vm0, %v8173_v54  ;;  %v2164_v11 = vadd.f32 %v2163_v0, %v9841_v51  ;;  %v2165_v25 = vpop.f32.mrb[171].mxu0  ;;  %v3321_v43 = vmax.f32 %v1447_v39, 0.0 }
 0x374   :  { %9868 = vst [vmem:[#allocation91_spill] sm:$0xff] %v8166_v26  ;;  %v1452_v14 = vpop.f32.mrb[62].mxu1  ;;  %2807 = vmatprep.mubr.f32.mxu0 %v9742_v57  ;;  %v2166_v7 = vadd.f32 %v2165_v25, %v9841_v51  ;;  %v5812_v26 = vld [vmem:[%s9600_s5 + $0x20] sm:$0xff]  ;;  %v8191_v25 = vld [vmem:[%s9600_s5 + $0xd8] sm:$0xff] }
 0x375   :  { %v1453_v29 = vadd.f32 %v1452_v14, %v9870_v63  ;;  %v1454_v27 = vpop.f32.mrb[63].mxu1  ;;  %4829 = vmatmul.mubr.msk.f32.gmra.mrb[168].mxu1 %vm942_vm0, %v5812_v26  ;;  %v3183_v18 = vmax.f32 %v2164_v11, 0.0 }
 0x376   :  { %v1455_v0 = vadd.f32 %v1454_v27, %v9870_v63  ;;  %2418 = vmatprep.mubr.f32.mxu1 %v9742_v57  ;;  %v3184_v33 = vmax.f32 %v2166_v7, 0.0  ;;  %v2169_v41 = vpop.f32.mrb[172].mxu0  ;;  %v3322_v27 = vmax.f32 %v1449_v47, 0.0 }
 0x377   :  { %v3337_v53 = vmax.f32 %v1453_v29, 0.0  ;;  %4884 = vmatmul.mubr.msk.f32.gmra.mrb[22].mxu0 %vm942_vm0, %v8191_v25  ;;  %v8195_v14 = vpack.c.bf16 %v3183_v18, %v3167_v40  ;;  %v2170_v26 = vadd.f32 %v2169_v41, %v9847_v19  ;;  %v2171_v11 = vpop.f32.mrb[173].mxu0  ;;  %v5814_v40 = vld [vmem:[%s9600_s5 + $0x28] sm:$0xff] }
 0x378   :  { %v3338_v54 = vmax.f32 %v1455_v0, 0.0  ;;  %v1458_v51 = vpop.f32.mrb[64].mxu1  ;;  %2813 = vmatprep.mubr.f32.mxu0 %v9742_v57  ;;  %v8199_v39 = vpack.c.bf16 %v3184_v33, %v3168_v62  ;;  %v2172_v7 = vadd.f32 %v2171_v11, %v9847_v19  ;;  %v8215_v62 = vld [vmem:[%s9600_s5 + $0xe0] sm:$0xff] }
 0x379   :  { %9871 = vst [vmem:[#allocation93_spill] sm:$0xff] %v8195_v14  ;;  %v8202_v29 = vpack.c.bf16 %v3337_v53, %v3321_v43  ;;  %v1460_v59 = vpop.f32.mrb[65].mxu1  ;;  %4830 = vmatmul.mubr.msk.f32.gmra.mrb[170].mxu1 %vm942_vm0, %v5814_v40  ;;  %v1459_v18 = vadd.f32 %v1458_v51, %v9801_v55  ;;  %9875 = vst [vmem:[#allocation97_spill] sm:$0xff] %v8215_v62  ;;  %v3199_v43 = vmax.f32 %v2170_v26, 0.0 }
 0x37a   :  { %9872 = vst [vmem:[#allocation94_spill] sm:$0xff] %v8199_v39  ;;  %v8208_v41 = vpack.c.bf16 %v3338_v54, %v3322_v27  ;;  %2424 = vmatprep.mubr.f32.mxu1 %v9742_v57  ;;  %v2175_v47 = vpop.f32.mrb[174].mxu0  ;;  %v1461_v54 = vadd.f32 %v1460_v59, %v9801_v55  ;;  %v3200_v11 = vmax.f32 %v2172_v7, 0.0  ;;  %v9876_v27 = vld [vmem:[#allocation46_spill] sm:$0xff] }
 0x37b   :  { %9873 = vst [vmem:[#allocation95_spill] sm:$0xff] %v8202_v29  ;;  %4885 = vmatmul.mubr.msk.f32.gmra.mrb[24].mxu0 %vm942_vm0, %v8215_v62  ;;  %v2176_v0 = vadd.f32 %v2175_v47, %v9848_v17  ;;  %v2177_v33 = vpop.f32.mrb[175].mxu0  ;;  %v3353_v14 = vmax.f32 %v1459_v18, 0.0 }
 0x37c   :  { %9874 = vst [vmem:[#allocation96_spill] sm:$0xff] %v8208_v41  ;;  %v1464_v53 = vpop.f32.mrb[66].mxu1  ;;  %2819 = vmatprep.mubr.f32.mxu0 %v9742_v57  ;;  %v2178_v51 = vadd.f32 %v2177_v33, %v9848_v17  ;;  %v5816_v41 = vld [vmem:[%s9600_s5 + $0x30] sm:$0xff]  ;;  %v3354_v19 = vmax.f32 %v1461_v54, 0.0 }
 0x37d   :  { %v1465_v40 = vadd.f32 %v1464_v53, %v9876_v27  ;;  %v1466_v29 = vpop.f32.mrb[67].mxu1  ;;  %4831 = vmatmul.mubr.msk.f32.gmra.mrb[172].mxu1 %vm942_vm0, %v5816_v41  ;;  %v3215_v26 = vmax.f32 %v2176_v0, 0.0 }
 0x37e   :  { %v1467_v47 = vadd.f32 %v1466_v29, %v9876_v27  ;;  %2430 = vmatprep.mubr.f32.mxu1 %v9742_v57  ;;  %v3216_v59 = vmax.f32 %v2178_v51, 0.0  ;;  %v2181_v62 = vpop.f32.mrb[176].mxu0 }
 0x37f   :  { %v3369_v7 = vmax.f32 %v1465_v40, 0.0  ;;  %4886 = vmatmul.mubr.msk.f32.gmra.mrb[26].mxu0 %vm942_vm0, %v8028_v44  ;;  %v8232_v33 = vpack.c.bf16 %v3215_v26, %v3199_v43  ;;  %v2182_v53 = vadd.f32 %v2181_v62, %v7133_v36  ;;  %v2183_v17 = vpop.f32.mrb[177].mxu0  ;;  %v5817_v44 = vld [vmem:[%s9600_s5 + $0x38] sm:$0xff] }
 0x380   :  { %v3370_v39 = vmax.f32 %v1467_v47, 0.0  ;;  %v1470_v41 = vpop.f32.mrb[68].mxu1  ;;  %2825 = vmatprep.mubr.f32.mxu0 %v9742_v57  ;;  %v8236_v29 = vpack.c.bf16 %v3216_v59, %v3200_v11  ;;  %v2184_v0 = vadd.f32 %v2183_v17, %v7133_v36  ;;  %v9884_v36 = vld [vmem:[#allocation56_spill] sm:$0xff] }
 0x381   :  { %v8239_v51 = vpack.c.bf16 %v3369_v7, %v3353_v14  ;;  %v1472_v18 = vpop.f32.mrb[69].mxu1  ;;  %4832 = vmatmul.mubr.msk.f32.gmra.mrb[174].mxu1 %vm942_vm0, %v5817_v44  ;;  %v1471_v54 = vadd.f32 %v1470_v41, %v7392_v20  ;;  %v3231_v17 = vmax.f32 %v2182_v53, 0.0  ;;  %v5818_v7 = vld [vmem:[%s9600_s5 + $0x40] sm:$0xff] }
 0x382   :  { %v8245_v62 = vpack.c.bf16 %v3370_v39, %v3354_v19  ;;  %2436 = vmatprep.mubr.f32.mxu1 %v9742_v57  ;;  %v2187_v43 = vpop.f32.mrb[178].mxu0  ;;  %v1473_v40 = vadd.f32 %v1472_v18, %v7392_v20  ;;  %v3232_v47 = vmax.f32 %v2184_v0, 0.0 }
 0x383   :  { %9877 = vst [vmem:[#allocation98_spill] sm:$0xff] %v8239_v51  ;;  %4887 = vmatmul.mubr.msk.f32.gmra.mrb[28].mxu0 %vm942_vm0, %v8051_v45  ;;  %v2188_v14 = vadd.f32 %v2187_v43, %v7139_v12  ;;  %v2189_v11 = vpop.f32.mrb[179].mxu0  ;;  %v8263_v45 = vld [vmem:[%s9602_s7 + $0x8] sm:$0xff]  ;;  %v3385_v44 = vmax.f32 %v1471_v54, 0.0 }
 0x384   :  { %9878 = vst [vmem:[#allocation99_spill] sm:$0xff] %v8245_v62  ;;  %v1476_v26 = vpop.f32.mrb[70].mxu1  ;;  %2831 = vmatprep.mubr.f32.mxu0 %v9742_v57  ;;  %v2190_v19 = vadd.f32 %v2189_v11, %v7139_v12  ;;  %v3386_v51 = vmax.f32 %v1473_v40, 0.0  ;;  %v5819_v40 = vld [vmem:[%s9600_s5 + $0x48] sm:$0xff] }
 0x385   :  { %v1477_v39 = vadd.f32 %v1476_v26, %v9815_v3  ;;  %v1478_v59 = vpop.f32.mrb[71].mxu1  ;;  %4833 = vmatmul.mubr.msk.f32.gmra.mrb[176].mxu1 %vm942_vm0, %v5818_v7  ;;  %v3247_v53 = vmax.f32 %v2188_v14, 0.0  ;;  %v8276_v14 = vld [vmem:[%s9602_s7] sm:$0xff] }
 0x386   :  { %v1479_v41 = vadd.f32 %v1478_v59, %v9815_v3  ;;  %2442 = vmatprep.mubr.f32.mxu1 %v9742_v57  ;;  %v3248_v0 = vmax.f32 %v2190_v19, 0.0  ;;  %v2193_v18 = vpop.f32.mrb[180].mxu0 }
 0x387   :  { %v3401_v43 = vmax.f32 %v1477_v39, 0.0  ;;  %4888 = vmatmul.mubr.msk.f32.gmra.mrb[30].mxu0 %vm942_vm0, %v8076_v34  ;;  %v8269_v11 = vpack.c.bf16 %v3247_v53, %v3231_v17  ;;  %v2194_v26 = vadd.f32 %v2193_v18, %v7174_v15  ;;  %v2195_v7 = vpop.f32.mrb[181].mxu0 }
 0x388   :  { %v3402_v62 = vmax.f32 %v1479_v41, 0.0  ;;  %v1482_v12 = vpop.f32.mrb[72].mxu1  ;;  %3679 = vmatprep.mubr.f32.mxu0 %v8263_v45  ;;  %v8278_v54 = vpack.c.bf16 %v3248_v0, %v3232_v47  ;;  %v2196_v19 = vadd.f32 %v2195_v7, %v7174_v15 }
 0x389   :  { %9879 = vst [vmem:[#allocation100_spill] sm:$0xff] %v8269_v11  ;;  %v8281_v34 = vpack.c.bf16 %v3401_v43, %v3385_v44  ;;  %v1484_v17 = vpop.f32.mrb[73].mxu1  ;;  %4834 = vmatmul.mubr.msk.f32.gmra.mrb[178].mxu1 %vm942_vm0, %v5819_v40  ;;  %v1483_v53 = vadd.f32 %v1482_v12, %v7429_v24  ;;  %v3263_v47 = vmax.f32 %v2194_v26, 0.0  ;;  %v9882_v44 = vld [vmem:[#allocation53_spill] sm:$0xff]  ;;  %v5820_v12 = vld [vmem:[%s9600_s5 + $0x50] sm:$0xff] }
 0x38a   :  { %v8287_v39 = vpack.c.bf16 %v3402_v62, %v3386_v51  ;;  %2448 = vmatprep.mubr.f32.mxu1 %v9742_v57  ;;  %v2199_v59 = vpop.f32.mrb[182].mxu0  ;;  %v1485_v18 = vadd.f32 %v1484_v17, %v7429_v24  ;;  %v3264_v7 = vmax.f32 %v2196_v19, 0.0  ;;  %v9883_v26 = vld [vmem:[#allocation58_spill] sm:$0xff] }
 0x38b   :  { %9880 = vst [vmem:[#allocation101_spill] sm:$0xff] %v8281_v34  ;;  %3680 = vmatmul.mubr.f32.vlgmr.msra.gmra.mrb[32].mxu0 %v8276_v14  ;;  %v2200_v41 = vadd.f32 %v2199_v59, %v7180_v28  ;;  %v2201_v0 = vpop.f32.mrb[183].mxu0 }
 0x38c   :  { %9881 = vst [vmem:[#allocation102_spill] sm:$0xff] %v8287_v39  ;;  %5214 = vmatpush1.bf16.msra.mxu0 %v9882_v44  ;;  %v1488_v43 = vpop.f32.mrb[74].mxu1  ;;  %v2202_v51 = vadd.f32 %v2201_v0, %v7180_v28  ;;  %3821 = vmatprep.mubr.f32.mxu0 %v8263_v45  ;;  %v3417_v44 = vmax.f32 %v1483_v53, 0.0  ;;  %v3418_v15 = vmax.f32 %v1485_v18, 0.0  ;;  %v5821_v53 = vld [vmem:[%s9600_s5 + $0x58] sm:$0xff] }
 0x38d   :  { %v1489_v62 = vadd.f32 %v1488_v43, %v7437_v5  ;;  %v1490_v40 = vpop.f32.mrb[75].mxu1  ;;  %4835 = vmatmul.mubr.msk.f32.gmra.mrb[180].mxu1 %vm942_vm0, %v5820_v12  ;;  %5216 = vmatprep.subr.bf16.mxu0 %v9883_v26  ;;  %v3279_v17 = vmax.f32 %v2200_v41, 0.0 }
 0x38e   :  { %v1491_v59 = vadd.f32 %v1490_v40, %v7437_v5  ;;  %2454 = vmatprep.mubr.f32.mxu1 %v9742_v57  ;;  %v3280_v19 = vmax.f32 %v2202_v51, 0.0  ;;  %v2205_v0 = vpop.f32.mrb[184].mxu0 }
 0x38f   :  { %v3433_v34 = vmax.f32 %v1489_v62, 0.0  ;;  %v8305_v39 = vpack.c.bf16 %v3279_v17, %v3263_v47  ;;  %v2206_v43 = vadd.f32 %v2205_v0, %v9781_v42  ;;  %v2207_v28 = vpop.f32.mrb[185].mxu0  ;;  %v9886_v47 = vld [vmem:[#allocation61_spill] sm:$0xff] }
 0x390   :  { %v3434_v11 = vmax.f32 %v1491_v59, 0.0  ;;  %5218 = vmatpush1.bf16.msra.mxu0 %v9884_v36  ;;  %v1494_v12 = vpop.f32.mrb[76].mxu1  ;;  %v8309_v26 = vpack.c.bf16 %v3280_v19, %v3264_v7  ;;  %v2208_v41 = vadd.f32 %v2207_v28, %v9781_v42  ;;  %v9888_v59 = vld [vmem:[#allocation60_spill] sm:$0xff]  ;;  %v9890_v42 = vld [vmem:[#allocation69_spill] sm:$0xff] }
 0x391   :  { %v8312_v40 = vpack.c.bf16 %v3433_v34, %v3417_v44  ;;  %v1496_v51 = vpop.f32.mrb[77].mxu1  ;;  %4836 = vmatmul.mubr.msk.f32.gmra.mrb[182].mxu1 %vm942_vm0, %v5821_v53  ;;  %5220 = vmatprep.subr.bf16.mxu0 %v9886_v47  ;;  %v1495_v7 = vadd.f32 %v1494_v12, %v7463_v23  ;;  %v3295_v62 = vmax.f32 %v2206_v43, 0.0  ;;  %v5822_v53 = vld [vmem:[%s9600_s5 + $0x60] sm:$0xff]  ;;  %v9889_v43 = vld [vmem:[#allocation70_spill] sm:$0xff] }
 0x392   :  { %v8319_v18 = vpack.c.bf16 %v3434_v11, %v3418_v15  ;;  %2460 = vmatprep.mubr.f32.mxu1 %v9742_v57  ;;  %v2211_v36 = vpop.f32.mrb[186].mxu0  ;;  %v1497_v17 = vadd.f32 %v1496_v51, %v7463_v23  ;;  %v3296_v0 = vmax.f32 %v2208_v41, 0.0 }
 0x393   :  { %9885 = vst [vmem:[#allocation53_spill] sm:$0xff] %v8312_v40  ;;  %v2212_v28 = vadd.f32 %v2211_v36, %v9786_v9  ;;  %v2213_v34 = vpop.f32.mrb[187].mxu0  ;;  %v3449_v36 = vmax.f32 %v1495_v7, 0.0  ;;  %v5823_v7 = vld [vmem:[%s9600_s5 + $0x68] sm:$0xff] }
 0x394   :  { %9887 = vst [vmem:[#allocation58_spill] sm:$0xff] %v8319_v18  ;;  %5222 = vmatpush1.bf16.msra.mxu0 %v9888_v59  ;;  %v1500_v19 = vpop.f32.mrb[78].mxu1  ;;  %v2214_v44 = vadd.f32 %v2213_v34, %v9786_v9  ;;  %v3450_v18 = vmax.f32 %v1497_v17, 0.0 }
 0x395   :  { %v1501_v15 = vadd.f32 %v1500_v19, %v7474_v1  ;;  %v1502_v11 = vpop.f32.mrb[79].mxu1  ;;  %4837 = vmatmul.mubr.msk.f32.gmra.mrb[184].mxu1 %vm942_vm0, %v5822_v53  ;;  %5224 = vmatprep.subr.bf16.mxu0 %v9889_v43  ;;  %v3311_v12 = vmax.f32 %v2212_v28, 0.0 }
 0x396   :  { %v1503_v51 = vadd.f32 %v1502_v11, %v7474_v1  ;;  %2466 = vmatprep.mubr.f32.mxu1 %v9742_v57  ;;  %v3312_v47 = vmax.f32 %v2214_v44, 0.0  ;;  %v2217_v41 = vpop.f32.mrb[188].mxu0 }
 0x397   :  { %v3465_v34 = vmax.f32 %v1501_v15, 0.0  ;;  %v8335_v59 = vpack.c.bf16 %v3311_v12, %v3295_v62  ;;  %v2218_v19 = vadd.f32 %v2217_v41, %v9791_v60  ;;  %v2219_v40 = vpop.f32.mrb[189].mxu0  ;;  %v9892_v62 = vld [vmem:[#allocation73_spill] sm:$0xff] }
 0x398   :  { %v3466_v9 = vmax.f32 %v1503_v51, 0.0  ;;  %5226 = vmatpush1.bf16.msra.mxu0 %v9890_v42  ;;  %v1506_v53 = vpop.f32.mrb[80].mxu1  ;;  %v8339_v43 = vpack.c.bf16 %v3312_v47, %v3296_v0  ;;  %v2220_v28 = vadd.f32 %v2219_v40, %v9791_v60  ;;  %v9894_v47 = vld [vmem:[#allocation72_spill] sm:$0xff]  ;;  %v9896_v60 = vld [vmem:[#allocation14_spill] sm:$0xff] }
 0x399   :  { %v8342_v11 = vpack.c.bf16 %v3465_v34, %v3449_v36  ;;  %v1508_v44 = vpop.f32.mrb[81].mxu1  ;;  %4838 = vmatmul.mubr.msk.f32.gmra.mrb[186].mxu1 %vm942_vm0, %v5823_v7  ;;  %5228 = vmatprep.subr.bf16.mxu0 %v9892_v62  ;;  %v1507_v0 = vadd.f32 %v1506_v53, %v7501_v50  ;;  %v3327_v15 = vmax.f32 %v2218_v19, 0.0  ;;  %v5824_v7 = vld [vmem:[%s9600_s5 + $0x70] sm:$0xff]  ;;  %v9895_v19 = vld [vmem:[#allocation48_spill] sm:$0xff] }
 0x39a   :  { %v8349_v17 = vpack.c.bf16 %v3466_v9, %v3450_v18  ;;  %2472 = vmatprep.mubr.f32.mxu1 %v9742_v57  ;;  %v2223_v42 = vpop.f32.mrb[190].mxu0  ;;  %v1509_v51 = vadd.f32 %v1508_v44, %v7501_v50  ;;  %v3328_v36 = vmax.f32 %v2220_v28, 0.0 }
 0x39b   :  { %9891 = vst [vmem:[#allocation56_spill] sm:$0xff] %v8342_v11  ;;  %v2224_v40 = vadd.f32 %v2223_v42, %v9870_v63  ;;  %v2225_v12 = vpop.f32.mrb[191].mxu0  ;;  %v3481_v42 = vmax.f32 %v1507_v0, 0.0  ;;  %v5825_v0 = vld [vmem:[%s9600_s5 + $0x78] sm:$0xff] }
 0x39c   :  { %9893 = vst [vmem:[#allocation61_spill] sm:$0xff] %v8349_v17  ;;  %5230 = vmatpush1.bf16.msra.mxu0 %v9894_v47  ;;  %v1512_v41 = vpop.f32.mrb[82].mxu1  ;;  %v2226_v34 = vadd.f32 %v2225_v12, %v9870_v63  ;;  %v3482_v17 = vmax.f32 %v1509_v51, 0.0 }
 0x39d   :  { %v1513_v9 = vadd.f32 %v1512_v41, %v7508_v32  ;;  %v1514_v18 = vpop.f32.mrb[83].mxu1  ;;  %4839 = vmatmul.mubr.msk.f32.gmra.mrb[188].mxu1 %vm942_vm0, %v5824_v7  ;;  %5232 = vmatprep.subr.bf16.mxu0 %v9895_v19  ;;  %v3343_v53 = vmax.f32 %v2224_v40, 0.0 }
 0x39e   :  { %v1515_v44 = vadd.f32 %v1514_v18, %v7508_v32  ;;  %2478 = vmatprep.mubr.f32.mxu1 %v9742_v57  ;;  %v3344_v62 = vmax.f32 %v2226_v34, 0.0  ;;  %v2229_v28 = vpop.f32.mrb[192].mxu0 }
 0x39f   :  { %v3497_v12 = vmax.f32 %v1513_v9, 0.0  ;;  %v8365_v47 = vpack.c.bf16 %v3343_v53, %v3327_v15  ;;  %v2230_v41 = vadd.f32 %v2229_v28, %v9801_v55  ;;  %v2231_v11 = vpop.f32.mrb[193].mxu0  ;;  %v9898_v15 = vld [vmem:[#allocation21_spill] sm:$0xff] }
 0x3a0   :  { %v3498_v63 = vmax.f32 %v1515_v44, 0.0  ;;  %5234 = vmatpush1.bf16.msra.mxu0 %v9896_v60  ;;  %v1518_v7 = vpop.f32.mrb[84].mxu1  ;;  %v8369_v19 = vpack.c.bf16 %v3344_v62, %v3328_v36  ;;  %v2232_v40 = vadd.f32 %v2231_v11, %v9801_v55  ;;  %v9900_v62 = vld [vmem:[#allocation19_spill] sm:$0xff]  ;;  %v9902_v55 = vld [vmem:[#allocation26_spill] sm:$0xff] }
 0x3a1   :  { %v8372_v18 = vpack.c.bf16 %v3497_v12, %v3481_v42  ;;  %v1520_v34 = vpop.f32.mrb[85].mxu1  ;;  %4840 = vmatmul.mubr.msk.f32.gmra.mrb[190].mxu1 %vm942_vm0, %v5825_v0  ;;  %5236 = vmatprep.subr.bf16.mxu0 %v9898_v15  ;;  %v1519_v36 = vadd.f32 %v1518_v7, %v7537_v48  ;;  %v3359_v9 = vmax.f32 %v2230_v41, 0.0  ;;  %v5826_v0 = vld [vmem:[%s9600_s5 + $0x80] sm:$0xff]  ;;  %v9901_v41 = vld [vmem:[#allocation30_spill] sm:$0xff] }
 0x3a2   :  { %v8379_v51 = vpack.c.bf16 %v3498_v63, %v3482_v17  ;;  %2484 = vmatprep.mubr.f32.mxu1 %v9742_v57  ;;  %v2235_v60 = vpop.f32.mrb[194].mxu0  ;;  %v1521_v44 = vadd.f32 %v1520_v34, %v7537_v48  ;;  %v3360_v42 = vmax.f32 %v2232_v40, 0.0 }
 0x3a3   :  { %9897 = vst [vmem:[#allocation60_spill] sm:$0xff] %v8372_v18  ;;  %v2236_v11 = vadd.f32 %v2235_v60, %v9876_v27  ;;  %v2237_v53 = vpop.f32.mrb[195].mxu0  ;;  %v3513_v60 = vmax.f32 %v1519_v36, 0.0 }
 0x3a4   :  { %9899 = vst [vmem:[#allocation70_spill] sm:$0xff] %v8379_v51  ;;  %5238 = vmatpush1.bf16.msra.mxu0 %v9900_v62  ;;  %v1524_v28 = vpop.f32.mrb[86].mxu1  ;;  %v2238_v12 = vadd.f32 %v2237_v53, %v9876_v27  ;;  %v3514_v51 = vmax.f32 %v1521_v44, 0.0 }
 0x3a5   :  { %v1525_v63 = vadd.f32 %v1524_v28, %v7548_v31  ;;  %v1526_v17 = vpop.f32.mrb[87].mxu1  ;;  %4841 = vmatmul.mubr.msk.f32.gmra.mrb[192].mxu1 %vm942_vm0, %v5826_v0  ;;  %5240 = vmatprep.subr.bf16.mxu0 %v9901_v41  ;;  %v3375_v7 = vmax.f32 %v2236_v11, 0.0 }
 0x3a6   :  { %v1527_v34 = vadd.f32 %v1526_v17, %v7548_v31  ;;  %2490 = vmatprep.mubr.f32.mxu1 %v9742_v57  ;;  %v3376_v15 = vmax.f32 %v2238_v12, 0.0  ;;  %v2241_v40 = vpop.f32.mrb[196].mxu0 }
 0x3a7   :  { %v3529_v53 = vmax.f32 %v1525_v63, 0.0  ;;  %v8395_v62 = vpack.c.bf16 %v3375_v7, %v3359_v9  ;;  %v2242_v28 = vadd.f32 %v2241_v40, %v7392_v20  ;;  %v2243_v18 = vpop.f32.mrb[197].mxu0  ;;  %v9903_v7 = vld [vmem:[#allocation38_spill] sm:$0xff] }
 0x3a8   :  { %v3530_v27 = vmax.f32 %v1527_v34, 0.0  ;;  %5242 = vmatpush1.bf16.msra.mxu0 %v9902_v55  ;;  %v1530_v0 = vpop.f32.mrb[88].mxu1  ;;  %v8399_v41 = vpack.c.bf16 %v3376_v15, %v3360_v42  ;;  %v2244_v11 = vadd.f32 %v2243_v18, %v7392_v20 }
 0x3a9   :  { %v8402_v17 = vpack.c.bf16 %v3529_v53, %v3513_v60  ;;  %v1532_v12 = vpop.f32.mrb[89].mxu1  ;;  %4842 = vmatmul.mubr.msk.f32.gmra.mrb[194].mxu1 %vm942_vm0, %v7974_v22  ;;  %5244 = vmatprep.subr.bf16.mxu0 %v7825_v46  ;;  %v1531_v55 = vadd.f32 %v1530_v0, %v7577_v30  ;;  %v3391_v44 = vmax.f32 %v2242_v28, 0.0 }
 0x3aa   :  { %v8407_v36 = vpack.c.bf16 %v3530_v27, %v3514_v51  ;;  %2496 = vmatprep.mubr.f32.mxu1 %v9742_v57  ;;  %v2247_v9 = vpop.f32.mrb[198].mxu0  ;;  %v1533_v18 = vadd.f32 %v1532_v12, %v7577_v30  ;;  %v3392_v15 = vmax.f32 %v2244_v11, 0.0 }
 0x3ab   :  { %v2248_v42 = vadd.f32 %v2247_v9, %v9815_v3  ;;  %v2249_v63 = vpop.f32.mrb[199].mxu0  ;;  %v3545_v28 = vmax.f32 %v1531_v55, 0.0 }
 0x3ac   :  { %5246 = vmatpush1.bf16.msra.mxu0 %v9903_v7  ;;  %v1536_v34 = vpop.f32.mrb[90].mxu1  ;;  %v2250_v22 = vadd.f32 %v2249_v63, %v9815_v3  ;;  %v3546_v63 = vmax.f32 %v1533_v18, 0.0 }
 0x3ad   :  { %v1537_v46 = vadd.f32 %v1536_v34, %v7584_v49  ;;  %v1538_v27 = vpop.f32.mrb[91].mxu1  ;;  %4843 = vmatmul.mubr.msk.f32.gmra.mrb[196].mxu1 %vm942_vm0, %v7996_v58  ;;  %5248 = vmatprep.subr.bf16.mxu0 %v7855_v37  ;;  %v3407_v51 = vmax.f32 %v2248_v42, 0.0 }
 0x3ae   :  { %v1539_v40 = vadd.f32 %v1538_v27, %v7584_v49  ;;  %2502 = vmatprep.mubr.f32.mxu1 %v9742_v57  ;;  %v3408_v60 = vmax.f32 %v2250_v22, 0.0  ;;  %v2253_v53 = vpop.f32.mrb[200].mxu0 }
 0x3af   :  { %v3561_v0 = vmax.f32 %v1537_v46, 0.0  ;;  %v8421_v11 = vpack.c.bf16 %v3407_v51, %v3391_v44  ;;  %v2254_v12 = vadd.f32 %v2253_v53, %v7429_v24  ;;  %v2255_v9 = vpop.f32.mrb[201].mxu0 }
 0x3b0   :  { %v3562_v7 = vmax.f32 %v1539_v40, 0.0  ;;  %5250 = vmatpush1.bf16.msra.mxu0 %v7850_v38  ;;  %v1542_v58 = vpop.f32.mrb[92].mxu1  ;;  %v8425_v37 = vpack.c.bf16 %v3408_v60, %v3392_v15  ;;  %v2256_v42 = vadd.f32 %v2255_v9, %v7429_v24 }
 0x3b1   :  { %v8428_v34 = vpack.c.bf16 %v3561_v0, %v3545_v28  ;;  %v1544_v22 = vpop.f32.mrb[93].mxu1  ;;  %4844 = vmatmul.mubr.msk.f32.gmra.mrb[198].mxu1 %vm942_vm0, %v8012_v21  ;;  %5252 = vmatprep.subr.bf16.mxu0 %v7885_v52  ;;  %v1543_v38 = vadd.f32 %v1542_v58, %v7608_v8  ;;  %v3423_v18 = vmax.f32 %v2254_v12, 0.0 }
 0x3b2   :  { %v8433_v55 = vpack.c.bf16 %v3562_v7, %v3546_v63  ;;  %2508 = vmatprep.mubr.f32.mxu1 %v9742_v57  ;;  %v2259_v44 = vpop.f32.mrb[202].mxu0  ;;  %v1545_v27 = vadd.f32 %v1544_v22, %v7608_v8  ;;  %v3424_v40 = vmax.f32 %v2256_v42, 0.0 }
 0x3b3   :  { %9904 = vst [vmem:[#allocation69_spill] sm:$0xff] %v8428_v34  ;;  %v2260_v15 = vadd.f32 %v2259_v44, %v7437_v5  ;;  %v2261_v46 = vpop.f32.mrb[203].mxu0  ;;  %v9905_v44 = vld [vmem:[#allocation52_spill] sm:$0xff] }
 0x3b4   :  { %5254 = vmatpush1.bf16.msra.mxu0 %v7880_v2  ;;  %v1548_v51 = vpop.f32.mrb[94].mxu1  ;;  %v2262_v21 = vadd.f32 %v2261_v46, %v7437_v5  ;;  %v3577_v2 = vmax.f32 %v1543_v38, 0.0  ;;  %v3578_v42 = vmax.f32 %v1545_v27, 0.0  ;;  %v9907_v38 = vld [vmem:[#allocation37_spill] sm:$0xff] }
 0x3b5   :  { %v1549_v52 = vadd.f32 %v1548_v51, %v7615_v10  ;;  %v1550_v60 = vpop.f32.mrb[95].mxu1  ;;  %4845 = vmatmul.mubr.msk.f32.gmra.mrb[200].mxu1 %vm942_vm0, %v8039_v6  ;;  %5256 = vmatprep.subr.bf16.mxu0 %v7916_v61  ;;  %v3439_v53 = vmax.f32 %v2260_v15, 0.0 }
 0x3b6   :  { %v1551_v28 = vadd.f32 %v1550_v60, %v7615_v10  ;;  %2514 = vmatprep.mubr.f32.mxu1 %v9742_v57  ;;  %v3440_v0 = vmax.f32 %v2262_v21, 0.0  ;;  %v2265_v12 = vpop.f32.mrb[204].mxu0 }
 0x3b7   :  { %v3593_v9 = vmax.f32 %v1549_v52, 0.0  ;;  %v8447_v63 = vpack.c.bf16 %v3439_v53, %v3423_v18  ;;  %v2266_v7 = vadd.f32 %v2265_v12, %v7463_v23  ;;  %v2267_v58 = vpop.f32.mrb[205].mxu0 }
 0x3b8   :  { %v3594_v22 = vmax.f32 %v1551_v28, 0.0  ;;  %5258 = vmatpush1.bf16.msra.mxu0 %v9905_v44  ;;  %v1876_v6 = vpop.f32.mrb[96].mxu1  ;;  %v8451_v61 = vpack.c.bf16 %v3440_v0, %v3424_v40  ;;  %v2268_v15 = vadd.f32 %v2267_v58, %v7463_v23  ;;  %v9909_v28 = vld [vmem:[#allocation35_spill] sm:$0xff] }
 0x3b9   :  { %v8454_v46 = vpack.c.bf16 %v3593_v9, %v3577_v2  ;;  %v1878_v51 = vpop.f32.mrb[97].mxu1  ;;  %4846 = vmatmul.mubr.msk.f32.gmra.mrb[202].mxu1 %vm942_vm0, %v8060_v56  ;;  %5260 = vmatprep.subr.bf16.mxu0 %v9907_v38  ;;  %v1877_v21 = vadd.f32 %v1876_v6, %v9825_v16  ;;  %v3455_v52 = vmax.f32 %v2266_v7, 0.0  ;;  %v9910_v2 = vld [vmem:[#allocation9_spill] sm:$0xff] }
 0x3ba   :  { %v8459_v18 = vpack.c.bf16 %v3594_v22, %v3578_v42  ;;  %2520 = vmatprep.mubr.f32.mxu1 %v9742_v57  ;;  %v2271_v27 = vpop.f32.mrb[206].mxu0  ;;  %v1879_v53 = vadd.f32 %v1878_v51, %v9825_v16  ;;  %v3456_v12 = vmax.f32 %v2268_v15, 0.0  ;;  %v9911_v42 = vld [vmem:[#allocation83_spill] sm:$0xff] }
 0x3bb   :  { %9906 = vst [vmem:[#allocation73_spill] sm:$0xff] %v8454_v46  ;;  %v2272_v40 = vadd.f32 %v2271_v27, %v7474_v1  ;;  %v2273_v60 = vpop.f32.mrb[207].mxu0  ;;  %v9912_v22 = vld [vmem:[#allocation51_spill] sm:$0xff]  ;;  %v3101_v38 = vmax.f32 %v1877_v21, 0.0  ;;  %v9915_v21 = vld [vmem:[#allocation65_spill] sm:$0xff] }
 0x3bc   :  { %9908 = vst [vmem:[#allocation72_spill] sm:$0xff] %v8459_v18  ;;  %5262 = vmatpush1.bf16.msra.mxu0 %v9909_v28  ;;  %v1882_v0 = vpop.f32.mrb[98].mxu1  ;;  %v2274_v56 = vadd.f32 %v2273_v60, %v7474_v1  ;;  %v9913_v18 = vld [vmem:[#allocation47_spill] sm:$0xff] }
 0x3bd   :  { %v1883_v9 = vadd.f32 %v1882_v0, %v9910_v2  ;;  %v1884_v58 = vpop.f32.mrb[99].mxu1  ;;  %4847 = vmatmul.mubr.msk.f32.gmra.mrb[204].mxu1 %vm942_vm0, %v9911_v42  ;;  %5264 = vmatprep.subr.bf16.mxu0 %v9912_v22  ;;  %v3471_v7 = vmax.f32 %v2272_v40, 0.0  ;;  %v3102_v0 = vmax.f32 %v1879_v53, 0.0 }
 0x3be   :  { %v1885_v44 = vadd.f32 %v1884_v58, %v9910_v2  ;;  %2526 = vmatprep.mubr.f32.mxu1 %v9742_v57  ;;  %v3472_v6 = vmax.f32 %v2274_v56, 0.0  ;;  %v2277_v51 = vpop.f32.mrb[208].mxu0 }
 0x3bf   :  { %v3117_v27 = vmax.f32 %v1883_v9, 0.0  ;;  %v8473_v15 = vpack.c.bf16 %v3471_v7, %v3455_v52  ;;  %v2278_v60 = vadd.f32 %v2277_v51, %v7501_v50  ;;  %v2279_v28 = vpop.f32.mrb[209].mxu0 }
 0x3c0   :  { %v3118_v46 = vmax.f32 %v1885_v44, 0.0  ;;  %5266 = vmatpush1.bf16.msra.mxu0 %v9913_v18  ;;  %v1888_v42 = vpop.f32.mrb[100].mxu1  ;;  %v8477_v22 = vpack.c.bf16 %v3472_v6, %v3456_v12  ;;  %v2280_v40 = vadd.f32 %v2279_v28, %v7501_v50  ;;  %v9917_v6 = vld [vmem:[#allocation57_spill] sm:$0xff] }
 0x3c1   :  { %v8480_v58 = vpack.c.bf16 %v3117_v27, %v3101_v38  ;;  %v1890_v56 = vpop.f32.mrb[101].mxu1  ;;  %4848 = vmatmul.mubr.msk.f32.gmra.mrb[206].mxu1 %vm942_vm0, %v8107_v35  ;;  %5268 = vmatprep.subr.bf16.mxu0 %v9915_v21  ;;  %v1889_v18 = vadd.f32 %v1888_v42, %v9831_v13  ;;  %v3487_v9 = vmax.f32 %v2278_v60, 0.0  ;;  %v9918_v27 = vld [vmem:[#allocation12_spill] sm:$0xff] }
 0x3c2   :  { %v8485_v52 = vpack.c.bf16 %v3118_v46, %v3102_v0  ;;  %2532 = vmatprep.mubr.f32.mxu1 %v9742_v57  ;;  %v2283_v53 = vpop.f32.mrb[210].mxu0  ;;  %v1891_v44 = vadd.f32 %v1890_v56, %v9831_v13  ;;  %v3488_v38 = vmax.f32 %v2280_v40, 0.0  ;;  %v9919_v0 = vld [vmem:[#allocation87_spill] sm:$0xff]  ;;  %v9920_v21 = vld [vmem:[#allocation80_spill] sm:$0xff] }
 0x3c3   :  { %9914 = vst [vmem:[#allocation48_spill] sm:$0xff] %v8480_v58  ;;  %v2284_v12 = vadd.f32 %v2283_v53, %v7508_v32  ;;  %v2285_v7 = vpop.f32.mrb[211].mxu0 }
 0x3c4   :  { %9916 = vst [vmem:[#allocation14_spill] sm:$0xff] %v8485_v52  ;;  %5270 = vmatpush1.bf16.msra.mxu0 %v9917_v6  ;;  %v1894_v51 = vpop.f32.mrb[102].mxu1  ;;  %v2286_v35 = vadd.f32 %v2285_v7, %v7508_v32  ;;  %v3133_v6 = vmax.f32 %v1889_v18, 0.0  ;;  %v3134_v52 = vmax.f32 %v1891_v44, 0.0  ;;  %v9921_v32 = vld [vmem:[#allocation79_spill] sm:$0xff]  ;;  %v9923_v18 = vld [vmem:[#allocation84_spill] sm:$0xff] }
 0x3c5   :  { %v1895_v46 = vadd.f32 %v1894_v51, %v9918_v27  ;;  %v1896_v28 = vpop.f32.mrb[103].mxu1  ;;  %4849 = vmatmul.mubr.msk.f32.gmra.mrb[208].mxu1 %vm942_vm0, %v9919_v0  ;;  %5272 = vmatprep.subr.bf16.mxu0 %v9920_v21  ;;  %v3503_v60 = vmax.f32 %v2284_v12, 0.0 }
 0x3c6   :  { %v1897_v42 = vadd.f32 %v1896_v28, %v9918_v27  ;;  %2538 = vmatprep.mubr.f32.mxu1 %v9742_v57  ;;  %v3504_v56 = vmax.f32 %v2286_v35, 0.0  ;;  %v2289_v53 = vpop.f32.mrb[212].mxu0 }
 0x3c7   :  { %v3149_v58 = vmax.f32 %v1895_v46, 0.0  ;;  %v8499_v40 = vpack.c.bf16 %v3503_v60, %v3487_v9  ;;  %v2290_v7 = vadd.f32 %v2289_v53, %v7537_v48  ;;  %v2291_v51 = vpop.f32.mrb[213].mxu0  ;;  %v9925_v46 = vld [vmem:[#allocation13_spill] sm:$0xff] }
 0x3c8   :  { %v3150_v34 = vmax.f32 %v1897_v42, 0.0  ;;  %5274 = vmatpush1.bf16.msra.mxu0 %v9921_v32  ;;  %v1900_v0 = vpop.f32.mrb[104].mxu1  ;;  %v8503_v21 = vpack.c.bf16 %v3504_v56, %v3488_v38  ;;  %v2292_v12 = vadd.f32 %v2291_v51, %v7537_v48  ;;  %v9926_v56 = vld [vmem:[#allocation8_spill] sm:$0xff] }
 0x3c9   :  { %v8506_v28 = vpack.c.bf16 %v3149_v58, %v3133_v6  ;;  %v1902_v35 = vpop.f32.mrb[105].mxu1  ;;  %4850 = vmatmul.mubr.msk.f32.gmra.mrb[210].mxu1 %vm942_vm0, %v8149_v4  ;;  %5340 = vmatprep.subr.bf16.mxu0 %v9923_v18  ;;  %v1901_v32 = vadd.f32 %v1900_v0, %v9925_v46  ;;  %v3519_v38 = vmax.f32 %v2290_v7, 0.0  ;;  %v9928_v0 = vld [vmem:[#allocation92_spill] sm:$0xff] }
 0x3ca   :  { %v8511_v9 = vpack.c.bf16 %v3150_v34, %v3134_v52  ;;  %2544 = vmatprep.mubr.f32.mxu1 %v9742_v57  ;;  %v2295_v44 = vpop.f32.mrb[214].mxu0  ;;  %v1903_v42 = vadd.f32 %v1902_v35, %v9925_v46  ;;  %v3520_v53 = vmax.f32 %v2292_v12, 0.0  ;;  %v9927_v52 = vld [vmem:[#allocation16_spill] sm:$0xff] }
 0x3cb   :  { %9922 = vst [vmem:[#allocation21_spill] sm:$0xff] %v8506_v28  ;;  %3822 = vmatmul.mubr.f32.vlgmr.msra.gmra.mrb[34].mxu0 %v8276_v14  ;;  %v2296_v60 = vadd.f32 %v2295_v44, %v7548_v31  ;;  %v2297_v58 = vpop.f32.mrb[215].mxu0  ;;  %v9929_v14 = vld [vmem:[#allocation89_spill] sm:$0xff]  ;;  %v3165_v12 = vmax.f32 %v1901_v32, 0.0  ;;  %v9932_v32 = vld [vmem:[#allocation94_spill] sm:$0xff] }
 0x3cc   :  { %9924 = vst [vmem:[#allocation19_spill] sm:$0xff] %v8511_v9  ;;  %5342 = vmatpush1.bf16.msra.mxu0 %v9926_v56  ;;  %v1906_v4 = vpop.f32.mrb[106].mxu1  ;;  %v2298_v34 = vadd.f32 %v2297_v58, %v7548_v31  ;;  %3963 = vmatprep.mubr.f32.mxu0 %v8263_v45  ;;  %v3166_v28 = vmax.f32 %v1903_v42, 0.0  ;;  %v9930_v31 = vld [vmem:[#allocation88_spill] sm:$0xff] }
 0x3cd   :  { %v1907_v6 = vadd.f32 %v1906_v4, %v9927_v52  ;;  %v1908_v51 = vpop.f32.mrb[107].mxu1  ;;  %4851 = vmatmul.mubr.msk.f32.gmra.mrb[212].mxu1 %vm942_vm0, %v9928_v0  ;;  %5344 = vmatprep.subr.bf16.mxu0 %v9929_v14  ;;  %v3535_v7 = vmax.f32 %v2296_v60, 0.0 }
 0x3ce   :  { %v1909_v18 = vadd.f32 %v1908_v51, %v9927_v52  ;;  %2550 = vmatprep.mubr.f32.mxu1 %v9742_v57  ;;  %v3536_v35 = vmax.f32 %v2298_v34, 0.0  ;;  %v2301_v44 = vpop.f32.mrb[216].mxu0 }
 0x3cf   :  { %v3181_v56 = vmax.f32 %v1907_v6, 0.0  ;;  %v8527_v58 = vpack.c.bf16 %v3535_v7, %v3519_v38  ;;  %v2302_v45 = vadd.f32 %v2301_v44, %v7577_v30  ;;  %v2303_v4 = vpop.f32.mrb[217].mxu0  ;;  %v9934_v6 = vld [vmem:[#allocation17_spill] sm:$0xff] }
 0x3d0   :  { %v3182_v9 = vmax.f32 %v1909_v18, 0.0  ;;  %5346 = vmatpush1.bf16.msra.mxu0 %v9930_v31  ;;  %v1912_v0 = vpop.f32.mrb[108].mxu1  ;;  %v8531_v14 = vpack.c.bf16 %v3536_v35, %v3520_v53  ;;  %v2304_v60 = vadd.f32 %v2303_v4, %v7577_v30  ;;  %v9935_v44 = vld [vmem:[#allocation93_spill] sm:$0xff]  ;;  %v9936_v4 = vld [vmem:[#allocation20_spill] sm:$0xff] }
 0x3d1   :  { %v8534_v51 = vpack.c.bf16 %v3181_v56, %v3165_v12  ;;  %v1914_v34 = vpop.f32.mrb[109].mxu1  ;;  %4852 = vmatmul.mubr.msk.f32.gmra.mrb[214].mxu1 %vm942_vm0, %v8191_v25  ;;  %5348 = vmatprep.subr.bf16.mxu0 %v9932_v32  ;;  %v1913_v31 = vadd.f32 %v1912_v0, %v9934_v6  ;;  %v3551_v7 = vmax.f32 %v2302_v45, 0.0  ;;  %v9937_v32 = vld [vmem:[#allocation97_spill] sm:$0xff] }
 0x3d2   :  { %v8539_v38 = vpack.c.bf16 %v3182_v9, %v3166_v28  ;;  %2556 = vmatprep.mubr.f32.mxu1 %v9742_v57  ;;  %v2307_v42 = vpop.f32.mrb[218].mxu0  ;;  %v1915_v35 = vadd.f32 %v1914_v34, %v9934_v6  ;;  %v3552_v56 = vmax.f32 %v2304_v60, 0.0 }
 0x3d3   :  { %9931 = vst [vmem:[#allocation30_spill] sm:$0xff] %v8534_v51  ;;  %v2308_v53 = vadd.f32 %v2307_v42, %v7584_v49  ;;  %v2309_v18 = vpop.f32.mrb[219].mxu0 }
 0x3d4   :  { %9933 = vst [vmem:[#allocation26_spill] sm:$0xff] %v8539_v38  ;;  %5350 = vmatpush1.bf16.msra.mxu0 %v9935_v44  ;;  %v1918_v12 = vpop.f32.mrb[110].mxu1  ;;  %v2310_v25 = vadd.f32 %v2309_v18, %v7584_v49  ;;  %v3197_v44 = vmax.f32 %v1913_v31, 0.0  ;;  %v3198_v38 = vmax.f32 %v1915_v35, 0.0  ;;  %v5827_v31 = vld [vmem:[%s9600_s5 + $0xe8] sm:$0xff]  ;;  %v9940_v35 = vld [vmem:[#allocation23_spill] sm:$0xff] }
 0x3d5   :  { %v1919_v28 = vadd.f32 %v1918_v12, %v9936_v4  ;;  %v1920_v9 = vpop.f32.mrb[111].mxu1  ;;  %4853 = vmatmul.mubr.msk.f32.gmra.mrb[216].mxu1 %vm942_vm0, %v9937_v32  ;;  %5352 = vmatprep.subr.bf16.mxu0 %v8236_v29  ;;  %v3567_v45 = vmax.f32 %v2308_v53, 0.0 }
 0x3d6   :  { %v1921_v0 = vadd.f32 %v1920_v9, %v9936_v4  ;;  %2562 = vmatprep.mubr.f32.mxu1 %v9742_v57  ;;  %v3568_v34 = vmax.f32 %v2310_v25, 0.0  ;;  %v2313_v42 = vpop.f32.mrb[220].mxu0 }
 0x3d7   :  { %v3213_v51 = vmax.f32 %v1919_v28, 0.0  ;;  %v8553_v60 = vpack.c.bf16 %v3567_v45, %v3551_v7  ;;  %v2314_v18 = vadd.f32 %v2313_v42, %v7608_v8  ;;  %v2315_v12 = vpop.f32.mrb[221].mxu0 }
 0x3d8   :  { %v3214_v49 = vmax.f32 %v1921_v0, 0.0  ;;  %5354 = vmatpush1.bf16.msra.mxu0 %v8232_v33  ;;  %v1924_v32 = vpop.f32.mrb[112].mxu1  ;;  %v8557_v29 = vpack.c.bf16 %v3568_v34, %v3552_v56  ;;  %v2316_v53 = vadd.f32 %v2315_v12, %v7608_v8  ;;  %v9941_v34 = vld [vmem:[#allocation100_spill] sm:$0xff] }
 0x3d9   :  { %v8560_v9 = vpack.c.bf16 %v3213_v51, %v3197_v44  ;;  %v1926_v25 = vpop.f32.mrb[113].mxu1  ;;  %4854 = vmatmul.mubr.msk.f32.gmra.mrb[218].mxu1 %vm942_vm0, %v5827_v31  ;;  %5356 = vmatprep.subr.bf16.mxu0 %v8278_v54  ;;  %v1925_v56 = vadd.f32 %v1924_v32, %v9940_v35  ;;  %v3583_v28 = vmax.f32 %v2314_v18, 0.0  ;;  %v9942_v54 = vld [vmem:[#allocation24_spill] sm:$0xff]  ;;  %v5828_v31 = vld [vmem:[%s9600_s5 + $0xf0] sm:$0xff] }
 0x3da   :  { %v8567_v7 = vpack.c.bf16 %v3214_v49, %v3198_v38  ;;  %2568 = vmatprep.mubr.f32.mxu1 %v9742_v57  ;;  %v2319_v33 = vpop.f32.mrb[222].mxu0  ;;  %v1927_v0 = vadd.f32 %v1926_v25, %v9940_v35  ;;  %v3584_v44 = vmax.f32 %v2316_v53, 0.0 }
 0x3db   :  { %9938 = vst [vmem:[#allocation38_spill] sm:$0xff] %v8560_v9  ;;  %v2320_v51 = vadd.f32 %v2319_v33, %v7615_v10  ;;  %v2321_v45 = vpop.f32.mrb[223].mxu0  ;;  %v3229_v33 = vmax.f32 %v1925_v56, 0.0  ;;  %v5829_v56 = vld [vmem:[%s9600_s5 + $0xf8] sm:$0xff] }
 0x3dc   :  { %9939 = vst [vmem:[#allocation52_spill] sm:$0xff] %v8567_v7  ;;  %5358 = vmatpush1.bf16.msra.mxu0 %v9941_v34  ;;  %v1930_v42 = vpop.f32.mrb[114].mxu1  ;;  %v2322_v12 = vadd.f32 %v2321_v45, %v7615_v10  ;;  %v3230_v7 = vmax.f32 %v1927_v0, 0.0 }
 0x3dd   :  { %v1931_v49 = vadd.f32 %v1930_v42, %v9942_v54  ;;  %v1932_v38 = vpop.f32.mrb[115].mxu1  ;;  %4855 = vmatmul.mubr.msk.f32.gmra.mrb[220].mxu1 %vm942_vm0, %v5828_v31  ;;  %5360 = vmatprep.subr.bf16.mxu0 %v8309_v26  ;;  %v3599_v18 = vmax.f32 %v2320_v51, 0.0 }
 0x3de   :  { %v1933_v32 = vadd.f32 %v1932_v38, %v9942_v54  ;;  %2574 = vmatprep.mubr.f32.mxu1 %v9742_v57  ;;  %v3600_v25 = vmax.f32 %v2322_v12, 0.0  ;;  %v2647_v53 = vpop.f32.mrb[224].mxu0 }
 0x3df   :  { %v3245_v45 = vmax.f32 %v1931_v49, 0.0  ;;  %v8583_v34 = vpack.c.bf16 %v3599_v18, %v3583_v28  ;;  %v2648_v42 = vadd.f32 %v2647_v53, %v9825_v16  ;;  %v2649_v9 = vpop.f32.mrb[225].mxu0 }
 0x3e0   :  { %v3246_v10 = vmax.f32 %v1933_v32, 0.0  ;;  %5362 = vmatpush1.bf16.msra.mxu0 %v8305_v39  ;;  %v1936_v31 = vpop.f32.mrb[116].mxu1  ;;  %v8587_v26 = vpack.c.bf16 %v3600_v25, %v3584_v44  ;;  %v2650_v51 = vadd.f32 %v2649_v9, %v9825_v16  ;;  %v9945_v39 = vld [vmem:[#allocation27_spill] sm:$0xff] }
 0x3e1   :  { %v8590_v38 = vpack.c.bf16 %v3245_v45, %v3229_v33  ;;  %v1938_v12 = vpop.f32.mrb[117].mxu1  ;;  %4856 = vmatmul.mubr.msk.f32.gmra.mrb[222].mxu1 %vm942_vm0, %v5829_v56  ;;  %5364 = vmatprep.subr.bf16.mxu0 %v8339_v43  ;;  %v1937_v44 = vadd.f32 %v1936_v31, %v9945_v39  ;;  %v3107_v49 = vmax.f32 %v2648_v42, 0.0  ;;  %v9946_v43 = vld [vmem:[#allocation28_spill] sm:$0xff] }
 0x3e2   :  { %v8597_v28 = vpack.c.bf16 %v3246_v10, %v3230_v7  ;;  %v2653_v0 = vpop.f32.mrb[226].mxu0  ;;  %2902 = vmatprep.mubr.f32.mxu1 %v9742_v57  ;;  %v1939_v32 = vadd.f32 %v1938_v12, %v9945_v39  ;;  %v3108_v25 = vmax.f32 %v2650_v51, 0.0  ;;  %v5830_v31 = vld [vmem:[%s9600_s5] sm:$0xff]  ;;  %v9947_v12 = vld [vmem:[#allocation31_spill] sm:$0xff] }
 0x3e3   :  { %9943 = vst [vmem:[#allocation37_spill] sm:$0xff] %v8590_v38  ;;  %v2654_v9 = vadd.f32 %v2653_v0, %v9910_v2  ;;  %v2655_v18 = vpop.f32.mrb[227].mxu0  ;;  %v3261_v56 = vmax.f32 %v1937_v44, 0.0 }
 0x3e4   :  { %9944 = vst [vmem:[#allocation35_spill] sm:$0xff] %v8597_v28  ;;  %5366 = vmatpush1.bf16.msra.mxu0 %v8335_v59  ;;  %v1942_v53 = vpop.f32.mrb[118].mxu1  ;;  %v2656_v33 = vadd.f32 %v2655_v18, %v9910_v2 }
 0x3e5   :  { %v1943_v10 = vadd.f32 %v1942_v53, %v9946_v43  ;;  %v3123_v7 = vmax.f32 %v2654_v9, 0.0  ;;  %v1944_v45 = vpop.f32.mrb[119].mxu1  ;;  %4889 = vmatmul.mubr.msk.f32.vlgmr.msra.gmra.mrb[224].mxu1 %vm942_vm0, %v5830_v31  ;;  %5368 = vmatprep.subr.bf16.mxu0 %v8369_v19  ;;  %v9948_v53 = vld [vmem:[#allocation43_spill] sm:$0xff]  ;;  %v3262_v31 = vmax.f32 %v1939_v32, 0.0 }
 0x3e6   :  { %v1945_v42 = vadd.f32 %v1944_v45, %v9946_v43  ;;  %v3124_v51 = vmax.f32 %v2656_v33, 0.0  ;;  %5150 = vmatpush1.bf16.msra.mxu1 %v9947_v12  ;;  %v2659_v59 = vpop.f32.mrb[228].mxu0  ;;  %2908 = vmatprep.mubr.f32.mxu1 %v9742_v57 }
 0x3e7   :  { %v3277_v0 = vmax.f32 %v1943_v10, 0.0  ;;  %v8614_v9 = vpack.c.bf16 %v3123_v7, %v3107_v49  ;;  %v2660_v18 = vadd.f32 %v2659_v59, %v9831_v13  ;;  %5152 = vmatprep.subr.bf16.mxu1 %v9948_v53  ;;  %v2661_v38 = vpop.f32.mrb[229].mxu0  ;;  %v5831_v49 = vld [vmem:[%s9600_s5 + $0x8] sm:$0xff] }
 0x3e8   :  { %v3278_v28 = vmax.f32 %v1945_v42, 0.0  ;;  %v8618_v19 = vpack.c.bf16 %v3124_v51, %v3108_v25  ;;  %v2662_v33 = vadd.f32 %v2661_v38, %v9831_v13  ;;  %5370 = vmatpush1.bf16.msra.mxu0 %v8365_v47  ;;  %v1948_v45 = vpop.f32.mrb[120].mxu1  ;;  %v9951_v25 = vld [vmem:[#allocation41_spill] sm:$0xff]  ;;  %v9953_v51 = vld [vmem:[#allocation55_spill] sm:$0xff] }
 0x3e9   :  { %v8622_v12 = vpack.c.bf16 %v3277_v0, %v3261_v56  ;;  %v1950_v44 = vpop.f32.mrb[121].mxu1  ;;  %4890 = vmatmul.mubr.msk.f32.gmra.mrb[226].mxu1 %vm942_vm0, %v5831_v49  ;;  %5372 = vmatprep.subr.bf16.mxu0 %v8399_v41  ;;  %v3139_v47 = vmax.f32 %v2660_v18, 0.0  ;;  %v9952_v38 = vld [vmem:[#allocation33_spill] sm:$0xff] }
 0x3ea   :  { %v8629_v32 = vpack.c.bf16 %v3278_v28, %v3262_v31  ;;  %5154 = vmatpush1.bf16.msra.mxu1 %v9951_v25  ;;  %v2665_v10 = vpop.f32.mrb[230].mxu0  ;;  %2914 = vmatprep.mubr.f32.mxu1 %v9742_v57  ;;  %v1949_v7 = vadd.f32 %v1948_v45, %v9952_v38  ;;  %v3140_v56 = vmax.f32 %v2662_v33, 0.0  ;;  %v1951_v0 = vadd.f32 %v1950_v44, %v9952_v38  ;;  %v9954_v31 = vld [vmem:[#allocation34_spill] sm:$0xff] }
 0x3eb   :  { %9949 = vst [vmem:[#allocation83_spill] sm:$0xff] %v8622_v12  ;;  %v2666_v42 = vadd.f32 %v2665_v10, %v9918_v27  ;;  %5156 = vmatprep.subr.bf16.mxu1 %v9953_v51  ;;  %v2667_v59 = vpop.f32.mrb[231].mxu0  ;;  %v5832_v45 = vld [vmem:[%s9600_s5 + $0x10] sm:$0xff] }
 0x3ec   :  { %9950 = vst [vmem:[#allocation51_spill] sm:$0xff] %v8629_v32  ;;  %v2668_v41 = vadd.f32 %v2667_v59, %v9918_v27  ;;  %5374 = vmatpush1.bf16.msra.mxu0 %v8395_v62  ;;  %v1954_v28 = vpop.f32.mrb[122].mxu1  ;;  %v9955_v25 = vld [vmem:[#allocation54_spill] sm:$0xff]  ;;  %v3293_v62 = vmax.f32 %v1949_v7, 0.0  ;;  %v3294_v12 = vmax.f32 %v1951_v0, 0.0  ;;  %v5833_v7 = vld [vmem:[%s9600_s5 + $0x18] sm:$0xff] }
 0x3ed   :  { %v3155_v53 = vmax.f32 %v2666_v42, 0.0  ;;  %v1955_v49 = vadd.f32 %v1954_v28, %v9954_v31  ;;  %5376 = vmatprep.subr.bf16.mxu0 %v8425_v37  ;;  %v1956_v18 = vpop.f32.mrb[123].mxu1  ;;  %4891 = vmatmul.mubr.msk.f32.gmra.mrb[228].mxu1 %vm942_vm0, %v5832_v45  ;;  %v9956_v59 = vld [vmem:[#allocation78_spill] sm:$0xff] }
 0x3ee   :  { %v3156_v33 = vmax.f32 %v2668_v41, 0.0  ;;  %v1957_v44 = vadd.f32 %v1956_v18, %v9954_v31  ;;  %5158 = vmatpush1.bf16.msra.mxu1 %v9955_v25  ;;  %v2671_v10 = vpop.f32.mrb[232].mxu0  ;;  %2920 = vmatprep.mubr.f32.mxu1 %v9742_v57 }
 0x3ef   :  { %v8648_v42 = vpack.c.bf16 %v3155_v53, %v3139_v47  ;;  %v3309_v51 = vmax.f32 %v1955_v49, 0.0  ;;  %v2672_v37 = vadd.f32 %v2671_v10, %v9925_v46  ;;  %5160 = vmatprep.subr.bf16.mxu1 %v9956_v59  ;;  %v2673_v28 = vpop.f32.mrb[233].mxu0  ;;  %v9960_v49 = vld [vmem:[#allocation39_spill] sm:$0xff] }
 0x3f0   :  { %v8652_v32 = vpack.c.bf16 %v3156_v33, %v3140_v56  ;;  %v3310_v41 = vmax.f32 %v1957_v44, 0.0  ;;  %v2674_v18 = vadd.f32 %v2673_v28, %v9925_v46  ;;  %5378 = vmatpush1.bf16.msra.mxu0 %v8421_v11  ;;  %v1960_v45 = vpop.f32.mrb[124].mxu1  ;;  %v9959_v56 = vld [vmem:[#allocation77_spill] sm:$0xff] }
 0x3f1   :  { %v8656_v25 = vpack.c.bf16 %v3309_v51, %v3293_v62  ;;  %5380 = vmatprep.subr.bf16.mxu0 %v8451_v61  ;;  %v1962_v47 = vpop.f32.mrb[125].mxu1  ;;  %4892 = vmatmul.mubr.msk.f32.gmra.mrb[230].mxu1 %vm942_vm0, %v5833_v7  ;;  %v3171_v11 = vmax.f32 %v2672_v37, 0.0  ;;  %v1961_v33 = vadd.f32 %v1960_v45, %v9960_v49  ;;  %v9961_v61 = vld [vmem:[#allocation82_spill] sm:$0xff]  ;;  %v5834_v45 = vld [vmem:[%s9600_s5 + $0x20] sm:$0xff] }
 0x3f2   :  { %v8663_v0 = vpack.c.bf16 %v3310_v41, %v3294_v12  ;;  %5162 = vmatpush1.bf16.msra.mxu1 %v9959_v56  ;;  %v2677_v53 = vpop.f32.mrb[234].mxu0  ;;  %2926 = vmatprep.mubr.f32.mxu1 %v9742_v57  ;;  %v3172_v62 = vmax.f32 %v2674_v18, 0.0  ;;  %v1963_v51 = vadd.f32 %v1962_v47, %v9960_v49  ;;  %v9962_v41 = vld [vmem:[#allocation40_spill] sm:$0xff]  ;;  %v9963_v56 = vld [vmem:[#allocation81_spill] sm:$0xff] }
 0x3f3   :  { %9957 = vst [vmem:[#allocation47_spill] sm:$0xff] %v8656_v25  ;;  %v2678_v44 = vadd.f32 %v2677_v53, %v9927_v52  ;;  %5164 = vmatprep.subr.bf16.mxu1 %v9961_v61  ;;  %v2679_v10 = vpop.f32.mrb[235].mxu0 }
 0x3f4   :  { %9958 = vst [vmem:[#allocation65_spill] sm:$0xff] %v8663_v0  ;;  %v2680_v59 = vadd.f32 %v2679_v10, %v9927_v52  ;;  %5382 = vmatpush1.bf16.msra.mxu0 %v8447_v63  ;;  %v1966_v12 = vpop.f32.mrb[126].mxu1  ;;  %v3325_v63 = vmax.f32 %v1961_v33, 0.0  ;;  %v9964_v10 = vld [vmem:[#allocation86_spill] sm:$0xff]  ;;  %v3326_v25 = vmax.f32 %v1963_v51, 0.0  ;;  %v5835_v33 = vld [vmem:[%s9600_s5 + $0x28] sm:$0xff] }
 0x3f5   :  { %v3187_v28 = vmax.f32 %v2678_v44, 0.0  ;;  %v1967_v7 = vadd.f32 %v1966_v12, %v9962_v41  ;;  %5384 = vmatprep.subr.bf16.mxu0 %v8477_v22  ;;  %v1968_v37 = vpop.f32.mrb[127].mxu1  ;;  %4893 = vmatmul.mubr.msk.f32.gmra.mrb[232].mxu1 %vm942_vm0, %v5834_v45 }
 0x3f6   :  { %v3188_v18 = vmax.f32 %v2680_v59, 0.0  ;;  %v1969_v47 = vadd.f32 %v1968_v37, %v9962_v41  ;;  %5166 = vmatpush1.bf16.msra.mxu1 %v9963_v56  ;;  %v2683_v53 = vpop.f32.mrb[236].mxu0  ;;  %2932 = vmatprep.mubr.f32.mxu1 %v9742_v57 }
 0x3f7   :  { %v8682_v44 = vpack.c.bf16 %v3187_v28, %v3171_v11  ;;  %v3341_v61 = vmax.f32 %v1967_v7, 0.0  ;;  %v2684_v22 = vadd.f32 %v2683_v53, %v9934_v6  ;;  %5168 = vmatprep.subr.bf16.mxu1 %v9964_v10  ;;  %v2685_v12 = vpop.f32.mrb[237].mxu0  ;;  %v9968_v7 = vld [vmem:[#allocation45_spill] sm:$0xff] }
 0x3f8   :  { %v8686_v0 = vpack.c.bf16 %v3188_v18, %v3172_v62  ;;  %v3342_v59 = vmax.f32 %v1969_v47, 0.0  ;;  %v2686_v37 = vadd.f32 %v2685_v12, %v9934_v6  ;;  %5386 = vmatpush1.bf16.msra.mxu0 %v8473_v15  ;;  %v1972_v45 = vpop.f32.mrb[128].mxu1  ;;  %v9967_v62 = vld [vmem:[#allocation85_spill] sm:$0xff] }
 0x3f9   :  { %v8690_v56 = vpack.c.bf16 %v3341_v61, %v3325_v63  ;;  %5388 = vmatprep.subr.bf16.mxu0 %v8503_v21  ;;  %v1974_v11 = vpop.f32.mrb[129].mxu1  ;;  %4894 = vmatmul.mubr.msk.f32.gmra.mrb[234].mxu1 %vm942_vm0, %v5835_v33  ;;  %v3203_v15 = vmax.f32 %v2684_v22, 0.0  ;;  %v1973_v18 = vadd.f32 %v1972_v45, %v9968_v7  ;;  %v9969_v21 = vld [vmem:[#allocation91_spill] sm:$0xff]  ;;  %v5836_v45 = vld [vmem:[%s9600_s5 + $0x30] sm:$0xff] }
 0x3fa   :  { %v8697_v51 = vpack.c.bf16 %v3342_v59, %v3326_v25  ;;  %5170 = vmatpush1.bf16.msra.mxu1 %v9967_v62  ;;  %v2689_v28 = vpop.f32.mrb[238].mxu0  ;;  %2938 = vmatprep.mubr.f32.mxu1 %v9742_v57  ;;  %v3204_v63 = vmax.f32 %v2686_v37, 0.0  ;;  %v1975_v61 = vadd.f32 %v1974_v11, %v9968_v7  ;;  %v9970_v59 = vld [vmem:[#allocation46_spill] sm:$0xff] }
 0x3fb   :  { %9965 = vst [vmem:[#allocation57_spill] sm:$0xff] %v8690_v56  ;;  %v2690_v47 = vadd.f32 %v2689_v28, %v9936_v4  ;;  %5172 = vmatprep.subr.bf16.mxu1 %v9969_v21  ;;  %v2691_v53 = vpop.f32.mrb[239].mxu0  ;;  %v9971_v62 = vld [vmem:[#allocation90_spill] sm:$0xff] }
 0x3fc   :  { %9966 = vst [vmem:[#allocation87_spill] sm:$0xff] %v8697_v51  ;;  %v2692_v10 = vadd.f32 %v2691_v53, %v9936_v4  ;;  %5390 = vmatpush1.bf16.msra.mxu0 %v8499_v40  ;;  %v1978_v25 = vpop.f32.mrb[130].mxu1  ;;  %v3357_v40 = vmax.f32 %v1973_v18, 0.0  ;;  %v9972_v53 = vld [vmem:[#allocation96_spill] sm:$0xff]  ;;  %v3358_v56 = vmax.f32 %v1975_v61, 0.0  ;;  %v5837_v18 = vld [vmem:[%s9600_s5 + $0x38] sm:$0xff] }
 0x3fd   :  { %v3219_v12 = vmax.f32 %v2690_v47, 0.0  ;;  %v1979_v33 = vadd.f32 %v1978_v25, %v9970_v59  ;;  %5392 = vmatprep.subr.bf16.mxu0 %v8531_v14  ;;  %v1980_v22 = vpop.f32.mrb[131].mxu1  ;;  %4895 = vmatmul.mubr.msk.f32.gmra.mrb[236].mxu1 %vm942_vm0, %v5836_v45 }
 0x3fe   :  { %v3220_v37 = vmax.f32 %v2692_v10, 0.0  ;;  %v1981_v11 = vadd.f32 %v1980_v22, %v9970_v59  ;;  %5174 = vmatpush1.bf16.msra.mxu1 %v9971_v62  ;;  %v2695_v28 = vpop.f32.mrb[240].mxu0  ;;  %2944 = vmatprep.mubr.f32.mxu1 %v9742_v57 }
 0x3ff   :  { %v8716_v47 = vpack.c.bf16 %v3219_v12, %v3203_v15  ;;  %v3373_v21 = vmax.f32 %v1979_v33, 0.0  ;;  %v2696_v14 = vadd.f32 %v2695_v28, %v9940_v35  ;;  %5176 = vmatprep.subr.bf16.mxu1 %v9972_v53  ;;  %v2697_v25 = vpop.f32.mrb[241].mxu0 }
 0x400   :  { %v8720_v51 = vpack.c.bf16 %v3220_v37, %v3204_v63  ;;  %v3374_v10 = vmax.f32 %v1981_v11, 0.0  ;;  %v2698_v22 = vadd.f32 %v2697_v25, %v9940_v35  ;;  %5394 = vmatpush1.bf16.msra.mxu0 %v8527_v58  ;;  %v1984_v45 = vpop.f32.mrb[132].mxu1  ;;  %v9973_v63 = vld [vmem:[#allocation95_spill] sm:$0xff] }
 0x401   :  { %v8724_v62 = vpack.c.bf16 %v3373_v21, %v3357_v40  ;;  %5396 = vmatprep.subr.bf16.mxu0 %v8557_v29  ;;  %v1986_v15 = vpop.f32.mrb[133].mxu1  ;;  %4896 = vmatmul.mubr.msk.f32.gmra.mrb[238].mxu1 %vm942_vm0, %v5837_v18  ;;  %v3235_v58 = vmax.f32 %v2696_v14, 0.0  ;;  %v1985_v33 = vadd.f32 %v1984_v45, %v7392_v20  ;;  %v9974_v29 = vld [vmem:[#allocation99_spill] sm:$0xff] }
 0x402   :  { %v8731_v61 = vpack.c.bf16 %v3374_v10, %v3358_v56  ;;  %5178 = vmatpush1.bf16.msra.mxu1 %v9973_v63  ;;  %v2701_v12 = vpop.f32.mrb[242].mxu0  ;;  %2950 = vmatprep.mubr.f32.mxu1 %v9742_v57  ;;  %v3236_v28 = vmax.f32 %v2698_v22, 0.0  ;;  %v1987_v40 = vadd.f32 %v1986_v15, %v7392_v20  ;;  %v5838_v10 = vld [vmem:[%s9600_s5 + $0x40] sm:$0xff]  ;;  %v9975_v15 = vld [vmem:[#allocation98_spill] sm:$0xff] }
 0x403   :  { %v2702_v37 = vadd.f32 %v2701_v12, %v9942_v54  ;;  %5180 = vmatprep.subr.bf16.mxu1 %v9974_v29  ;;  %v2703_v11 = vpop.f32.mrb[243].mxu0 }
 0x404   :  { %v2704_v21 = vadd.f32 %v2703_v11, %v9942_v54  ;;  %5398 = vmatpush1.bf16.msra.mxu0 %v8553_v60  ;;  %v1990_v56 = vpop.f32.mrb[134].mxu1  ;;  %v3389_v60 = vmax.f32 %v1985_v33, 0.0  ;;  %v3390_v11 = vmax.f32 %v1987_v40, 0.0  ;;  %v5839_v33 = vld [vmem:[%s9600_s5 + $0x48] sm:$0xff] }
 0x405   :  { %v3251_v53 = vmax.f32 %v2702_v37, 0.0  ;;  %v1991_v25 = vadd.f32 %v1990_v56, %v9815_v3  ;;  %5400 = vmatprep.subr.bf16.mxu0 %v8587_v26  ;;  %v1992_v14 = vpop.f32.mrb[135].mxu1  ;;  %4897 = vmatmul.mubr.msk.f32.gmra.mrb[240].mxu1 %vm942_vm0, %v5838_v10  ;;  %v9976_v37 = vld [vmem:[#allocation102_spill] sm:$0xff] }
 0x406   :  { %v3252_v22 = vmax.f32 %v2704_v21, 0.0  ;;  %v1993_v45 = vadd.f32 %v1992_v14, %v9815_v3  ;;  %5182 = vmatpush1.bf16.msra.mxu1 %v9975_v15  ;;  %v2707_v18 = vpop.f32.mrb[244].mxu0  ;;  %2956 = vmatprep.mubr.f32.mxu1 %v9742_v57 }
 0x407   :  { %v8750_v63 = vpack.c.bf16 %v3251_v53, %v3235_v58  ;;  %v3405_v12 = vmax.f32 %v1991_v25, 0.0  ;;  %v2708_v26 = vadd.f32 %v2707_v18, %v9945_v39  ;;  %5184 = vmatprep.subr.bf16.mxu1 %v9976_v37  ;;  %v2709_v29 = vpop.f32.mrb[245].mxu0 }
 0x408   :  { %v8754_v56 = vpack.c.bf16 %v3252_v22, %v3236_v28  ;;  %v3406_v21 = vmax.f32 %v1993_v45, 0.0  ;;  %v2710_v14 = vadd.f32 %v2709_v29, %v9945_v39  ;;  %5402 = vmatpush1.bf16.msra.mxu0 %v8583_v34  ;;  %v1996_v10 = vpop.f32.mrb[136].mxu1  ;;  %v9979_v28 = vld [vmem:[#allocation101_spill] sm:$0xff]  ;;  %v8775_v45 = vld [vmem:[%s9602_s7] sm:$0xff] }
 0x409   :  { %v8758_v15 = vpack.c.bf16 %v3405_v12, %v3389_v60  ;;  %5468 = vmatprep.subr.bf16.mxu0 %v8618_v19  ;;  %v1998_v58 = vpop.f32.mrb[137].mxu1  ;;  %4898 = vmatmul.mubr.msk.f32.gmra.mrb[242].mxu1 %vm942_vm0, %v5839_v33  ;;  %v3267_v34 = vmax.f32 %v2708_v26, 0.0  ;;  %v1997_v25 = vadd.f32 %v1996_v10, %v7429_v24  ;;  %v9980_v19 = vld [vmem:[#allocation58_spill] sm:$0xff]  ;;  %v8784_v29 = vld [vmem:[%s9602_s7 + $0x8] sm:$0xff] }
 0x40a   :  { %v8765_v40 = vpack.c.bf16 %v3406_v21, %v3390_v11  ;;  %5186 = vmatpush1.bf16.msra.mxu1 %v9979_v28  ;;  %v2713_v53 = vpop.f32.mrb[246].mxu0  ;;  %2962 = vmatprep.mubr.f32.mxu1 %v9742_v57  ;;  %v3268_v60 = vmax.f32 %v2710_v14, 0.0  ;;  %v1999_v12 = vadd.f32 %v1998_v58, %v7429_v24  ;;  %v5842_v10 = vld [vmem:[%s9600_s5 + $0x50] sm:$0xff]  ;;  %v9981_v33 = vld [vmem:[#allocation53_spill] sm:$0xff] }
 0x40b   :  { %9977 = vst [vmem:[#allocation80_spill] sm:$0xff] %v8758_v15  ;;  %v2714_v22 = vadd.f32 %v2713_v53, %v9946_v43  ;;  %5188 = vmatprep.subr.bf16.mxu1 %v9980_v19  ;;  %3964 = vmatmul.mubr.f32.vlgmr.msra.gmra.mrb[36].mxu0 %v8775_v45  ;;  %v2715_v18 = vpop.f32.mrb[247].mxu0  ;;  %v3421_v53 = vmax.f32 %v1997_v25, 0.0  ;;  %v5843_v25 = vld [vmem:[%s9600_s5 + $0x58] sm:$0xff] }
 0x40c   :  { %9978 = vst [vmem:[#allocation79_spill] sm:$0xff] %v8765_v40  ;;  %v2716_v37 = vadd.f32 %v2715_v18, %v9946_v43  ;;  %5470 = vmatpush1.bf16.msra.mxu0 %v8614_v9  ;;  %v2002_v26 = vpop.f32.mrb[138].mxu1  ;;  %4105 = vmatprep.mubr.f32.mxu0 %v8784_v29  ;;  %v9982_v18 = vld [vmem:[#allocation61_spill] sm:$0xff]  ;;  %v3422_v15 = vmax.f32 %v1999_v12, 0.0 }
 0x40d   :  { %v3283_v11 = vmax.f32 %v2714_v22, 0.0  ;;  %v2003_v21 = vadd.f32 %v2002_v26, %v7437_v5  ;;  %5472 = vmatprep.subr.bf16.mxu0 %v8652_v32  ;;  %v2004_v14 = vpop.f32.mrb[139].mxu1  ;;  %4899 = vmatmul.mubr.msk.f32.gmra.mrb[244].mxu1 %vm942_vm0, %v5842_v10 }
 0x40e   :  { %v3284_v9 = vmax.f32 %v2716_v37, 0.0  ;;  %v2005_v58 = vadd.f32 %v2004_v14, %v7437_v5  ;;  %5190 = vmatpush1.bf16.msra.mxu1 %v9981_v33  ;;  %v2719_v28 = vpop.f32.mrb[248].mxu0  ;;  %2968 = vmatprep.mubr.f32.mxu1 %v9742_v57 }
 0x40f   :  { %v8796_v22 = vpack.c.bf16 %v3283_v11, %v3267_v34  ;;  %v3437_v19 = vmax.f32 %v2003_v21, 0.0  ;;  %v2720_v32 = vadd.f32 %v2719_v28, %v9952_v38  ;;  %5192 = vmatprep.subr.bf16.mxu1 %v9982_v18  ;;  %v2721_v26 = vpop.f32.mrb[249].mxu0 }
 0x410   :  { %v8800_v40 = vpack.c.bf16 %v3284_v9, %v3268_v60  ;;  %v3438_v37 = vmax.f32 %v2005_v58, 0.0  ;;  %v2722_v14 = vadd.f32 %v2721_v26, %v9952_v38  ;;  %5474 = vmatpush1.bf16.msra.mxu0 %v8648_v42  ;;  %v2008_v10 = vpop.f32.mrb[140].mxu1  ;;  %v9983_v60 = vld [vmem:[#allocation56_spill] sm:$0xff] }
 0x411   :  { %v8804_v33 = vpack.c.bf16 %v3437_v19, %v3421_v53  ;;  %5476 = vmatprep.subr.bf16.mxu0 %v8686_v0  ;;  %v2010_v34 = vpop.f32.mrb[141].mxu1  ;;  %4900 = vmatmul.mubr.msk.f32.gmra.mrb[246].mxu1 %vm942_vm0, %v5843_v25  ;;  %v3299_v42 = vmax.f32 %v2720_v32, 0.0  ;;  %v2009_v21 = vadd.f32 %v2008_v10, %v7463_v23  ;;  %v9984_v0 = vld [vmem:[#allocation70_spill] sm:$0xff] }
 0x412   :  { %v8811_v12 = vpack.c.bf16 %v3438_v37, %v3422_v15  ;;  %5194 = vmatpush1.bf16.msra.mxu1 %v9983_v60  ;;  %v2725_v11 = vpop.f32.mrb[250].mxu0  ;;  %2974 = vmatprep.mubr.f32.mxu1 %v9742_v57  ;;  %v3300_v28 = vmax.f32 %v2722_v14, 0.0  ;;  %v2011_v53 = vadd.f32 %v2010_v34, %v7463_v23  ;;  %v5844_v37 = vld [vmem:[%s9600_s5 + $0x60] sm:$0xff] }
 0x413   :  { %v2726_v9 = vadd.f32 %v2725_v11, %v9954_v31  ;;  %5196 = vmatprep.subr.bf16.mxu1 %v9984_v0  ;;  %v2727_v58 = vpop.f32.mrb[251].mxu0  ;;  %v9985_v34 = vld [vmem:[#allocation60_spill] sm:$0xff] }
 0x414   :  { %v2728_v19 = vadd.f32 %v2727_v58, %v9954_v31  ;;  %5478 = vmatpush1.bf16.msra.mxu0 %v8682_v44  ;;  %v2014_v15 = vpop.f32.mrb[142].mxu1  ;;  %v3453_v44 = vmax.f32 %v2009_v21, 0.0  ;;  %v3454_v0 = vmax.f32 %v2011_v53, 0.0 }
 0x415   :  { %v3315_v18 = vmax.f32 %v2726_v9, 0.0  ;;  %v2015_v26 = vadd.f32 %v2014_v15, %v7474_v1  ;;  %5480 = vmatprep.subr.bf16.mxu0 %v8720_v51  ;;  %v2016_v32 = vpop.f32.mrb[143].mxu1  ;;  %4901 = vmatmul.mubr.msk.f32.gmra.mrb[248].mxu1 %vm942_vm0, %v5844_v37 }
 0x416   :  { %v3316_v14 = vmax.f32 %v2728_v19, 0.0  ;;  %v2017_v10 = vadd.f32 %v2016_v32, %v7474_v1  ;;  %5198 = vmatpush1.bf16.msra.mxu1 %v9985_v34  ;;  %v2731_v25 = vpop.f32.mrb[252].mxu0  ;;  %2980 = vmatprep.mubr.f32.mxu1 %v9742_v57 }
 0x417   :  { %v8830_v60 = vpack.c.bf16 %v3315_v18, %v3299_v42  ;;  %v3469_v11 = vmax.f32 %v2015_v26, 0.0  ;;  %v2732_v51 = vadd.f32 %v2731_v25, %v9960_v49  ;;  %5200 = vmatprep.subr.bf16.mxu1 %v8407_v36  ;;  %v2733_v9 = vpop.f32.mrb[253].mxu0  ;;  %v5845_v42 = vld [vmem:[%s9600_s5 + $0x68] sm:$0xff] }
 0x418   :  { %v5491_v58 = vpack.c.bf16 %v3316_v14, %v3300_v28  ;;  %v3470_v15 = vmax.f32 %v2017_v10, 0.0  ;;  %5482 = vmatpush1.bf16.msra.mxu0 %v8716_v47  ;;  %v2020_v19 = vpop.f32.mrb[144].mxu1  ;;  %v2734_v36 = vadd.f32 %v2733_v9, %v9960_v49 }
 0x419   :  { %v8835_v32 = vpack.c.bf16 %v3469_v11, %v3453_v44  ;;  %5484 = vmatprep.subr.bf16.mxu0 %v8754_v56  ;;  %v2022_v37 = vpop.f32.mrb[145].mxu1  ;;  %4902 = vmatmul.mubr.msk.f32.gmra.mrb[250].mxu1 %vm942_vm0, %v5845_v42  ;;  %v3331_v47 = vmax.f32 %v2732_v51, 0.0  ;;  %v2021_v53 = vadd.f32 %v2020_v19, %v7501_v50  ;;  %v5846_v11 = vld [vmem:[%s9600_s5 + $0x70] sm:$0xff] }
 0x41a   :  { %v8842_v21 = vpack.c.bf16 %v3470_v15, %v3454_v0  ;;  %5202 = vmatpush1.bf16.msra.mxu1 %v8402_v17  ;;  %v2737_v28 = vpop.f32.mrb[254].mxu0  ;;  %2986 = vmatprep.mubr.f32.mxu1 %v9742_v57  ;;  %v2023_v26 = vadd.f32 %v2022_v37, %v7501_v50  ;;  %v9986_v17 = vld [vmem:[#allocation59_spill] sm:$0xff]  ;;  %v9987_v0 = vld [vmem:[#allocation69_spill] sm:$0xff] }
 0x41b   :  { %v2738_v56 = vadd.f32 %v2737_v28, %v9962_v41  ;;  %5204 = vmatprep.subr.bf16.mxu1 %v8433_v55  ;;  %v2739_v18 = vpop.f32.mrb[255].mxu0  ;;  %v3332_v55 = vmax.f32 %v2734_v36, 0.0  ;;  %v3485_v15 = vmax.f32 %v2021_v53, 0.0 }
 0x41c   :  { %v2740_v14 = vadd.f32 %v2739_v18, %v9962_v41  ;;  %5486 = vmatpush1.bf16.msra.mxu0 %v8750_v63  ;;  %v2026_v10 = vpop.f32.mrb[146].mxu1  ;;  %v3486_v28 = vmax.f32 %v2023_v26, 0.0 }
 0x41d   :  { %v3347_v34 = vmax.f32 %v2738_v56, 0.0  ;;  %v2027_v25 = vadd.f32 %v2026_v10, %v9986_v17  ;;  %5488 = vmatprep.subr.bf16.mxu0 %v8800_v40  ;;  %v2028_v44 = vpop.f32.mrb[147].mxu1  ;;  %4903 = vmatmul.mubr.msk.f32.gmra.mrb[252].mxu1 %vm942_vm0, %v5846_v11  ;;  %v9988_v40 = vld [vmem:[#allocation72_spill] sm:$0xff]  ;;  %v9992_v11 = vld [vmem:[#allocation14_spill] sm:$0xff] }
 0x41e   :  { %v3348_v51 = vmax.f32 %v2740_v14, 0.0  ;;  %v2029_v9 = vadd.f32 %v2028_v44, %v9986_v17  ;;  %5206 = vmatpush1.bf16.msra.mxu1 %v9987_v0  ;;  %v2743_v63 = vpop.f32.mrb[0].mxu0  ;;  %2992 = vmatprep.mubr.f32.mxu1 %v9742_v57 }
 0x41f   :  { %v5497_v19 = vpack.c.bf16 %v3347_v34, %v3331_v47  ;;  %v3501_v37 = vmax.f32 %v2027_v25, 0.0  ;;  %5208 = vmatprep.subr.bf16.mxu1 %v9988_v40  ;;  %v2745_v42 = vpop.f32.mrb[1].mxu0  ;;  %v2744_v10 = vadd.f32 %v2743_v63, %v9968_v7  ;;  %v5847_v47 = vld [vmem:[%s9600_s5 + $0x78] sm:$0xff]  ;;  %v9991_v34 = vld [vmem:[#allocation73_spill] sm:$0xff] }
 0x420   :  { %v5495_v56 = vpack.c.bf16 %v3348_v51, %v3332_v55  ;;  %v3502_v18 = vmax.f32 %v2029_v9, 0.0  ;;  %5490 = vmatpush1.bf16.msra.mxu0 %v8796_v22  ;;  %v2032_v36 = vpop.f32.mrb[148].mxu1  ;;  %v2746_v26 = vadd.f32 %v2745_v42, %v9968_v7 }
 0x421   :  { %v8864_v14 = vpack.c.bf16 %v3501_v37, %v3485_v15  ;;  %5492 = vmatprep.subr.bf16.mxu0 %v5491_v58  ;;  %v2034_v44 = vpop.f32.mrb[149].mxu1  ;;  %4904 = vmatmul.mubr.msk.f32.gmra.mrb[254].mxu1 %vm942_vm0, %v5847_v47  ;;  %v2033_v25 = vadd.f32 %v2032_v36, %v7537_v48  ;;  %v3363_v63 = vmax.f32 %v2744_v10, 0.0  ;;  %v9993_v37 = vld [vmem:[#allocation64_spill] sm:$0xff] }
 0x422   :  { %v8871_v53 = vpack.c.bf16 %v3502_v18, %v3486_v28  ;;  %5210 = vmatpush1.bf16.msra.mxu1 %v9991_v34  ;;  %v2749_v22 = vpop.f32.mrb[2].mxu0  ;;  %2998 = vmatprep.mubr.f32.mxu1 %v9742_v57  ;;  %v2035_v51 = vadd.f32 %v2034_v44, %v7537_v48  ;;  %v5848_v28 = vld [vmem:[%s9600_s5 + $0x80] sm:$0xff]  ;;  %v3364_v18 = vmax.f32 %v2746_v26, 0.0 }
 0x423   :  { %9989 = vst [vmem:[#allocation84_spill] sm:$0xff] %v8864_v14  ;;  %v2750_v58 = vadd.f32 %v2749_v22, %v9970_v59  ;;  %5276 = vmatprep.subr.bf16.mxu1 %v9992_v11  ;;  %v2751_v55 = vpop.f32.mrb[3].mxu0 }
 0x424   :  { %9990 = vst [vmem:[#allocation8_spill] sm:$0xff] %v8871_v53  ;;  %v2752_v9 = vadd.f32 %v2751_v55, %v9970_v59  ;;  %5494 = vmatpush1.bf16.msra.mxu0 %v8830_v60  ;;  %v2038_v0 = vpop.f32.mrb[150].mxu1  ;;  %v3517_v60 = vmax.f32 %v2033_v25, 0.0 }
 0x425   :  { %v3379_v15 = vmax.f32 %v2750_v58, 0.0  ;;  %v2039_v40 = vadd.f32 %v2038_v0, %v9993_v37  ;;  %5496 = vmatprep.subr.bf16.mxu0 %v5495_v56  ;;  %v2040_v42 = vpop.f32.mrb[151].mxu1  ;;  %4905 = vmatmul.mubr.msk.f32.gmra.mrb[0].mxu1 %vm942_vm0, %v5848_v28  ;;  %v3518_v58 = vmax.f32 %v2035_v51, 0.0 }
 0x426   :  { %v3380_v36 = vmax.f32 %v2752_v9, 0.0  ;;  %v2041_v44 = vadd.f32 %v2040_v42, %v9993_v37  ;;  %v2755_v47 = vpop.f32.mrb[4].mxu0  ;;  %3004 = vmatprep.mubr.f32.mxu1 %v9742_v57  ;;  %v5849_v9 = vld [vmem:[%s9600_s5 + $0x88] sm:$0xff] }
 0x427   :  { %v5501_v10 = vpack.c.bf16 %v3379_v15, %v3363_v63  ;;  %v3533_v34 = vmax.f32 %v2039_v40, 0.0  ;;  %v2757_v22 = vpop.f32.mrb[5].mxu0  ;;  %v2756_v28 = vadd.f32 %v2755_v47, %v7392_v20 }
 0x428   :  { %v5499_v56 = vpack.c.bf16 %v3380_v36, %v3364_v18  ;;  %v3534_v11 = vmax.f32 %v2041_v44, 0.0  ;;  %5498 = vmatpush1.bf16.msra.mxu0 %v5497_v19  ;;  %v2044_v55 = vpop.f32.mrb[152].mxu1  ;;  %v2758_v63 = vadd.f32 %v2757_v22, %v7392_v20 }
 0x429   :  { %v8889_v0 = vpack.c.bf16 %v3533_v34, %v3517_v60  ;;  %v2046_v26 = vpop.f32.mrb[153].mxu1  ;;  %4906 = vmatmul.mubr.msk.f32.gmra.mrb[2].mxu1 %vm942_vm0, %v5849_v9  ;;  %v2045_v19 = vadd.f32 %v2044_v55, %v7577_v30  ;;  %v3395_v44 = vmax.f32 %v2756_v28, 0.0  ;;  %v9996_v60 = vld [vmem:[#allocation68_spill] sm:$0xff] }
 0x42a   :  { %v8896_v25 = vpack.c.bf16 %v3534_v11, %v3518_v58  ;;  %v2761_v51 = vpop.f32.mrb[6].mxu0  ;;  %5500 = vmatprep.subr.bf16.mxu0 %v5499_v56  ;;  %3010 = vmatprep.mubr.f32.mxu1 %v9742_v57  ;;  %v2047_v42 = vadd.f32 %v2046_v26, %v7577_v30  ;;  %v5850_v58 = vld [vmem:[%s9600_s5 + $0x90] sm:$0xff]  ;;  %v3396_v56 = vmax.f32 %v2758_v63, 0.0  ;;  %v5851_v63 = vld [vmem:[%s9600_s5 + $0x98] sm:$0xff] }
 0x42b   :  { %9994 = vst [vmem:[#allocation92_spill] sm:$0xff] %v8889_v0  ;;  %v2762_v15 = vadd.f32 %v2761_v51, %v9815_v3  ;;  %v2763_v40 = vpop.f32.mrb[7].mxu0 }
 0x42c   :  { %9995 = vst [vmem:[#allocation89_spill] sm:$0xff] %v8896_v25  ;;  %v2764_v18 = vadd.f32 %v2763_v40, %v9815_v3  ;;  %5502 = vmatpush1.bf16.msra.mxu0 %v5501_v10  ;;  %v2050_v36 = vpop.f32.mrb[154].mxu1  ;;  %v3549_v10 = vmax.f32 %v2045_v19, 0.0 }
 0x42d   :  { %v3411_v47 = vmax.f32 %v2762_v15, 0.0  ;;  %v2051_v34 = vadd.f32 %v2050_v36, %v9996_v60  ;;  %v2052_v22 = vpop.f32.mrb[155].mxu1  ;;  %4907 = vmatmul.mubr.msk.f32.gmra.mrb[4].mxu1 %vm942_vm0, %v5850_v58  ;;  %v3550_v15 = vmax.f32 %v2047_v42, 0.0 }
 0x42e   :  { %v3412_v11 = vmax.f32 %v2764_v18, 0.0  ;;  %v2053_v55 = vadd.f32 %v2052_v22, %v9996_v60  ;;  %v2767_v26 = vpop.f32.mrb[8].mxu0  ;;  %3016 = vmatprep.mubr.f32.mxu1 %v9742_v57 }
 0x42f   :  { %v5505_v9 = vpack.c.bf16 %v3411_v47, %v3395_v44  ;;  %v3565_v28 = vmax.f32 %v2051_v34, 0.0  ;;  %v2769_v51 = vpop.f32.mrb[9].mxu0  ;;  %v2768_v14 = vadd.f32 %v2767_v26, %v7429_v24 }
 0x430   :  { %v5503_v40 = vpack.c.bf16 %v3412_v11, %v3396_v56  ;;  %v3566_v36 = vmax.f32 %v2053_v55, 0.0  ;;  %v2056_v0 = vpop.f32.mrb[156].mxu1  ;;  %v2770_v19 = vadd.f32 %v2769_v51, %v7429_v24 }
 0x431   :  { %v8911_v25 = vpack.c.bf16 %v3565_v28, %v3549_v10  ;;  %v2058_v58 = vpop.f32.mrb[157].mxu1  ;;  %4908 = vmatmul.mubr.msk.f32.gmra.mrb[6].mxu1 %vm942_vm0, %v5851_v63  ;;  %v2057_v42 = vadd.f32 %v2056_v0, %v7608_v8  ;;  %v3427_v55 = vmax.f32 %v2768_v14, 0.0  ;;  %v9999_v10 = vld [vmem:[#allocation71_spill] sm:$0xff] }
 0x432   :  { %v8918_v18 = vpack.c.bf16 %v3566_v36, %v3550_v15  ;;  %v2773_v44 = vpop.f32.mrb[10].mxu0  ;;  %5504 = vmatprep.subr.bf16.mxu0 %v5503_v40  ;;  %3022 = vmatprep.mubr.f32.mxu1 %v9742_v57  ;;  %v2059_v22 = vadd.f32 %v2058_v58, %v7608_v8  ;;  %v5852_v15 = vld [vmem:[%s9600_s5 + $0xa0] sm:$0xff]  ;;  %v3428_v0 = vmax.f32 %v2770_v19, 0.0  ;;  %v5853_v19 = vld [vmem:[%s9600_s5 + $0xa8] sm:$0xff] }
 0x433   :  { %9997 = vst [vmem:[#allocation88_spill] sm:$0xff] %v8911_v25  ;;  %v2774_v47 = vadd.f32 %v2773_v44, %v7437_v5  ;;  %v2775_v34 = vpop.f32.mrb[11].mxu0  ;;  %5506 = vmatpush1.bf16.msra.mxu0 %v5505_v9  ;;  %v3581_v58 = vmax.f32 %v2057_v42, 0.0 }
 0x434   :  { %9998 = vst [vmem:[#allocation94_spill] sm:$0xff] %v8918_v18  ;;  %v2776_v56 = vadd.f32 %v2775_v34, %v7437_v5  ;;  %v2062_v11 = vpop.f32.mrb[158].mxu1 }
 0x435   :  { %v3443_v26 = vmax.f32 %v2774_v47, 0.0  ;;  %v2063_v28 = vadd.f32 %v2062_v11, %v9999_v10  ;;  %v2064_v51 = vpop.f32.mrb[159].mxu1  ;;  %4909 = vmatmul.mubr.msk.f32.gmra.mrb[8].mxu1 %vm942_vm0, %v5852_v15  ;;  %v3582_v47 = vmax.f32 %v2059_v22, 0.0 }
 0x436   :  { %v3444_v40 = vmax.f32 %v2776_v56, 0.0  ;;  %v2065_v9 = vadd.f32 %v2064_v51, %v9999_v10  ;;  %v2779_v36 = vpop.f32.mrb[12].mxu0  ;;  %3028 = vmatprep.mubr.f32.mxu1 %v9742_v57 }
 0x437   :  { %v5509_v63 = vpack.c.bf16 %v3443_v26, %v3427_v55  ;;  %v3597_v14 = vmax.f32 %v2063_v28, 0.0  ;;  %v2781_v44 = vpop.f32.mrb[13].mxu0  ;;  %v2780_v53 = vadd.f32 %v2779_v36, %v7463_v23 }
 0x438   :  { %v5507_v34 = vpack.c.bf16 %v3444_v40, %v3428_v0  ;;  %v3598_v11 = vmax.f32 %v2065_v9, 0.0  ;;  %v2390_v25 = vpop.f32.mrb[160].mxu1  ;;  %v2782_v42 = vadd.f32 %v2781_v44, %v7463_v23  ;;  %v5854_v44 = vld [vmem:[%s9600_s5 + $0xb0] sm:$0xff] }
 0x439   :  { %v8933_v18 = vpack.c.bf16 %v3597_v14, %v3581_v58  ;;  %v2392_v15 = vpop.f32.mrb[161].mxu1  ;;  %4910 = vmatmul.mubr.msk.f32.gmra.mrb[10].mxu1 %vm942_vm0, %v5853_v19  ;;  %v2391_v22 = vadd.f32 %v2390_v25, %v9825_v16  ;;  %v3459_v9 = vmax.f32 %v2780_v53, 0.0 }
 0x43a   :  { %v8940_v56 = vpack.c.bf16 %v3598_v11, %v3582_v47  ;;  %v2785_v55 = vpop.f32.mrb[14].mxu0  ;;  %5508 = vmatprep.subr.bf16.mxu0 %v5507_v34  ;;  %3034 = vmatprep.mubr.f32.mxu1 %v9742_v57  ;;  %v2393_v51 = vadd.f32 %v2392_v15, %v9825_v16  ;;  %v3460_v25 = vmax.f32 %v2782_v42, 0.0  ;;  %v5855_v42 = vld [vmem:[%s9600_s5 + $0xb8] sm:$0xff] }
 0x43b   :  { %10000 = vst [vmem:[#allocation93_spill] sm:$0xff] %v8933_v18  ;;  %v2786_v26 = vadd.f32 %v2785_v55, %v7474_v1  ;;  %v2787_v28 = vpop.f32.mrb[15].mxu0  ;;  %5510 = vmatpush1.bf16.msra.mxu0 %v5509_v63  ;;  %v3105_v11 = vmax.f32 %v2391_v22, 0.0 }
 0x43c   :  { %v2788_v0 = vadd.f32 %v2787_v28, %v7474_v1  ;;  %v2396_v40 = vpop.f32.mrb[162].mxu1  ;;  %v3106_v55 = vmax.f32 %v2393_v51, 0.0 }
 0x43d   :  { %v3475_v36 = vmax.f32 %v2786_v26, 0.0  ;;  %v2397_v58 = vadd.f32 %v2396_v40, %v9910_v2  ;;  %v2398_v14 = vpop.f32.mrb[163].mxu1  ;;  %4911 = vmatmul.mubr.msk.f32.gmra.mrb[12].mxu1 %vm942_vm0, %v5854_v44 }
 0x43e   :  { %v3476_v47 = vmax.f32 %v2788_v0, 0.0  ;;  %v2399_v63 = vadd.f32 %v2398_v14, %v9910_v2  ;;  %v2791_v34 = vpop.f32.mrb[16].mxu0  ;;  %3040 = vmatprep.mubr.f32.mxu1 %v9742_v57 }
 0x43f   :  { %v5513_v15 = vpack.c.bf16 %v3475_v36, %v3459_v9  ;;  %v3121_v53 = vmax.f32 %v2397_v58, 0.0  ;;  %v2793_v19 = vpop.f32.mrb[17].mxu0  ;;  %v2792_v18 = vadd.f32 %v2791_v34, %v7501_v50 }
 0x440   :  { %v5511_v26 = vpack.c.bf16 %v3476_v47, %v3460_v25  ;;  %v3122_v28 = vmax.f32 %v2399_v63, 0.0  ;;  %v2402_v40 = vpop.f32.mrb[164].mxu1  ;;  %v2794_v22 = vadd.f32 %v2793_v19, %v7501_v50  ;;  %v5856_v19 = vld [vmem:[%s9600_s5 + $0xc0] sm:$0xff] }
 0x441   :  { %v8955_v16 = vpack.c.bf16 %v3121_v53, %v3105_v11  ;;  %v2404_v44 = vpop.f32.mrb[165].mxu1  ;;  %4912 = vmatmul.mubr.msk.f32.gmra.mrb[14].mxu1 %vm942_vm0, %v5855_v42  ;;  %v2403_v51 = vadd.f32 %v2402_v40, %v9831_v13  ;;  %v3491_v63 = vmax.f32 %v2792_v18, 0.0 }
 0x442   :  { %v8962_v0 = vpack.c.bf16 %v3122_v28, %v3106_v55  ;;  %v2797_v9 = vpop.f32.mrb[18].mxu0  ;;  %5512 = vmatprep.subr.bf16.mxu0 %v5511_v26  ;;  %3046 = vmatprep.mubr.f32.mxu1 %v9742_v57  ;;  %v2405_v14 = vadd.f32 %v2404_v44, %v9831_v13  ;;  %v3492_v55 = vmax.f32 %v2794_v22, 0.0  ;;  %v5857_v22 = vld [vmem:[%s9600_s5 + $0xc8] sm:$0xff] }
 0x443   :  { %v2798_v36 = vadd.f32 %v2797_v9, %v9986_v17  ;;  %v2799_v58 = vpop.f32.mrb[19].mxu0  ;;  %5514 = vmatpush1.bf16.msra.mxu0 %v5513_v15  ;;  %v3137_v40 = vmax.f32 %v2403_v51, 0.0 }
 0x444   :  { %v2800_v25 = vadd.f32 %v2799_v58, %v9986_v17  ;;  %v2408_v47 = vpop.f32.mrb[166].mxu1  ;;  %v3138_v9 = vmax.f32 %v2405_v14, 0.0 }
 0x445   :  { %v3507_v34 = vmax.f32 %v2798_v36, 0.0  ;;  %v2409_v11 = vadd.f32 %v2408_v47, %v9918_v27  ;;  %v2410_v53 = vpop.f32.mrb[167].mxu1  ;;  %4913 = vmatmul.mubr.msk.f32.gmra.mrb[16].mxu1 %vm942_vm0, %v5856_v19 }
 0x446   :  { %v3508_v26 = vmax.f32 %v2800_v25, 0.0  ;;  %v2411_v15 = vadd.f32 %v2410_v53, %v9918_v27  ;;  %v2803_v28 = vpop.f32.mrb[20].mxu0  ;;  %3052 = vmatprep.mubr.f32.mxu1 %v9742_v57 }
 0x447   :  { %v5517_v44 = vpack.c.bf16 %v3507_v34, %v3491_v63  ;;  %v3153_v18 = vmax.f32 %v2409_v11, 0.0  ;;  %v2805_v42 = vpop.f32.mrb[21].mxu0  ;;  %v2804_v2 = vadd.f32 %v2803_v28, %v7537_v48 }
 0x448   :  { %v5515_v36 = vpack.c.bf16 %v3508_v26, %v3492_v55  ;;  %v3154_v58 = vmax.f32 %v2411_v15, 0.0  ;;  %v2414_v47 = vpop.f32.mrb[168].mxu1  ;;  %v2806_v51 = vadd.f32 %v2805_v42, %v7537_v48  ;;  %v5858_v42 = vld [vmem:[%s9600_s5 + $0xd0] sm:$0xff] }
 0x449   :  { %v8977_v13 = vpack.c.bf16 %v3153_v18, %v3137_v40  ;;  %v2416_v19 = vpop.f32.mrb[169].mxu1  ;;  %4914 = vmatmul.mubr.msk.f32.gmra.mrb[18].mxu1 %vm942_vm0, %v5857_v22  ;;  %v2415_v14 = vadd.f32 %v2414_v47, %v9925_v46  ;;  %v3523_v15 = vmax.f32 %v2804_v2, 0.0 }
 0x44a   :  { %v8984_v25 = vpack.c.bf16 %v3154_v58, %v3138_v9  ;;  %v2809_v63 = vpop.f32.mrb[22].mxu0  ;;  %5516 = vmatprep.subr.bf16.mxu0 %v5515_v36  ;;  %3058 = vmatprep.mubr.f32.mxu1 %v9742_v57  ;;  %v2417_v53 = vadd.f32 %v2416_v19, %v9925_v46  ;;  %v3524_v9 = vmax.f32 %v2806_v51, 0.0  ;;  %v5859_v51 = vld [vmem:[%s9600_s5 + $0xd8] sm:$0xff] }
 0x44b   :  { %v2810_v34 = vadd.f32 %v2809_v63, %v9993_v37  ;;  %v2811_v11 = vpop.f32.mrb[23].mxu0  ;;  %5518 = vmatpush1.bf16.msra.mxu0 %v5517_v44  ;;  %v3169_v47 = vmax.f32 %v2415_v14, 0.0 }
 0x44c   :  { %v2812_v55 = vadd.f32 %v2811_v11, %v9993_v37  ;;  %v2420_v26 = vpop.f32.mrb[170].mxu1  ;;  %v3170_v63 = vmax.f32 %v2417_v53, 0.0 }
 0x44d   :  { %v3539_v28 = vmax.f32 %v2810_v34, 0.0  ;;  %v2421_v40 = vadd.f32 %v2420_v26, %v9927_v52  ;;  %v2422_v18 = vpop.f32.mrb[171].mxu1  ;;  %4915 = vmatmul.mubr.msk.f32.gmra.mrb[20].mxu1 %vm942_vm0, %v5858_v42 }
 0x44e   :  { %v3540_v36 = vmax.f32 %v2812_v55, 0.0  ;;  %v2423_v44 = vadd.f32 %v2422_v18, %v9927_v52  ;;  %v2815_v58 = vpop.f32.mrb[24].mxu0  ;;  %3064 = vmatprep.mubr.f32.mxu1 %v9742_v57 }
 0x44f   :  { %v5521_v19 = vpack.c.bf16 %v3539_v28, %v3523_v15  ;;  %v3185_v2 = vmax.f32 %v2421_v40, 0.0  ;;  %v2817_v22 = vpop.f32.mrb[25].mxu0  ;;  %v2816_v27 = vadd.f32 %v2815_v58, %v7577_v30 }
 0x450   :  { %v5519_v34 = vpack.c.bf16 %v3540_v36, %v3524_v9  ;;  %v3186_v11 = vmax.f32 %v2423_v44, 0.0  ;;  %v2426_v26 = vpop.f32.mrb[172].mxu1  ;;  %v2818_v14 = vadd.f32 %v2817_v22, %v7577_v30  ;;  %v5860_v22 = vld [vmem:[%s9600_s5 + $0xe0] sm:$0xff] }
 0x451   :  { %v8999_v46 = vpack.c.bf16 %v3185_v2, %v3169_v47  ;;  %v2428_v42 = vpop.f32.mrb[173].mxu1  ;;  %4916 = vmatmul.mubr.msk.f32.gmra.mrb[22].mxu1 %vm942_vm0, %v5859_v51  ;;  %v2427_v53 = vadd.f32 %v2426_v26, %v9934_v6  ;;  %v3555_v44 = vmax.f32 %v2816_v27, 0.0 }
 0x452   :  { %v9006_v55 = vpack.c.bf16 %v3186_v11, %v3170_v63  ;;  %v2821_v15 = vpop.f32.mrb[26].mxu0  ;;  %5520 = vmatprep.subr.bf16.mxu0 %v5519_v34  ;;  %3070 = vmatprep.mubr.f32.mxu1 %v9742_v57  ;;  %v2429_v18 = vadd.f32 %v2428_v42, %v9934_v6  ;;  %v3556_v63 = vmax.f32 %v2818_v14, 0.0  ;;  %v5861_v14 = vld [vmem:[%s9600_s5 + $0xe8] sm:$0xff] }
 0x453   :  { %v2822_v28 = vadd.f32 %v2821_v15, %v9996_v60  ;;  %v2823_v40 = vpop.f32.mrb[27].mxu0  ;;  %5522 = vmatpush1.bf16.msra.mxu0 %v5521_v19  ;;  %v3201_v26 = vmax.f32 %v2427_v53, 0.0 }
 0x454   :  { %v2824_v9 = vadd.f32 %v2823_v40, %v9996_v60  ;;  %v2432_v36 = vpop.f32.mrb[174].mxu1  ;;  %v3202_v15 = vmax.f32 %v2429_v18, 0.0 }
 0x455   :  { %v3571_v58 = vmax.f32 %v2822_v28, 0.0  ;;  %v2433_v47 = vadd.f32 %v2432_v36, %v9936_v4  ;;  %v2434_v2 = vpop.f32.mrb[175].mxu1  ;;  %4917 = vmatmul.mubr.msk.f32.gmra.mrb[24].mxu1 %vm942_vm0, %v5860_v22 }
 0x456   :  { %v3572_v34 = vmax.f32 %v2824_v9, 0.0  ;;  %v2435_v19 = vadd.f32 %v2434_v2, %v9936_v4  ;;  %v2827_v11 = vpop.f32.mrb[28].mxu0  ;;  %3076 = vmatprep.mubr.f32.mxu1 %v9742_v57 }
 0x457   :  { %v5525_v42 = vpack.c.bf16 %v3571_v58, %v3555_v44  ;;  %v3217_v27 = vmax.f32 %v2433_v47, 0.0  ;;  %v2829_v51 = vpop.f32.mrb[29].mxu0  ;;  %v2828_v52 = vadd.f32 %v2827_v11, %v7608_v8 }
 0x458   :  { %v5523_v28 = vpack.c.bf16 %v3572_v34, %v3556_v63  ;;  %v3218_v40 = vmax.f32 %v2435_v19, 0.0  ;;  %v2438_v36 = vpop.f32.mrb[176].mxu1  ;;  %v2830_v53 = vadd.f32 %v2829_v51, %v7608_v8  ;;  %v5862_v51 = vld [vmem:[%s9600_s5 + $0xf0] sm:$0xff] }
 0x459   :  { %v9021_v6 = vpack.c.bf16 %v3217_v27, %v3201_v26  ;;  %v2440_v22 = vpop.f32.mrb[177].mxu1  ;;  %4918 = vmatmul.mubr.msk.f32.gmra.mrb[26].mxu1 %vm942_vm0, %v5861_v14  ;;  %v2439_v18 = vadd.f32 %v2438_v36, %v9940_v35  ;;  %v3587_v19 = vmax.f32 %v2828_v52, 0.0 }
 0x45a   :  { %v9028_v9 = vpack.c.bf16 %v3218_v40, %v3202_v15  ;;  %v2833_v44 = vpop.f32.mrb[30].mxu0  ;;  %5524 = vmatprep.subr.bf16.mxu0 %v5523_v28  ;;  %3082 = vmatprep.mubr.f32.mxu1 %v9742_v57  ;;  %v2441_v2 = vadd.f32 %v2440_v22, %v9940_v35  ;;  %v9041_v15 = vpop.permute.xlu1 %3612  ;;  %v3588_v28 = vmax.f32 %v2830_v53, 0.0 }
 0x45b   :  { %v2834_v58 = vadd.f32 %v2833_v44, %v9999_v10  ;;  %v2835_v47 = vpop.f32.mrb[31].mxu0  ;;  %5526 = vmatpush1.bf16.msra.mxu0 %v5525_v42  ;;  %v3233_v52 = vmax.f32 %v2439_v18, 0.0 }
 0x45c   :  { %v2836_v63 = vadd.f32 %v2835_v47, %v9999_v10  ;;  %v2444_v34 = vpop.f32.mrb[178].mxu1  ;;  %v3234_v47 = vmax.f32 %v2441_v2, 0.0 }
 0x45d   :  { %v3603_v11 = vmax.f32 %v2834_v58, 0.0  ;;  %v2445_v26 = vadd.f32 %v2444_v34, %v9942_v54  ;;  %v2446_v27 = vpop.f32.mrb[179].mxu1  ;;  %4919 = vmatmul.mubr.msk.f32.gmra.mrb[28].mxu1 %vm942_vm0, %v5862_v51 }
 0x45e   :  { %v3604_v42 = vmax.f32 %v2836_v63, 0.0  ;;  %v2447_v40 = vadd.f32 %v2446_v27, %v9942_v54  ;;  %v3681_v36 = vpop.f32.mrb[32].mxu0  ;;  %3088 = vmatprep.mubr.f32.mxu1 %v9742_v57  ;;  %v5863_v57 = vld [vmem:[%s9600_s5 + $0xf8] sm:$0xff] }
 0x45f   :  { %v5529_v22 = vpack.c.bf16 %v3603_v11, %v3587_v19  ;;  %v3249_v14 = vmax.f32 %v2445_v26, 0.0  ;;  %v3682_v44 = vadd.f32 %v3681_v36, %v9041_v15  ;;  %v3683_v58 = vpop.f32.mrb[33].mxu0 }
 0x460   :  { %v5527_v34 = vpack.c.bf16 %v3604_v42, %v3588_v28  ;;  %v3250_v35 = vmax.f32 %v2447_v40, 0.0  ;;  %v3684_v51 = vadd.f32 %v3683_v58, %v9041_v15  ;;  %v2450_v4 = vpop.f32.mrb[180].mxu1  ;;  %v10001_v42 = vld [vmem:[#allocation48_spill] sm:$0xff] }
 0x461   :  { %v9047_v10 = vpack.c.bf16 %v3249_v14, %v3233_v52  ;;  %v4199_v53 = vmul.f32 0.70710677, %v3682_v44  ;;  %v2452_v63 = vpop.f32.mrb[181].mxu1  ;;  %4920 = vmatmul.mubr.msk.f32.gmra.mrb[30].mxu1 %vm942_vm0, %v5863_v57  ;;  %v2451_v2 = vadd.f32 %v2450_v4, %v9945_v39  ;;  %v10002_v52 = vld [vmem:[#allocation19_spill] sm:$0xff]  ;;  %v10004_v57 = vld [vmem:[#allocation26_spill] sm:$0xff] }
 0x462   :  { %v9053_v18 = vpack.c.bf16 %v3250_v35, %v3234_v47  ;;  %v4200_v19 = vmul.f32 0.70710677, %v3684_v51  ;;  %5528 = vmatprep.subr.bf16.mxu0 %v5527_v34  ;;  %3750 = vmatprep.mubr.f32.mxu1 %v8784_v29  ;;  %v2453_v11 = vadd.f32 %v2452_v63, %v9945_v39 }
 0x463   :  { %5635 = verf.f32 %v4199_v53  ;;  %5530 = vmatpush1.bf16.msra.mxu0 %v5529_v22  ;;  %v3265_v40 = vmax.f32 %v2451_v2, 0.0  ;;  %v10003_v53 = vld [vmem:[#allocation21_spill] sm:$0xff] }
 0x464   :  { %5637 = verf.f32 %v4200_v19  ;;  %v2456_v26 = vpop.f32.mrb[182].mxu1  ;;  %v3266_v4 = vmax.f32 %v2453_v11, 0.0 }
 0x465   :  { %v2457_v27 = vadd.f32 %v2456_v26, %v9946_v43  ;;  %v2458_v28 = vpop.f32.mrb[183].mxu1  ;;  %3751 = vmatmul.mubr.f32.vlgmr.msra.gmra.mrb[32].mxu1 %v8775_v45 }
 0x466   :  { %v2459_v35 = vadd.f32 %v2458_v28, %v9946_v43  ;;  %5278 = vmatpush1.bf16.msra.mxu1 %v10001_v42  ;;  %4106 = vmatmul.mubr.f32.vlgmr.msra.gmra.mrb[38].mxu0 %v8775_v45 }
 0x467   :  { %v3281_v36 = vmax.f32 %v2457_v27, 0.0  ;;  %5280 = vmatprep.subr.bf16.mxu1 %v10002_v52  ;;  %3892 = vmatprep.mubr.f32.mxu1 %v8784_v29  ;;  %v4183_v27 = vmul.f32 0.5, %v3682_v44 }
 0x468   :  { %v3282_v22 = vmax.f32 %v2459_v35, 0.0  ;;  %v2462_v14 = vpop.f32.mrb[184].mxu1  ;;  %v10005_v35 = vld [vmem:[#allocation30_spill] sm:$0xff] }
 0x469   :  { %v9065_v58 = vpack.c.bf16 %v3281_v36, %v3265_v40  ;;  %v2464_v47 = vpop.f32.mrb[185].mxu1  ;;  %v2463_v63 = vadd.f32 %v2462_v14, %v9952_v38  ;;  %v4184_v40 = vmul.f32 0.5, %v3684_v51 }
 0x46a   :  { %v9067_v34 = vpack.c.bf16 %v3282_v22, %v3266_v4  ;;  %5282 = vmatpush1.bf16.msra.mxu1 %v10003_v53  ;;  %v2465_v45 = vadd.f32 %v2464_v47, %v9952_v38  ;;  %v10006_v4 = vld [vmem:[#allocation52_spill] sm:$0xff] }
 0x46b   :  { %5284 = vmatprep.subr.bf16.mxu1 %v10004_v57  ;;  %v3297_v36 = vmax.f32 %v2463_v63, 0.0  ;;  %v5864_v57 = vld [vmem:[%s9607_s12] ss:$0 sm:$0xff] }
 0x46c   :  { %v2468_v19 = vpop.f32.mrb[186].mxu1  ;;  %v3298_v14 = vmax.f32 %v2465_v45, 0.0 }
 0x46d   :  { %v5636_v2 = vpop.eup %5635  ;;  %v2469_v29 = vadd.f32 %v2468_v19, %v9954_v31  ;;  %v2470_v11 = vpop.f32.mrb[187].mxu1  ;;  %v10007_v19 = vld [vmem:[#allocation63_spill] sm:$0xff] }
 0x46e   :  { %v5638_v26 = vpop.eup %5637  ;;  %v2471_v28 = vadd.f32 %v2470_v11, %v9954_v31  ;;  %5286 = vmatpush1.bf16.msra.mxu1 %v10005_v35  ;;  %v4231_v42 = vadd.f32 1.0, %v5636_v2  ;;  %v640_v44 = vadd.f32 %v5864_v57, %v10007_v19  ;;  %v10008_v2 = vld [vmem:[#allocation67_spill] sm:$0xff] }
 0x46f   :  { %v3313_v52 = vmax.f32 %v2469_v29, 0.0  ;;  %5288 = vmatprep.subr.bf16.mxu1 %v10006_v4  ;;  %v4232_v22 = vadd.f32 1.0, %v5638_v26  ;;  %v645_v51 = vadd.f32 %v5864_v57, %v10008_v2  ;;  %v10009_v4 = vld [vmem:[#allocation38_spill] sm:$0xff] }
 0x470   :  { %v3314_v47 = vmax.f32 %v2471_v28, 0.0  ;;  %v2474_v53 = vpop.f32.mrb[188].mxu1  ;;  %v4247_v38 = vmul.f32 %v4231_v42, %v4183_v27  ;;  %v10011_v28 = vld [vmem:[#allocation35_spill] sm:$0xff] }
 0x471   :  { %v9081_v11 = vpack.c.bf16 %v3313_v52, %v3297_v36  ;;  %v2476_v35 = vpop.f32.mrb[189].mxu1  ;;  %v4248_v63 = vmul.f32 %v4232_v22, %v4184_v40  ;;  %v2475_v26 = vadd.f32 %v2474_v53, %v9960_v49 }
 0x472   :  { %v9084_v29 = vpack.c.bf16 %v3314_v47, %v3298_v14  ;;  %5290 = vmatpush1.bf16.msra.mxu1 %v10009_v4  ;;  %v9087_v45 = vmul.f32 %v4247_v38, %v640_v44  ;;  %v2477_v27 = vadd.f32 %v2476_v35, %v9960_v49  ;;  %v10013_v38 = vld [vmem:[#allocation37_spill] sm:$0xff]  ;;  %v10014_v47 = vld [vmem:[#allocation51_spill] sm:$0xff] }
 0x473   :  { %5292 = vmatprep.subr.bf16.mxu1 %v10011_v28  ;;  %v9091_v31 = vmul.f32 %v4248_v63, %v645_v51  ;;  %v3329_v22 = vmax.f32 %v2475_v26, 0.0  ;;  %v10015_v51 = vld [vmem:[#allocation83_spill] sm:$0xff]  ;;  %v10016_v4 = vld [vmem:[#allocation65_spill] sm:$0xff] }
 0x474   :  { %10010 = vst [vmem:[#allocation97_spill] sm:$0xff] %v9087_v45  ;;  %v2480_v42 = vpop.f32.mrb[190].mxu1  ;;  %4281 = vadd.xlane.f32.xlu0 %v9087_v45  ;;  %v3330_v53 = vmax.f32 %v2477_v27, 0.0 }
 0x475   :  { %10012 = vst [vmem:[#allocation100_spill] sm:$0xff] %v9091_v31  ;;  %v2481_v36 = vadd.f32 %v2480_v42, %v9962_v41  ;;  %v2482_v40 = vpop.f32.mrb[191].mxu1  ;;  %4283 = vadd.xlane.f32.xlu1 %v9091_v31 }
 0x476   :  { %v2483_v52 = vadd.f32 %v2482_v40, %v9962_v41  ;;  %5294 = vmatpush1.bf16.msra.mxu1 %v10013_v38  ;;  %v10017_v40 = vld [vmem:[#allocation47_spill] sm:$0xff] }
 0x477   :  { %v3345_v14 = vmax.f32 %v2481_v36, 0.0  ;;  %5296 = vmatprep.subr.bf16.mxu1 %v10014_v47 }
 0x478   :  { %v3346_v57 = vmax.f32 %v2483_v52, 0.0  ;;  %v2486_v19 = vpop.f32.mrb[192].mxu1 }
 0x479   :  { %v9100_v44 = vpack.c.bf16 %v3345_v14, %v3329_v22  ;;  %v2488_v35 = vpop.f32.mrb[193].mxu1  ;;  %v2487_v63 = vadd.f32 %v2486_v19, %v9968_v7  ;;  %v10018_v22 = vld [vmem:[#allocation87_spill] sm:$0xff] }
 0x47a   :  { %v9102_v2 = vpack.c.bf16 %v3346_v57, %v3330_v53  ;;  %5298 = vmatpush1.bf16.msra.mxu1 %v10015_v51  ;;  %v2489_v28 = vadd.f32 %v2488_v35, %v9968_v7  ;;  %v10019_v35 = vld [vmem:[#allocation57_spill] sm:$0xff] }
 0x47b   :  { %5300 = vmatprep.subr.bf16.mxu1 %v10016_v4  ;;  %v3361_v52 = vmax.f32 %v2487_v63, 0.0 }
 0x47c   :  { %v2492_v26 = vpop.f32.mrb[194].mxu1  ;;  %v3362_v14 = vmax.f32 %v2489_v28, 0.0 }
 0x47d   :  { %v2493_v42 = vadd.f32 %v2492_v26, %v9970_v59  ;;  %v2494_v36 = vpop.f32.mrb[195].mxu1 }
 0x47e   :  { %v2495_v27 = vadd.f32 %v2494_v36, %v9970_v59  ;;  %5302 = vmatpush1.bf16.msra.mxu1 %v10017_v40 }
 0x47f   :  { %v3377_v38 = vmax.f32 %v2493_v42, 0.0  ;;  %5304 = vmatprep.subr.bf16.mxu1 %v10018_v22 }
 0x480   :  { %v3378_v47 = vmax.f32 %v2495_v27, 0.0  ;;  %v2498_v53 = vpop.f32.mrb[196].mxu1 }
 0x481   :  { %v9112_v57 = vpack.c.bf16 %v3377_v38, %v3361_v52  ;;  %v2500_v19 = vpop.f32.mrb[197].mxu1  ;;  %v2499_v4 = vadd.f32 %v2498_v53, %v7392_v20  ;;  %v10020_v52 = vld [vmem:[#allocation79_spill] sm:$0xff] }
 0x482   :  { %v9114_v51 = vpack.c.bf16 %v3378_v47, %v3362_v14  ;;  %5306 = vmatpush1.bf16.msra.mxu1 %v10019_v35  ;;  %v2501_v26 = vadd.f32 %v2500_v19, %v7392_v20  ;;  %v10021_v19 = vld [vmem:[#allocation80_spill] sm:$0xff] }
 0x483   :  { %5308 = vmatprep.subr.bf16.mxu1 %v8731_v61  ;;  %v3393_v27 = vmax.f32 %v2499_v4, 0.0 }
 0x484   :  { %v2504_v63 = vpop.f32.mrb[198].mxu1  ;;  %v3394_v38 = vmax.f32 %v2501_v26, 0.0 }
 0x485   :  { %v2505_v42 = vadd.f32 %v2504_v63, %v9815_v3  ;;  %v2506_v36 = vpop.f32.mrb[199].mxu1 }
 0x486   :  { %v2507_v28 = vadd.f32 %v2506_v36, %v9815_v3  ;;  %5310 = vmatpush1.bf16.msra.mxu1 %v8724_v62 }
 0x487   :  { %v3409_v40 = vmax.f32 %v2505_v42, 0.0  ;;  %5312 = vmatprep.subr.bf16.mxu1 %v10020_v52 }
 0x488   :  { %v3410_v22 = vmax.f32 %v2507_v28, 0.0  ;;  %v2510_v14 = vpop.f32.mrb[200].mxu1 }
 0x489   :  { %v9124_v47 = vpack.c.bf16 %v3409_v40, %v3393_v27  ;;  %v2512_v61 = vpop.f32.mrb[201].mxu1  ;;  %v2511_v35 = vadd.f32 %v2510_v14, %v7429_v24 }
 0x48a   :  { %v9126_v53 = vpack.c.bf16 %v3410_v22, %v3394_v38  ;;  %5314 = vmatpush1.bf16.msra.mxu1 %v10021_v19  ;;  %v2513_v62 = vadd.f32 %v2512_v61, %v7429_v24  ;;  %v10022_v61 = vld [vmem:[#allocation8_spill] sm:$0xff] }
 0x48b   :  { %5316 = vmatprep.subr.bf16.mxu1 %v8811_v12  ;;  %v3425_v36 = vmax.f32 %v2511_v35, 0.0 }
 0x48c   :  { %v2516_v4 = vpop.f32.mrb[202].mxu1  ;;  %v3426_v27 = vmax.f32 %v2513_v62, 0.0 }
 0x48d   :  { %v2517_v63 = vadd.f32 %v2516_v4, %v7437_v5  ;;  %v2518_v42 = vpop.f32.mrb[203].mxu1  ;;  %v10023_v4 = vld [vmem:[#allocation84_spill] sm:$0xff] }
 0x48e   :  { %v2519_v26 = vadd.f32 %v2518_v42, %v7437_v5  ;;  %5318 = vmatpush1.bf16.msra.mxu1 %v8804_v33 }
 0x48f   :  { %v3441_v28 = vmax.f32 %v2517_v63, 0.0  ;;  %5320 = vmatprep.subr.bf16.mxu1 %v8842_v21 }
 0x490   :  { %v3442_v40 = vmax.f32 %v2519_v26, 0.0  ;;  %v2522_v52 = vpop.f32.mrb[204].mxu1  ;;  %v10024_v26 = vld [vmem:[#allocation89_spill] sm:$0xff] }
 0x491   :  { %v9136_v38 = vpack.c.bf16 %v3441_v28, %v3425_v36  ;;  %v2524_v12 = vpop.f32.mrb[205].mxu1  ;;  %v2523_v14 = vadd.f32 %v2522_v52, %v7463_v23 }
 0x492   :  { %v9138_v22 = vpack.c.bf16 %v3442_v40, %v3426_v27  ;;  %5322 = vmatpush1.bf16.msra.mxu1 %v8835_v32  ;;  %v2525_v33 = vadd.f32 %v2524_v12, %v7463_v23  ;;  %v10025_v12 = vld [vmem:[#allocation92_spill] sm:$0xff] }
 0x493   :  { %5324 = vmatprep.subr.bf16.mxu1 %v10022_v61  ;;  %v3457_v63 = vmax.f32 %v2523_v14, 0.0 }
 0x494   :  { %v2528_v19 = vpop.f32.mrb[206].mxu1  ;;  %v3458_v36 = vmax.f32 %v2525_v33, 0.0 }
 0x495   :  { %v2529_v35 = vadd.f32 %v2528_v19, %v7474_v1  ;;  %v2530_v21 = vpop.f32.mrb[207].mxu1  ;;  %v10026_v19 = vld [vmem:[#allocation94_spill] sm:$0xff] }
 0x496   :  { %v2531_v62 = vadd.f32 %v2530_v21, %v7474_v1  ;;  %5326 = vmatpush1.bf16.msra.mxu1 %v10023_v4 }
 0x497   :  { %v3473_v42 = vmax.f32 %v2529_v35, 0.0  ;;  %5328 = vmatprep.subr.bf16.mxu1 %v10024_v26 }
 0x498   :  { %v3474_v32 = vmax.f32 %v2531_v62, 0.0  ;;  %v2534_v28 = vpop.f32.mrb[208].mxu1 }
 0x499   :  { %v9148_v27 = vpack.c.bf16 %v3473_v42, %v3457_v63  ;;  %v2536_v40 = vpop.f32.mrb[209].mxu1  ;;  %v2535_v61 = vadd.f32 %v2534_v28, %v7501_v50  ;;  %v10027_v63 = vld [vmem:[#allocation88_spill] sm:$0xff] }
 0x49a   :  { %v9150_v52 = vpack.c.bf16 %v3474_v32, %v3458_v36  ;;  %5330 = vmatpush1.bf16.msra.mxu1 %v10025_v12  ;;  %v2537_v21 = vadd.f32 %v2536_v40, %v7501_v50 }
 0x49b   :  { %5332 = vmatprep.subr.bf16.mxu1 %v10026_v19  ;;  %v3489_v42 = vmax.f32 %v2535_v61, 0.0 }
 0x49c   :  { %v2540_v14 = vpop.f32.mrb[210].mxu1  ;;  %v3490_v28 = vmax.f32 %v2537_v21, 0.0 }
 0x49d   :  { %v2541_v35 = vadd.f32 %v2540_v14, %v9986_v17  ;;  %v2542_v4 = vpop.f32.mrb[211].mxu1 }
 0x49e   :  { %v2543_v33 = vadd.f32 %v2542_v4, %v9986_v17  ;;  %v3823_v62 = vpop.f32.mrb[34].mxu0  ;;  %5334 = vmatpush1.bf16.msra.mxu1 %v10027_v63  ;;  %v10028_v63 = vld [vmem:[#allocation93_spill] sm:$0xff] }
 0x49f   :  { %v3505_v26 = vmax.f32 %v2541_v35, 0.0  ;;  %v3824_v36 = vadd.f32 %v3823_v62, %v9041_v15  ;;  %v3825_v32 = vpop.f32.mrb[35].mxu0  ;;  %5336 = vmatprep.subr.bf16.mxu1 %v8940_v56 }
 0x4a0   :  { %v3506_v12 = vmax.f32 %v2543_v33, 0.0  ;;  %v3826_v40 = vadd.f32 %v3825_v32, %v9041_v15  ;;  %v2546_v19 = vpop.f32.mrb[212].mxu1  ;;  %v9174_v33 = vld [vmem:[%s9602_s7] sm:$0xff] }
 0x4a1   :  { %v9162_v31 = vpack.c.bf16 %v3505_v26, %v3489_v42  ;;  %v4203_v14 = vmul.f32 0.70710677, %v3824_v36  ;;  %v2548_v45 = vpop.f32.mrb[213].mxu1  ;;  %v2547_v61 = vadd.f32 %v2546_v19, %v7537_v48 }
 0x4a2   :  { %v9164_v4 = vpack.c.bf16 %v3506_v12, %v3490_v28  ;;  %v4204_v17 = vmul.f32 0.70710677, %v3826_v40  ;;  %5338 = vmatpush1.bf16.msra.mxu1 %v10028_v63  ;;  %v2549_v56 = vadd.f32 %v2548_v45, %v7537_v48 }
 0x4a3   :  { %5639 = verf.f32 %v4203_v14  ;;  %5404 = vmatprep.subr.bf16.mxu1 %v8962_v0  ;;  %v3521_v0 = vmax.f32 %v2547_v61, 0.0 }
 0x4a4   :  { %5641 = verf.f32 %v4204_v17  ;;  %v2552_v21 = vpop.f32.mrb[214].mxu1  ;;  %v9182_v17 = vld [vmem:[%s9602_s7 + $0x8] sm:$0xff]  ;;  %v3522_v26 = vmax.f32 %v2549_v56, 0.0 }
 0x4a5   :  { %v2553_v35 = vadd.f32 %v2552_v21, %v9993_v37  ;;  %3893 = vmatmul.mubr.f32.vlgmr.msra.gmra.mrb[34].mxu1 %v9174_v33  ;;  %v2554_v62 = vpop.f32.mrb[215].mxu1 }
 0x4a6   :  { %v2555_v42 = vadd.f32 %v2554_v62, %v9993_v37  ;;  %5406 = vmatpush1.bf16.msra.mxu1 %v8955_v16  ;;  %4034 = vmatprep.mubr.f32.mxu1 %v9182_v17  ;;  %v4187_v62 = vmul.f32 0.5, %v3824_v36 }
 0x4a7   :  { %v3537_v45 = vmax.f32 %v2553_v35, 0.0  ;;  %5408 = vmatprep.subr.bf16.mxu1 %v8984_v25 }
 0x4a8   :  { %v3538_v32 = vmax.f32 %v2555_v42, 0.0  ;;  %v2558_v28 = vpop.f32.mrb[216].mxu1 }
 0x4a9   :  { %v9186_v12 = vpack.c.bf16 %v3537_v45, %v3521_v0  ;;  %v2560_v19 = vpop.f32.mrb[217].mxu1  ;;  %v2559_v16 = vadd.f32 %v2558_v28, %v7577_v30  ;;  %v4188_v45 = vmul.f32 0.5, %v3826_v40 }
 0x4aa   :  { %v9188_v14 = vpack.c.bf16 %v3538_v32, %v3522_v26  ;;  %5410 = vmatpush1.bf16.msra.mxu1 %v8977_v13  ;;  %v2561_v63 = vadd.f32 %v2560_v19, %v7577_v30 }
 0x4ab   :  { %5412 = vmatprep.subr.bf16.mxu1 %v9006_v55  ;;  %v3553_v13 = vmax.f32 %v2559_v16, 0.0 }
 0x4ac   :  { %v2564_v61 = vpop.f32.mrb[218].mxu1  ;;  %v3554_v32 = vmax.f32 %v2561_v63, 0.0 }
 0x4ad   :  { %v5640_v21 = vpop.eup %5639  ;;  %v2565_v25 = vadd.f32 %v2564_v61, %v9996_v60  ;;  %v2566_v56 = vpop.f32.mrb[219].mxu1 }
 0x4ae   :  { %v5642_v35 = vpop.eup %5641  ;;  %v2567_v42 = vadd.f32 %v2566_v56, %v9996_v60  ;;  %5414 = vmatpush1.bf16.msra.mxu1 %v8999_v46  ;;  %v4235_v0 = vadd.f32 1.0, %v5640_v21  ;;  %v10029_v46 = vld [vmem:[#allocation76_spill] sm:$0xff]  ;;  %v10031_v56 = vld [vmem:[#allocation71_spill] sm:$0xff] }
 0x4af   :  { %v3569_v26 = vmax.f32 %v2565_v25, 0.0  ;;  %5416 = vmatprep.subr.bf16.mxu1 %v9028_v9  ;;  %v4236_v55 = vadd.f32 1.0, %v5642_v35  ;;  %v10030_v9 = vld [vmem:[#allocation15_spill] sm:$0xff] }
 0x4b0   :  { %v3570_v28 = vmax.f32 %v2567_v42, 0.0  ;;  %v2570_v19 = vpop.f32.mrb[220].mxu1  ;;  %v4251_v30 = vmul.f32 %v4235_v0, %v4187_v62 }
 0x4b1   :  { %v9198_v37 = vpack.c.bf16 %v3569_v26, %v3553_v13  ;;  %v2572_v61 = vpop.f32.mrb[221].mxu1  ;;  %v4252_v48 = vmul.f32 %v4236_v55, %v4188_v45  ;;  %v2571_v40 = vadd.f32 %v2570_v19, %v7608_v8  ;;  %v10032_v55 = vld [vmem:[#allocation10_spill] sm:$0xff]  ;;  %v10033_v19 = vld [vmem:[#allocation9_spill] sm:$0xff] }
 0x4b2   :  { %v9200_v36 = vpack.c.bf16 %v3570_v28, %v3554_v32  ;;  %5418 = vmatpush1.bf16.msra.mxu1 %v9021_v6  ;;  %v9204_v21 = vmul.f32 %v4251_v30, %v10029_v46  ;;  %v2573_v63 = vadd.f32 %v2572_v61, %v7608_v8 }
 0x4b3   :  { %5420 = vmatprep.subr.bf16.mxu1 %v9053_v18  ;;  %v9209_v16 = vmul.f32 %v4252_v48, %v10030_v9  ;;  %v3585_v62 = vmax.f32 %v2571_v40, 0.0 }
 0x4b4   :  { %4289 = vadd.xlane.f32.xlu1 %v9204_v21  ;;  %v2576_v25 = vpop.f32.mrb[222].mxu1  ;;  %v3586_v48 = vmax.f32 %v2573_v63, 0.0 }
 0x4b5   :  { %v2577_v35 = vadd.f32 %v2576_v25, %v10031_v56  ;;  %4291 = vadd.xlane.f32.xlu0 %v9209_v16  ;;  %v2578_v6 = vpop.f32.mrb[223].mxu1 }
 0x4b6   :  { %v2579_v30 = vadd.f32 %v2578_v6, %v10031_v56  ;;  %5422 = vmatpush1.bf16.msra.mxu1 %v9047_v10 }
 0x4b7   :  { %v3601_v42 = vmax.f32 %v2577_v35, 0.0  ;;  %5424 = vmatprep.subr.bf16.mxu1 %v9067_v34 }
 0x4b8   :  { %v3602_v18 = vmax.f32 %v2579_v30, 0.0  ;;  %v2904_v0 = vpop.f32.mrb[224].mxu1  ;;  %v10034_v30 = vld [vmem:[#allocation11_spill] sm:$0xff] }
 0x4b9   :  { %v9218_v45 = vpack.c.bf16 %v3601_v42, %v3585_v62  ;;  %v2906_v13 = vpop.f32.mrb[225].mxu1  ;;  %v2905_v32 = vadd.f32 %v2904_v0, %v10032_v55 }
 0x4ba   :  { %v9220_v26 = vpack.c.bf16 %v3602_v18, %v3586_v48  ;;  %5426 = vmatpush1.bf16.msra.mxu1 %v9065_v58  ;;  %v2907_v10 = vadd.f32 %v2906_v13, %v10032_v55  ;;  %v10035_v48 = vld [vmem:[#allocation12_spill] sm:$0xff] }
 0x4bb   :  { %5428 = vmatprep.subr.bf16.mxu1 %v9084_v29  ;;  %v3109_v40 = vmax.f32 %v2905_v32, 0.0 }
 0x4bc   :  { %v2910_v28 = vpop.f32.mrb[226].mxu1  ;;  %v3110_v63 = vmax.f32 %v2907_v10, 0.0 }
 0x4bd   :  { %v2911_v61 = vadd.f32 %v2910_v28, %v10033_v19  ;;  %v2912_v34 = vpop.f32.mrb[227].mxu1 }
 0x4be   :  { %v2913_v46 = vadd.f32 %v2912_v34, %v10033_v19  ;;  %5430 = vmatpush1.bf16.msra.mxu1 %v9081_v11 }
 0x4bf   :  { %v3125_v9 = vmax.f32 %v2911_v61, 0.0  ;;  %5432 = vmatprep.subr.bf16.mxu1 %v9102_v2  ;;  %v10036_v61 = vld [vmem:[#allocation13_spill] sm:$0xff] }
 0x4c0   :  { %v3126_v58 = vmax.f32 %v2913_v46, 0.0  ;;  %v2916_v25 = vpop.f32.mrb[228].mxu1 }
 0x4c1   :  { %v9230_v35 = vpack.c.bf16 %v3125_v9, %v3109_v40  ;;  %v2918_v29 = vpop.f32.mrb[229].mxu1  ;;  %v2917_v62 = vadd.f32 %v2916_v25, %v10034_v30  ;;  %v10037_v40 = vld [vmem:[#allocation16_spill] sm:$0xff] }
 0x4c2   :  { %v9232_v6 = vpack.c.bf16 %v3126_v58, %v3110_v63  ;;  %5434 = vmatpush1.bf16.msra.mxu1 %v9100_v44  ;;  %v2919_v11 = vadd.f32 %v2918_v29, %v10034_v30 }
 0x4c3   :  { %5436 = vmatprep.subr.bf16.mxu1 %v9114_v51  ;;  %v3141_v13 = vmax.f32 %v2917_v62, 0.0 }
 0x4c4   :  { %v2922_v42 = vpop.f32.mrb[230].mxu1  ;;  %v3142_v32 = vmax.f32 %v2919_v11, 0.0 }
 0x4c5   :  { %v2923_v18 = vadd.f32 %v2922_v42, %v10035_v48  ;;  %v2924_v2 = vpop.f32.mrb[231].mxu1  ;;  %v10038_v42 = vld [vmem:[#allocation17_spill] sm:$0xff] }
 0x4c6   :  { %v2925_v0 = vadd.f32 %v2924_v2, %v10035_v48  ;;  %5438 = vmatpush1.bf16.msra.mxu1 %v9112_v57  ;;  %v10039_v2 = vld [vmem:[#allocation20_spill] sm:$0xff] }
 0x4c7   :  { %v3157_v55 = vmax.f32 %v2923_v18, 0.0  ;;  %5440 = vmatprep.subr.bf16.mxu1 %v9126_v53 }
 0x4c8   :  { %v3158_v44 = vmax.f32 %v2925_v0, 0.0  ;;  %v2928_v10 = vpop.f32.mrb[232].mxu1 }
 0x4c9   :  { %v9242_v28 = vpack.c.bf16 %v3157_v55, %v3141_v13  ;;  %v2930_v51 = vpop.f32.mrb[233].mxu1  ;;  %v2929_v34 = vadd.f32 %v2928_v10, %v10036_v61 }
 0x4ca   :  { %v9244_v19 = vpack.c.bf16 %v3158_v44, %v3142_v32  ;;  %5442 = vmatpush1.bf16.msra.mxu1 %v9124_v47  ;;  %v2931_v57 = vadd.f32 %v2930_v51, %v10036_v61 }
 0x4cb   :  { %5444 = vmatprep.subr.bf16.mxu1 %v9138_v22  ;;  %v3173_v58 = vmax.f32 %v2929_v34, 0.0  ;;  %v10040_v34 = vld [vmem:[#allocation23_spill] sm:$0xff] }
 0x4cc   :  { %v2934_v46 = vpop.f32.mrb[234].mxu1  ;;  %v3174_v29 = vmax.f32 %v2931_v57, 0.0 }
 0x4cd   :  { %v2935_v9 = vadd.f32 %v2934_v46, %v10037_v40  ;;  %v2936_v53 = vpop.f32.mrb[235].mxu1 }
 0x4ce   :  { %v2937_v63 = vadd.f32 %v2936_v53, %v10037_v40  ;;  %5446 = vmatpush1.bf16.msra.mxu1 %v9136_v38 }
 0x4cf   :  { %v3189_v25 = vmax.f32 %v2935_v9, 0.0  ;;  %5448 = vmatprep.subr.bf16.mxu1 %v9150_v52 }
 0x4d0   :  { %v3190_v47 = vmax.f32 %v2937_v63, 0.0  ;;  %v2940_v30 = vpop.f32.mrb[236].mxu1 }
 0x4d1   :  { %v9254_v62 = vpack.c.bf16 %v3189_v25, %v3173_v58  ;;  %v2942_v22 = vpop.f32.mrb[237].mxu1  ;;  %v2941_v48 = vadd.f32 %v2940_v30, %v10038_v42 }
 0x4d2   :  { %v9256_v11 = vpack.c.bf16 %v3190_v47, %v3174_v29  ;;  %5450 = vmatpush1.bf16.msra.mxu1 %v9148_v27  ;;  %v2943_v38 = vadd.f32 %v2942_v22, %v10038_v42 }
 0x4d3   :  { %5452 = vmatprep.subr.bf16.mxu1 %v9164_v4  ;;  %v3205_v55 = vmax.f32 %v2941_v48, 0.0 }
 0x4d4   :  { %v2946_v18 = vpop.f32.mrb[238].mxu1  ;;  %v3206_v44 = vmax.f32 %v2943_v38, 0.0 }
 0x4d5   :  { %v2947_v0 = vadd.f32 %v2946_v18, %v10039_v2  ;;  %v2948_v52 = vpop.f32.mrb[239].mxu1 }
 0x4d6   :  { %v2949_v13 = vadd.f32 %v2948_v52, %v10039_v2  ;;  %5454 = vmatpush1.bf16.msra.mxu1 %v9162_v31 }
 0x4d7   :  { %v3221_v32 = vmax.f32 %v2947_v0, 0.0  ;;  %5456 = vmatprep.subr.bf16.mxu1 %v9188_v14 }
 0x4d8   :  { %v3222_v27 = vmax.f32 %v2949_v13, 0.0  ;;  %v2952_v10 = vpop.f32.mrb[240].mxu1 }
 0x4d9   :  { %v9266_v51 = vpack.c.bf16 %v3221_v32, %v3205_v55  ;;  %v2954_v4 = vpop.f32.mrb[241].mxu1  ;;  %v2953_v57 = vadd.f32 %v2952_v10, %v10040_v34  ;;  %v10041_v10 = vld [vmem:[#allocation33_spill] sm:$0xff] }
 0x4da   :  { %v5543_v61 = vpack.c.bf16 %v3222_v27, %v3206_v44  ;;  %5458 = vmatpush1.bf16.msra.mxu1 %v9186_v12  ;;  %v2955_v46 = vadd.f32 %v2954_v4, %v10040_v34  ;;  %v10042_v34 = vld [vmem:[#allocation34_spill] sm:$0xff] }
 0x4db   :  { %5460 = vmatprep.subr.bf16.mxu1 %v9200_v36  ;;  %v3237_v63 = vmax.f32 %v2953_v57, 0.0 }
 0x4dc   :  { %v2958_v31 = vpop.f32.mrb[242].mxu1  ;;  %v3238_v29 = vmax.f32 %v2955_v46, 0.0 }
 0x4dd   :  { %v2959_v40 = vadd.f32 %v2958_v31, %v9942_v54  ;;  %v2960_v9 = vpop.f32.mrb[243].mxu1 }
 0x4de   :  { %v2961_v14 = vadd.f32 %v2960_v9, %v9942_v54  ;;  %v3965_v53 = vpop.f32.mrb[36].mxu0  ;;  %5462 = vmatpush1.bf16.msra.mxu1 %v9198_v37 }
 0x4df   :  { %v3253_v58 = vmax.f32 %v2959_v40, 0.0  ;;  %v3966_v25 = vadd.f32 %v3965_v53, %v9041_v15  ;;  %v3967_v12 = vpop.f32.mrb[37].mxu0  ;;  %5464 = vmatprep.subr.bf16.mxu1 %v9220_v26 }
 0x4e0   :  { %v3254_v36 = vmax.f32 %v2961_v14, 0.0  ;;  %v3968_v47 = vadd.f32 %v3967_v12, %v9041_v15  ;;  %v2964_v30 = vpop.f32.mrb[244].mxu1 }
 0x4e1   :  { %v9278_v22 = vpack.c.bf16 %v3253_v58, %v3237_v63  ;;  %v4207_v42 = vmul.f32 0.70710677, %v3966_v25  ;;  %v2966_v48 = vpop.f32.mrb[245].mxu1  ;;  %v2965_v37 = vadd.f32 %v2964_v30, %v9945_v39  ;;  %v4191_v31 = vmul.f32 0.5, %v3966_v25  ;;  %v10043_v25 = vld [vmem:[#allocation25_spill] sm:$0xff] }
 0x4e2   :  { %v5547_v54 = vpack.c.bf16 %v3254_v36, %v3238_v29  ;;  %v4208_v38 = vmul.f32 0.70710677, %v3968_v47  ;;  %5466 = vmatpush1.bf16.msra.mxu1 %v9218_v45  ;;  %v2967_v26 = vadd.f32 %v2966_v48, %v9945_v39  ;;  %v4192_v14 = vmul.f32 0.5, %v3968_v47  ;;  %v10044_v47 = vld [vmem:[#allocation32_spill] sm:$0xff] }
 0x4e3   :  { %5643 = verf.f32 %v4207_v42  ;;  %5532 = vmatprep.subr.bf16.mxu1 %v9232_v6  ;;  %v3269_v45 = vmax.f32 %v2965_v37, 0.0 }
 0x4e4   :  { %5645 = verf.f32 %v4208_v38  ;;  %v2970_v18 = vpop.f32.mrb[246].mxu1  ;;  %v3270_v6 = vmax.f32 %v2967_v26, 0.0 }
 0x4e5   :  { %v2971_v2 = vadd.f32 %v2970_v18, %v9946_v43  ;;  %4035 = vmatmul.mubr.f32.vlgmr.msra.gmra.mrb[36].mxu1 %v9174_v33  ;;  %v2972_v0 = vpop.f32.mrb[247].mxu1 }
 0x4e6   :  { %v2973_v52 = vadd.f32 %v2972_v0, %v9946_v43  ;;  %5534 = vmatpush1.bf16.msra.mxu1 %v9230_v35  ;;  %4176 = vmatprep.mubr.f32.mxu1 %v9182_v17 }
 0x4e7   :  { %v3285_v13 = vmax.f32 %v2971_v2, 0.0  ;;  %5536 = vmatprep.subr.bf16.mxu1 %v9244_v19 }
 0x4e8   :  { %v3286_v55 = vmax.f32 %v2973_v52, 0.0  ;;  %v2976_v32 = vpop.f32.mrb[248].mxu1 }
 0x4e9   :  { %v5553_v39 = vpack.c.bf16 %v3285_v13, %v3269_v45  ;;  %v2978_v44 = vpop.f32.mrb[249].mxu1  ;;  %v2977_v4 = vadd.f32 %v2976_v32, %v10041_v10 }
 0x4ea   :  { %v5551_v27 = vpack.c.bf16 %v3286_v55, %v3270_v6  ;;  %5538 = vmatpush1.bf16.msra.mxu1 %v9242_v28  ;;  %v2979_v43 = vadd.f32 %v2978_v44, %v10041_v10 }
 0x4eb   :  { %5540 = vmatprep.subr.bf16.mxu1 %v9256_v11  ;;  %v3301_v28 = vmax.f32 %v2977_v4, 0.0 }
 0x4ec   :  { %v2982_v35 = vpop.f32.mrb[250].mxu1  ;;  %v3302_v11 = vmax.f32 %v2979_v43, 0.0 }
 0x4ed   :  { %v5644_v17 = vpop.eup %5643  ;;  %v2983_v57 = vadd.f32 %v2982_v35, %v10042_v34  ;;  %v2984_v46 = vpop.f32.mrb[251].mxu1 }
 0x4ee   :  { %v5646_v19 = vpop.eup %5645  ;;  %v2985_v40 = vadd.f32 %v2984_v46, %v10042_v34  ;;  %5542 = vmatpush1.bf16.msra.mxu1 %v9254_v62  ;;  %v4239_v9 = vadd.f32 1.0, %v5644_v17 }
 0x4ef   :  { %v3317_v53 = vmax.f32 %v2983_v57, 0.0  ;;  %5544 = vmatprep.subr.bf16.mxu1 %v5543_v61  ;;  %v4240_v63 = vadd.f32 1.0, %v5646_v19 }
 0x4f0   :  { %v3318_v58 = vmax.f32 %v2985_v40, 0.0  ;;  %v2988_v12 = vpop.f32.mrb[252].mxu1  ;;  %v4255_v29 = vmul.f32 %v4239_v9, %v4191_v31 }
 0x4f1   :  { %v5557_v36 = vpack.c.bf16 %v3317_v53, %v3301_v28  ;;  %v2990_v30 = vpop.f32.mrb[253].mxu1  ;;  %v4256_v42 = vmul.f32 %v4240_v63, %v4192_v14  ;;  %v2989_v62 = vadd.f32 %v2988_v12, %v9960_v49 }
 0x4f2   :  { %v5555_v48 = vpack.c.bf16 %v3318_v58, %v3302_v11  ;;  %5546 = vmatpush1.bf16.msra.mxu1 %v9266_v51  ;;  %v9299_v38 = vmul.f32 %v4255_v29, %v10043_v25  ;;  %v2991_v61 = vadd.f32 %v2990_v30, %v9960_v49 }
 0x4f3   :  { %5548 = vmatprep.subr.bf16.mxu1 %v5547_v54  ;;  %v9303_v37 = vmul.f32 %v4256_v42, %v10044_v47  ;;  %v3333_v0 = vmax.f32 %v2989_v62, 0.0 }
 0x4f4   :  { %4297 = vadd.xlane.f32.xlu1 %v9299_v38  ;;  %v2994_v26 = vpop.f32.mrb[254].mxu1  ;;  %v3334_v54 = vmax.f32 %v2991_v61, 0.0 }
 0x4f5   :  { %v2995_v18 = vadd.f32 %v2994_v26, %v9962_v41  ;;  %4299 = vadd.xlane.f32.xlu0 %v9303_v37  ;;  %v2996_v2 = vpop.f32.mrb[255].mxu1 }
 0x4f6   :  { %v2997_v51 = vadd.f32 %v2996_v2, %v9962_v41  ;;  %5550 = vmatpush1.bf16.msra.mxu1 %v9278_v22 }
 0x4f7   :  { %v3349_v52 = vmax.f32 %v2995_v18, 0.0  ;;  %5552 = vmatprep.subr.bf16.mxu1 %v5551_v27 }
 0x4f8   :  { %v3350_v45 = vmax.f32 %v2997_v51, 0.0  ;;  %v3000_v13 = vpop.f32.mrb[0].mxu1 }
 0x4f9   :  { %v5561_v6 = vpack.c.bf16 %v3349_v52, %v3333_v0  ;;  %v3002_v49 = vpop.f32.mrb[1].mxu1  ;;  %v3001_v32 = vadd.f32 %v3000_v13, %v9968_v7 }
 0x4fa   :  { %v5559_v55 = vpack.c.bf16 %v3350_v45, %v3334_v54  ;;  %5554 = vmatpush1.bf16.msra.mxu1 %v5553_v39  ;;  %v3003_v44 = vadd.f32 %v3002_v49, %v9968_v7 }
 0x4fb   :  { %5556 = vmatprep.subr.bf16.mxu1 %v5555_v48  ;;  %v3365_v27 = vmax.f32 %v3001_v32, 0.0 }
 0x4fc   :  { %v3006_v10 = vpop.f32.mrb[2].mxu1  ;;  %v3366_v35 = vmax.f32 %v3003_v44, 0.0 }
 0x4fd   :  { %v3007_v41 = vadd.f32 %v3006_v10, %v9970_v59  ;;  %v3008_v4 = vpop.f32.mrb[3].mxu1 }
 0x4fe   :  { %v3009_v22 = vadd.f32 %v3008_v4, %v9970_v59  ;;  %5558 = vmatpush1.bf16.msra.mxu1 %v5557_v36 }
 0x4ff   :  { %v3381_v43 = vmax.f32 %v3007_v41, 0.0  ;;  %5560 = vmatprep.subr.bf16.mxu1 %v5559_v55 }
 0x500   :  { %v3382_v17 = vmax.f32 %v3009_v22, 0.0  ;;  %v3012_v34 = vpop.f32.mrb[4].mxu1 }
 0x501   :  { %v5565_v57 = vpack.c.bf16 %v3381_v43, %v3365_v27  ;;  %v3014_v39 = vpop.f32.mrb[5].mxu1  ;;  %v3013_v19 = vadd.f32 %v3012_v34, %v7392_v20  ;;  %v10045_v27 = vld [vmem:[#allocation59_spill] sm:$0xff] }
 0x502   :  { %v5563_v46 = vpack.c.bf16 %v3382_v17, %v3366_v35  ;;  %5562 = vmatpush1.bf16.msra.mxu1 %v5561_v6  ;;  %v3015_v7 = vadd.f32 %v3014_v39, %v7392_v20 }
 0x503   :  { %v3397_v14 = vmax.f32 %v3013_v19, 0.0 }
 0x504   :  { %v3018_v31 = vpop.f32.mrb[6].mxu1  ;;  %5564 = vmatprep.subr.bf16.mxu1 %v5563_v46  ;;  %v3398_v53 = vmax.f32 %v3015_v7, 0.0 }
 0x505   :  { %v3019_v40 = vadd.f32 %v3018_v31, %v9815_v3  ;;  %v3020_v59 = vpop.f32.mrb[7].mxu1 }
 0x506   :  { %v3021_v9 = vadd.f32 %v3020_v59, %v9815_v3  ;;  %5566 = vmatpush1.bf16.msra.mxu1 %v5565_v57 }
 0x507   :  { %v3413_v28 = vmax.f32 %v3019_v40, 0.0  ;;  %v10046_v40 = vld [vmem:[#allocation62_spill] sm:$0xff] }
 0x508   :  { %v3414_v63 = vmax.f32 %v3021_v9, 0.0  ;;  %v3024_v11 = vpop.f32.mrb[8].mxu1 }
 0x509   :  { %v5569_v58 = vpack.c.bf16 %v3413_v28, %v3397_v14  ;;  %v3026_v12 = vpop.f32.mrb[9].mxu1  ;;  %v3025_v36 = vadd.f32 %v3024_v11, %v7429_v24  ;;  %v10047_v14 = vld [vmem:[#allocation64_spill] sm:$0xff] }
 0x50a   :  { %v5567_v29 = vpack.c.bf16 %v3414_v63, %v3398_v53  ;;  %v3027_v20 = vadd.f32 %v3026_v12, %v7429_v24 }
 0x50b   :  { %v3429_v25 = vmax.f32 %v3025_v36, 0.0 }
 0x50c   :  { %v3030_v30 = vpop.f32.mrb[10].mxu1  ;;  %5568 = vmatprep.subr.bf16.mxu1 %v5567_v29  ;;  %v3430_v47 = vmax.f32 %v3027_v20, 0.0 }
 0x50d   :  { %v3031_v42 = vadd.f32 %v3030_v30, %v7437_v5  ;;  %v3032_v48 = vpop.f32.mrb[11].mxu1  ;;  %5570 = vmatpush1.bf16.msra.mxu1 %v5569_v58 }
 0x50e   :  { %v3033_v3 = vadd.f32 %v3032_v48, %v7437_v5  ;;  %v10048_v48 = vld [vmem:[#allocation66_spill] sm:$0xff] }
 0x50f   :  { %v3445_v62 = vmax.f32 %v3031_v42, 0.0 }
 0x510   :  { %v3446_v61 = vmax.f32 %v3033_v3, 0.0  ;;  %v3036_v26 = vpop.f32.mrb[12].mxu1 }
 0x511   :  { %v5573_v18 = vpack.c.bf16 %v3445_v62, %v3429_v25  ;;  %v3038_v2 = vpop.f32.mrb[13].mxu1  ;;  %v3037_v0 = vadd.f32 %v3036_v26, %v7463_v23 }
 0x512   :  { %v5571_v51 = vpack.c.bf16 %v3446_v61, %v3430_v47  ;;  %v3039_v24 = vadd.f32 %v3038_v2, %v7463_v23 }
 0x513   :  { %v3461_v13 = vmax.f32 %v3037_v0, 0.0 }
 0x514   :  { %v3042_v52 = vpop.f32.mrb[14].mxu1  ;;  %5572 = vmatprep.subr.bf16.mxu1 %v5571_v51  ;;  %v3462_v49 = vmax.f32 %v3039_v24, 0.0 }
 0x515   :  { %v3043_v54 = vadd.f32 %v3042_v52, %v7474_v1  ;;  %v3044_v45 = vpop.f32.mrb[15].mxu1  ;;  %5574 = vmatpush1.bf16.msra.mxu1 %v5573_v18 }
 0x516   :  { %v3045_v5 = vadd.f32 %v3044_v45, %v7474_v1 }
 0x517   :  { %v3477_v6 = vmax.f32 %v3043_v54, 0.0 }
 0x518   :  { %v3478_v55 = vmax.f32 %v3045_v5, 0.0  ;;  %v3048_v32 = vpop.f32.mrb[16].mxu1 }
 0x519   :  { %v5577_v44 = vpack.c.bf16 %v3477_v6, %v3461_v13  ;;  %v3050_v10 = vpop.f32.mrb[17].mxu1  ;;  %v3049_v4 = vadd.f32 %v3048_v32, %v7501_v50 }
 0x51a   :  { %v5575_v41 = vpack.c.bf16 %v3478_v55, %v3462_v49  ;;  %v3051_v23 = vadd.f32 %v3050_v10, %v7501_v50 }
 0x51b   :  { %v3493_v17 = vmax.f32 %v3049_v4, 0.0 }
 0x51c   :  { %v3054_v22 = vpop.f32.mrb[18].mxu1  ;;  %5576 = vmatprep.subr.bf16.mxu1 %v5575_v41  ;;  %v3494_v57 = vmax.f32 %v3051_v23, 0.0 }
 0x51d   :  { %v3055_v43 = vadd.f32 %v3054_v22, %v10045_v27  ;;  %v3056_v35 = vpop.f32.mrb[19].mxu1  ;;  %5578 = vmatpush1.bf16.msra.mxu1 %v5577_v44 }
 0x51e   :  { %v3057_v1 = vadd.f32 %v3056_v35, %v10045_v27 }
 0x51f   :  { %v3509_v34 = vmax.f32 %v3055_v43, 0.0 }
 0x520   :  { %v3510_v39 = vmax.f32 %v3057_v1, 0.0  ;;  %v3060_v46 = vpop.f32.mrb[20].mxu1 }
 0x521   :  { %v5581_v19 = vpack.c.bf16 %v3509_v34, %v3493_v17  ;;  %v3062_v7 = vpop.f32.mrb[21].mxu1  ;;  %v3061_v59 = vadd.f32 %v3060_v46, %v10046_v40 }
 0x522   :  { %v5579_v31 = vpack.c.bf16 %v3510_v39, %v3494_v57  ;;  %v3063_v50 = vadd.f32 %v3062_v7, %v10046_v40 }
 0x523   :  { %v3525_v11 = vmax.f32 %v3061_v59, 0.0 }
 0x524   :  { %v3066_v9 = vpop.f32.mrb[22].mxu1  ;;  %5580 = vmatprep.subr.bf16.mxu1 %v5579_v31  ;;  %v3526_v12 = vmax.f32 %v3063_v50, 0.0 }
 0x525   :  { %v3067_v28 = vadd.f32 %v3066_v9, %v10047_v14  ;;  %v3068_v53 = vpop.f32.mrb[23].mxu1  ;;  %5582 = vmatpush1.bf16.msra.mxu1 %v5581_v19 }
 0x526   :  { %v3069_v63 = vadd.f32 %v3068_v53, %v10047_v14 }
 0x527   :  { %v3541_v58 = vmax.f32 %v3067_v28, 0.0 }
 0x528   :  { %v3542_v29 = vmax.f32 %v3069_v63, 0.0  ;;  %v3072_v36 = vpop.f32.mrb[24].mxu1 }
 0x529   :  { %v5585_v20 = vpack.c.bf16 %v3541_v58, %v3525_v11  ;;  %v3074_v30 = vpop.f32.mrb[25].mxu1  ;;  %v3073_v3 = vadd.f32 %v3072_v36, %v10048_v48 }
 0x52a   :  { %v5583_v42 = vpack.c.bf16 %v3542_v29, %v3526_v12  ;;  %v3075_v25 = vadd.f32 %v3074_v30, %v10048_v48  ;;  %v10049_v29 = vld [vmem:[#allocation74_spill] sm:$0xff]  ;;  %v10050_v30 = vld [vmem:[#allocation75_spill] sm:$0xff]  ;;  %v10051_v48 = vld [vmem:[#allocation44_spill] sm:$0xff] }
 0x52b   :  { %v3557_v18 = vmax.f32 %v3073_v3, 0.0 }
 0x52c   :  { %v3078_v62 = vpop.f32.mrb[26].mxu1  ;;  %5584 = vmatprep.subr.bf16.mxu1 %v5583_v42  ;;  %v3558_v51 = vmax.f32 %v3075_v25, 0.0  ;;  %v10052_v25 = vld [vmem:[#allocation29_spill] sm:$0xff] }
 0x52d   :  { %v3079_v47 = vadd.f32 %v3078_v62, %v9996_v60  ;;  %v3080_v61 = vpop.f32.mrb[27].mxu1  ;;  %5586 = vmatpush1.bf16.msra.mxu1 %v5585_v20 }
 0x52e   :  { %v3081_v26 = vadd.f32 %v3080_v61, %v9996_v60 }
 0x52f   :  { %v3573_v2 = vmax.f32 %v3079_v47, 0.0 }
 0x530   :  { %v3574_v0 = vmax.f32 %v3081_v26, 0.0  ;;  %v3084_v24 = vpop.f32.mrb[28].mxu1 }
 0x531   :  { %v5589_v52 = vpack.c.bf16 %v3573_v2, %v3557_v18  ;;  %v3086_v54 = vpop.f32.mrb[29].mxu1  ;;  %v3085_v5 = vadd.f32 %v3084_v24, %v7608_v8 }
 0x532   :  { %v5587_v45 = vpack.c.bf16 %v3574_v0, %v3558_v51  ;;  %v3087_v13 = vadd.f32 %v3086_v54, %v7608_v8 }
 0x533   :  { %v3589_v32 = vmax.f32 %v3085_v5, 0.0 }
 0x534   :  { %v3090_v6 = vpop.f32.mrb[30].mxu1  ;;  %5588 = vmatprep.subr.bf16.mxu1 %v5587_v45  ;;  %v3590_v10 = vmax.f32 %v3087_v13, 0.0 }
 0x535   :  { %v3091_v49 = vadd.f32 %v3090_v6, %v10031_v56  ;;  %v3092_v55 = vpop.f32.mrb[31].mxu1  ;;  %5590 = vmatpush1.bf16.msra.mxu1 %v5589_v52 }
 0x536   :  { %v3093_v60 = vadd.f32 %v3092_v55, %v10031_v56 }
 0x537   :  { %v3605_v44 = vmax.f32 %v3091_v49, 0.0  ;;  %v10053_v49 = vld [vmem:[#allocation18_spill] sm:$0xff] }
 0x538   :  { %v3606_v41 = vmax.f32 %v3093_v60, 0.0  ;;  %v3752_v4 = vpop.f32.mrb[32].mxu1  ;;  %v10054_v60 = vld [vmem:[#allocation22_spill] sm:$0xff] }
 0x539   :  { %v5593_v23 = vpack.c.bf16 %v3605_v44, %v3589_v32  ;;  %v3753_v22 = vadd.f32 %v3752_v4, %v9041_v15  ;;  %v3754_v27 = vpop.f32.mrb[33].mxu1  ;;  %v4107_v43 = vpop.f32.mrb[38].mxu0 }
 0x53a   :  { %v5591_v35 = vpack.c.bf16 %v3606_v41, %v3590_v10  ;;  %v3755_v8 = vadd.f32 %v3754_v27, %v9041_v15  ;;  %v4108_v1 = vadd.f32 %v4107_v43, %v9041_v15  ;;  %v4109_v17 = vpop.f32.mrb[39].mxu0 }
 0x53b   :  { %v4201_v34 = vmul.f32 0.70710677, %v3753_v22  ;;  %v4110_v57 = vadd.f32 %v4109_v17, %v9041_v15  ;;  %v4185_v31 = vmul.f32 0.5, %v3753_v22 }
 0x53c   :  { %v4202_v56 = vmul.f32 0.70710677, %v3755_v8  ;;  %v4211_v39 = vmul.f32 0.70710677, %v4108_v1  ;;  %5592 = vmatprep.subr.bf16.mxu1 %v5591_v35  ;;  %v4186_v50 = vmul.f32 0.5, %v3755_v8  ;;  %v4195_v28 = vmul.f32 0.5, %v4108_v1 }
 0x53d   :  { %5647 = verf.f32 %v4201_v34  ;;  %v4212_v46 = vmul.f32 0.70710677, %v4110_v57  ;;  %5594 = vmatpush1.bf16.msra.mxu1 %v5593_v23  ;;  %v4196_v11 = vmul.f32 0.5, %v4110_v57 }
 0x53e   :  { %5649 = verf.f32 %v4202_v56  ;;  %v10055_v56 = vld [vmem:[#allocation36_spill] sm:$0xff] }
 0x53f   :  { %5651 = verf.f32 %v4211_v39 }
 0x540   :  { %5653 = verf.f32 %v4212_v46  ;;  %4177 = vmatmul.mubr.f32.vlgmr.msra.gmra.mrb[38].mxu1 %v9174_v33  ;;  %v10056_v46 = vld [vmem:[#allocation42_spill] sm:$0xff] }
 0x547   :  { %v5648_v19 = vpop.eup %5647 }
 0x548   :  { %v5650_v7 = vpop.eup %5649  ;;  %v4233_v40 = vadd.f32 1.0, %v5648_v19 }
 0x549   :  { %v5652_v59 = vpop.eup %5651  ;;  %v4234_v9 = vadd.f32 1.0, %v5650_v7  ;;  %v4282_v7 = vpop.xlane.xlu0 %4281 }
 0x54a   :  { %v5654_v14 = vpop.eup %5653  ;;  %v4249_v53 = vmul.f32 %v4233_v40, %v4185_v31  ;;  %v4243_v63 = vadd.f32 1.0, %v5652_v59 }
 0x54b   :  { %v4250_v58 = vmul.f32 %v4234_v9, %v4186_v50  ;;  %v4244_v12 = vadd.f32 1.0, %v5654_v14 }
 0x54c   :  { %v9349_v36 = vmul.f32 %v4249_v53, %v10049_v29  ;;  %v4259_v20 = vmul.f32 %v4243_v63, %v4195_v28  ;;  %v4284_v63 = vpop.xlane.xlu1 %4283 }
 0x54d   :  { %v9352_v33 = vmul.f32 %v4250_v58, %v10050_v30  ;;  %v4260_v42 = vmul.f32 %v4244_v12, %v4196_v11  ;;  %v4292_v50 = vpop.xlane.xlu0 %4291 }
 0x54e   :  { %4285 = vadd.xlane.f32.xlu0 %v9349_v36  ;;  %v9356_v3 = vmul.f32 %v4259_v20, %v10051_v48  ;;  %v4313_v20 = vmul.f32 0.0078125, %v4282_v7 }
 0x54f   :  { %v9359_v62 = vmul.f32 %v4260_v42, %v10052_v25  ;;  %v4314_v25 = vmul.f32 0.0078125, %v4284_v63 }
 0x550   :  { %4305 = vadd.xlane.f32.xlu1 %v9356_v3  ;;  %v4290_v58 = vpop.xlane.xlu1 %4289 }
 0x552   :  { %4287 = vadd.xlane.f32.xlu0 %v9352_v33 }
 0x556   :  { %4307 = vadd.xlane.f32.xlu0 %v9359_v62 }
 0x578   :  { %v3894_v47 = vpop.f32.mrb[34].mxu1 }
 0x579   :  { %v3895_v61 = vadd.f32 %v3894_v47, %v9041_v15  ;;  %v3896_v26 = vpop.f32.mrb[35].mxu1 }
 0x57a   :  { %v3897_v18 = vadd.f32 %v3896_v26, %v9041_v15 }
 0x57b   :  { %v4205_v2 = vmul.f32 0.70710677, %v3895_v61  ;;  %v4189_v52 = vmul.f32 0.5, %v3895_v61 }
 0x57c   :  { %v4206_v51 = vmul.f32 0.70710677, %v3897_v18  ;;  %v4190_v45 = vmul.f32 0.5, %v3897_v18 }
 0x57d   :  { %5655 = verf.f32 %v4205_v2  ;;  %v10057_v2 = vld [vmem:[#allocation97_spill] sm:$0xff] }
 0x57e   :  { %5657 = verf.f32 %v4206_v51  ;;  %v9387_v51 = vsub.f32 %v10057_v2, %v4313_v20 }
 0x581   :  { %v4298_v47 = vpop.xlane.xlu1 %4297 }
 0x582   :  { %v4300_v53 = vpop.xlane.xlu0 %4299 }
 0x587   :  { %v5656_v0 = vpop.eup %5655 }
 0x588   :  { %v5658_v24 = vpop.eup %5657  ;;  %v4237_v54 = vadd.f32 1.0, %v5656_v0 }
 0x589   :  { %v4238_v5 = vadd.f32 1.0, %v5658_v24  ;;  %v10058_v24 = vld [vmem:[#allocation50_spill] sm:$0xff] }
 0x58a   :  { %v4253_v13 = vmul.f32 %v4237_v54, %v4189_v52  ;;  %v10059_v54 = vld [vmem:[#allocation100_spill] sm:$0xff] }
 0x58b   :  { %v4254_v6 = vmul.f32 %v4238_v5, %v4190_v45  ;;  %v9393_v45 = vsub.f32 %v10059_v54, %v4314_v25 }
 0x58c   :  { %v9367_v55 = vmul.f32 %v4253_v13, %v10053_v49 }
 0x58d   :  { %v9370_v32 = vmul.f32 %v4254_v6, %v10054_v60  ;;  %v10060_v6 = vld [vmem:[#allocation49_spill] sm:$0xff] }
 0x58e   :  { %4293 = vadd.xlane.f32.xlu1 %v9367_v55 }
 0x58f   :  { %4295 = vadd.xlane.f32.xlu0 %v9370_v32 }
 0x5b8   :  { %v4036_v44 = vpop.f32.mrb[36].mxu1 }
 0x5b9   :  { %v4037_v10 = vadd.f32 %v4036_v44, %v9041_v15  ;;  %v4038_v41 = vpop.f32.mrb[37].mxu1  ;;  %v4317_v44 = vmul.f32 0.0078125, %v4290_v58 }
 0x5ba   :  { %v4039_v4 = vadd.f32 %v4038_v41, %v9041_v15  ;;  %v4345_v41 = vmul.f32 %v9387_v51, %v9387_v51 }
 0x5bb   :  { %v4209_v23 = vmul.f32 0.70710677, %v4037_v10  ;;  %v4193_v35 = vmul.f32 0.5, %v4037_v10 }
 0x5bc   :  { %v4210_v22 = vmul.f32 0.70710677, %v4039_v4  ;;  %v4194_v1 = vmul.f32 0.5, %v4039_v4  ;;  %v4318_v4 = vmul.f32 0.0078125, %v4292_v50 }
 0x5bd   :  { %5659 = verf.f32 %v4209_v23 }
 0x5be   :  { %5661 = verf.f32 %v4210_v22 }
 0x5c7   :  { %v5660_v27 = vpop.eup %5659 }
 0x5c8   :  { %v5662_v43 = vpop.eup %5661  ;;  %v4241_v8 = vadd.f32 1.0, %v5660_v27  ;;  %v4346_v27 = vmul.f32 %v9393_v45, %v9393_v45 }
 0x5c9   :  { %v4242_v17 = vadd.f32 1.0, %v5662_v43 }
 0x5ca   :  { %v4257_v34 = vmul.f32 %v4241_v8, %v4193_v35  ;;  %v9411_v35 = vsub.f32 %v9204_v21, %v4317_v44 }
 0x5cb   :  { %v4258_v57 = vmul.f32 %v4242_v17, %v4194_v1  ;;  %v9416_v1 = vsub.f32 %v9209_v16, %v4318_v4 }
 0x5cc   :  { %v9377_v39 = vmul.f32 %v4257_v34, %v10055_v56  ;;  %v4321_v34 = vmul.f32 0.0078125, %v4298_v47  ;;  %v4349_v21 = vmul.f32 %v9411_v35, %v9411_v35  ;;  %v4322_v56 = vmul.f32 0.0078125, %v4300_v53 }
 0x5cd   :  { %v9380_v19 = vmul.f32 %v4258_v57, %v10056_v46  ;;  %v4350_v16 = vmul.f32 %v9416_v1, %v9416_v1 }
 0x5ce   :  { %4301 = vadd.xlane.f32.xlu1 %v9377_v39  ;;  %v9431_v7 = vsub.f32 %v9299_v38, %v4321_v34 }
 0x5cf   :  { %4303 = vadd.xlane.f32.xlu0 %v9380_v19 }
 0x5d0   :  { %v4353_v38 = vmul.f32 %v9431_v7, %v9431_v7 }
 0x5db   :  { %v4286_v11 = vpop.xlane.xlu0 %4285 }
 0x5dc   :  { %v4315_v0 = vmul.f32 0.0078125, %v4286_v11 }
 0x5dd   :  { %v4306_v5 = vpop.xlane.xlu1 %4305 }
 0x5de   :  { %v9401_v10 = vsub.f32 %v9349_v36, %v4315_v0 }
 0x5df   :  { %v4288_v30 = vpop.xlane.xlu0 %4287 }
 0x5e0   :  { %v4316_v13 = vmul.f32 0.0078125, %v4288_v30  ;;  %v4347_v36 = vmul.f32 %v9401_v10, %v9401_v10 }
 0x5e2   :  { %v9406_v23 = vsub.f32 %v9352_v33, %v4316_v13 }
 0x5e3   :  { %v4308_v60 = vpop.xlane.xlu0 %4307 }
 0x5e4   :  { %v4348_v33 = vmul.f32 %v9406_v23, %v9406_v23 }
 0x613   :  { %v4178_v31 = vpop.f32.mrb[38].mxu1 }
 0x614   :  { %v4179_v40 = vadd.f32 %v4178_v31, %v9041_v15  ;;  %v4180_v59 = vpop.f32.mrb[39].mxu1  ;;  %v4325_v31 = vmul.f32 0.0078125, %v4306_v5 }
 0x615   :  { %v4181_v9 = vadd.f32 %v4180_v59, %v9041_v15  ;;  %v4326_v59 = vmul.f32 0.0078125, %v4308_v60 }
 0x616   :  { %v4213_v14 = vmul.f32 0.70710677, %v4179_v40  ;;  %v4197_v42 = vmul.f32 0.5, %v4179_v40  ;;  %v9436_v40 = vsub.f32 %v9303_v37, %v4322_v56  ;;  %v9441_v50 = vsub.f32 %v9356_v3, %v4325_v31 }
 0x617   :  { %v4214_v28 = vmul.f32 0.70710677, %v4181_v9  ;;  %v4198_v61 = vmul.f32 0.5, %v4181_v9  ;;  %v9446_v9 = vsub.f32 %v9359_v62, %v4326_v59 }
 0x618   :  { %5663 = verf.f32 %v4213_v14  ;;  %v4354_v14 = vmul.f32 %v9436_v40, %v9436_v40  ;;  %v4357_v37 = vmul.f32 %v9441_v50, %v9441_v50 }
 0x619   :  { %5665 = verf.f32 %v4214_v28  ;;  %v4358_v28 = vmul.f32 %v9446_v9, %v9446_v9 }
 0x61b   :  { %v4294_v22 = vpop.xlane.xlu1 %4293 }
 0x61c   :  { %v4296_v43 = vpop.xlane.xlu0 %4295  ;;  %v4319_v8 = vmul.f32 0.0078125, %v4294_v22 }
 0x61d   :  { %v4320_v17 = vmul.f32 0.0078125, %v4296_v43 }
 0x61e   :  { %v9421_v57 = vsub.f32 %v9367_v55, %v4319_v8 }
 0x61f   :  { %v9426_v46 = vsub.f32 %v9370_v32, %v4320_v17 }
 0x620   :  { %v4351_v55 = vmul.f32 %v9421_v57, %v9421_v57 }
 0x621   :  { %v4352_v32 = vmul.f32 %v9426_v46, %v9426_v46 }
 0x622   :  { %v5664_v12 = vpop.eup %5663 }
 0x623   :  { %v5666_v29 = vpop.eup %5665  ;;  %v4245_v48 = vadd.f32 1.0, %v5664_v12 }
 0x624   :  { %v4246_v26 = vadd.f32 1.0, %v5666_v29 }
 0x625   :  { %v4261_v18 = vmul.f32 %v4245_v48, %v4197_v42 }
 0x626   :  { %v4262_v15 = vmul.f32 %v4246_v26, %v4198_v61 }
 0x627   :  { %v9390_v52 = vmul.f32 %v4261_v18, %v10058_v24 }
 0x628   :  { %v9396_v49 = vmul.f32 %v4262_v15, %v10060_v6 }
 0x629   :  { %4309 = vadd.xlane.f32.xlu1 %v9390_v52 }
 0x62a   :  { %4311 = vadd.xlane.f32.xlu0 %v9396_v49 }
 0x62d   :  { %4361 = vadd.xlane.f32.xlu1 %v4345_v41 }
 0x62e   :  { %4363 = vadd.xlane.f32.xlu0 %v4346_v27 }
 0x631   :  { %4365 = vadd.xlane.f32.xlu1 %v4347_v36 }
 0x632   :  { %4367 = vadd.xlane.f32.xlu0 %v4348_v33  ;;  %v9477_v33 = vld [vmem:[%s9598_s3] ss:$0 sm:$0xff]  ;;  %s5936_s3 = smov [#allocation5]  }
 0x635   :  { %4369 = vadd.xlane.f32.xlu1 %v4349_v21 }
 0x636   :  { %4371 = vadd.xlane.f32.xlu0 %v4350_v16 }
 0x639   :  { %4373 = vadd.xlane.f32.xlu1 %v4351_v55  ;;  %v9483_v55 = vld [vmem:[%s9599_s4] ss:$0 sm:$0xff]  ;;  %s4650_s4 = sshll.u32 %s5936_s3, 4  ;;  %s4651_s4 = int_to_ptr.vmem [resolvable:$true] %s4650_s4 }
 0x63a   :  { %4375 = vadd.xlane.f32.xlu0 %v4352_v32  ;;  %s5905_s20 = scalar_lea.vmem %s4651_s4, 2048  ;;  %p5910_p9 = scmp.lt.s32.totalorder %s4651_s4, %s4651_s4 }
 0x63b   :  { %p5906_p8 = scmp.ne.s32.totalorder %s4651_s4, %s5905_s20  ;;  %p5911_p10 = scmp.lt.s32.totalorder %s5905_s20, %s5905_s20 }
 0x63d   :  { %4377 = vadd.xlane.f32.xlu1 %v4353_v38  ;;  %p5912_p11 = por %p5911_p10, %p5910_p9 }
 0x63e   :  { %4379 = vadd.xlane.f32.xlu0 %v4354_v14 }
 0x63f   :  { %p5913_p12 = pnand %p5912_p11, %p5906_p8 }
 0x641   :  { %4385 = vadd.xlane.f32.xlu1 %v4357_v37 }
 0x642   :  { %4387 = vadd.xlane.f32.xlu0 %v4358_v28 }
 0x65b   :  { %v4302_v3 = vpop.xlane.xlu1 %4301 }
 0x65c   :  { %v4323_v53 = vmul.f32 0.0078125, %v4302_v3  ;;  %v4304_v63 = vpop.xlane.xlu0 %4303 }
 0x65d   :  { %v4324_v11 = vmul.f32 0.0078125, %v4304_v63 }
 0x65e   :  { %v9455_v62 = vsub.f32 %v9377_v39, %v4323_v53 }
 0x65f   :  { %v9458_v58 = vsub.f32 %v9380_v19, %v4324_v11 }
 0x660   :  { %v4355_v12 = vmul.f32 %v9455_v62, %v9455_v62 }
 0x661   :  { %v4356_v29 = vmul.f32 %v9458_v58, %v9458_v58 }
 0x662   :  { %4381 = vadd.xlane.f32.xlu1 %v4355_v12 }
 0x663   :  { %4383 = vadd.xlane.f32.xlu0 %v4356_v29 }
 0x6b6   :  { %v4310_v20 = vpop.xlane.xlu1 %4309 }
 0x6b7   :  { %v4327_v30 = vmul.f32 0.0078125, %v4310_v20  ;;  %v4312_v42 = vpop.xlane.xlu0 %4311 }
 0x6b8   :  { %v4328_v48 = vmul.f32 0.0078125, %v4312_v42 }
 0x6b9   :  { %v9465_v25 = vsub.f32 %v9390_v52, %v4327_v30 }
 0x6ba   :  { %v9468_v39 = vsub.f32 %v9396_v49, %v4328_v48  ;;  %v4362_v19 = vpop.xlane.xlu1 %4361 }
 0x6bb   :  { %v4393_v47 = vmul.f32 0.0078125, %v4362_v19  ;;  %v4364_v61 = vpop.xlane.xlu0 %4363  ;;  %v4359_v26 = vmul.f32 %v9465_v25, %v9465_v25 }
 0x6bc   :  { %v4394_v18 = vmul.f32 0.0078125, %v4364_v61  ;;  %v4360_v15 = vmul.f32 %v9468_v39, %v9468_v39 }
 0x6bd   :  { %v4409_v2 = vadd.f32 1e-05, %v4393_v47  ;;  %4389 = vadd.xlane.f32.xlu1 %v4359_v26 }
 0x6be   :  { %v4410_v0 = vadd.f32 1e-05, %v4394_v18  ;;  %v4366_v24 = vpop.xlane.xlu1 %4365  ;;  %4391 = vadd.xlane.f32.xlu0 %v4360_v15 }
 0x6bf   :  { %5667 = vrsqrt.f32 %v4409_v2  ;;  %v4395_v52 = vmul.f32 0.0078125, %v4366_v24  ;;  %v4368_v54 = vpop.xlane.xlu0 %4367 }
 0x6c0   :  { %5669 = vrsqrt.f32 %v4410_v0  ;;  %v4396_v5 = vmul.f32 0.0078125, %v4368_v54 }
 0x6c1   :  { %v4411_v13 = vadd.f32 1e-05, %v4395_v52 }
 0x6c2   :  { %v4412_v6 = vadd.f32 1e-05, %v4396_v5  ;;  %v4370_v49 = vpop.xlane.xlu1 %4369 }
 0x6c3   :  { %5671 = vrsqrt.f32 %v4411_v13  ;;  %v4397_v60 = vmul.f32 0.0078125, %v4370_v49  ;;  %v4372_v44 = vpop.xlane.xlu0 %4371 }
 0x6c4   :  { %5673 = vrsqrt.f32 %v4412_v6  ;;  %v4398_v41 = vmul.f32 0.0078125, %v4372_v44 }
 0x6c5   :  { %v4413_v4 = vadd.f32 1e-05, %v4397_v60 }
 0x6c6   :  { %v4414_v22 = vadd.f32 1e-05, %v4398_v41  ;;  %v4374_v27 = vpop.xlane.xlu1 %4373 }
 0x6c7   :  { %5675 = vrsqrt.f32 %v4413_v4  ;;  %v4399_v43 = vmul.f32 0.0078125, %v4374_v27  ;;  %v4376_v8 = vpop.xlane.xlu0 %4375 }
 0x6c8   :  { %5677 = vrsqrt.f32 %v4414_v22  ;;  %v4400_v36 = vmul.f32 0.0078125, %v4376_v8 }
 0x6c9   :  { %v5668_v17 = vpop.eup %5667  ;;  %v4415_v34 = vadd.f32 1e-05, %v4399_v43 }
 0x6ca   :  { %v5670_v21 = vpop.eup %5669  ;;  %v4441_v56 = vmul.f32 %v5668_v17, %v9387_v51  ;;  %v4416_v16 = vadd.f32 1e-05, %v4400_v36  ;;  %v4378_v31 = vpop.xlane.xlu1 %4377 }
 0x6cb   :  { %v4442_v59 = vmul.f32 %v5670_v21, %v9393_v45  ;;  %5679 = vrsqrt.f32 %v4415_v34  ;;  %v4401_v32 = vmul.f32 0.0078125, %v4378_v31  ;;  %v4380_v38 = vpop.xlane.xlu0 %4379 }
 0x6cc   :  { %v4463_v14 = vmul.f32 %v9477_v33, %v4441_v56  ;;  %5681 = vrsqrt.f32 %v4416_v16  ;;  %v4402_v37 = vmul.f32 0.0078125, %v4380_v38 }
 0x6cd   :  { %v5672_v28 = vpop.eup %5671  ;;  %v4464_v3 = vmul.f32 %v9477_v33, %v4442_v59  ;;  %v4417_v51 = vadd.f32 1e-05, %v4401_v32 }
 0x6ce   :  { %v5674_v53 = vpop.eup %5673  ;;  %v9489_v63 = vadd.f32 %v9483_v55, %v4463_v14  ;;  %v4443_v11 = vmul.f32 %v5672_v28, %v9401_v10  ;;  %v4418_v12 = vadd.f32 1e-05, %v4402_v37  ;;  %v4386_v29 = vpop.xlane.xlu1 %4385 }
 0x6cf   :  { %v9493_v45 = vadd.f32 %v9483_v55, %v4464_v3  ;;  %v4444_v20 = vmul.f32 %v5674_v53, %v9406_v23  ;;  %5683 = vrsqrt.f32 %v4417_v51  ;;  %v4405_v30 = vmul.f32 0.0078125, %v4386_v29  ;;  %v4388_v42 = vpop.xlane.xlu0 %4387 }
 0x6d0   :  { %v4923_v48 = vmul.f32 -1.442695, %v9489_v63  ;;  %v4465_v19 = vmul.f32 %v9477_v33, %v4443_v11  ;;  %5685 = vrsqrt.f32 %v4418_v12  ;;  %v4406_v47 = vmul.f32 0.0078125, %v4388_v42 }
 0x6d1   :  { %v5676_v61 = vpop.eup %5675  ;;  %v4924_v26 = vmul.f32 -1.442695, %v9493_v45  ;;  %v4466_v10 = vmul.f32 %v9477_v33, %v4444_v20  ;;  %v4421_v18 = vadd.f32 1e-05, %v4405_v30 }
 0x6d2   :  { %v5678_v15 = vpop.eup %5677  ;;  %5687 = vpow2.f32 %v4923_v48  ;;  %v9501_v2 = vadd.f32 %v9483_v55, %v4465_v19  ;;  %v4445_v23 = vmul.f32 %v5676_v61, %v9411_v35  ;;  %v4422_v0 = vadd.f32 1e-05, %v4406_v47 }
 0x6d3   :  { %5689 = vpow2.f32 %v4924_v26  ;;  %v9505_v24 = vadd.f32 %v9483_v55, %v4466_v10  ;;  %v4446_v52 = vmul.f32 %v5678_v15, %v9416_v1 }
 0x6d4   :  { %v4925_v54 = vmul.f32 -1.442695, %v9501_v2  ;;  %v4467_v5 = vmul.f32 %v9477_v33, %v4445_v23  ;;  %5691 = vrsqrt.f32 %v4421_v18 }
 0x6d5   :  { %v5680_v13 = vpop.eup %5679  ;;  %v4926_v6 = vmul.f32 -1.442695, %v9505_v24  ;;  %v4468_v49 = vmul.f32 %v9477_v33, %v4446_v52  ;;  %5693 = vrsqrt.f32 %v4422_v0 }
 0x6d6   :  { %v5682_v60 = vpop.eup %5681  ;;  %5695 = vpow2.f32 %v4925_v54  ;;  %v9513_v35 = vadd.f32 %v9483_v55, %v4467_v5  ;;  %v4447_v44 = vmul.f32 %v5680_v13, %v9421_v57 }
 0x6d7   :  { %5697 = vpow2.f32 %v4926_v6  ;;  %v9517_v1 = vadd.f32 %v9483_v55, %v4468_v49  ;;  %v4448_v41 = vmul.f32 %v5682_v60, %v9426_v46  ;;  %v5867_v49 = vld [vmem:[#allocation2] sm:$0xff] }
 0x6d8   :  { %v4927_v4 = vmul.f32 -1.442695, %v9513_v35  ;;  %v4469_v22 = vmul.f32 %v9477_v33, %v4447_v44 }
 0x6d9   :  { %v5684_v27 = vpop.eup %5683  ;;  %v4928_v43 = vmul.f32 -1.442695, %v9517_v1  ;;  %v4470_v8 = vmul.f32 %v9477_v33, %v4448_v41 }
 0x6da   :  { %v5686_v36 = vpop.eup %5685  ;;  %5699 = vpow2.f32 %v4927_v4  ;;  %v9525_v17 = vadd.f32 %v9483_v55, %v4469_v22  ;;  %v4449_v57 = vmul.f32 %v5684_v27, %v9431_v7  ;;  %v5868_v4 = vld [vmem:[#allocation2 + $0x8] sm:$0xff] }
 0x6db   :  { %5701 = vpow2.f32 %v4928_v43  ;;  %v9529_v34 = vadd.f32 %v9483_v55, %v4470_v8  ;;  %v4450_v46 = vmul.f32 %v5686_v36, %v9436_v40 }
 0x6dc   :  { %v5688_v21 = vpop.eup %5687  ;;  %v4929_v56 = vmul.f32 -1.442695, %v9525_v17  ;;  %v4471_v16 = vmul.f32 %v9477_v33, %v4449_v57  ;;  %v5869_v57 = vld [vmem:[#allocation2 + $0x10] sm:$0xff] }
 0x6dd   :  { %v5690_v31 = vpop.eup %5689  ;;  %v4549_v59 = vadd.f32 1.0, %v5688_v21  ;;  %v4930_v32 = vmul.f32 -1.442695, %v9529_v34  ;;  %v4472_v38 = vmul.f32 %v9477_v33, %v4450_v46 }
 0x6de   :  { %v5692_v14 = vpop.eup %5691  ;;  %v4550_v37 = vadd.f32 1.0, %v5690_v31  ;;  %5703 = vpow2.f32 %v4929_v56  ;;  %v9537_v7 = vadd.f32 %v9483_v55, %v4471_v16 }
 0x6df   :  { %v5694_v28 = vpop.eup %5693  ;;  %5705 = vrcp.f32 %v4549_v59  ;;  %v9540_v40 = vadd.f32 %v9483_v55, %v4472_v38  ;;  %v4453_v3 = vmul.f32 %v5692_v14, %v9441_v50  ;;  %v5870_v59 = vld [vmem:[#allocation2 + $0x18] sm:$0xff] }
 0x6e0   :  { %v5696_v51 = vpop.eup %5695  ;;  %5707 = vrcp.f32 %v4550_v37  ;;  %v4931_v53 = vmul.f32 -1.442695, %v9537_v7  ;;  %v4454_v11 = vmul.f32 %v5694_v28, %v9446_v9 }
 0x6e1   :  { %v5698_v12 = vpop.eup %5697  ;;  %v4551_v29 = vadd.f32 1.0, %v5696_v51  ;;  %5709 = vpow2.f32 %v4930_v32  ;;  %v4932_v20 = vmul.f32 -1.442695, %v9540_v40  ;;  %v4475_v30 = vmul.f32 %v9477_v33, %v4453_v3 }
 0x6e2   :  { %v4552_v42 = vadd.f32 1.0, %v5698_v12  ;;  %5711 = vpow2.f32 %v4931_v53  ;;  %v4476_v48 = vmul.f32 %v9477_v33, %v4454_v11  ;;  %v5871_v53 = vld [vmem:[#allocation2 + $0x20] sm:$0xff] }
 0x6e3   :  { %5713 = vrcp.f32 %v4551_v29  ;;  %v9549_v50 = vadd.f32 %v9483_v55, %v4475_v30 }
 0x6e4   :  { %v5700_v19 = vpop.eup %5699  ;;  %5715 = vrcp.f32 %v4552_v42  ;;  %v9552_v47 = vadd.f32 %v9483_v55, %v4476_v48 }
 0x6e5   :  { %v5702_v9 = vpop.eup %5701  ;;  %v4553_v61 = vadd.f32 1.0, %v5700_v19  ;;  %5717 = vpow2.f32 %v4932_v20  ;;  %v4935_v26 = vmul.f32 -1.442695, %v9549_v50  ;;  %v5872_v20 = vld [vmem:[#allocation2 + $0x28] sm:$0xff]  ;;  %v5873_v19 = vld [vmem:[#allocation2 + $0x30] sm:$0xff] }
 0x6e6   :  { %v4554_v10 = vadd.f32 1.0, %v5702_v9  ;;  %v4936_v18 = vmul.f32 -1.442695, %v9552_v47 }
 0x6e7   :  { %5719 = vrcp.f32 %v4553_v61 }
 0x6e8   :  { %v5704_v15 = vpop.eup %5703  ;;  %5721 = vrcp.f32 %v4554_v10  ;;  %v5874_v10 = vld [vmem:[#allocation2 + $0x38] sm:$0xff] }
 0x6e9   :  { %v5706_v23 = vpop.eup %5705  ;;  %v4555_v0 = vadd.f32 1.0, %v5704_v15  ;;  %5723 = vpow2.f32 %v4935_v26 }
 0x6ea   :  { %v5708_v52 = vpop.eup %5707  ;;  %v4597_v54 = vmul.f32 %v5706_v23, %v9489_v63  ;;  %5725 = vpow2.f32 %v4936_v18  ;;  %v5875_v23 = vld [vmem:[#allocation2 + $0x40] sm:$0xff] }
 0x6eb   :  { %v5710_v5 = vpop.eup %5709  ;;  %v4598_v13 = vmul.f32 %v5708_v52, %v9493_v45  ;;  %5727 = vrcp.f32 %v4555_v0 }
 0x6ec   :  { %v5712_v6 = vpop.eup %5711  ;;  %v4613_v60 = vadd.f32 %v5867_v49, %v4597_v54  ;;  %v4556_v44 = vadd.f32 1.0, %v5710_v5  ;;  %v5876_v5 = vld [vmem:[#allocation2 + $0x48] sm:$0xff] }
 0x6ed   :  { %v5714_v41 = vpop.eup %5713  ;;  %v4614_v22 = vadd.f32 %v5868_v4, %v4598_v13  ;;  %v4557_v27 = vadd.f32 1.0, %v5712_v6  ;;  %v5877_v4 = vld [vmem:[#allocation2 + $0x60] sm:$0xff] }
 0x6ee   :  { %v5716_v43 = vpop.eup %5715  ;;  %4629 = vst [vmem:[#allocation5] sm:$0xff] %v4613_v60  ;;  %v4599_v8 = vmul.f32 %v5714_v41, %v9501_v2  ;;  %5729 = vrcp.f32 %v4556_v44 }
 0x6ef   :  { %v5718_v36 = vpop.eup %5717  ;;  %4630 = vst [vmem:[#allocation5 + $0x8] sm:$0xff] %v4614_v22  ;;  %v4600_v63 = vmul.f32 %v5716_v43, %v9505_v24  ;;  %5731 = vrcp.f32 %v4557_v27  ;;  %v4382_v45 = vpop.xlane.xlu1 %4381  ;;  %v5878_v43 = vld [vmem:[#allocation2 + $0x68] sm:$0xff] }
 0x6f0   :  { %v4615_v46 = vadd.f32 %v5869_v57, %v4599_v8  ;;  %v4558_v21 = vadd.f32 1.0, %v5718_v36  ;;  %v4403_v56 = vmul.f32 0.0078125, %v4382_v45  ;;  %v4384_v16 = vpop.xlane.xlu0 %4383 }
 0x6f1   :  { %v5720_v31 = vpop.eup %5719  ;;  %v4616_v32 = vadd.f32 %v5870_v59, %v4600_v63  ;;  %v4404_v38 = vmul.f32 0.0078125, %v4384_v16  ;;  %v5879_v16 = vld [vmem:[#allocation2 + $0x50] sm:$0xff]  ;;  %v5880_v59 = vld [vmem:[#allocation2 + $0x58] sm:$0xff] }
 0x6f2   :  { %v5722_v14 = vpop.eup %5721  ;;  %4631 = vst [vmem:[#allocation5 + $0x10] sm:$0xff] %v4615_v46  ;;  %v4601_v2 = vmul.f32 %v5720_v31, %v9513_v35  ;;  %5733 = vrcp.f32 %v4558_v21  ;;  %v4419_v37 = vadd.f32 1e-05, %v4403_v56 }
 0x6f3   :  { %v5724_v28 = vpop.eup %5723  ;;  %4632 = vst [vmem:[#allocation5 + $0x18] sm:$0xff] %v4616_v32  ;;  %v4602_v24 = vmul.f32 %v5722_v14, %v9517_v1  ;;  %v4420_v3 = vadd.f32 1e-05, %v4404_v38 }
 0x6f4   :  { %v5726_v51 = vpop.eup %5725  ;;  %v4617_v11 = vadd.f32 %v5871_v53, %v4601_v2  ;;  %v4561_v12 = vadd.f32 1.0, %v5724_v28  ;;  %5735 = vrsqrt.f32 %v4419_v37 }
 0x6f5   :  { %v5728_v29 = vpop.eup %5727  ;;  %v4618_v30 = vadd.f32 %v5872_v20, %v4602_v24  ;;  %v4562_v42 = vadd.f32 1.0, %v5726_v51  ;;  %5737 = vrsqrt.f32 %v4420_v3 }
 0x6f6   :  { %4633 = vst [vmem:[#allocation5 + $0x20] sm:$0xff] %v4617_v11  ;;  %v4603_v35 = vmul.f32 %v5728_v29, %v9525_v17  ;;  %5739 = vrcp.f32 %v4561_v12 }
 0x6f7   :  { %4634 = vst [vmem:[#allocation5 + $0x28] sm:$0xff] %v4618_v30  ;;  %5741 = vrcp.f32 %v4562_v42 }
 0x6f8   :  { %v5730_v48 = vpop.eup %5729  ;;  %v4619_v1 = vadd.f32 %v5873_v19, %v4603_v35 }
 0x6f9   :  { %v5732_v9 = vpop.eup %5731  ;;  %v4604_v61 = vmul.f32 %v5730_v48, %v9529_v34 }
 0x6fa   :  { %4635 = vst [vmem:[#allocation5 + $0x30] sm:$0xff] %v4619_v1  ;;  %v4605_v26 = vmul.f32 %v5732_v9, %v9537_v7 }
 0x6fb   :  { %v4620_v18 = vadd.f32 %v5874_v10, %v4604_v61 }
 0x6fc   :  { %v5734_v15 = vpop.eup %5733  ;;  %v4621_v0 = vadd.f32 %v5875_v23, %v4605_v26  ;;  %v5881_v26 = vld [vmem:[#allocation2 + $0x70] sm:$0xff] }
 0x6fd   :  { %4636 = vst [vmem:[#allocation5 + $0x38] sm:$0xff] %v4620_v18  ;;  %v4606_v17 = vmul.f32 %v5734_v15, %v9540_v40  ;;  %v5882_v18 = vld [vmem:[#allocation2 + $0x78] sm:$0xff] }
 0x6fe   :  { %v5736_v52 = vpop.eup %5735  ;;  %4637 = vst [vmem:[#allocation5 + $0x40] sm:$0xff] %v4621_v0 }
 0x6ff   :  { %v5738_v54 = vpop.eup %5737  ;;  %v4622_v13 = vadd.f32 %v5876_v5, %v4606_v17  ;;  %v4451_v6 = vmul.f32 %v5736_v52, %v9455_v62 }
 0x700   :  { %v5740_v49 = vpop.eup %5739  ;;  %v4452_v34 = vmul.f32 %v5738_v54, %v9458_v58 }
 0x701   :  { %v5742_v60 = vpop.eup %5741  ;;  %4638 = vst [vmem:[#allocation5 + $0x48] sm:$0xff] %v4622_v13  ;;  %v4609_v7 = vmul.f32 %v5740_v49, %v9549_v50  ;;  %v4473_v44 = vmul.f32 %v9477_v33, %v4451_v6 }
 0x702   :  { %v4610_v41 = vmul.f32 %v5742_v60, %v9552_v47  ;;  %v4474_v40 = vmul.f32 %v9477_v33, %v4452_v34 }
 0x703   :  { %v4625_v22 = vadd.f32 %v5877_v4, %v4609_v7  ;;  %v4495_v27 = vadd.f32 %v9483_v55, %v4473_v44 }
 0x704   :  { %v4626_v8 = vadd.f32 %v5878_v43, %v4610_v41  ;;  %v4496_v62 = vadd.f32 %v9483_v55, %v4474_v40 }
 0x705   :  { %4641 = vst [vmem:[#allocation5 + $0x60] sm:$0xff] %v4625_v22  ;;  %v4933_v58 = vmul.f32 -1.442695, %v4495_v27 }
 0x706   :  { %4642 = vst [vmem:[#allocation5 + $0x68] sm:$0xff] %v4626_v8  ;;  %v4934_v36 = vmul.f32 -1.442695, %v4496_v62 }
 0x707   :  { %5743 = vpow2.f32 %v4933_v58 }
 0x708   :  { %5745 = vpow2.f32 %v4934_v36 }
 0x711   :  { %v5744_v50 = vpop.eup %5743 }
 0x712   :  { %v5746_v63 = vpop.eup %5745  ;;  %v4559_v45 = vadd.f32 1.0, %v5744_v50 }
 0x713   :  { %v4560_v47 = vadd.f32 1.0, %v5746_v63 }
 0x714   :  { %5747 = vrcp.f32 %v4559_v45 }
 0x715   :  { %5749 = vrcp.f32 %v4560_v47 }
 0x71e   :  { %v5748_v57 = vpop.eup %5747 }
 0x71f   :  { %v5750_v46 = vpop.eup %5749  ;;  %v4607_v21 = vmul.f32 %v5748_v57, %v4495_v27 }
 0x720   :  { %v4608_v56 = vmul.f32 %v5750_v46, %v4496_v62 }
 0x721   :  { %v4623_v31 = vadd.f32 %v5879_v16, %v4607_v21 }
 0x722   :  { %v4624_v32 = vadd.f32 %v5880_v59, %v4608_v56 }
 0x723   :  { %4639 = vst [vmem:[#allocation5 + $0x50] sm:$0xff] %v4623_v31 }
 0x724   :  { %4640 = vst [vmem:[#allocation5 + $0x58] sm:$0xff] %v4624_v32 }
 0x74a   :  { %v4390_v38 = vpop.xlane.xlu1 %4389 }
 0x74b   :  { %v4407_v14 = vmul.f32 0.0078125, %v4390_v38  ;;  %v4392_v2 = vpop.xlane.xlu0 %4391 }
 0x74c   :  { %v4408_v37 = vmul.f32 0.0078125, %v4392_v2 }
 0x74d   :  { %v4423_v28 = vadd.f32 1e-05, %v4407_v14 }
 0x74e   :  { %v4424_v24 = vadd.f32 1e-05, %v4408_v37 }
 0x74f   :  { %5751 = vrsqrt.f32 %v4423_v28 }
 0x750   :  { %5753 = vrsqrt.f32 %v4424_v24 }
 0x759   :  { %v5752_v3 = vpop.eup %5751 }
 0x75a   :  { %v5754_v51 = vpop.eup %5753  ;;  %v4455_v53 = vmul.f32 %v5752_v3, %v9465_v25 }
 0x75b   :  { %v4456_v11 = vmul.f32 %v5754_v51, %v9468_v39 }
 0x75c   :  { %v4477_v12 = vmul.f32 %v9477_v33, %v4455_v53 }
 0x75d   :  { %v4478_v29 = vmul.f32 %v9477_v33, %v4456_v11 }
 0x75e   :  { %v4499_v20 = vadd.f32 %v9483_v55, %v4477_v12 }
 0x75f   :  { %v4500_v30 = vadd.f32 %v9483_v55, %v4478_v29 }
 0x760   :  { %v4937_v42 = vmul.f32 -1.442695, %v4499_v20 }
 0x761   :  { %v4938_v35 = vmul.f32 -1.442695, %v4500_v30 }
 0x762   :  { %5755 = vpow2.f32 %v4937_v42 }
 0x763   :  { %5757 = vpow2.f32 %v4938_v35 }
 0x76c   :  { %v5756_v48 = vpop.eup %5755 }
 0x76d   :  { %v5758_v19 = vpop.eup %5757  ;;  %v4563_v1 = vadd.f32 1.0, %v5756_v48 }
 0x76e   :  { %v4564_v9 = vadd.f32 1.0, %v5758_v19 }
 0x76f   :  { %5759 = vrcp.f32 %v4563_v1 }
 0x770   :  { %5761 = vrcp.f32 %v4564_v9 }
 0x779   :  { %v5760_v25 = vpop.eup %5759 }
 0x77a   :  { %v5762_v39 = vpop.eup %5761  ;;  %v4611_v61 = vmul.f32 %v5760_v25, %v4499_v20 }
 0x77b   :  { %v4612_v33 = vmul.f32 %v5762_v39, %v4500_v30 }
 0x77c   :  { %v4627_v10 = vadd.f32 %v5881_v26, %v4611_v61 }
 0x77d   :  { %v4628_v55 = vadd.f32 %v5882_v18, %v4612_v33 }
 0x77e   :  { %4643 = vst [vmem:[#allocation5 + $0x70] sm:$0xff] %v4627_v10 }
 0x77f   :  { %4644 = vst [vmem:[#allocation5 + $0x78] sm:$0xff] %v4628_v55 }
 0x780   :  { %5916 = shalt.err (!%p5913_p12)
}
 0x781   :  { %s5917_s9 = scalar_lea.hbm %s9608_s13, 2048 }
 0x782   :  { %p5918_p13 = scmp.ne.s32.totalorder %s9608_s13, %s5917_s9  ;;  %p5921_p0 = scmp.lt.u32.totalorder %s5917_s9, %s9608_s13 }
 0x784   :  { %p5923_p1 = pnand %p5921_p0, %p5918_p13 }
 0x786   :  { %5926 = shalt.err (!%p5923_p1)
}
 0x787   :  { %4656 = dma.vmem_to_hbm [thread:$0]  %s4651_s4, 2048, %s9608_s13, [#allocation4], %s5932_s18, %s5932_s18, %s5933_s19  }
 0x788   :  { %5929 = dma.done.wait [#allocation4], 2048  }
 0x789   :  { %5930 = vsyncadd [#allocation4], 4294965248 }
 0x78a   :  { %4660 = vsyncpa [#allocation3], 1 }
 0x78b   :  { %4661 = vsyncpa [#allocation4], 1 }

</bundles_post_ra>
